<compile_context>
chip_gen: v7x
topology: tpu7x:2x2x1
jax: 0.10.0
libtpu: 0.0.40
codegen_flags: <defaults>
</compile_context>

<pallas_src>
import functools

import numpy as np
import jax
import jax.numpy as jnp
from jax import lax
from jax.experimental import pallas as pl
from jax.experimental.pallas import tpu as pltpu

LRELU_SLOPE = 0.01
BN_EPS = 1e-5


def _round_up(x, m):
    return ((x + m - 1) // m) * m


# --------------------------- fused MLP (linear) kernel ---------------------------
def _mlp_kernel(z_ref, xt_ref, w1z_ref, w1x_ref, b1_ref, w2_ref, b2_ref, o_ref):
    # mean over sequence axis (torch.mean(x_target, dim=1))
    xm = jnp.mean(xt_ref[...], axis=1)  # (B, x_dim)
    # cat([z, xm], 1) @ W1  ==  z @ W1[:z_dim] + xm @ W1[z_dim:]
    h = (jnp.dot(z_ref[...], w1z_ref[...], preferred_element_type=jnp.float32)
         + jnp.dot(xm, w1x_ref[...], preferred_element_type=jnp.float32)
         + b1_ref[...])
    h = jnp.where(h > 0, h, LRELU_SLOPE * h)
    out = jnp.dot(h, w2_ref[...], preferred_element_type=jnp.float32) + b2_ref[...]
    out = jnp.where(out > 0, out, LRELU_SLOPE * out)
    o_ref[...] = out


def mlp_forward(z, xt, w1z, w1x, b1, w2, b2):
    B = z.shape[0]
    P = w2.shape[1]
    return pl.pallas_call(
        _mlp_kernel,
        out_shape=jax.ShapeDtypeStruct((B, P), jnp.float32),
    )(z, xt, w1z, w1x, b1, w2, b2)


# --------- phase-folded (upsample2x + ConvTranspose3d + affine + act) kernel -----
def _make_phase_conv_kernel(cin, cing, coutg, cout, Dq, LHW_pad, P, activation, td):
    """Kernel for one (batch, phase) grid point.

    x_ref : (cin, Dp, Lin_pad)       zero-padded pre-upsample volume, HW flattened
                                     with row pitch P = W+2, zero padded on lanes.
    o_ref : (cout, Dq, LHW_pad)      this phase's output, row pitch P (lane padded).
    w_ref : SMEM, flat (8, cout, cing, 8) phase-folded 2x2x2 weights.
    """
    tap_count = cout * cing * 8

    # static output-depth tiles (sublane-packed, td <= 8)
    tiles = []
    d0 = 0
    while d0 < Dq:
        tiles.append((d0, min(td, Dq - d0)))
        d0 += td

    def kernel(w_ref, scale_ref, shift_ref, x_ref, o_ref):
        phase = pl.program_id(1)
        wbase = phase * tap_count
        # hoist all scalar reads for this phase (<= 32 weights, <= 2 scale/shift)
        wv = [[[w_ref[wbase + (co * cing + cil) * 8 + t] for t in range(8)]
               for cil in range(cing)] for co in range(cout)]
        sv = [scale_ref[co] for co in range(cout)]
        tv = [shift_ref[co] for co in range(cout)]

        for (dd, tdl) in tiles:
            accs = [jnp.zeros((tdl, LHW_pad), jnp.float32) for _ in range(cout)]
            for ci in range(cin):
                g = ci // cing
                cil = ci % cing
                co_list = [g * coutg + col for col in range(coutg)]
                for eh in range(2):
                    for ew in range(2):
                        off = eh * P + ew
                        # one lane-shifted window, reused for both depth taps and
                        # every output channel in this group
                        win = x_ref[ci, dd:dd + tdl + 1, off:off + LHW_pad]
                        for ed in range(2):
                            op = win[ed:ed + tdl, :]
                            tap = (ed * 2 + eh) * 2 + ew
                            for co in co_list:
                                accs[co] = accs[co] + wv[co][cil][tap] * op
            for co in range(cout):
                a = accs[co] * sv[co] + tv[co]
                if activation == "lrelu":
                    a = jnp.where(a > 0, a, LRELU_SLOPE * a)
                elif activation == "sigmoid":
                    a = jax.nn.sigmoid(a)
                o_ref[co, dd:dd + tdl, :] = a

    return kernel


def phase_convT_up2(x, weight, scale, shift, groups, activation):
    """nearest-2x upsample -> ConvTranspose3d(k=3, s=1, p=0) -> affine -> act,
    computed as 8 phase-folded 2x2x2 correlations over the pre-upsample grid."""
    B, cin, D, H, W = x.shape
    coutg = weight.shape[1]
    cout = groups * coutg
    cing = cin // groups
    Dq, Hq, Wq = D + 1, H + 1, W + 1          # per-phase output dims
    Dp, Hp, Wp = D + 2, H + 2, W + 2          # zero-padded input dims
    P = Wp                                     # common flat row pitch
    LHW = Hq * P
    LHW_pad = _round_up(LHW, 128)              # lane-dense output width
    Lin_pad = _round_up(LHW_pad + P + 1, 128)  # covers max in-kernel lane offset

    # phase-folded weights: Kp[0] = [W1+W2, W0], Kp[1] = [W2, W0+W1] per axis
    A = jnp.array([[[0., 1., 1.], [1., 0., 0.]],
                   [[0., 0., 1.], [1., 1., 0.]]], dtype=jnp.float32)
    wph = jnp.einsum("aek,bfl,cgm,ioklm->abcioefg", A, A, A,
                     weight.astype(jnp.float32), precision=lax.Precision.HIGHEST)
    # (pd,ph,pw, ci, coutg, ed,eh,ew) -> flat (8, cout, cing, 8)
    wph = wph.reshape(8, groups, cing, coutg, 8).transpose(0, 1, 3, 2, 4).reshape(-1)

    # zero-pad by 1, flatten HW with pitch P, lane-pad with zeros
    xp = jnp.pad(x.astype(jnp.float32), ((0, 0), (0, 0), (1, 1), (1, 1), (1, 1)))
    xf = xp.reshape(B, cin, Dp, Hp * Wp)
    xf = jnp.pad(xf, ((0, 0), (0, 0), (0, 0), (0, Lin_pad - Hp * Wp)))

    td = min(8, Dq)
    kernel = _make_phase_conv_kernel(cin, cing, coutg, cout, Dq, LHW_pad, P,
                                     activation, td)
    smem = pl.BlockSpec(memory_space=pltpu.MemorySpace.SMEM)
    out = pl.pallas_call(
        kernel,
        grid=(B, 8),
        in_specs=[smem, smem, smem,
                  pl.BlockSpec((None, cin, Dp, Lin_pad), lambda b, p: (b, 0, 0, 0))],
        out_specs=pl.BlockSpec((None, None, cout, Dq, LHW_pad),
                               lambda b, p: (b, p, 0, 0, 0)),
        out_shape=jax.ShapeDtypeStruct((B, 8, cout, Dq, LHW_pad), jnp.float32),
        compiler_params=pltpu.CompilerParams(
            dimension_semantics=("parallel", "parallel")),
    )(wph, scale.astype(jnp.float32), shift.astype(jnp.float32), xf)

    # interleave the 8 phases: out_full[co, 2qd+pd, 2qh+ph, 2qw+pw] (small XLA pass)
    o = out[..., :LHW].reshape(B, 2, 2, 2, cout, Dq, Hq, P)[..., :Wq]
    o = o.transpose(0, 4, 5, 1, 6, 2, 7, 3).reshape(B, cout, 2 * Dq, 2 * Hq, 2 * Wq)
    return o


# ------------------------------------- glue --------------------------------------
def nearest_resize(x, out_spatial):
    B, C, D, H, W = x.shape
    Do, Ho, Wo = out_spatial
    if (Do, Ho, Wo) == (D, H, W):
        return x
    di = jnp.floor(jnp.arange(Do) * (D / Do)).astype(jnp.int32)
    hi = jnp.floor(jnp.arange(Ho) * (H / Ho)).astype(jnp.int32)
    wi = jnp.floor(jnp.arange(Wo) * (W / Wo)).astype(jnp.int32)
    return x[:, :, di][:, :, :, hi][:, :, :, :, wi]


def decoder_forward(params, z_sample, x_target, cnn_feature_num, factor, y_spatial):
    B = x_target.shape[0]
    h = mlp_forward(z_sample, x_target, params["w1z"], params["w1x"], params["b1"],
                    params["w2"], params["b2"])
    v = h.reshape(B, cnn_feature_num[0], cnn_feature_num[1],
                  cnn_feature_num[2], cnn_feature_num[3])

    # Fold conv bias into the eval-mode BN shift: (conv+b)*s + t == conv*s + (t + b*s)
    s1 = params["bn1_scale"]; t1 = params["bn1_shift"] + params["b_c1"] * s1
    s2 = params["bn2_scale"]; t2 = params["bn2_shift"] + params["b_c2"] * s2
    s3 = params["bn3_scale"]; t3 = params["bn3_shift"] + params["b_c3"] * s3
    ones_last = jnp.ones_like(params["b_c4"])

    v = phase_convT_up2(v, params["w_c1"], s1, t1, groups=1, activation="lrelu")
    v = phase_convT_up2(v, params["w_c2"], s2, t2, groups=factor, activation="lrelu")
    v = phase_convT_up2(v, params["w_c3"], s3, t3, groups=factor, activation="lrelu")
    v = phase_convT_up2(v, params["w_c4"], ones_last, params["b_c4"],
                        groups=1, activation="sigmoid")
    # final F.interpolate(scale=y/d_out_1) — nearest gather commutes with sigmoid
    return nearest_resize(v, y_spatial)


# ---------------------------- pure-JAX reference (check) -------------------------
def reference_forward(params, z_sample, x_target, cnn_feature_num, factor, y_spatial):
    hi = lax.Precision.HIGHEST
    xm = jnp.mean(x_target, axis=1)
    zx = jnp.concatenate([z_sample, xm], axis=1)
    W1 = jnp.concatenate([params["w1z"], params["w1x"]], axis=0)
    h = jnp.dot(zx, W1, precision=hi) + params["b1"]
    h = jnp.where(h > 0, h, LRELU_SLOPE * h)
    h = jnp.dot(h, params["w2"], precision=hi) + params["b2"]
    h = jnp.where(h > 0, h, LRELU_SLOPE * h)
    B = x_target.shape[0]
    v = h.reshape(B, cnn_feature_num[0], cnn_feature_num[1],
                  cnn_feature_num[2], cnn_feature_num[3])

    def up2(x):
        x = jnp.repeat(x, 2, axis=2)
        x = jnp.repeat(x, 2, axis=3)
        return jnp.repeat(x, 2, axis=4)

    def ref_convT(x, w, b, groups):
        wf = jnp.flip(w, axis=(2, 3, 4))
        rhs = jnp.transpose(wf, (1, 0, 2, 3, 4)) if groups == 1 else wf
        out = lax.conv_general_dilated(
            x, rhs, (1, 1, 1), [(2, 2)] * 3,
            dimension_numbers=("NCDHW", "OIDHW", "NCDHW"),
            feature_group_count=groups, precision=hi)
        return out + b.reshape(1, -1, 1, 1, 1)

    def bn(x, scale, shift):
        return x * scale.reshape(1, -1, 1, 1, 1) + shift.reshape(1, -1, 1, 1, 1)

    def lrelu(x):
        return jnp.where(x > 0, x, LRELU_SLOPE * x)

    v = lrelu(bn(ref_convT(up2(v), params["w_c1"], params["b_c1"], 1),
                 params["bn1_scale"], params["bn1_shift"]))
    v = lrelu(bn(ref_convT(up2(v), params["w_c2"], params["b_c2"], factor),
                 params["bn2_scale"], params["bn2_shift"]))
    v = lrelu(bn(ref_convT(up2(v), params["w_c3"], params["b_c3"], factor),
                 params["bn3_scale"], params["bn3_shift"]))
    v = ref_convT(up2(v), params["w_c4"], params["b_c4"], 1)
    return jax.nn.sigmoid(nearest_resize(v, y_spatial))


# ------------------------------------- main ---------------------------------------
if __name__ == "__main__":
    # module config (small synthetic shapes)
    B, T, x_dim = 2, 8, 6          # x_target: (B, T, x_dim)
    z_dim = 10
    cnn_feature_num = (1, 2, 2, 2)  # args.cnn_feature_num; prod = 8
    factor = 2                      # args.m
    # spatial chain: 2 ->x2-> 4 ->conv-> 6 ->x2-> 12 ->conv-> 14 ->x2-> 28 ->conv-> 30
    #                  ->x2-> 60 ->conv-> 62 ; y spatial chosen = 62 so scaling == 1
    y_spatial = (62, 62, 62)

    key = jax.random.PRNGKey(0)
    ks = jax.random.split(key, 25)

    def rnd(k, shape, scale=0.1):
        return scale * jax.random.normal(k, shape, dtype=jnp.float32)

    P = int(np.prod(cnn_feature_num))
    params = {
        # Linear(z_dim + x_dim, 50): stored (in, out) for matmul
        "w1z": rnd(ks[0], (z_dim, 50)),
        "w1x": rnd(ks[1], (x_dim, 50)),
        "b1": rnd(ks[2], (1, 50)),
        # Linear(50, prod(cnn_feature_num))
        "w2": rnd(ks[3], (50, P)),
        "b2": rnd(ks[4], (1, P)),
        # ConvTranspose3d weights in torch layout (in_ch, out_ch // groups, 3, 3, 3)
        "w_c1": rnd(ks[5], (1, factor, 3, 3, 3)),
        "b_c1": rnd(ks[6], (factor,)),
        "w_c2": rnd(ks[7], (factor, 1, 3, 3, 3)),
        "b_c2": rnd(ks[8], (factor,)),
        "w_c3": rnd(ks[9], (factor, 1, 3, 3, 3)),
        "b_c3": rnd(ks[10], (factor,)),
        "w_c4": rnd(ks[11], (factor, 1, 3, 3, 3)),
        "b_c4": rnd(ks[12], (1,)),
    }
    # BatchNorm3d (eval mode): fold running stats + affine into scale/shift
    for i, (kg, kb, km, kv) in enumerate(
            [(13, 14, 15, 16), (17, 18, 19, 20), (21, 22, 23, 24)], 1):
        gamma = 1.0 + rnd(ks[kg], (factor,))
        beta = rnd(ks[kb], (factor,))
        rmean = rnd(ks[km], (factor,))
        rvar = 1.0 + jnp.abs(rnd(ks[kv], (factor,)))
        scale = gamma / jnp.sqrt(rvar + BN_EPS)
        shift = beta - rmean * scale
        params[f"bn{i}_scale"] = scale
        params[f"bn{i}_shift"] = shift

    ki1, ki2 = jax.random.split(jax.random.PRNGKey(1))
    z_sample = jax.random.normal(ki1, (B, z_dim), dtype=jnp.float32)
    x_target = jax.random.normal(ki2, (B, T, x_dim), dtype=jnp.float32)

    fwd = jax.jit(functools.partial(
        decoder_forward, cnn_feature_num=cnn_feature_num,
        factor=factor, y_spatial=y_spatial))
    ref = jax.jit(functools.partial(
        reference_forward, cnn_feature_num=cnn_feature_num,
        factor=factor, y_spatial=y_spatial))

    y_hat = jax.block_until_ready(fwd(params, z_sample, x_target))

    assert y_hat.shape == (B, 1) + y_spatial
    assert bool(jnp.all(jnp.isfinite(y_hat)))

    y_ref = jax.block_until_ready(ref(params, z_sample, x_target))
    assert bool(jnp.allclose(y_hat, y_ref, rtol=1e-3, atol=1e-3))

    print("KERNEL_OK")
</pallas_src>

<mosaic_0001>
module attributes {stable_mosaic.version = 11 : i64} {
  func.func @_mlp_kernel(%arg0: memref<2x10xf32, #tpu.memory_space<vmem>>, %arg1: memref<2x8x6xf32, #tpu.memory_space<vmem>>, %arg2: memref<10x50xf32, #tpu.memory_space<vmem>>, %arg3: memref<6x50xf32, #tpu.memory_space<vmem>>, %arg4: memref<1x50xf32, #tpu.memory_space<vmem>>, %arg5: memref<50x8xf32, #tpu.memory_space<vmem>>, %arg6: memref<1x8xf32, #tpu.memory_space<vmem>>, %arg7: memref<2x8xf32, #tpu.memory_space<vmem>>) attributes {dimension_semantics = [], scalar_prefetch = 0 : i64, scratch_operands = 0 : i64, tpu.core_type = #tpu.core_type<tc>} {
    %c0 = arith.constant 0 : index
    %c0_0 = arith.constant 0 : index
    %c0_1 = arith.constant 0 : index
    %0 = vector.load %arg1[%c0, %c0_0, %c0_1] : memref<2x8x6xf32, #tpu.memory_space<vmem>>, vector<2x8x6xf32>
    %cst = arith.constant dense<0.000000e+00> : vector<2x6xf32>
    %1 = vector.multi_reduction <add>, %0, %cst [1] : vector<2x8x6xf32> to vector<2x6xf32>
    %cst_2 = arith.constant 8.000000e+00 : f32
    %2 = vector.broadcast %cst_2 : f32 to vector<2x6xf32>
    %3 = arith.divf %1, %2 : vector<2x6xf32>
    %c0_3 = arith.constant 0 : index
    %c0_4 = arith.constant 0 : index
    %4 = vector.load %arg0[%c0_3, %c0_4] : memref<2x10xf32, #tpu.memory_space<vmem>>, vector<2x10xf32>
    %c0_5 = arith.constant 0 : index
    %c0_6 = arith.constant 0 : index
    %5 = vector.load %arg2[%c0_5, %c0_6] : memref<10x50xf32, #tpu.memory_space<vmem>>, vector<10x50xf32>
    %cst_7 = arith.constant dense<0.000000e+00> : vector<2x50xf32>
    %6 = tpu.matmul %4, %5, %cst_7 {dimension_numbers = #tpu.dot_dimension_numbers<[1], [0], [0], [1], [0, 0, 1, 1], [], []>} : vector<2x10xf32>, vector<10x50xf32>, vector<2x50xf32> -> vector<2x50xf32>
    %c0_8 = arith.constant 0 : index
    %c0_9 = arith.constant 0 : index
    %7 = vector.load %arg3[%c0_8, %c0_9] : memref<6x50xf32, #tpu.memory_space<vmem>>, vector<6x50xf32>
    %cst_10 = arith.constant dense<0.000000e+00> : vector<2x50xf32>
    %8 = tpu.matmul %3, %7, %cst_10 {dimension_numbers = #tpu.dot_dimension_numbers<[1], [0], [0], [1], [0, 0, 1, 1], [], []>} : vector<2x6xf32>, vector<6x50xf32>, vector<2x50xf32> -> vector<2x50xf32>
    %9 = arith.addf %6, %8 : vector<2x50xf32>
    %c0_11 = arith.constant 0 : index
    %c0_12 = arith.constant 0 : index
    %10 = vector.load %arg4[%c0_11, %c0_12] : memref<1x50xf32, #tpu.memory_space<vmem>>, vector<1x50xf32>
    %11 = vector.broadcast %10 : vector<1x50xf32> to vector<2x50xf32>
    %12 = arith.addf %9, %11 : vector<2x50xf32>
    %cst_13 = arith.constant 0.000000e+00 : f32
    %13 = vector.broadcast %cst_13 : f32 to vector<2x50xf32>
    %14 = arith.cmpf ogt, %12, %13 : vector<2x50xf32>
    %cst_14 = arith.constant 0.00999999977 : f32
    %15 = vector.broadcast %cst_14 : f32 to vector<2x50xf32>
    %16 = arith.mulf %15, %12 : vector<2x50xf32>
    %17 = arith.select %14, %12, %16 : vector<2x50xi1>, vector<2x50xf32>
    %c0_15 = arith.constant 0 : index
    %c0_16 = arith.constant 0 : index
    %18 = vector.load %arg5[%c0_15, %c0_16] : memref<50x8xf32, #tpu.memory_space<vmem>>, vector<50x8xf32>
    %cst_17 = arith.constant dense<0.000000e+00> : vector<2x8xf32>
    %19 = tpu.matmul %17, %18, %cst_17 {dimension_numbers = #tpu.dot_dimension_numbers<[1], [0], [0], [1], [0, 0, 1, 1], [], []>} : vector<2x50xf32>, vector<50x8xf32>, vector<2x8xf32> -> vector<2x8xf32>
    %c0_18 = arith.constant 0 : index
    %c0_19 = arith.constant 0 : index
    %20 = vector.load %arg6[%c0_18, %c0_19] : memref<1x8xf32, #tpu.memory_space<vmem>>, vector<1x8xf32>
    %21 = vector.broadcast %20 : vector<1x8xf32> to vector<2x8xf32>
    %22 = arith.addf %19, %21 : vector<2x8xf32>
    %cst_20 = arith.constant 0.000000e+00 : f32
    %23 = vector.broadcast %cst_20 : f32 to vector<2x8xf32>
    %24 = arith.cmpf ogt, %22, %23 : vector<2x8xf32>
    %cst_21 = arith.constant 0.00999999977 : f32
    %25 = vector.broadcast %cst_21 : f32 to vector<2x8xf32>
    %26 = arith.mulf %25, %22 : vector<2x8xf32>
    %27 = arith.select %24, %22, %26 : vector<2x8xi1>, vector<2x8xf32>
    %c0_22 = arith.constant 0 : index
    %c0_23 = arith.constant 0 : index
    %28 = vector.load %arg7[%c0_22, %c0_23] : memref<2x8xf32, #tpu.memory_space<vmem>>, vector<2x8xf32>
    tpu.vector_store %arg7[%c0_22, %c0_23], %27 {strides = array<i32>} : memref<2x8xf32, #tpu.memory_space<vmem>>, vector<2x8xf32>,
    return
  }
}

module attributes {stable_mosaic.version = 11 : i64} {
  func.func @kernel(%arg0: i32, %arg1: i32, %arg2: memref<128xf32, #tpu.memory_space<smem>>, %arg3: memref<2xf32, #tpu.memory_space<smem>>, %arg4: memref<2xf32, #tpu.memory_space<smem>>, %arg5: memref<1x1x4x256xf32, #tpu.memory_space<vmem>>, %arg6: memref<1x1x2x3x128xf32, #tpu.memory_space<vmem>>) attributes {dimension_semantics = [#tpu.dimension_semantics<parallel>, #tpu.dimension_semantics<parallel>], iteration_bounds = array<i64: 2, 8>, scalar_prefetch = 0 : i64, scratch_operands = 0 : i64, tpu.core_type = #tpu.core_type<tc>, window_params = [{transform_indices = @transform_0, window_bounds = array<i64: 128>}, {transform_indices = @transform_1, window_bounds = array<i64: 2>}, {transform_indices = @transform_2, window_bounds = array<i64: 2>}, {transform_indices = @transform_3, window_bounds = array<i64: 1, 1, 4, 256>}, {transform_indices = @transform_4, window_bounds = array<i64: 1, 1, 2, 3, 128>}]} {
    %c16_i32 = arith.constant 16 : i32
    %0 = arith.muli %arg1, %c16_i32 : i32
    %c0_i32 = arith.constant 0 : i32
    %1 = arith.addi %0, %c0_i32 : i32
    %c0_i32_0 = arith.constant 0 : i32
    %2 = arith.addi %1, %c0_i32_0 : i32
    %3 = arith.index_cast %2 : i32 to index
    %4 = memref.load %arg2[%3] : memref<128xf32, #tpu.memory_space<smem>>
    %c0_i32_1 = arith.constant 0 : i32
    %5 = arith.addi %0, %c0_i32_1 : i32
    %c1_i32 = arith.constant 1 : i32
    %6 = arith.addi %5, %c1_i32 : i32
    %7 = arith.index_cast %6 : i32 to index
    %8 = memref.load %arg2[%7] : memref<128xf32, #tpu.memory_space<smem>>
    %c0_i32_2 = arith.constant 0 : i32
    %9 = arith.addi %0, %c0_i32_2 : i32
    %c2_i32 = arith.constant 2 : i32
    %10 = arith.addi %9, %c2_i32 : i32
    %11 = arith.index_cast %10 : i32 to index
    %12 = memref.load %arg2[%11] : memref<128xf32, #tpu.memory_space<smem>>
    %c0_i32_3 = arith.constant 0 : i32
    %13 = arith.addi %0, %c0_i32_3 : i32
    %c3_i32 = arith.constant 3 : i32
    %14 = arith.addi %13, %c3_i32 : i32
    %15 = arith.index_cast %14 : i32 to index
    %16 = memref.load %arg2[%15] : memref<128xf32, #tpu.memory_space<smem>>
    %c0_i32_4 = arith.constant 0 : i32
    %17 = arith.addi %0, %c0_i32_4 : i32
    %c4_i32 = arith.constant 4 : i32
    %18 = arith.addi %17, %c4_i32 : i32
    %19 = arith.index_cast %18 : i32 to index
    %20 = memref.load %arg2[%19] : memref<128xf32, #tpu.memory_space<smem>>
    %c0_i32_5 = arith.constant 0 : i32
    %21 = arith.addi %0, %c0_i32_5 : i32
    %c5_i32 = arith.constant 5 : i32
    %22 = arith.addi %21, %c5_i32 : i32
    %23 = arith.index_cast %22 : i32 to index
    %24 = memref.load %arg2[%23] : memref<128xf32, #tpu.memory_space<smem>>
    %c0_i32_6 = arith.constant 0 : i32
    %25 = arith.addi %0, %c0_i32_6 : i32
    %c6_i32 = arith.constant 6 : i32
    %26 = arith.addi %25, %c6_i32 : i32
    %27 = arith.index_cast %26 : i32 to index
    %28 = memref.load %arg2[%27] : memref<128xf32, #tpu.memory_space<smem>>
    %c0_i32_7 = arith.constant 0 : i32
    %29 = arith.addi %0, %c0_i32_7 : i32
    %c7_i32 = arith.constant 7 : i32
    %30 = arith.addi %29, %c7_i32 : i32
    %31 = arith.index_cast %30 : i32 to index
    %32 = memref.load %arg2[%31] : memref<128xf32, #tpu.memory_space<smem>>
    %c8_i32 = arith.constant 8 : i32
    %33 = arith.addi %0, %c8_i32 : i32
    %c0_i32_8 = arith.constant 0 : i32
    %34 = arith.addi %33, %c0_i32_8 : i32
    %35 = arith.index_cast %34 : i32 to index
    %36 = memref.load %arg2[%35] : memref<128xf32, #tpu.memory_space<smem>>
    %c8_i32_9 = arith.constant 8 : i32
    %37 = arith.addi %0, %c8_i32_9 : i32
    %c1_i32_10 = arith.constant 1 : i32
    %38 = arith.addi %37, %c1_i32_10 : i32
    %39 = arith.index_cast %38 : i32 to index
    %40 = memref.load %arg2[%39] : memref<128xf32, #tpu.memory_space<smem>>
    %c8_i32_11 = arith.constant 8 : i32
    %41 = arith.addi %0, %c8_i32_11 : i32
    %c2_i32_12 = arith.constant 2 : i32
    %42 = arith.addi %41, %c2_i32_12 : i32
    %43 = arith.index_cast %42 : i32 to index
    %44 = memref.load %arg2[%43] : memref<128xf32, #tpu.memory_space<smem>>
    %c8_i32_13 = arith.constant 8 : i32
    %45 = arith.addi %0, %c8_i32_13 : i32
    %c3_i32_14 = arith.constant 3 : i32
    %46 = arith.addi %45, %c3_i32_14 : i32
    %47 = arith.index_cast %46 : i32 to index
    %48 = memref.load %arg2[%47] : memref<128xf32, #tpu.memory_space<smem>>
    %c8_i32_15 = arith.constant 8 : i32
    %49 = arith.addi %0, %c8_i32_15 : i32
    %c4_i32_16 = arith.constant 4 : i32
    %50 = arith.addi %49, %c4_i32_16 : i32
    %51 = arith.index_cast %50 : i32 to index
    %52 = memref.load %arg2[%51] : memref<128xf32, #tpu.memory_space<smem>>
    %c8_i32_17 = arith.constant 8 : i32
    %53 = arith.addi %0, %c8_i32_17 : i32
    %c5_i32_18 = arith.constant 5 : i32
    %54 = arith.addi %53, %c5_i32_18 : i32
    %55 = arith.index_cast %54 : i32 to index
    %56 = memref.load %arg2[%55] : memref<128xf32, #tpu.memory_space<smem>>
    %c8_i32_19 = arith.constant 8 : i32
    %57 = arith.addi %0, %c8_i32_19 : i32
    %c6_i32_20 = arith.constant 6 : i32
    %58 = arith.addi %57, %c6_i32_20 : i32
    %59 = arith.index_cast %58 : i32 to index
    %60 = memref.load %arg2[%59] : memref<128xf32, #tpu.memory_space<smem>>
    %c8_i32_21 = arith.constant 8 : i32
    %61 = arith.addi %0, %c8_i32_21 : i32
    %c7_i32_22 = arith.constant 7 : i32
    %62 = arith.addi %61, %c7_i32_22 : i32
    %63 = arith.index_cast %62 : i32 to index
    %64 = memref.load %arg2[%63] : memref<128xf32, #tpu.memory_space<smem>>
    %c0 = arith.constant 0 : index
    %65 = memref.load %arg3[%c0] : memref<2xf32, #tpu.memory_space<smem>>
    %c1 = arith.constant 1 : index
    %66 = memref.load %arg3[%c1] : memref<2xf32, #tpu.memory_space<smem>>
    %c0_23 = arith.constant 0 : index
    %67 = memref.load %arg4[%c0_23] : memref<2xf32, #tpu.memory_space<smem>>
    %c1_24 = arith.constant 1 : index
    %68 = memref.load %arg4[%c1_24] : memref<2xf32, #tpu.memory_space<smem>>
    %cst = arith.constant 0.000000e+00 : f32
    %69 = vector.broadcast %cst : f32 to vector<3x128xf32>
    %cst_25 = arith.constant 0.000000e+00 : f32
    %70 = vector.broadcast %cst_25 : f32 to vector<3x128xf32>
    %c0_26 = arith.constant 0 : index
    %c0_27 = arith.constant 0 : index
    %c0_28 = arith.constant 0 : index
    %c0_29 = arith.constant 0 : index
    %71 = vector.load %arg5[%c0_26, %c0_27, %c0_28, %c0_29] : memref<1x1x4x256xf32, #tpu.memory_space<vmem>>, vector<1x1x4x128xf32>
    %72 = vector.shape_cast %71 : vector<1x1x4x128xf32> to vector<4x128xf32>
    %73 = vector.extract_strided_slice %72 {offsets = [0, 0], sizes = [3, 128], strides = [1, 1]} : vector<4x128xf32> to vector<3x128xf32>
    %74 = vector.broadcast %4 : f32 to vector<3x128xf32>
    %75 = arith.mulf %74, %73 : vector<3x128xf32>
    %76 = arith.addf %69, %75 : vector<3x128xf32>
    %77 = vector.broadcast %36 : f32 to vector<3x128xf32>
    %78 = arith.mulf %77, %73 : vector<3x128xf32>
    %79 = arith.addf %70, %78 : vector<3x128xf32>
    %80 = vector.extract_strided_slice %72 {offsets = [1, 0], sizes = [3, 128], strides = [1, 1]} : vector<4x128xf32> to vector<3x128xf32>
    %81 = vector.broadcast %20 : f32 to vector<3x128xf32>
    %82 = arith.mulf %81, %80 : vector<3x128xf32>
    %83 = arith.addf %76, %82 : vector<3x128xf32>
    %84 = vector.broadcast %52 : f32 to vector<3x128xf32>
    %85 = arith.mulf %84, %80 : vector<3x128xf32>
    %86 = arith.addf %79, %85 : vector<3x128xf32>
    %c0_30 = arith.constant 0 : index
    %c0_31 = arith.constant 0 : index
    %c0_32 = arith.constant 0 : index
    %c1_33 = arith.constant 1 : index
    %87 = vector.load %arg5[%c0_30, %c0_31, %c0_32, %c1_33] : memref<1x1x4x256xf32, #tpu.memory_space<vmem>>, vector<1x1x4x128xf32>
    %88 = vector.shape_cast %87 : vector<1x1x4x128xf32> to vector<4x128xf32>
    %89 = vector.extract_strided_slice %88 {offsets = [0, 0], sizes = [3, 128], strides = [1, 1]} : vector<4x128xf32> to vector<3x128xf32>
    %90 = vector.broadcast %8 : f32 to vector<3x128xf32>
    %91 = arith.mulf %90, %89 : vector<3x128xf32>
    %92 = arith.addf %83, %91 : vector<3x128xf32>
    %93 = vector.broadcast %40 : f32 to vector<3x128xf32>
    %94 = arith.mulf %93, %89 : vector<3x128xf32>
    %95 = arith.addf %86, %94 : vector<3x128xf32>
    %96 = vector.extract_strided_slice %88 {offsets = [1, 0], sizes = [3, 128], strides = [1, 1]} : vector<4x128xf32> to vector<3x128xf32>
    %97 = vector.broadcast %24 : f32 to vector<3x128xf32>
    %98 = arith.mulf %97, %96 : vector<3x128xf32>
    %99 = arith.addf %92, %98 : vector<3x128xf32>
    %100 = vector.broadcast %56 : f32 to vector<3x128xf32>
    %101 = arith.mulf %100, %96 : vector<3x128xf32>
    %102 = arith.addf %95, %101 : vector<3x128xf32>
    %c0_34 = arith.constant 0 : index
    %c0_35 = arith.constant 0 : index
    %c0_36 = arith.constant 0 : index
    %c4 = arith.constant 4 : index
    %103 = vector.load %arg5[%c0_34, %c0_35, %c0_36, %c4] : memref<1x1x4x256xf32, #tpu.memory_space<vmem>>, vector<1x1x4x128xf32>
    %104 = vector.shape_cast %103 : vector<1x1x4x128xf32> to vector<4x128xf32>
    %105 = vector.extract_strided_slice %104 {offsets = [0, 0], sizes = [3, 128], strides = [1, 1]} : vector<4x128xf32> to vector<3x128xf32>
    %106 = vector.broadcast %12 : f32 to vector<3x128xf32>
    %107 = arith.mulf %106, %105 : vector<3x128xf32>
    %108 = arith.addf %99, %107 : vector<3x128xf32>
    %109 = vector.broadcast %44 : f32 to vector<3x128xf32>
    %110 = arith.mulf %109, %105 : vector<3x128xf32>
    %111 = arith.addf %102, %110 : vector<3x128xf32>
    %112 = vector.extract_strided_slice %104 {offsets = [1, 0], sizes = [3, 128], strides = [1, 1]} : vector<4x128xf32> to vector<3x128xf32>
    %113 = vector.broadcast %28 : f32 to vector<3x128xf32>
    %114 = arith.mulf %113, %112 : vector<3x128xf32>
    %115 = arith.addf %108, %114 : vector<3x128xf32>
    %116 = vector.broadcast %60 : f32 to vector<3x128xf32>
    %117 = arith.mulf %116, %112 : vector<3x128xf32>
    %118 = arith.addf %111, %117 : vector<3x128xf32>
    %c0_37 = arith.constant 0 : index
    %c0_38 = arith.constant 0 : index
    %c0_39 = arith.constant 0 : index
    %c5 = arith.constant 5 : index
    %119 = vector.load %arg5[%c0_37, %c0_38, %c0_39, %c5] : memref<1x1x4x256xf32, #tpu.memory_space<vmem>>, vector<1x1x4x128xf32>
    %120 = vector.shape_cast %119 : vector<1x1x4x128xf32> to vector<4x128xf32>
    %121 = vector.extract_strided_slice %120 {offsets = [0, 0], sizes = [3, 128], strides = [1, 1]} : vector<4x128xf32> to vector<3x128xf32>
    %122 = vector.broadcast %16 : f32 to vector<3x128xf32>
    %123 = arith.mulf %122, %121 : vector<3x128xf32>
    %124 = arith.addf %115, %123 : vector<3x128xf32>
    %125 = vector.broadcast %48 : f32 to vector<3x128xf32>
    %126 = arith.mulf %125, %121 : vector<3x128xf32>
    %127 = arith.addf %118, %126 : vector<3x128xf32>
    %128 = vector.extract_strided_slice %120 {offsets = [1, 0], sizes = [3, 128], strides = [1, 1]} : vector<4x128xf32> to vector<3x128xf32>
    %129 = vector.broadcast %32 : f32 to vector<3x128xf32>
    %130 = arith.mulf %129, %128 : vector<3x128xf32>
    %131 = arith.addf %124, %130 : vector<3x128xf32>
    %132 = vector.broadcast %64 : f32 to vector<3x128xf32>
    %133 = arith.mulf %132, %128 : vector<3x128xf32>
    %134 = arith.addf %127, %133 : vector<3x128xf32>
    %135 = vector.broadcast %65 : f32 to vector<3x128xf32>
    %136 = arith.mulf %131, %135 : vector<3x128xf32>
    %137 = vector.broadcast %67 : f32 to vector<3x128xf32>
    %138 = arith.addf %136, %137 : vector<3x128xf32>
    %cst_40 = arith.constant 0.000000e+00 : f32
    %139 = vector.broadcast %cst_40 : f32 to vector<3x128xf32>
    %140 = arith.cmpf ogt, %138, %139 : vector<3x128xf32>
    %cst_41 = arith.constant 0.00999999977 : f32
    %141 = vector.broadcast %cst_41 : f32 to vector<3x128xf32>
    %142 = arith.mulf %141, %138 : vector<3x128xf32>
    %143 = arith.select %140, %138, %142 : vector<3x128xi1>, vector<3x128xf32>
    %c0_42 = arith.constant 0 : index
    %c0_43 = arith.constant 0 : index
    %c0_44 = arith.constant 0 : index
    %c0_45 = arith.constant 0 : index
    %c0_46 = arith.constant 0 : index
    %144 = vector.load %arg6[%c0_42, %c0_43, %c0_44, %c0_45, %c0_46] : memref<1x1x2x3x128xf32, #tpu.memory_space<vmem>>, vector<1x1x1x3x128xf32>
    %145 = vector.shape_cast %144 : vector<1x1x1x3x128xf32> to vector<3x128xf32>
    %146 = vector.shape_cast %143 : vector<3x128xf32> to vector<1x1x1x3x128xf32>
    tpu.vector_store %arg6[%c0_42, %c0_43, %c0_44, %c0_45, %c0_46], %146 {strides = array<i32>} : memref<1x1x2x3x128xf32, #tpu.memory_space<vmem>>, vector<1x1x1x3x128xf32>,
    %147 = vector.broadcast %66 : f32 to vector<3x128xf32>
    %148 = arith.mulf %134, %147 : vector<3x128xf32>
    %149 = vector.broadcast %68 : f32 to vector<3x128xf32>
    %150 = arith.addf %148, %149 : vector<3x128xf32>
    %cst_47 = arith.constant 0.000000e+00 : f32
    %151 = vector.broadcast %cst_47 : f32 to vector<3x128xf32>
    %152 = arith.cmpf ogt, %150, %151 : vector<3x128xf32>
    %cst_48 = arith.constant 0.00999999977 : f32
    %153 = vector.broadcast %cst_48 : f32 to vector<3x128xf32>
    %154 = arith.mulf %153, %150 : vector<3x128xf32>
    %155 = arith.select %152, %150, %154 : vector<3x128xi1>, vector<3x128xf32>
    %c0_49 = arith.constant 0 : index
    %c0_50 = arith.constant 0 : index
    %c1_51 = arith.constant 1 : index
    %c0_52 = arith.constant 0 : index
    %c0_53 = arith.constant 0 : index
    %156 = vector.load %arg6[%c0_49, %c0_50, %c1_51, %c0_52, %c0_53] : memref<1x1x2x3x128xf32, #tpu.memory_space<vmem>>, vector<1x1x1x3x128xf32>
    %157 = vector.shape_cast %156 : vector<1x1x1x3x128xf32> to vector<3x128xf32>
    %158 = vector.shape_cast %155 : vector<3x128xf32> to vector<1x1x1x3x128xf32>
    tpu.vector_store %arg6[%c0_49, %c0_50, %c1_51, %c0_52, %c0_53], %158 {strides = array<i32>} : memref<1x1x2x3x128xf32, #tpu.memory_space<vmem>>, vector<1x1x1x3x128xf32>,
    return
  }
  func.func @transform_0(%arg0: i32, %arg1: i32) -> i32 {
    %c0_i32 = arith.constant 0 : i32
    %c0_i32_0 = arith.constant 0 : i32
    return %c0_i32 : i32
  }
  func.func @transform_1(%arg0: i32, %arg1: i32) -> i32 {
    %c0_i32 = arith.constant 0 : i32
    %c0_i32_0 = arith.constant 0 : i32
    return %c0_i32 : i32
  }
  func.func @transform_2(%arg0: i32, %arg1: i32) -> i32 {
    %c0_i32 = arith.constant 0 : i32
    %c0_i32_0 = arith.constant 0 : i32
    return %c0_i32 : i32
  }
  func.func @transform_3(%arg0: i32, %arg1: i32) -> (i32, i32, i32, i32) {
    %c0_i32 = arith.constant 0 : i32
    %c0_i32_0 = arith.constant 0 : i32
    %c0_i32_1 = arith.constant 0 : i32
    %c0_i32_2 = arith.constant 0 : i32
    return %arg0, %c0_i32, %c0_i32_0, %c0_i32_1 : i32, i32, i32, i32
  }
  func.func @transform_4(%arg0: i32, %arg1: i32) -> (i32, i32, i32, i32, i32) {
    %c0_i32 = arith.constant 0 : i32
    %c0_i32_0 = arith.constant 0 : i32
    %c0_i32_1 = arith.constant 0 : i32
    %c0_i32_2 = arith.constant 0 : i32
    return %arg0, %arg1, %c0_i32, %c0_i32_0, %c0_i32_1 : i32, i32, i32, i32, i32
  }
}

module attributes {stable_mosaic.version = 11 : i64} {
  func.func @kernel(%arg0: i32, %arg1: i32, %arg2: memref<128xf32, #tpu.memory_space<smem>>, %arg3: memref<2xf32, #tpu.memory_space<smem>>, %arg4: memref<2xf32, #tpu.memory_space<smem>>, %arg5: memref<1x2x8x256xf32, #tpu.memory_space<vmem>>, %arg6: memref<1x1x2x7x128xf32, #tpu.memory_space<vmem>>) attributes {dimension_semantics = [#tpu.dimension_semantics<parallel>, #tpu.dimension_semantics<parallel>], iteration_bounds = array<i64: 2, 8>, scalar_prefetch = 0 : i64, scratch_operands = 0 : i64, tpu.core_type = #tpu.core_type<tc>, window_params = [{transform_indices = @transform_0, window_bounds = array<i64: 128>}, {transform_indices = @transform_1, window_bounds = array<i64: 2>}, {transform_indices = @transform_2, window_bounds = array<i64: 2>}, {transform_indices = @transform_3, window_bounds = array<i64: 1, 2, 8, 256>}, {transform_indices = @transform_4, window_bounds = array<i64: 1, 1, 2, 7, 128>}]} {
    %c16_i32 = arith.constant 16 : i32
    %0 = arith.muli %arg1, %c16_i32 : i32
    %c0_i32 = arith.constant 0 : i32
    %1 = arith.addi %0, %c0_i32 : i32
    %c0_i32_0 = arith.constant 0 : i32
    %2 = arith.addi %1, %c0_i32_0 : i32
    %3 = arith.index_cast %2 : i32 to index
    %4 = memref.load %arg2[%3] : memref<128xf32, #tpu.memory_space<smem>>
    %c0_i32_1 = arith.constant 0 : i32
    %5 = arith.addi %0, %c0_i32_1 : i32
    %c1_i32 = arith.constant 1 : i32
    %6 = arith.addi %5, %c1_i32 : i32
    %7 = arith.index_cast %6 : i32 to index
    %8 = memref.load %arg2[%7] : memref<128xf32, #tpu.memory_space<smem>>
    %c0_i32_2 = arith.constant 0 : i32
    %9 = arith.addi %0, %c0_i32_2 : i32
    %c2_i32 = arith.constant 2 : i32
    %10 = arith.addi %9, %c2_i32 : i32
    %11 = arith.index_cast %10 : i32 to index
    %12 = memref.load %arg2[%11] : memref<128xf32, #tpu.memory_space<smem>>
    %c0_i32_3 = arith.constant 0 : i32
    %13 = arith.addi %0, %c0_i32_3 : i32
    %c3_i32 = arith.constant 3 : i32
    %14 = arith.addi %13, %c3_i32 : i32
    %15 = arith.index_cast %14 : i32 to index
    %16 = memref.load %arg2[%15] : memref<128xf32, #tpu.memory_space<smem>>
    %c0_i32_4 = arith.constant 0 : i32
    %17 = arith.addi %0, %c0_i32_4 : i32
    %c4_i32 = arith.constant 4 : i32
    %18 = arith.addi %17, %c4_i32 : i32
    %19 = arith.index_cast %18 : i32 to index
    %20 = memref.load %arg2[%19] : memref<128xf32, #tpu.memory_space<smem>>
    %c0_i32_5 = arith.constant 0 : i32
    %21 = arith.addi %0, %c0_i32_5 : i32
    %c5_i32 = arith.constant 5 : i32
    %22 = arith.addi %21, %c5_i32 : i32
    %23 = arith.index_cast %22 : i32 to index
    %24 = memref.load %arg2[%23] : memref<128xf32, #tpu.memory_space<smem>>
    %c0_i32_6 = arith.constant 0 : i32
    %25 = arith.addi %0, %c0_i32_6 : i32
    %c6_i32 = arith.constant 6 : i32
    %26 = arith.addi %25, %c6_i32 : i32
    %27 = arith.index_cast %26 : i32 to index
    %28 = memref.load %arg2[%27] : memref<128xf32, #tpu.memory_space<smem>>
    %c0_i32_7 = arith.constant 0 : i32
    %29 = arith.addi %0, %c0_i32_7 : i32
    %c7_i32 = arith.constant 7 : i32
    %30 = arith.addi %29, %c7_i32 : i32
    %31 = arith.index_cast %30 : i32 to index
    %32 = memref.load %arg2[%31] : memref<128xf32, #tpu.memory_space<smem>>
    %c8_i32 = arith.constant 8 : i32
    %33 = arith.addi %0, %c8_i32 : i32
    %c0_i32_8 = arith.constant 0 : i32
    %34 = arith.addi %33, %c0_i32_8 : i32
    %35 = arith.index_cast %34 : i32 to index
    %36 = memref.load %arg2[%35] : memref<128xf32, #tpu.memory_space<smem>>
    %c8_i32_9 = arith.constant 8 : i32
    %37 = arith.addi %0, %c8_i32_9 : i32
    %c1_i32_10 = arith.constant 1 : i32
    %38 = arith.addi %37, %c1_i32_10 : i32
    %39 = arith.index_cast %38 : i32 to index
    %40 = memref.load %arg2[%39] : memref<128xf32, #tpu.memory_space<smem>>
    %c8_i32_11 = arith.constant 8 : i32
    %41 = arith.addi %0, %c8_i32_11 : i32
    %c2_i32_12 = arith.constant 2 : i32
    %42 = arith.addi %41, %c2_i32_12 : i32
    %43 = arith.index_cast %42 : i32 to index
    %44 = memref.load %arg2[%43] : memref<128xf32, #tpu.memory_space<smem>>
    %c8_i32_13 = arith.constant 8 : i32
    %45 = arith.addi %0, %c8_i32_13 : i32
    %c3_i32_14 = arith.constant 3 : i32
    %46 = arith.addi %45, %c3_i32_14 : i32
    %47 = arith.index_cast %46 : i32 to index
    %48 = memref.load %arg2[%47] : memref<128xf32, #tpu.memory_space<smem>>
    %c8_i32_15 = arith.constant 8 : i32
    %49 = arith.addi %0, %c8_i32_15 : i32
    %c4_i32_16 = arith.constant 4 : i32
    %50 = arith.addi %49, %c4_i32_16 : i32
    %51 = arith.index_cast %50 : i32 to index
    %52 = memref.load %arg2[%51] : memref<128xf32, #tpu.memory_space<smem>>
    %c8_i32_17 = arith.constant 8 : i32
    %53 = arith.addi %0, %c8_i32_17 : i32
    %c5_i32_18 = arith.constant 5 : i32
    %54 = arith.addi %53, %c5_i32_18 : i32
    %55 = arith.index_cast %54 : i32 to index
    %56 = memref.load %arg2[%55] : memref<128xf32, #tpu.memory_space<smem>>
    %c8_i32_19 = arith.constant 8 : i32
    %57 = arith.addi %0, %c8_i32_19 : i32
    %c6_i32_20 = arith.constant 6 : i32
    %58 = arith.addi %57, %c6_i32_20 : i32
    %59 = arith.index_cast %58 : i32 to index
    %60 = memref.load %arg2[%59] : memref<128xf32, #tpu.memory_space<smem>>
    %c8_i32_21 = arith.constant 8 : i32
    %61 = arith.addi %0, %c8_i32_21 : i32
    %c7_i32_22 = arith.constant 7 : i32
    %62 = arith.addi %61, %c7_i32_22 : i32
    %63 = arith.index_cast %62 : i32 to index
    %64 = memref.load %arg2[%63] : memref<128xf32, #tpu.memory_space<smem>>
    %c0 = arith.constant 0 : index
    %65 = memref.load %arg3[%c0] : memref<2xf32, #tpu.memory_space<smem>>
    %c1 = arith.constant 1 : index
    %66 = memref.load %arg3[%c1] : memref<2xf32, #tpu.memory_space<smem>>
    %c0_23 = arith.constant 0 : index
    %67 = memref.load %arg4[%c0_23] : memref<2xf32, #tpu.memory_space<smem>>
    %c1_24 = arith.constant 1 : index
    %68 = memref.load %arg4[%c1_24] : memref<2xf32, #tpu.memory_space<smem>>
    %cst = arith.constant 0.000000e+00 : f32
    %69 = vector.broadcast %cst : f32 to vector<7x128xf32>
    %cst_25 = arith.constant 0.000000e+00 : f32
    %70 = vector.broadcast %cst_25 : f32 to vector<7x128xf32>
    %c0_26 = arith.constant 0 : index
    %c0_27 = arith.constant 0 : index
    %c0_28 = arith.constant 0 : index
    %c0_29 = arith.constant 0 : index
    %71 = vector.load %arg5[%c0_26, %c0_27, %c0_28, %c0_29] : memref<1x2x8x256xf32, #tpu.memory_space<vmem>>, vector<1x1x8x128xf32>
    %72 = vector.shape_cast %71 : vector<1x1x8x128xf32> to vector<8x128xf32>
    %73 = vector.extract_strided_slice %72 {offsets = [0, 0], sizes = [7, 128], strides = [1, 1]} : vector<8x128xf32> to vector<7x128xf32>
    %74 = vector.broadcast %4 : f32 to vector<7x128xf32>
    %75 = arith.mulf %74, %73 : vector<7x128xf32>
    %76 = arith.addf %69, %75 : vector<7x128xf32>
    %77 = vector.extract_strided_slice %72 {offsets = [1, 0], sizes = [7, 128], strides = [1, 1]} : vector<8x128xf32> to vector<7x128xf32>
    %78 = vector.broadcast %20 : f32 to vector<7x128xf32>
    %79 = arith.mulf %78, %77 : vector<7x128xf32>
    %80 = arith.addf %76, %79 : vector<7x128xf32>
    %c0_30 = arith.constant 0 : index
    %c0_31 = arith.constant 0 : index
    %c0_32 = arith.constant 0 : index
    %c1_33 = arith.constant 1 : index
    %81 = vector.load %arg5[%c0_30, %c0_31, %c0_32, %c1_33] : memref<1x2x8x256xf32, #tpu.memory_space<vmem>>, vector<1x1x8x128xf32>
    %82 = vector.shape_cast %81 : vector<1x1x8x128xf32> to vector<8x128xf32>
    %83 = vector.extract_strided_slice %82 {offsets = [0, 0], sizes = [7, 128], strides = [1, 1]} : vector<8x128xf32> to vector<7x128xf32>
    %84 = vector.broadcast %8 : f32 to vector<7x128xf32>
    %85 = arith.mulf %84, %83 : vector<7x128xf32>
    %86 = arith.addf %80, %85 : vector<7x128xf32>
    %87 = vector.extract_strided_slice %82 {offsets = [1, 0], sizes = [7, 128], strides = [1, 1]} : vector<8x128xf32> to vector<7x128xf32>
    %88 = vector.broadcast %24 : f32 to vector<7x128xf32>
    %89 = arith.mulf %88, %87 : vector<7x128xf32>
    %90 = arith.addf %86, %89 : vector<7x128xf32>
    %c0_34 = arith.constant 0 : index
    %c0_35 = arith.constant 0 : index
    %c0_36 = arith.constant 0 : index
    %c8 = arith.constant 8 : index
    %91 = vector.load %arg5[%c0_34, %c0_35, %c0_36, %c8] : memref<1x2x8x256xf32, #tpu.memory_space<vmem>>, vector<1x1x8x128xf32>
    %92 = vector.shape_cast %91 : vector<1x1x8x128xf32> to vector<8x128xf32>
    %93 = vector.extract_strided_slice %92 {offsets = [0, 0], sizes = [7, 128], strides = [1, 1]} : vector<8x128xf32> to vector<7x128xf32>
    %94 = vector.broadcast %12 : f32 to vector<7x128xf32>
    %95 = arith.mulf %94, %93 : vector<7x128xf32>
    %96 = arith.addf %90, %95 : vector<7x128xf32>
    %97 = vector.extract_strided_slice %92 {offsets = [1, 0], sizes = [7, 128], strides = [1, 1]} : vector<8x128xf32> to vector<7x128xf32>
    %98 = vector.broadcast %28 : f32 to vector<7x128xf32>
    %99 = arith.mulf %98, %97 : vector<7x128xf32>
    %100 = arith.addf %96, %99 : vector<7x128xf32>
    %c0_37 = arith.constant 0 : index
    %c0_38 = arith.constant 0 : index
    %c0_39 = arith.constant 0 : index
    %c9 = arith.constant 9 : index
    %101 = vector.load %arg5[%c0_37, %c0_38, %c0_39, %c9] : memref<1x2x8x256xf32, #tpu.memory_space<vmem>>, vector<1x1x8x128xf32>
    %102 = vector.shape_cast %101 : vector<1x1x8x128xf32> to vector<8x128xf32>
    %103 = vector.extract_strided_slice %102 {offsets = [0, 0], sizes = [7, 128], strides = [1, 1]} : vector<8x128xf32> to vector<7x128xf32>
    %104 = vector.broadcast %16 : f32 to vector<7x128xf32>
    %105 = arith.mulf %104, %103 : vector<7x128xf32>
    %106 = arith.addf %100, %105 : vector<7x128xf32>
    %107 = vector.extract_strided_slice %102 {offsets = [1, 0], sizes = [7, 128], strides = [1, 1]} : vector<8x128xf32> to vector<7x128xf32>
    %108 = vector.broadcast %32 : f32 to vector<7x128xf32>
    %109 = arith.mulf %108, %107 : vector<7x128xf32>
    %110 = arith.addf %106, %109 : vector<7x128xf32>
    %c0_40 = arith.constant 0 : index
    %c1_41 = arith.constant 1 : index
    %c0_42 = arith.constant 0 : index
    %c0_43 = arith.constant 0 : index
    %111 = vector.load %arg5[%c0_40, %c1_41, %c0_42, %c0_43] : memref<1x2x8x256xf32, #tpu.memory_space<vmem>>, vector<1x1x8x128xf32>
    %112 = vector.shape_cast %111 : vector<1x1x8x128xf32> to vector<8x128xf32>
    %113 = vector.extract_strided_slice %112 {offsets = [0, 0], sizes = [7, 128], strides = [1, 1]} : vector<8x128xf32> to vector<7x128xf32>
    %114 = vector.broadcast %36 : f32 to vector<7x128xf32>
    %115 = arith.mulf %114, %113 : vector<7x128xf32>
    %116 = arith.addf %70, %115 : vector<7x128xf32>
    %117 = vector.extract_strided_slice %112 {offsets = [1, 0], sizes = [7, 128], strides = [1, 1]} : vector<8x128xf32> to vector<7x128xf32>
    %118 = vector.broadcast %52 : f32 to vector<7x128xf32>
    %119 = arith.mulf %118, %117 : vector<7x128xf32>
    %120 = arith.addf %116, %119 : vector<7x128xf32>
    %c0_44 = arith.constant 0 : index
    %c1_45 = arith.constant 1 : index
    %c0_46 = arith.constant 0 : index
    %c1_47 = arith.constant 1 : index
    %121 = vector.load %arg5[%c0_44, %c1_45, %c0_46, %c1_47] : memref<1x2x8x256xf32, #tpu.memory_space<vmem>>, vector<1x1x8x128xf32>
    %122 = vector.shape_cast %121 : vector<1x1x8x128xf32> to vector<8x128xf32>
    %123 = vector.extract_strided_slice %122 {offsets = [0, 0], sizes = [7, 128], strides = [1, 1]} : vector<8x128xf32> to vector<7x128xf32>
    %124 = vector.broadcast %40 : f32 to vector<7x128xf32>
    %125 = arith.mulf %124, %123 : vector<7x128xf32>
    %126 = arith.addf %120, %125 : vector<7x128xf32>
    %127 = vector.extract_strided_slice %122 {offsets = [1, 0], sizes = [7, 128], strides = [1, 1]} : vector<8x128xf32> to vector<7x128xf32>
    %128 = vector.broadcast %56 : f32 to vector<7x128xf32>
    %129 = arith.mulf %128, %127 : vector<7x128xf32>
    %130 = arith.addf %126, %129 : vector<7x128xf32>
    %c0_48 = arith.constant 0 : index
    %c1_49 = arith.constant 1 : index
    %c0_50 = arith.constant 0 : index
    %c8_51 = arith.constant 8 : index
    %131 = vector.load %arg5[%c0_48, %c1_49, %c0_50, %c8_51] : memref<1x2x8x256xf32, #tpu.memory_space<vmem>>, vector<1x1x8x128xf32>
    %132 = vector.shape_cast %131 : vector<1x1x8x128xf32> to vector<8x128xf32>
    %133 = vector.extract_strided_slice %132 {offsets = [0, 0], sizes = [7, 128], strides = [1, 1]} : vector<8x128xf32> to vector<7x128xf32>
    %134 = vector.broadcast %44 : f32 to vector<7x128xf32>
    %135 = arith.mulf %134, %133 : vector<7x128xf32>
    %136 = arith.addf %130, %135 : vector<7x128xf32>
    %137 = vector.extract_strided_slice %132 {offsets = [1, 0], sizes = [7, 128], strides = [1, 1]} : vector<8x128xf32> to vector<7x128xf32>
    %138 = vector.broadcast %60 : f32 to vector<7x128xf32>
    %139 = arith.mulf %138, %137 : vector<7x128xf32>
    %140 = arith.addf %136, %139 : vector<7x128xf32>
    %c0_52 = arith.constant 0 : index
    %c1_53 = arith.constant 1 : index
    %c0_54 = arith.constant 0 : index
    %c9_55 = arith.constant 9 : index
    %141 = vector.load %arg5[%c0_52, %c1_53, %c0_54, %c9_55] : memref<1x2x8x256xf32, #tpu.memory_space<vmem>>, vector<1x1x8x128xf32>
    %142 = vector.shape_cast %141 : vector<1x1x8x128xf32> to vector<8x128xf32>
    %143 = vector.extract_strided_slice %142 {offsets = [0, 0], sizes = [7, 128], strides = [1, 1]} : vector<8x128xf32> to vector<7x128xf32>
    %144 = vector.broadcast %48 : f32 to vector<7x128xf32>
    %145 = arith.mulf %144, %143 : vector<7x128xf32>
    %146 = arith.addf %140, %145 : vector<7x128xf32>
    %147 = vector.extract_strided_slice %142 {offsets = [1, 0], sizes = [7, 128], strides = [1, 1]} : vector<8x128xf32> to vector<7x128xf32>
    %148 = vector.broadcast %64 : f32 to vector<7x128xf32>
    %149 = arith.mulf %148, %147 : vector<7x128xf32>
    %150 = arith.addf %146, %149 : vector<7x128xf32>
    %151 = vector.broadcast %65 : f32 to vector<7x128xf32>
    %152 = arith.mulf %110, %151 : vector<7x128xf32>
    %153 = vector.broadcast %67 : f32 to vector<7x128xf32>
    %154 = arith.addf %152, %153 : vector<7x128xf32>
    %cst_56 = arith.constant 0.000000e+00 : f32
    %155 = vector.broadcast %cst_56 : f32 to vector<7x128xf32>
    %156 = arith.cmpf ogt, %154, %155 : vector<7x128xf32>
    %cst_57 = arith.constant 0.00999999977 : f32
    %157 = vector.broadcast %cst_57 : f32 to vector<7x128xf32>
    %158 = arith.mulf %157, %154 : vector<7x128xf32>
    %159 = arith.select %156, %154, %158 : vector<7x128xi1>, vector<7x128xf32>
    %c0_58 = arith.constant 0 : index
    %c0_59 = arith.constant 0 : index
    %c0_60 = arith.constant 0 : index
    %c0_61 = arith.constant 0 : index
    %c0_62 = arith.constant 0 : index
    %160 = vector.load %arg6[%c0_58, %c0_59, %c0_60, %c0_61, %c0_62] : memref<1x1x2x7x128xf32, #tpu.memory_space<vmem>>, vector<1x1x1x7x128xf32>
    %161 = vector.shape_cast %160 : vector<1x1x1x7x128xf32> to vector<7x128xf32>
    %162 = vector.shape_cast %159 : vector<7x128xf32> to vector<1x1x1x7x128xf32>
    tpu.vector_store %arg6[%c0_58, %c0_59, %c0_60, %c0_61, %c0_62], %162 {strides = array<i32>} : memref<1x1x2x7x128xf32, #tpu.memory_space<vmem>>, vector<1x1x1x7x128xf32>,
    %163 = vector.broadcast %66 : f32 to vector<7x128xf32>
    %164 = arith.mulf %150, %163 : vector<7x128xf32>
    %165 = vector.broadcast %68 : f32 to vector<7x128xf32>
    %166 = arith.addf %164, %165 : vector<7x128xf32>
    %cst_63 = arith.constant 0.000000e+00 : f32
    %167 = vector.broadcast %cst_63 : f32 to vector<7x128xf32>
    %168 = arith.cmpf ogt, %166, %167 : vector<7x128xf32>
    %cst_64 = arith.constant 0.00999999977 : f32
    %169 = vector.broadcast %cst_64 : f32 to vector<7x128xf32>
    %170 = arith.mulf %169, %166 : vector<7x128xf32>
    %171 = arith.select %168, %166, %170 : vector<7x128xi1>, vector<7x128xf32>
    %c0_65 = arith.constant 0 : index
    %c0_66 = arith.constant 0 : index
    %c1_67 = arith.constant 1 : index
    %c0_68 = arith.constant 0 : index
    %c0_69 = arith.constant 0 : index
    %172 = vector.load %arg6[%c0_65, %c0_66, %c1_67, %c0_68, %c0_69] : memref<1x1x2x7x128xf32, #tpu.memory_space<vmem>>, vector<1x1x1x7x128xf32>
    %173 = vector.shape_cast %172 : vector<1x1x1x7x128xf32> to vector<7x128xf32>
    %174 = vector.shape_cast %171 : vector<7x128xf32> to vector<1x1x1x7x128xf32>
    tpu.vector_store %arg6[%c0_65, %c0_66, %c1_67, %c0_68, %c0_69], %174 {strides = array<i32>} : memref<1x1x2x7x128xf32, #tpu.memory_space<vmem>>, vector<1x1x1x7x128xf32>,
    return
  }
  func.func @transform_0(%arg0: i32, %arg1: i32) -> i32 {
    %c0_i32 = arith.constant 0 : i32
    %c0_i32_0 = arith.constant 0 : i32
    return %c0_i32 : i32
  }
  func.func @transform_1(%arg0: i32, %arg1: i32) -> i32 {
    %c0_i32 = arith.constant 0 : i32
    %c0_i32_0 = arith.constant 0 : i32
    return %c0_i32 : i32
  }
  func.func @transform_2(%arg0: i32, %arg1: i32) -> i32 {
    %c0_i32 = arith.constant 0 : i32
    %c0_i32_0 = arith.constant 0 : i32
    return %c0_i32 : i32
  }
  func.func @transform_3(%arg0: i32, %arg1: i32) -> (i32, i32, i32, i32) {
    %c0_i32 = arith.constant 0 : i32
    %c0_i32_0 = arith.constant 0 : i32
    %c0_i32_1 = arith.constant 0 : i32
    %c0_i32_2 = arith.constant 0 : i32
    return %arg0, %c0_i32, %c0_i32_0, %c0_i32_1 : i32, i32, i32, i32
  }
  func.func @transform_4(%arg0: i32, %arg1: i32) -> (i32, i32, i32, i32, i32) {
    %c0_i32 = arith.constant 0 : i32
    %c0_i32_0 = arith.constant 0 : i32
    %c0_i32_1 = arith.constant 0 : i32
    %c0_i32_2 = arith.constant 0 : i32
    return %arg0, %arg1, %c0_i32, %c0_i32_0, %c0_i32_1 : i32, i32, i32, i32, i32
  }
}

module attributes {stable_mosaic.version = 11 : i64} {
  func.func @kernel(%arg0: i32, %arg1: i32, %arg2: memref<128xf32, #tpu.memory_space<smem>>, %arg3: memref<2xf32, #tpu.memory_space<smem>>, %arg4: memref<2xf32, #tpu.memory_space<smem>>, %arg5: memref<1x2x16x384xf32, #tpu.memory_space<vmem>>, %arg6: memref<1x1x2x15x256xf32, #tpu.memory_space<vmem>>) attributes {dimension_semantics = [#tpu.dimension_semantics<parallel>, #tpu.dimension_semantics<parallel>], iteration_bounds = array<i64: 2, 8>, scalar_prefetch = 0 : i64, scratch_operands = 0 : i64, tpu.core_type = #tpu.core_type<tc>, window_params = [{transform_indices = @transform_0, window_bounds = array<i64: 128>}, {transform_indices = @transform_1, window_bounds = array<i64: 2>}, {transform_indices = @transform_2, window_bounds = array<i64: 2>}, {transform_indices = @transform_3, window_bounds = array<i64: 1, 2, 16, 384>}, {transform_indices = @transform_4, window_bounds = array<i64: 1, 1, 2, 15, 256>}]} {
    %c16_i32 = arith.constant 16 : i32
    %0 = arith.muli %arg1, %c16_i32 : i32
    %c0_i32 = arith.constant 0 : i32
    %1 = arith.addi %0, %c0_i32 : i32
    %c0_i32_0 = arith.constant 0 : i32
    %2 = arith.addi %1, %c0_i32_0 : i32
    %3 = arith.index_cast %2 : i32 to index
    %4 = memref.load %arg2[%3] : memref<128xf32, #tpu.memory_space<smem>>
    %c0_i32_1 = arith.constant 0 : i32
    %5 = arith.addi %0, %c0_i32_1 : i32
    %c1_i32 = arith.constant 1 : i32
    %6 = arith.addi %5, %c1_i32 : i32
    %7 = arith.index_cast %6 : i32 to index
    %8 = memref.load %arg2[%7] : memref<128xf32, #tpu.memory_space<smem>>
    %c0_i32_2 = arith.constant 0 : i32
    %9 = arith.addi %0, %c0_i32_2 : i32
    %c2_i32 = arith.constant 2 : i32
    %10 = arith.addi %9, %c2_i32 : i32
    %11 = arith.index_cast %10 : i32 to index
    %12 = memref.load %arg2[%11] : memref<128xf32, #tpu.memory_space<smem>>
    %c0_i32_3 = arith.constant 0 : i32
    %13 = arith.addi %0, %c0_i32_3 : i32
    %c3_i32 = arith.constant 3 : i32
    %14 = arith.addi %13, %c3_i32 : i32
    %15 = arith.index_cast %14 : i32 to index
    %16 = memref.load %arg2[%15] : memref<128xf32, #tpu.memory_space<smem>>
    %c0_i32_4 = arith.constant 0 : i32
    %17 = arith.addi %0, %c0_i32_4 : i32
    %c4_i32 = arith.constant 4 : i32
    %18 = arith.addi %17, %c4_i32 : i32
    %19 = arith.index_cast %18 : i32 to index
    %20 = memref.load %arg2[%19] : memref<128xf32, #tpu.memory_space<smem>>
    %c0_i32_5 = arith.constant 0 : i32
    %21 = arith.addi %0, %c0_i32_5 : i32
    %c5_i32 = arith.constant 5 : i32
    %22 = arith.addi %21, %c5_i32 : i32
    %23 = arith.index_cast %22 : i32 to index
    %24 = memref.load %arg2[%23] : memref<128xf32, #tpu.memory_space<smem>>
    %c0_i32_6 = arith.constant 0 : i32
    %25 = arith.addi %0, %c0_i32_6 : i32
    %c6_i32 = arith.constant 6 : i32
    %26 = arith.addi %25, %c6_i32 : i32
    %27 = arith.index_cast %26 : i32 to index
    %28 = memref.load %arg2[%27] : memref<128xf32, #tpu.memory_space<smem>>
    %c0_i32_7 = arith.constant 0 : i32
    %29 = arith.addi %0, %c0_i32_7 : i32
    %c7_i32 = arith.constant 7 : i32
    %30 = arith.addi %29, %c7_i32 : i32
    %31 = arith.index_cast %30 : i32 to index
    %32 = memref.load %arg2[%31] : memref<128xf32, #tpu.memory_space<smem>>
    %c8_i32 = arith.constant 8 : i32
    %33 = arith.addi %0, %c8_i32 : i32
    %c0_i32_8 = arith.constant 0 : i32
    %34 = arith.addi %33, %c0_i32_8 : i32
    %35 = arith.index_cast %34 : i32 to index
    %36 = memref.load %arg2[%35] : memref<128xf32, #tpu.memory_space<smem>>
    %c8_i32_9 = arith.constant 8 : i32
    %37 = arith.addi %0, %c8_i32_9 : i32
    %c1_i32_10 = arith.constant 1 : i32
    %38 = arith.addi %37, %c1_i32_10 : i32
    %39 = arith.index_cast %38 : i32 to index
    %40 = memref.load %arg2[%39] : memref<128xf32, #tpu.memory_space<smem>>
    %c8_i32_11 = arith.constant 8 : i32
    %41 = arith.addi %0, %c8_i32_11 : i32
    %c2_i32_12 = arith.constant 2 : i32
    %42 = arith.addi %41, %c2_i32_12 : i32
    %43 = arith.index_cast %42 : i32 to index
    %44 = memref.load %arg2[%43] : memref<128xf32, #tpu.memory_space<smem>>
    %c8_i32_13 = arith.constant 8 : i32
    %45 = arith.addi %0, %c8_i32_13 : i32
    %c3_i32_14 = arith.constant 3 : i32
    %46 = arith.addi %45, %c3_i32_14 : i32
    %47 = arith.index_cast %46 : i32 to index
    %48 = memref.load %arg2[%47] : memref<128xf32, #tpu.memory_space<smem>>
    %c8_i32_15 = arith.constant 8 : i32
    %49 = arith.addi %0, %c8_i32_15 : i32
    %c4_i32_16 = arith.constant 4 : i32
    %50 = arith.addi %49, %c4_i32_16 : i32
    %51 = arith.index_cast %50 : i32 to index
    %52 = memref.load %arg2[%51] : memref<128xf32, #tpu.memory_space<smem>>
    %c8_i32_17 = arith.constant 8 : i32
    %53 = arith.addi %0, %c8_i32_17 : i32
    %c5_i32_18 = arith.constant 5 : i32
    %54 = arith.addi %53, %c5_i32_18 : i32
    %55 = arith.index_cast %54 : i32 to index
    %56 = memref.load %arg2[%55] : memref<128xf32, #tpu.memory_space<smem>>
    %c8_i32_19 = arith.constant 8 : i32
    %57 = arith.addi %0, %c8_i32_19 : i32
    %c6_i32_20 = arith.constant 6 : i32
    %58 = arith.addi %57, %c6_i32_20 : i32
    %59 = arith.index_cast %58 : i32 to index
    %60 = memref.load %arg2[%59] : memref<128xf32, #tpu.memory_space<smem>>
    %c8_i32_21 = arith.constant 8 : i32
    %61 = arith.addi %0, %c8_i32_21 : i32
    %c7_i32_22 = arith.constant 7 : i32
    %62 = arith.addi %61, %c7_i32_22 : i32
    %63 = arith.index_cast %62 : i32 to index
    %64 = memref.load %arg2[%63] : memref<128xf32, #tpu.memory_space<smem>>
    %c0 = arith.constant 0 : index
    %65 = memref.load %arg3[%c0] : memref<2xf32, #tpu.memory_space<smem>>
    %c1 = arith.constant 1 : index
    %66 = memref.load %arg3[%c1] : memref<2xf32, #tpu.memory_space<smem>>
    %c0_23 = arith.constant 0 : index
    %67 = memref.load %arg4[%c0_23] : memref<2xf32, #tpu.memory_space<smem>>
    %c1_24 = arith.constant 1 : index
    %68 = memref.load %arg4[%c1_24] : memref<2xf32, #tpu.memory_space<smem>>
    %cst = arith.constant 0.000000e+00 : f32
    %69 = vector.broadcast %cst : f32 to vector<8x256xf32>
    %cst_25 = arith.constant 0.000000e+00 : f32
    %70 = vector.broadcast %cst_25 : f32 to vector<8x256xf32>
    %c0_26 = arith.constant 0 : index
    %c0_27 = arith.constant 0 : index
    %c0_28 = arith.constant 0 : index
    %c0_29 = arith.constant 0 : index
    %71 = vector.load %arg5[%c0_26, %c0_27, %c0_28, %c0_29] : memref<1x2x16x384xf32, #tpu.memory_space<vmem>>, vector<1x1x9x256xf32>
    %72 = vector.shape_cast %71 : vector<1x1x9x256xf32> to vector<9x256xf32>
    %73 = vector.extract_strided_slice %72 {offsets = [0, 0], sizes = [8, 256], strides = [1, 1]} : vector<9x256xf32> to vector<8x256xf32>
    %74 = vector.broadcast %4 : f32 to vector<8x256xf32>
    %75 = arith.mulf %74, %73 : vector<8x256xf32>
    %76 = arith.addf %69, %75 : vector<8x256xf32>
    %77 = vector.extract_strided_slice %72 {offsets = [1, 0], sizes = [8, 256], strides = [1, 1]} : vector<9x256xf32> to vector<8x256xf32>
    %78 = vector.broadcast %20 : f32 to vector<8x256xf32>
    %79 = arith.mulf %78, %77 : vector<8x256xf32>
    %80 = arith.addf %76, %79 : vector<8x256xf32>
    %c0_30 = arith.constant 0 : index
    %c0_31 = arith.constant 0 : index
    %c0_32 = arith.constant 0 : index
    %c1_33 = arith.constant 1 : index
    %81 = vector.load %arg5[%c0_30, %c0_31, %c0_32, %c1_33] : memref<1x2x16x384xf32, #tpu.memory_space<vmem>>, vector<1x1x9x256xf32>
    %82 = vector.shape_cast %81 : vector<1x1x9x256xf32> to vector<9x256xf32>
    %83 = vector.extract_strided_slice %82 {offsets = [0, 0], sizes = [8, 256], strides = [1, 1]} : vector<9x256xf32> to vector<8x256xf32>
    %84 = vector.broadcast %8 : f32 to vector<8x256xf32>
    %85 = arith.mulf %84, %83 : vector<8x256xf32>
    %86 = arith.addf %80, %85 : vector<8x256xf32>
    %87 = vector.extract_strided_slice %82 {offsets = [1, 0], sizes = [8, 256], strides = [1, 1]} : vector<9x256xf32> to vector<8x256xf32>
    %88 = vector.broadcast %24 : f32 to vector<8x256xf32>
    %89 = arith.mulf %88, %87 : vector<8x256xf32>
    %90 = arith.addf %86, %89 : vector<8x256xf32>
    %c0_34 = arith.constant 0 : index
    %c0_35 = arith.constant 0 : index
    %c0_36 = arith.constant 0 : index
    %c16 = arith.constant 16 : index
    %91 = vector.load %arg5[%c0_34, %c0_35, %c0_36, %c16] : memref<1x2x16x384xf32, #tpu.memory_space<vmem>>, vector<1x1x9x256xf32>
    %92 = vector.shape_cast %91 : vector<1x1x9x256xf32> to vector<9x256xf32>
    %93 = vector.extract_strided_slice %92 {offsets = [0, 0], sizes = [8, 256], strides = [1, 1]} : vector<9x256xf32> to vector<8x256xf32>
    %94 = vector.broadcast %12 : f32 to vector<8x256xf32>
    %95 = arith.mulf %94, %93 : vector<8x256xf32>
    %96 = arith.addf %90, %95 : vector<8x256xf32>
    %97 = vector.extract_strided_slice %92 {offsets = [1, 0], sizes = [8, 256], strides = [1, 1]} : vector<9x256xf32> to vector<8x256xf32>
    %98 = vector.broadcast %28 : f32 to vector<8x256xf32>
    %99 = arith.mulf %98, %97 : vector<8x256xf32>
    %100 = arith.addf %96, %99 : vector<8x256xf32>
    %c0_37 = arith.constant 0 : index
    %c0_38 = arith.constant 0 : index
    %c0_39 = arith.constant 0 : index
    %c17 = arith.constant 17 : index
    %101 = vector.load %arg5[%c0_37, %c0_38, %c0_39, %c17] : memref<1x2x16x384xf32, #tpu.memory_space<vmem>>, vector<1x1x9x256xf32>
    %102 = vector.shape_cast %101 : vector<1x1x9x256xf32> to vector<9x256xf32>
    %103 = vector.extract_strided_slice %102 {offsets = [0, 0], sizes = [8, 256], strides = [1, 1]} : vector<9x256xf32> to vector<8x256xf32>
    %104 = vector.broadcast %16 : f32 to vector<8x256xf32>
    %105 = arith.mulf %104, %103 : vector<8x256xf32>
    %106 = arith.addf %100, %105 : vector<8x256xf32>
    %107 = vector.extract_strided_slice %102 {offsets = [1, 0], sizes = [8, 256], strides = [1, 1]} : vector<9x256xf32> to vector<8x256xf32>
    %108 = vector.broadcast %32 : f32 to vector<8x256xf32>
    %109 = arith.mulf %108, %107 : vector<8x256xf32>
    %110 = arith.addf %106, %109 : vector<8x256xf32>
    %c0_40 = arith.constant 0 : index
    %c1_41 = arith.constant 1 : index
    %c0_42 = arith.constant 0 : index
    %c0_43 = arith.constant 0 : index
    %111 = vector.load %arg5[%c0_40, %c1_41, %c0_42, %c0_43] : memref<1x2x16x384xf32, #tpu.memory_space<vmem>>, vector<1x1x9x256xf32>
    %112 = vector.shape_cast %111 : vector<1x1x9x256xf32> to vector<9x256xf32>
    %113 = vector.extract_strided_slice %112 {offsets = [0, 0], sizes = [8, 256], strides = [1, 1]} : vector<9x256xf32> to vector<8x256xf32>
    %114 = vector.broadcast %36 : f32 to vector<8x256xf32>
    %115 = arith.mulf %114, %113 : vector<8x256xf32>
    %116 = arith.addf %70, %115 : vector<8x256xf32>
    %117 = vector.extract_strided_slice %112 {offsets = [1, 0], sizes = [8, 256], strides = [1, 1]} : vector<9x256xf32> to vector<8x256xf32>
    %118 = vector.broadcast %52 : f32 to vector<8x256xf32>
    %119 = arith.mulf %118, %117 : vector<8x256xf32>
    %120 = arith.addf %116, %119 : vector<8x256xf32>
    %c0_44 = arith.constant 0 : index
    %c1_45 = arith.constant 1 : index
    %c0_46 = arith.constant 0 : index
    %c1_47 = arith.constant 1 : index
    %121 = vector.load %arg5[%c0_44, %c1_45, %c0_46, %c1_47] : memref<1x2x16x384xf32, #tpu.memory_space<vmem>>, vector<1x1x9x256xf32>
    %122 = vector.shape_cast %121 : vector<1x1x9x256xf32> to vector<9x256xf32>
    %123 = vector.extract_strided_slice %122 {offsets = [0, 0], sizes = [8, 256], strides = [1, 1]} : vector<9x256xf32> to vector<8x256xf32>
    %124 = vector.broadcast %40 : f32 to vector<8x256xf32>
    %125 = arith.mulf %124, %123 : vector<8x256xf32>
    %126 = arith.addf %120, %125 : vector<8x256xf32>
    %127 = vector.extract_strided_slice %122 {offsets = [1, 0], sizes = [8, 256], strides = [1, 1]} : vector<9x256xf32> to vector<8x256xf32>
    %128 = vector.broadcast %56 : f32 to vector<8x256xf32>
    %129 = arith.mulf %128, %127 : vector<8x256xf32>
    %130 = arith.addf %126, %129 : vector<8x256xf32>
    %c0_48 = arith.constant 0 : index
    %c1_49 = arith.constant 1 : index
    %c0_50 = arith.constant 0 : index
    %c16_51 = arith.constant 16 : index
    %131 = vector.load %arg5[%c0_48, %c1_49, %c0_50, %c16_51] : memref<1x2x16x384xf32, #tpu.memory_space<vmem>>, vector<1x1x9x256xf32>
    %132 = vector.shape_cast %131 : vector<1x1x9x256xf32> to vector<9x256xf32>
    %133 = vector.extract_strided_slice %132 {offsets = [0, 0], sizes = [8, 256], strides = [1, 1]} : vector<9x256xf32> to vector<8x256xf32>
    %134 = vector.broadcast %44 : f32 to vector<8x256xf32>
    %135 = arith.mulf %134, %133 : vector<8x256xf32>
    %136 = arith.addf %130, %135 : vector<8x256xf32>
    %137 = vector.extract_strided_slice %132 {offsets = [1, 0], sizes = [8, 256], strides = [1, 1]} : vector<9x256xf32> to vector<8x256xf32>
    %138 = vector.broadcast %60 : f32 to vector<8x256xf32>
    %139 = arith.mulf %138, %137 : vector<8x256xf32>
    %140 = arith.addf %136, %139 : vector<8x256xf32>
    %c0_52 = arith.constant 0 : index
    %c1_53 = arith.constant 1 : index
    %c0_54 = arith.constant 0 : index
    %c17_55 = arith.constant 17 : index
    %141 = vector.load %arg5[%c0_52, %c1_53, %c0_54, %c17_55] : memref<1x2x16x384xf32, #tpu.memory_space<vmem>>, vector<1x1x9x256xf32>
    %142 = vector.shape_cast %141 : vector<1x1x9x256xf32> to vector<9x256xf32>
    %143 = vector.extract_strided_slice %142 {offsets = [0, 0], sizes = [8, 256], strides = [1, 1]} : vector<9x256xf32> to vector<8x256xf32>
    %144 = vector.broadcast %48 : f32 to vector<8x256xf32>
    %145 = arith.mulf %144, %143 : vector<8x256xf32>
    %146 = arith.addf %140, %145 : vector<8x256xf32>
    %147 = vector.extract_strided_slice %142 {offsets = [1, 0], sizes = [8, 256], strides = [1, 1]} : vector<9x256xf32> to vector<8x256xf32>
    %148 = vector.broadcast %64 : f32 to vector<8x256xf32>
    %149 = arith.mulf %148, %147 : vector<8x256xf32>
    %150 = arith.addf %146, %149 : vector<8x256xf32>
    %151 = vector.broadcast %65 : f32 to vector<8x256xf32>
    %152 = arith.mulf %110, %151 : vector<8x256xf32>
    %153 = vector.broadcast %67 : f32 to vector<8x256xf32>
    %154 = arith.addf %152, %153 : vector<8x256xf32>
    %cst_56 = arith.constant 0.000000e+00 : f32
    %155 = vector.broadcast %cst_56 : f32 to vector<8x256xf32>
    %156 = arith.cmpf ogt, %154, %155 : vector<8x256xf32>
    %cst_57 = arith.constant 0.00999999977 : f32
    %157 = vector.broadcast %cst_57 : f32 to vector<8x256xf32>
    %158 = arith.mulf %157, %154 : vector<8x256xf32>
    %159 = arith.select %156, %154, %158 : vector<8x256xi1>, vector<8x256xf32>
    %c0_58 = arith.constant 0 : index
    %c0_59 = arith.constant 0 : index
    %c0_60 = arith.constant 0 : index
    %c0_61 = arith.constant 0 : index
    %c0_62 = arith.constant 0 : index
    %160 = vector.load %arg6[%c0_58, %c0_59, %c0_60, %c0_61, %c0_62] : memref<1x1x2x15x256xf32, #tpu.memory_space<vmem>>, vector<1x1x1x8x256xf32>
    %161 = vector.shape_cast %160 : vector<1x1x1x8x256xf32> to vector<8x256xf32>
    %162 = vector.shape_cast %159 : vector<8x256xf32> to vector<1x1x1x8x256xf32>
    tpu.vector_store %arg6[%c0_58, %c0_59, %c0_60, %c0_61, %c0_62], %162 {strides = array<i32>} : memref<1x1x2x15x256xf32, #tpu.memory_space<vmem>>, vector<1x1x1x8x256xf32>,
    %163 = vector.broadcast %66 : f32 to vector<8x256xf32>
    %164 = arith.mulf %150, %163 : vector<8x256xf32>
    %165 = vector.broadcast %68 : f32 to vector<8x256xf32>
    %166 = arith.addf %164, %165 : vector<8x256xf32>
    %cst_63 = arith.constant 0.000000e+00 : f32
    %167 = vector.broadcast %cst_63 : f32 to vector<8x256xf32>
    %168 = arith.cmpf ogt, %166, %167 : vector<8x256xf32>
    %cst_64 = arith.constant 0.00999999977 : f32
    %169 = vector.broadcast %cst_64 : f32 to vector<8x256xf32>
    %170 = arith.mulf %169, %166 : vector<8x256xf32>
    %171 = arith.select %168, %166, %170 : vector<8x256xi1>, vector<8x256xf32>
    %c0_65 = arith.constant 0 : index
    %c0_66 = arith.constant 0 : index
    %c1_67 = arith.constant 1 : index
    %c0_68 = arith.constant 0 : index
    %c0_69 = arith.constant 0 : index
    %172 = vector.load %arg6[%c0_65, %c0_66, %c1_67, %c0_68, %c0_69] : memref<1x1x2x15x256xf32, #tpu.memory_space<vmem>>, vector<1x1x1x8x256xf32>
    %173 = vector.shape_cast %172 : vector<1x1x1x8x256xf32> to vector<8x256xf32>
    %174 = vector.shape_cast %171 : vector<8x256xf32> to vector<1x1x1x8x256xf32>
    tpu.vector_store %arg6[%c0_65, %c0_66, %c1_67, %c0_68, %c0_69], %174 {strides = array<i32>} : memref<1x1x2x15x256xf32, #tpu.memory_space<vmem>>, vector<1x1x1x8x256xf32>,
    %cst_70 = arith.constant 0.000000e+00 : f32
    %175 = vector.broadcast %cst_70 : f32 to vector<7x256xf32>
    %cst_71 = arith.constant 0.000000e+00 : f32
    %176 = vector.broadcast %cst_71 : f32 to vector<7x256xf32>
    %c0_72 = arith.constant 0 : index
    %c0_73 = arith.constant 0 : index
    %c8 = arith.constant 8 : index
    %c0_74 = arith.constant 0 : index
    %177 = vector.load %arg5[%c0_72, %c0_73, %c8, %c0_74] : memref<1x2x16x384xf32, #tpu.memory_space<vmem>>, vector<1x1x8x256xf32>
    %178 = vector.shape_cast %177 : vector<1x1x8x256xf32> to vector<8x256xf32>
    %179 = vector.extract_strided_slice %178 {offsets = [0, 0], sizes = [7, 256], strides = [1, 1]} : vector<8x256xf32> to vector<7x256xf32>
    %180 = vector.broadcast %4 : f32 to vector<7x256xf32>
    %181 = arith.mulf %180, %179 : vector<7x256xf32>
    %182 = arith.addf %175, %181 : vector<7x256xf32>
    %183 = vector.extract_strided_slice %178 {offsets = [1, 0], sizes = [7, 256], strides = [1, 1]} : vector<8x256xf32> to vector<7x256xf32>
    %184 = vector.broadcast %20 : f32 to vector<7x256xf32>
    %185 = arith.mulf %184, %183 : vector<7x256xf32>
    %186 = arith.addf %182, %185 : vector<7x256xf32>
    %c0_75 = arith.constant 0 : index
    %c0_76 = arith.constant 0 : index
    %c8_77 = arith.constant 8 : index
    %c1_78 = arith.constant 1 : index
    %187 = vector.load %arg5[%c0_75, %c0_76, %c8_77, %c1_78] : memref<1x2x16x384xf32, #tpu.memory_space<vmem>>, vector<1x1x8x256xf32>
    %188 = vector.shape_cast %187 : vector<1x1x8x256xf32> to vector<8x256xf32>
    %189 = vector.extract_strided_slice %188 {offsets = [0, 0], sizes = [7, 256], strides = [1, 1]} : vector<8x256xf32> to vector<7x256xf32>
    %190 = vector.broadcast %8 : f32 to vector<7x256xf32>
    %191 = arith.mulf %190, %189 : vector<7x256xf32>
    %192 = arith.addf %186, %191 : vector<7x256xf32>
    %193 = vector.extract_strided_slice %188 {offsets = [1, 0], sizes = [7, 256], strides = [1, 1]} : vector<8x256xf32> to vector<7x256xf32>
    %194 = vector.broadcast %24 : f32 to vector<7x256xf32>
    %195 = arith.mulf %194, %193 : vector<7x256xf32>
    %196 = arith.addf %192, %195 : vector<7x256xf32>
    %c0_79 = arith.constant 0 : index
    %c0_80 = arith.constant 0 : index
    %c8_81 = arith.constant 8 : index
    %c16_82 = arith.constant 16 : index
    %197 = vector.load %arg5[%c0_79, %c0_80, %c8_81, %c16_82] : memref<1x2x16x384xf32, #tpu.memory_space<vmem>>, vector<1x1x8x256xf32>
    %198 = vector.shape_cast %197 : vector<1x1x8x256xf32> to vector<8x256xf32>
    %199 = vector.extract_strided_slice %198 {offsets = [0, 0], sizes = [7, 256], strides = [1, 1]} : vector<8x256xf32> to vector<7x256xf32>
    %200 = vector.broadcast %12 : f32 to vector<7x256xf32>
    %201 = arith.mulf %200, %199 : vector<7x256xf32>
    %202 = arith.addf %196, %201 : vector<7x256xf32>
    %203 = vector.extract_strided_slice %198 {offsets = [1, 0], sizes = [7, 256], strides = [1, 1]} : vector<8x256xf32> to vector<7x256xf32>
    %204 = vector.broadcast %28 : f32 to vector<7x256xf32>
    %205 = arith.mulf %204, %203 : vector<7x256xf32>
    %206 = arith.addf %202, %205 : vector<7x256xf32>
    %c0_83 = arith.constant 0 : index
    %c0_84 = arith.constant 0 : index
    %c8_85 = arith.constant 8 : index
    %c17_86 = arith.constant 17 : index
    %207 = vector.load %arg5[%c0_83, %c0_84, %c8_85, %c17_86] : memref<1x2x16x384xf32, #tpu.memory_space<vmem>>, vector<1x1x8x256xf32>
    %208 = vector.shape_cast %207 : vector<1x1x8x256xf32> to vector<8x256xf32>
    %209 = vector.extract_strided_slice %208 {offsets = [0, 0], sizes = [7, 256], strides = [1, 1]} : vector<8x256xf32> to vector<7x256xf32>
    %210 = vector.broadcast %16 : f32 to vector<7x256xf32>
    %211 = arith.mulf %210, %209 : vector<7x256xf32>
    %212 = arith.addf %206, %211 : vector<7x256xf32>
    %213 = vector.extract_strided_slice %208 {offsets = [1, 0], sizes = [7, 256], strides = [1, 1]} : vector<8x256xf32> to vector<7x256xf32>
    %214 = vector.broadcast %32 : f32 to vector<7x256xf32>
    %215 = arith.mulf %214, %213 : vector<7x256xf32>
    %216 = arith.addf %212, %215 : vector<7x256xf32>
    %c0_87 = arith.constant 0 : index
    %c1_88 = arith.constant 1 : index
    %c8_89 = arith.constant 8 : index
    %c0_90 = arith.constant 0 : index
    %217 = vector.load %arg5[%c0_87, %c1_88, %c8_89, %c0_90] : memref<1x2x16x384xf32, #tpu.memory_space<vmem>>, vector<1x1x8x256xf32>
    %218 = vector.shape_cast %217 : vector<1x1x8x256xf32> to vector<8x256xf32>
    %219 = vector.extract_strided_slice %218 {offsets = [0, 0], sizes = [7, 256], strides = [1, 1]} : vector<8x256xf32> to vector<7x256xf32>
    %220 = vector.broadcast %36 : f32 to vector<7x256xf32>
    %221 = arith.mulf %220, %219 : vector<7x256xf32>
    %222 = arith.addf %176, %221 : vector<7x256xf32>
    %223 = vector.extract_strided_slice %218 {offsets = [1, 0], sizes = [7, 256], strides = [1, 1]} : vector<8x256xf32> to vector<7x256xf32>
    %224 = vector.broadcast %52 : f32 to vector<7x256xf32>
    %225 = arith.mulf %224, %223 : vector<7x256xf32>
    %226 = arith.addf %222, %225 : vector<7x256xf32>
    %c0_91 = arith.constant 0 : index
    %c1_92 = arith.constant 1 : index
    %c8_93 = arith.constant 8 : index
    %c1_94 = arith.constant 1 : index
    %227 = vector.load %arg5[%c0_91, %c1_92, %c8_93, %c1_94] : memref<1x2x16x384xf32, #tpu.memory_space<vmem>>, vector<1x1x8x256xf32>
    %228 = vector.shape_cast %227 : vector<1x1x8x256xf32> to vector<8x256xf32>
    %229 = vector.extract_strided_slice %228 {offsets = [0, 0], sizes = [7, 256], strides = [1, 1]} : vector<8x256xf32> to vector<7x256xf32>
    %230 = vector.broadcast %40 : f32 to vector<7x256xf32>
    %231 = arith.mulf %230, %229 : vector<7x256xf32>
    %232 = arith.addf %226, %231 : vector<7x256xf32>
    %233 = vector.extract_strided_slice %228 {offsets = [1, 0], sizes = [7, 256], strides = [1, 1]} : vector<8x256xf32> to vector<7x256xf32>
    %234 = vector.broadcast %56 : f32 to vector<7x256xf32>
    %235 = arith.mulf %234, %233 : vector<7x256xf32>
    %236 = arith.addf %232, %235 : vector<7x256xf32>
    %c0_95 = arith.constant 0 : index
    %c1_96 = arith.constant 1 : index
    %c8_97 = arith.constant 8 : index
    %c16_98 = arith.constant 16 : index
    %237 = vector.load %arg5[%c0_95, %c1_96, %c8_97, %c16_98] : memref<1x2x16x384xf32, #tpu.memory_space<vmem>>, vector<1x1x8x256xf32>
    %238 = vector.shape_cast %237 : vector<1x1x8x256xf32> to vector<8x256xf32>
    %239 = vector.extract_strided_slice %238 {offsets = [0, 0], sizes = [7, 256], strides = [1, 1]} : vector<8x256xf32> to vector<7x256xf32>
    %240 = vector.broadcast %44 : f32 to vector<7x256xf32>
    %241 = arith.mulf %240, %239 : vector<7x256xf32>
    %242 = arith.addf %236, %241 : vector<7x256xf32>
    %243 = vector.extract_strided_slice %238 {offsets = [1, 0], sizes = [7, 256], strides = [1, 1]} : vector<8x256xf32> to vector<7x256xf32>
    %244 = vector.broadcast %60 : f32 to vector<7x256xf32>
    %245 = arith.mulf %244, %243 : vector<7x256xf32>
    %246 = arith.addf %242, %245 : vector<7x256xf32>
    %c0_99 = arith.constant 0 : index
    %c1_100 = arith.constant 1 : index
    %c8_101 = arith.constant 8 : index
    %c17_102 = arith.constant 17 : index
    %247 = vector.load %arg5[%c0_99, %c1_100, %c8_101, %c17_102] : memref<1x2x16x384xf32, #tpu.memory_space<vmem>>, vector<1x1x8x256xf32>
    %248 = vector.shape_cast %247 : vector<1x1x8x256xf32> to vector<8x256xf32>
    %249 = vector.extract_strided_slice %248 {offsets = [0, 0], sizes = [7, 256], strides = [1, 1]} : vector<8x256xf32> to vector<7x256xf32>
    %250 = vector.broadcast %48 : f32 to vector<7x256xf32>
    %251 = arith.mulf %250, %249 : vector<7x256xf32>
    %252 = arith.addf %246, %251 : vector<7x256xf32>
    %253 = vector.extract_strided_slice %248 {offsets = [1, 0], sizes = [7, 256], strides = [1, 1]} : vector<8x256xf32> to vector<7x256xf32>
    %254 = vector.broadcast %64 : f32 to vector<7x256xf32>
    %255 = arith.mulf %254, %253 : vector<7x256xf32>
    %256 = arith.addf %252, %255 : vector<7x256xf32>
    %257 = vector.broadcast %65 : f32 to vector<7x256xf32>
    %258 = arith.mulf %216, %257 : vector<7x256xf32>
    %259 = vector.broadcast %67 : f32 to vector<7x256xf32>
    %260 = arith.addf %258, %259 : vector<7x256xf32>
    %cst_103 = arith.constant 0.000000e+00 : f32
    %261 = vector.broadcast %cst_103 : f32 to vector<7x256xf32>
    %262 = arith.cmpf ogt, %260, %261 : vector<7x256xf32>
    %cst_104 = arith.constant 0.00999999977 : f32
    %263 = vector.broadcast %cst_104 : f32 to vector<7x256xf32>
    %264 = arith.mulf %263, %260 : vector<7x256xf32>
    %265 = arith.select %262, %260, %264 : vector<7x256xi1>, vector<7x256xf32>
    %c0_105 = arith.constant 0 : index
    %c0_106 = arith.constant 0 : index
    %c0_107 = arith.constant 0 : index
    %c8_108 = arith.constant 8 : index
    %c0_109 = arith.constant 0 : index
    %266 = vector.load %arg6[%c0_105, %c0_106, %c0_107, %c8_108, %c0_109] : memref<1x1x2x15x256xf32, #tpu.memory_space<vmem>>, vector<1x1x1x7x256xf32>
    %267 = vector.shape_cast %266 : vector<1x1x1x7x256xf32> to vector<7x256xf32>
    %268 = vector.shape_cast %265 : vector<7x256xf32> to vector<1x1x1x7x256xf32>
    tpu.vector_store %arg6[%c0_105, %c0_106, %c0_107, %c8_108, %c0_109], %268 {strides = array<i32>} : memref<1x1x2x15x256xf32, #tpu.memory_space<vmem>>, vector<1x1x1x7x256xf32>,
    %269 = vector.broadcast %66 : f32 to vector<7x256xf32>
    %270 = arith.mulf %256, %269 : vector<7x256xf32>
    %271 = vector.broadcast %68 : f32 to vector<7x256xf32>
    %272 = arith.addf %270, %271 : vector<7x256xf32>
    %cst_110 = arith.constant 0.000000e+00 : f32
    %273 = vector.broadcast %cst_110 : f32 to vector<7x256xf32>
    %274 = arith.cmpf ogt, %272, %273 : vector<7x256xf32>
    %cst_111 = arith.constant 0.00999999977 : f32
    %275 = vector.broadcast %cst_111 : f32 to vector<7x256xf32>
    %276 = arith.mulf %275, %272 : vector<7x256xf32>
    %277 = arith.select %274, %272, %276 : vector<7x256xi1>, vector<7x256xf32>
    %c0_112 = arith.constant 0 : index
    %c0_113 = arith.constant 0 : index
    %c1_114 = arith.constant 1 : index
    %c8_115 = arith.constant 8 : index
    %c0_116 = arith.constant 0 : index
    %278 = vector.load %arg6[%c0_112, %c0_113, %c1_114, %c8_115, %c0_116] : memref<1x1x2x15x256xf32, #tpu.memory_space<vmem>>, vector<1x1x1x7x256xf32>
    %279 = vector.shape_cast %278 : vector<1x1x1x7x256xf32> to vector<7x256xf32>
    %280 = vector.shape_cast %277 : vector<7x256xf32> to vector<1x1x1x7x256xf32>
    tpu.vector_store %arg6[%c0_112, %c0_113, %c1_114, %c8_115, %c0_116], %280 {strides = array<i32>} : memref<1x1x2x15x256xf32, #tpu.memory_space<vmem>>, vector<1x1x1x7x256xf32>,
    return
  }
  func.func @transform_0(%arg0: i32, %arg1: i32) -> i32 {
    %c0_i32 = arith.constant 0 : i32
    %c0_i32_0 = arith.constant 0 : i32
    return %c0_i32 : i32
  }
  func.func @transform_1(%arg0: i32, %arg1: i32) -> i32 {
    %c0_i32 = arith.constant 0 : i32
    %c0_i32_0 = arith.constant 0 : i32
    return %c0_i32 : i32
  }
  func.func @transform_2(%arg0: i32, %arg1: i32) -> i32 {
    %c0_i32 = arith.constant 0 : i32
    %c0_i32_0 = arith.constant 0 : i32
    return %c0_i32 : i32
  }
  func.func @transform_3(%arg0: i32, %arg1: i32) -> (i32, i32, i32, i32) {
    %c0_i32 = arith.constant 0 : i32
    %c0_i32_0 = arith.constant 0 : i32
    %c0_i32_1 = arith.constant 0 : i32
    %c0_i32_2 = arith.constant 0 : i32
    return %arg0, %c0_i32, %c0_i32_0, %c0_i32_1 : i32, i32, i32, i32
  }
  func.func @transform_4(%arg0: i32, %arg1: i32) -> (i32, i32, i32, i32, i32) {
    %c0_i32 = arith.constant 0 : i32
    %c0_i32_0 = arith.constant 0 : i32
    %c0_i32_1 = arith.constant 0 : i32
    %c0_i32_2 = arith.constant 0 : i32
    return %arg0, %arg1, %c0_i32, %c0_i32_0, %c0_i32_1 : i32, i32, i32, i32, i32
  }
}

module attributes {stable_mosaic.version = 11 : i64} {
  func.func @kernel(%arg0: i32, %arg1: i32, %arg2: memref<128xf32, #tpu.memory_space<smem>>, %arg3: memref<1xf32, #tpu.memory_space<smem>>, %arg4: memref<1xf32, #tpu.memory_space<smem>>, %arg5: memref<1x2x32x1152xf32, #tpu.memory_space<vmem>>, %arg6: memref<1x1x1x31x1024xf32, #tpu.memory_space<vmem>>) attributes {dimension_semantics = [#tpu.dimension_semantics<parallel>, #tpu.dimension_semantics<parallel>], iteration_bounds = array<i64: 2, 8>, scalar_prefetch = 0 : i64, scratch_operands = 0 : i64, tpu.core_type = #tpu.core_type<tc>, window_params = [{transform_indices = @transform_0, window_bounds = array<i64: 128>}, {transform_indices = @transform_1, window_bounds = array<i64: 1>}, {transform_indices = @transform_2, window_bounds = array<i64: 1>}, {transform_indices = @transform_3, window_bounds = array<i64: 1, 2, 32, 1152>}, {transform_indices = @transform_4, window_bounds = array<i64: 1, 1, 1, 31, 1024>}]} {
    %c16_i32 = arith.constant 16 : i32
    %0 = arith.muli %arg1, %c16_i32 : i32
    %c0_i32 = arith.constant 0 : i32
    %1 = arith.addi %0, %c0_i32 : i32
    %c0_i32_0 = arith.constant 0 : i32
    %2 = arith.addi %1, %c0_i32_0 : i32
    %3 = arith.index_cast %2 : i32 to index
    %4 = memref.load %arg2[%3] : memref<128xf32, #tpu.memory_space<smem>>
    %c0_i32_1 = arith.constant 0 : i32
    %5 = arith.addi %0, %c0_i32_1 : i32
    %c1_i32 = arith.constant 1 : i32
    %6 = arith.addi %5, %c1_i32 : i32
    %7 = arith.index_cast %6 : i32 to index
    %8 = memref.load %arg2[%7] : memref<128xf32, #tpu.memory_space<smem>>
    %c0_i32_2 = arith.constant 0 : i32
    %9 = arith.addi %0, %c0_i32_2 : i32
    %c2_i32 = arith.constant 2 : i32
    %10 = arith.addi %9, %c2_i32 : i32
    %11 = arith.index_cast %10 : i32 to index
    %12 = memref.load %arg2[%11] : memref<128xf32, #tpu.memory_space<smem>>
    %c0_i32_3 = arith.constant 0 : i32
    %13 = arith.addi %0, %c0_i32_3 : i32
    %c3_i32 = arith.constant 3 : i32
    %14 = arith.addi %13, %c3_i32 : i32
    %15 = arith.index_cast %14 : i32 to index
    %16 = memref.load %arg2[%15] : memref<128xf32, #tpu.memory_space<smem>>
    %c0_i32_4 = arith.constant 0 : i32
    %17 = arith.addi %0, %c0_i32_4 : i32
    %c4_i32 = arith.constant 4 : i32
    %18 = arith.addi %17, %c4_i32 : i32
    %19 = arith.index_cast %18 : i32 to index
    %20 = memref.load %arg2[%19] : memref<128xf32, #tpu.memory_space<smem>>
    %c0_i32_5 = arith.constant 0 : i32
    %21 = arith.addi %0, %c0_i32_5 : i32
    %c5_i32 = arith.constant 5 : i32
    %22 = arith.addi %21, %c5_i32 : i32
    %23 = arith.index_cast %22 : i32 to index
    %24 = memref.load %arg2[%23] : memref<128xf32, #tpu.memory_space<smem>>
    %c0_i32_6 = arith.constant 0 : i32
    %25 = arith.addi %0, %c0_i32_6 : i32
    %c6_i32 = arith.constant 6 : i32
    %26 = arith.addi %25, %c6_i32 : i32
    %27 = arith.index_cast %26 : i32 to index
    %28 = memref.load %arg2[%27] : memref<128xf32, #tpu.memory_space<smem>>
    %c0_i32_7 = arith.constant 0 : i32
    %29 = arith.addi %0, %c0_i32_7 : i32
    %c7_i32 = arith.constant 7 : i32
    %30 = arith.addi %29, %c7_i32 : i32
    %31 = arith.index_cast %30 : i32 to index
    %32 = memref.load %arg2[%31] : memref<128xf32, #tpu.memory_space<smem>>
    %c8_i32 = arith.constant 8 : i32
    %33 = arith.addi %0, %c8_i32 : i32
    %c0_i32_8 = arith.constant 0 : i32
    %34 = arith.addi %33, %c0_i32_8 : i32
    %35 = arith.index_cast %34 : i32 to index
    %36 = memref.load %arg2[%35] : memref<128xf32, #tpu.memory_space<smem>>
    %c8_i32_9 = arith.constant 8 : i32
    %37 = arith.addi %0, %c8_i32_9 : i32
    %c1_i32_10 = arith.constant 1 : i32
    %38 = arith.addi %37, %c1_i32_10 : i32
    %39 = arith.index_cast %38 : i32 to index
    %40 = memref.load %arg2[%39] : memref<128xf32, #tpu.memory_space<smem>>
    %c8_i32_11 = arith.constant 8 : i32
    %41 = arith.addi %0, %c8_i32_11 : i32
    %c2_i32_12 = arith.constant 2 : i32
    %42 = arith.addi %41, %c2_i32_12 : i32
    %43 = arith.index_cast %42 : i32 to index
    %44 = memref.load %arg2[%43] : memref<128xf32, #tpu.memory_space<smem>>
    %c8_i32_13 = arith.constant 8 : i32
    %45 = arith.addi %0, %c8_i32_13 : i32
    %c3_i32_14 = arith.constant 3 : i32
    %46 = arith.addi %45, %c3_i32_14 : i32
    %47 = arith.index_cast %46 : i32 to index
    %48 = memref.load %arg2[%47] : memref<128xf32, #tpu.memory_space<smem>>
    %c8_i32_15 = arith.constant 8 : i32
    %49 = arith.addi %0, %c8_i32_15 : i32
    %c4_i32_16 = arith.constant 4 : i32
    %50 = arith.addi %49, %c4_i32_16 : i32
    %51 = arith.index_cast %50 : i32 to index
    %52 = memref.load %arg2[%51] : memref<128xf32, #tpu.memory_space<smem>>
    %c8_i32_17 = arith.constant 8 : i32
    %53 = arith.addi %0, %c8_i32_17 : i32
    %c5_i32_18 = arith.constant 5 : i32
    %54 = arith.addi %53, %c5_i32_18 : i32
    %55 = arith.index_cast %54 : i32 to index
    %56 = memref.load %arg2[%55] : memref<128xf32, #tpu.memory_space<smem>>
    %c8_i32_19 = arith.constant 8 : i32
    %57 = arith.addi %0, %c8_i32_19 : i32
    %c6_i32_20 = arith.constant 6 : i32
    %58 = arith.addi %57, %c6_i32_20 : i32
    %59 = arith.index_cast %58 : i32 to index
    %60 = memref.load %arg2[%59] : memref<128xf32, #tpu.memory_space<smem>>
    %c8_i32_21 = arith.constant 8 : i32
    %61 = arith.addi %0, %c8_i32_21 : i32
    %c7_i32_22 = arith.constant 7 : i32
    %62 = arith.addi %61, %c7_i32_22 : i32
    %63 = arith.index_cast %62 : i32 to index
    %64 = memref.load %arg2[%63] : memref<128xf32, #tpu.memory_space<smem>>
    %c0 = arith.constant 0 : index
    %65 = memref.load %arg3[%c0] : memref<1xf32, #tpu.memory_space<smem>>
    %c0_23 = arith.constant 0 : index
    %66 = memref.load %arg4[%c0_23] : memref<1xf32, #tpu.memory_space<smem>>
    %cst = arith.constant 0.000000e+00 : f32
    %67 = vector.broadcast %cst : f32 to vector<8x1024xf32>
    %c0_24 = arith.constant 0 : index
    %c0_25 = arith.constant 0 : index
    %c0_26 = arith.constant 0 : index
    %c0_27 = arith.constant 0 : index
    %68 = vector.load %arg5[%c0_24, %c0_25, %c0_26, %c0_27] : memref<1x2x32x1152xf32, #tpu.memory_space<vmem>>, vector<1x1x9x1024xf32>
    %69 = vector.shape_cast %68 : vector<1x1x9x1024xf32> to vector<9x1024xf32>
    %70 = vector.extract_strided_slice %69 {offsets = [0, 0], sizes = [8, 1024], strides = [1, 1]} : vector<9x1024xf32> to vector<8x1024xf32>
    %71 = vector.broadcast %4 : f32 to vector<8x1024xf32>
    %72 = arith.mulf %71, %70 : vector<8x1024xf32>
    %73 = arith.addf %67, %72 : vector<8x1024xf32>
    %74 = vector.extract_strided_slice %69 {offsets = [1, 0], sizes = [8, 1024], strides = [1, 1]} : vector<9x1024xf32> to vector<8x1024xf32>
    %75 = vector.broadcast %20 : f32 to vector<8x1024xf32>
    %76 = arith.mulf %75, %74 : vector<8x1024xf32>
    %77 = arith.addf %73, %76 : vector<8x1024xf32>
    %c0_28 = arith.constant 0 : index
    %c0_29 = arith.constant 0 : index
    %c0_30 = arith.constant 0 : index
    %c1 = arith.constant 1 : index
    %78 = vector.load %arg5[%c0_28, %c0_29, %c0_30, %c1] : memref<1x2x32x1152xf32, #tpu.memory_space<vmem>>, vector<1x1x9x1024xf32>
    %79 = vector.shape_cast %78 : vector<1x1x9x1024xf32> to vector<9x1024xf32>
    %80 = vector.extract_strided_slice %79 {offsets = [0, 0], sizes = [8, 1024], strides = [1, 1]} : vector<9x1024xf32> to vector<8x1024xf32>
    %81 = vector.broadcast %8 : f32 to vector<8x1024xf32>
    %82 = arith.mulf %81, %80 : vector<8x1024xf32>
    %83 = arith.addf %77, %82 : vector<8x1024xf32>
    %84 = vector.extract_strided_slice %79 {offsets = [1, 0], sizes = [8, 1024], strides = [1, 1]} : vector<9x1024xf32> to vector<8x1024xf32>
    %85 = vector.broadcast %24 : f32 to vector<8x1024xf32>
    %86 = arith.mulf %85, %84 : vector<8x1024xf32>
    %87 = arith.addf %83, %86 : vector<8x1024xf32>
    %c0_31 = arith.constant 0 : index
    %c0_32 = arith.constant 0 : index
    %c0_33 = arith.constant 0 : index
    %c32 = arith.constant 32 : index
    %88 = vector.load %arg5[%c0_31, %c0_32, %c0_33, %c32] : memref<1x2x32x1152xf32, #tpu.memory_space<vmem>>, vector<1x1x9x1024xf32>
    %89 = vector.shape_cast %88 : vector<1x1x9x1024xf32> to vector<9x1024xf32>
    %90 = vector.extract_strided_slice %89 {offsets = [0, 0], sizes = [8, 1024], strides = [1, 1]} : vector<9x1024xf32> to vector<8x1024xf32>
    %91 = vector.broadcast %12 : f32 to vector<8x1024xf32>
    %92 = arith.mulf %91, %90 : vector<8x1024xf32>
    %93 = arith.addf %87, %92 : vector<8x1024xf32>
    %94 = vector.extract_strided_slice %89 {offsets = [1, 0], sizes = [8, 1024], strides = [1, 1]} : vector<9x1024xf32> to vector<8x1024xf32>
    %95 = vector.broadcast %28 : f32 to vector<8x1024xf32>
    %96 = arith.mulf %95, %94 : vector<8x1024xf32>
    %97 = arith.addf %93, %96 : vector<8x1024xf32>
    %c0_34 = arith.constant 0 : index
    %c0_35 = arith.constant 0 : index
    %c0_36 = arith.constant 0 : index
    %c33 = arith.constant 33 : index
    %98 = vector.load %arg5[%c0_34, %c0_35, %c0_36, %c33] : memref<1x2x32x1152xf32, #tpu.memory_space<vmem>>, vector<1x1x9x1024xf32>
    %99 = vector.shape_cast %98 : vector<1x1x9x1024xf32> to vector<9x1024xf32>
    %100 = vector.extract_strided_slice %99 {offsets = [0, 0], sizes = [8, 1024], strides = [1, 1]} : vector<9x1024xf32> to vector<8x1024xf32>
    %101 = vector.broadcast %16 : f32 to vector<8x1024xf32>
    %102 = arith.mulf %101, %100 : vector<8x1024xf32>
    %103 = arith.addf %97, %102 : vector<8x1024xf32>
    %104 = vector.extract_strided_slice %99 {offsets = [1, 0], sizes = [8, 1024], strides = [1, 1]} : vector<9x1024xf32> to vector<8x1024xf32>
    %105 = vector.broadcast %32 : f32 to vector<8x1024xf32>
    %106 = arith.mulf %105, %104 : vector<8x1024xf32>
    %107 = arith.addf %103, %106 : vector<8x1024xf32>
    %c0_37 = arith.constant 0 : index
    %c1_38 = arith.constant 1 : index
    %c0_39 = arith.constant 0 : index
    %c0_40 = arith.constant 0 : index
    %108 = vector.load %arg5[%c0_37, %c1_38, %c0_39, %c0_40] : memref<1x2x32x1152xf32, #tpu.memory_space<vmem>>, vector<1x1x9x1024xf32>
    %109 = vector.shape_cast %108 : vector<1x1x9x1024xf32> to vector<9x1024xf32>
    %110 = vector.extract_strided_slice %109 {offsets = [0, 0], sizes = [8, 1024], strides = [1, 1]} : vector<9x1024xf32> to vector<8x1024xf32>
    %111 = vector.broadcast %36 : f32 to vector<8x1024xf32>
    %112 = arith.mulf %111, %110 : vector<8x1024xf32>
    %113 = arith.addf %107, %112 : vector<8x1024xf32>
    %114 = vector.extract_strided_slice %109 {offsets = [1, 0], sizes = [8, 1024], strides = [1, 1]} : vector<9x1024xf32> to vector<8x1024xf32>
    %115 = vector.broadcast %52 : f32 to vector<8x1024xf32>
    %116 = arith.mulf %115, %114 : vector<8x1024xf32>
    %117 = arith.addf %113, %116 : vector<8x1024xf32>
    %c0_41 = arith.constant 0 : index
    %c1_42 = arith.constant 1 : index
    %c0_43 = arith.constant 0 : index
    %c1_44 = arith.constant 1 : index
    %118 = vector.load %arg5[%c0_41, %c1_42, %c0_43, %c1_44] : memref<1x2x32x1152xf32, #tpu.memory_space<vmem>>, vector<1x1x9x1024xf32>
    %119 = vector.shape_cast %118 : vector<1x1x9x1024xf32> to vector<9x1024xf32>
    %120 = vector.extract_strided_slice %119 {offsets = [0, 0], sizes = [8, 1024], strides = [1, 1]} : vector<9x1024xf32> to vector<8x1024xf32>
    %121 = vector.broadcast %40 : f32 to vector<8x1024xf32>
    %122 = arith.mulf %121, %120 : vector<8x1024xf32>
    %123 = arith.addf %117, %122 : vector<8x1024xf32>
    %124 = vector.extract_strided_slice %119 {offsets = [1, 0], sizes = [8, 1024], strides = [1, 1]} : vector<9x1024xf32> to vector<8x1024xf32>
    %125 = vector.broadcast %56 : f32 to vector<8x1024xf32>
    %126 = arith.mulf %125, %124 : vector<8x1024xf32>
    %127 = arith.addf %123, %126 : vector<8x1024xf32>
    %c0_45 = arith.constant 0 : index
    %c1_46 = arith.constant 1 : index
    %c0_47 = arith.constant 0 : index
    %c32_48 = arith.constant 32 : index
    %128 = vector.load %arg5[%c0_45, %c1_46, %c0_47, %c32_48] : memref<1x2x32x1152xf32, #tpu.memory_space<vmem>>, vector<1x1x9x1024xf32>
    %129 = vector.shape_cast %128 : vector<1x1x9x1024xf32> to vector<9x1024xf32>
    %130 = vector.extract_strided_slice %129 {offsets = [0, 0], sizes = [8, 1024], strides = [1, 1]} : vector<9x1024xf32> to vector<8x1024xf32>
    %131 = vector.broadcast %44 : f32 to vector<8x1024xf32>
    %132 = arith.mulf %131, %130 : vector<8x1024xf32>
    %133 = arith.addf %127, %132 : vector<8x1024xf32>
    %134 = vector.extract_strided_slice %129 {offsets = [1, 0], sizes = [8, 1024], strides = [1, 1]} : vector<9x1024xf32> to vector<8x1024xf32>
    %135 = vector.broadcast %60 : f32 to vector<8x1024xf32>
    %136 = arith.mulf %135, %134 : vector<8x1024xf32>
    %137 = arith.addf %133, %136 : vector<8x1024xf32>
    %c0_49 = arith.constant 0 : index
    %c1_50 = arith.constant 1 : index
    %c0_51 = arith.constant 0 : index
    %c33_52 = arith.constant 33 : index
    %138 = vector.load %arg5[%c0_49, %c1_50, %c0_51, %c33_52] : memref<1x2x32x1152xf32, #tpu.memory_space<vmem>>, vector<1x1x9x1024xf32>
    %139 = vector.shape_cast %138 : vector<1x1x9x1024xf32> to vector<9x1024xf32>
    %140 = vector.extract_strided_slice %139 {offsets = [0, 0], sizes = [8, 1024], strides = [1, 1]} : vector<9x1024xf32> to vector<8x1024xf32>
    %141 = vector.broadcast %48 : f32 to vector<8x1024xf32>
    %142 = arith.mulf %141, %140 : vector<8x1024xf32>
    %143 = arith.addf %137, %142 : vector<8x1024xf32>
    %144 = vector.extract_strided_slice %139 {offsets = [1, 0], sizes = [8, 1024], strides = [1, 1]} : vector<9x1024xf32> to vector<8x1024xf32>
    %145 = vector.broadcast %64 : f32 to vector<8x1024xf32>
    %146 = arith.mulf %145, %144 : vector<8x1024xf32>
    %147 = arith.addf %143, %146 : vector<8x1024xf32>
    %148 = vector.broadcast %65 : f32 to vector<8x1024xf32>
    %149 = arith.mulf %147, %148 : vector<8x1024xf32>
    %150 = vector.broadcast %66 : f32 to vector<8x1024xf32>
    %151 = arith.addf %149, %150 : vector<8x1024xf32>
    %152 = arith.negf %151 : vector<8x1024xf32>
    %153 = math.exp %152 : vector<8x1024xf32>
    %cst_53 = arith.constant 1.000000e+00 : f32
    %154 = vector.broadcast %cst_53 : f32 to vector<8x1024xf32>
    %155 = arith.addf %154, %153 : vector<8x1024xf32>
    %156 = arith.divf %154, %155 : vector<8x1024xf32>
    %c0_54 = arith.constant 0 : index
    %c0_55 = arith.constant 0 : index
    %c0_56 = arith.constant 0 : index
    %c0_57 = arith.constant 0 : index
    %c0_58 = arith.constant 0 : index
    %157 = vector.load %arg6[%c0_54, %c0_55, %c0_56, %c0_57, %c0_58] : memref<1x1x1x31x1024xf32, #tpu.memory_space<vmem>>, vector<1x1x1x8x1024xf32>
    %158 = vector.shape_cast %157 : vector<1x1x1x8x1024xf32> to vector<8x1024xf32>
    %159 = vector.shape_cast %156 : vector<8x1024xf32> to vector<1x1x1x8x1024xf32>
    tpu.vector_store %arg6[%c0_54, %c0_55, %c0_56, %c0_57, %c0_58], %159 {strides = array<i32>} : memref<1x1x1x31x1024xf32, #tpu.memory_space<vmem>>, vector<1x1x1x8x1024xf32>,
    %cst_59 = arith.constant 0.000000e+00 : f32
    %160 = vector.broadcast %cst_59 : f32 to vector<8x1024xf32>
    %c0_60 = arith.constant 0 : index
    %c0_61 = arith.constant 0 : index
    %c8 = arith.constant 8 : index
    %c0_62 = arith.constant 0 : index
    %161 = vector.load %arg5[%c0_60, %c0_61, %c8, %c0_62] : memref<1x2x32x1152xf32, #tpu.memory_space<vmem>>, vector<1x1x9x1024xf32>
    %162 = vector.shape_cast %161 : vector<1x1x9x1024xf32> to vector<9x1024xf32>
    %163 = vector.extract_strided_slice %162 {offsets = [0, 0], sizes = [8, 1024], strides = [1, 1]} : vector<9x1024xf32> to vector<8x1024xf32>
    %164 = vector.broadcast %4 : f32 to vector<8x1024xf32>
    %165 = arith.mulf %164, %163 : vector<8x1024xf32>
    %166 = arith.addf %160, %165 : vector<8x1024xf32>
    %167 = vector.extract_strided_slice %162 {offsets = [1, 0], sizes = [8, 1024], strides = [1, 1]} : vector<9x1024xf32> to vector<8x1024xf32>
    %168 = vector.broadcast %20 : f32 to vector<8x1024xf32>
    %169 = arith.mulf %168, %167 : vector<8x1024xf32>
    %170 = arith.addf %166, %169 : vector<8x1024xf32>
    %c0_63 = arith.constant 0 : index
    %c0_64 = arith.constant 0 : index
    %c8_65 = arith.constant 8 : index
    %c1_66 = arith.constant 1 : index
    %171 = vector.load %arg5[%c0_63, %c0_64, %c8_65, %c1_66] : memref<1x2x32x1152xf32, #tpu.memory_space<vmem>>, vector<1x1x9x1024xf32>
    %172 = vector.shape_cast %171 : vector<1x1x9x1024xf32> to vector<9x1024xf32>
    %173 = vector.extract_strided_slice %172 {offsets = [0, 0], sizes = [8, 1024], strides = [1, 1]} : vector<9x1024xf32> to vector<8x1024xf32>
    %174 = vector.broadcast %8 : f32 to vector<8x1024xf32>
    %175 = arith.mulf %174, %173 : vector<8x1024xf32>
    %176 = arith.addf %170, %175 : vector<8x1024xf32>
    %177 = vector.extract_strided_slice %172 {offsets = [1, 0], sizes = [8, 1024], strides = [1, 1]} : vector<9x1024xf32> to vector<8x1024xf32>
    %178 = vector.broadcast %24 : f32 to vector<8x1024xf32>
    %179 = arith.mulf %178, %177 : vector<8x1024xf32>
    %180 = arith.addf %176, %179 : vector<8x1024xf32>
    %c0_67 = arith.constant 0 : index
    %c0_68 = arith.constant 0 : index
    %c8_69 = arith.constant 8 : index
    %c32_70 = arith.constant 32 : index
    %181 = vector.load %arg5[%c0_67, %c0_68, %c8_69, %c32_70] : memref<1x2x32x1152xf32, #tpu.memory_space<vmem>>, vector<1x1x9x1024xf32>
    %182 = vector.shape_cast %181 : vector<1x1x9x1024xf32> to vector<9x1024xf32>
    %183 = vector.extract_strided_slice %182 {offsets = [0, 0], sizes = [8, 1024], strides = [1, 1]} : vector<9x1024xf32> to vector<8x1024xf32>
    %184 = vector.broadcast %12 : f32 to vector<8x1024xf32>
    %185 = arith.mulf %184, %183 : vector<8x1024xf32>
    %186 = arith.addf %180, %185 : vector<8x1024xf32>
    %187 = vector.extract_strided_slice %182 {offsets = [1, 0], sizes = [8, 1024], strides = [1, 1]} : vector<9x1024xf32> to vector<8x1024xf32>
    %188 = vector.broadcast %28 : f32 to vector<8x1024xf32>
    %189 = arith.mulf %188, %187 : vector<8x1024xf32>
    %190 = arith.addf %186, %189 : vector<8x1024xf32>
    %c0_71 = arith.constant 0 : index
    %c0_72 = arith.constant 0 : index
    %c8_73 = arith.constant 8 : index
    %c33_74 = arith.constant 33 : index
    %191 = vector.load %arg5[%c0_71, %c0_72, %c8_73, %c33_74] : memref<1x2x32x1152xf32, #tpu.memory_space<vmem>>, vector<1x1x9x1024xf32>
    %192 = vector.shape_cast %191 : vector<1x1x9x1024xf32> to vector<9x1024xf32>
    %193 = vector.extract_strided_slice %192 {offsets = [0, 0], sizes = [8, 1024], strides = [1, 1]} : vector<9x1024xf32> to vector<8x1024xf32>
    %194 = vector.broadcast %16 : f32 to vector<8x1024xf32>
    %195 = arith.mulf %194, %193 : vector<8x1024xf32>
    %196 = arith.addf %190, %195 : vector<8x1024xf32>
    %197 = vector.extract_strided_slice %192 {offsets = [1, 0], sizes = [8, 1024], strides = [1, 1]} : vector<9x1024xf32> to vector<8x1024xf32>
    %198 = vector.broadcast %32 : f32 to vector<8x1024xf32>
    %199 = arith.mulf %198, %197 : vector<8x1024xf32>
    %200 = arith.addf %196, %199 : vector<8x1024xf32>
    %c0_75 = arith.constant 0 : index
    %c1_76 = arith.constant 1 : index
    %c8_77 = arith.constant 8 : index
    %c0_78 = arith.constant 0 : index
    %201 = vector.load %arg5[%c0_75, %c1_76, %c8_77, %c0_78] : memref<1x2x32x1152xf32, #tpu.memory_space<vmem>>, vector<1x1x9x1024xf32>
    %202 = vector.shape_cast %201 : vector<1x1x9x1024xf32> to vector<9x1024xf32>
    %203 = vector.extract_strided_slice %202 {offsets = [0, 0], sizes = [8, 1024], strides = [1, 1]} : vector<9x1024xf32> to vector<8x1024xf32>
    %204 = vector.broadcast %36 : f32 to vector<8x1024xf32>
    %205 = arith.mulf %204, %203 : vector<8x1024xf32>
    %206 = arith.addf %200, %205 : vector<8x1024xf32>
    %207 = vector.extract_strided_slice %202 {offsets = [1, 0], sizes = [8, 1024], strides = [1, 1]} : vector<9x1024xf32> to vector<8x1024xf32>
    %208 = vector.broadcast %52 : f32 to vector<8x1024xf32>
    %209 = arith.mulf %208, %207 : vector<8x1024xf32>
    %210 = arith.addf %206, %209 : vector<8x1024xf32>
    %c0_79 = arith.constant 0 : index
    %c1_80 = arith.constant 1 : index
    %c8_81 = arith.constant 8 : index
    %c1_82 = arith.constant 1 : index
    %211 = vector.load %arg5[%c0_79, %c1_80, %c8_81, %c1_82] : memref<1x2x32x1152xf32, #tpu.memory_space<vmem>>, vector<1x1x9x1024xf32>
    %212 = vector.shape_cast %211 : vector<1x1x9x1024xf32> to vector<9x1024xf32>
    %213 = vector.extract_strided_slice %212 {offsets = [0, 0], sizes = [8, 1024], strides = [1, 1]} : vector<9x1024xf32> to vector<8x1024xf32>
    %214 = vector.broadcast %40 : f32 to vector<8x1024xf32>
    %215 = arith.mulf %214, %213 : vector<8x1024xf32>
    %216 = arith.addf %210, %215 : vector<8x1024xf32>
    %217 = vector.extract_strided_slice %212 {offsets = [1, 0], sizes = [8, 1024], strides = [1, 1]} : vector<9x1024xf32> to vector<8x1024xf32>
    %218 = vector.broadcast %56 : f32 to vector<8x1024xf32>
    %219 = arith.mulf %218, %217 : vector<8x1024xf32>
    %220 = arith.addf %216, %219 : vector<8x1024xf32>
    %c0_83 = arith.constant 0 : index
    %c1_84 = arith.constant 1 : index
    %c8_85 = arith.constant 8 : index
    %c32_86 = arith.constant 32 : index
    %221 = vector.load %arg5[%c0_83, %c1_84, %c8_85, %c32_86] : memref<1x2x32x1152xf32, #tpu.memory_space<vmem>>, vector<1x1x9x1024xf32>
    %222 = vector.shape_cast %221 : vector<1x1x9x1024xf32> to vector<9x1024xf32>
    %223 = vector.extract_strided_slice %222 {offsets = [0, 0], sizes = [8, 1024], strides = [1, 1]} : vector<9x1024xf32> to vector<8x1024xf32>
    %224 = vector.broadcast %44 : f32 to vector<8x1024xf32>
    %225 = arith.mulf %224, %223 : vector<8x1024xf32>
    %226 = arith.addf %220, %225 : vector<8x1024xf32>
    %227 = vector.extract_strided_slice %222 {offsets = [1, 0], sizes = [8, 1024], strides = [1, 1]} : vector<9x1024xf32> to vector<8x1024xf32>
    %228 = vector.broadcast %60 : f32 to vector<8x1024xf32>
    %229 = arith.mulf %228, %227 : vector<8x1024xf32>
    %230 = arith.addf %226, %229 : vector<8x1024xf32>
    %c0_87 = arith.constant 0 : index
    %c1_88 = arith.constant 1 : index
    %c8_89 = arith.constant 8 : index
    %c33_90 = arith.constant 33 : index
    %231 = vector.load %arg5[%c0_87, %c1_88, %c8_89, %c33_90] : memref<1x2x32x1152xf32, #tpu.memory_space<vmem>>, vector<1x1x9x1024xf32>
    %232 = vector.shape_cast %231 : vector<1x1x9x1024xf32> to vector<9x1024xf32>
    %233 = vector.extract_strided_slice %232 {offsets = [0, 0], sizes = [8, 1024], strides = [1, 1]} : vector<9x1024xf32> to vector<8x1024xf32>
    %234 = vector.broadcast %48 : f32 to vector<8x1024xf32>
    %235 = arith.mulf %234, %233 : vector<8x1024xf32>
    %236 = arith.addf %230, %235 : vector<8x1024xf32>
    %237 = vector.extract_strided_slice %232 {offsets = [1, 0], sizes = [8, 1024], strides = [1, 1]} : vector<9x1024xf32> to vector<8x1024xf32>
    %238 = vector.broadcast %64 : f32 to vector<8x1024xf32>
    %239 = arith.mulf %238, %237 : vector<8x1024xf32>
    %240 = arith.addf %236, %239 : vector<8x1024xf32>
    %241 = vector.broadcast %65 : f32 to vector<8x1024xf32>
    %242 = arith.mulf %240, %241 : vector<8x1024xf32>
    %243 = vector.broadcast %66 : f32 to vector<8x1024xf32>
    %244 = arith.addf %242, %243 : vector<8x1024xf32>
    %245 = arith.negf %244 : vector<8x1024xf32>
    %246 = math.exp %245 : vector<8x1024xf32>
    %cst_91 = arith.constant 1.000000e+00 : f32
    %247 = vector.broadcast %cst_91 : f32 to vector<8x1024xf32>
    %248 = arith.addf %247, %246 : vector<8x1024xf32>
    %249 = arith.divf %247, %248 : vector<8x1024xf32>
    %c0_92 = arith.constant 0 : index
    %c0_93 = arith.constant 0 : index
    %c0_94 = arith.constant 0 : index
    %c8_95 = arith.constant 8 : index
    %c0_96 = arith.constant 0 : index
    %250 = vector.load %arg6[%c0_92, %c0_93, %c0_94, %c8_95, %c0_96] : memref<1x1x1x31x1024xf32, #tpu.memory_space<vmem>>, vector<1x1x1x8x1024xf32>
    %251 = vector.shape_cast %250 : vector<1x1x1x8x1024xf32> to vector<8x1024xf32>
    %252 = vector.shape_cast %249 : vector<8x1024xf32> to vector<1x1x1x8x1024xf32>
    tpu.vector_store %arg6[%c0_92, %c0_93, %c0_94, %c8_95, %c0_96], %252 {strides = array<i32>} : memref<1x1x1x31x1024xf32, #tpu.memory_space<vmem>>, vector<1x1x1x8x1024xf32>,
    %cst_97 = arith.constant 0.000000e+00 : f32
    %253 = vector.broadcast %cst_97 : f32 to vector<8x1024xf32>
    %c0_98 = arith.constant 0 : index
    %c0_99 = arith.constant 0 : index
    %c16 = arith.constant 16 : index
    %c0_100 = arith.constant 0 : index
    %254 = vector.load %arg5[%c0_98, %c0_99, %c16, %c0_100] : memref<1x2x32x1152xf32, #tpu.memory_space<vmem>>, vector<1x1x9x1024xf32>
    %255 = vector.shape_cast %254 : vector<1x1x9x1024xf32> to vector<9x1024xf32>
    %256 = vector.extract_strided_slice %255 {offsets = [0, 0], sizes = [8, 1024], strides = [1, 1]} : vector<9x1024xf32> to vector<8x1024xf32>
    %257 = vector.broadcast %4 : f32 to vector<8x1024xf32>
    %258 = arith.mulf %257, %256 : vector<8x1024xf32>
    %259 = arith.addf %253, %258 : vector<8x1024xf32>
    %260 = vector.extract_strided_slice %255 {offsets = [1, 0], sizes = [8, 1024], strides = [1, 1]} : vector<9x1024xf32> to vector<8x1024xf32>
    %261 = vector.broadcast %20 : f32 to vector<8x1024xf32>
    %262 = arith.mulf %261, %260 : vector<8x1024xf32>
    %263 = arith.addf %259, %262 : vector<8x1024xf32>
    %c0_101 = arith.constant 0 : index
    %c0_102 = arith.constant 0 : index
    %c16_103 = arith.constant 16 : index
    %c1_104 = arith.constant 1 : index
    %264 = vector.load %arg5[%c0_101, %c0_102, %c16_103, %c1_104] : memref<1x2x32x1152xf32, #tpu.memory_space<vmem>>, vector<1x1x9x1024xf32>
    %265 = vector.shape_cast %264 : vector<1x1x9x1024xf32> to vector<9x1024xf32>
    %266 = vector.extract_strided_slice %265 {offsets = [0, 0], sizes = [8, 1024], strides = [1, 1]} : vector<9x1024xf32> to vector<8x1024xf32>
    %267 = vector.broadcast %8 : f32 to vector<8x1024xf32>
    %268 = arith.mulf %267, %266 : vector<8x1024xf32>
    %269 = arith.addf %263, %268 : vector<8x1024xf32>
    %270 = vector.extract_strided_slice %265 {offsets = [1, 0], sizes = [8, 1024], strides = [1, 1]} : vector<9x1024xf32> to vector<8x1024xf32>
    %271 = vector.broadcast %24 : f32 to vector<8x1024xf32>
    %272 = arith.mulf %271, %270 : vector<8x1024xf32>
    %273 = arith.addf %269, %272 : vector<8x1024xf32>
    %c0_105 = arith.constant 0 : index
    %c0_106 = arith.constant 0 : index
    %c16_107 = arith.constant 16 : index
    %c32_108 = arith.constant 32 : index
    %274 = vector.load %arg5[%c0_105, %c0_106, %c16_107, %c32_108] : memref<1x2x32x1152xf32, #tpu.memory_space<vmem>>, vector<1x1x9x1024xf32>
    %275 = vector.shape_cast %274 : vector<1x1x9x1024xf32> to vector<9x1024xf32>
    %276 = vector.extract_strided_slice %275 {offsets = [0, 0], sizes = [8, 1024], strides = [1, 1]} : vector<9x1024xf32> to vector<8x1024xf32>
    %277 = vector.broadcast %12 : f32 to vector<8x1024xf32>
    %278 = arith.mulf %277, %276 : vector<8x1024xf32>
    %279 = arith.addf %273, %278 : vector<8x1024xf32>
    %280 = vector.extract_strided_slice %275 {offsets = [1, 0], sizes = [8, 1024], strides = [1, 1]} : vector<9x1024xf32> to vector<8x1024xf32>
    %281 = vector.broadcast %28 : f32 to vector<8x1024xf32>
    %282 = arith.mulf %281, %280 : vector<8x1024xf32>
    %283 = arith.addf %279, %282 : vector<8x1024xf32>
    %c0_109 = arith.constant 0 : index
    %c0_110 = arith.constant 0 : index
    %c16_111 = arith.constant 16 : index
    %c33_112 = arith.constant 33 : index
    %284 = vector.load %arg5[%c0_109, %c0_110, %c16_111, %c33_112] : memref<1x2x32x1152xf32, #tpu.memory_space<vmem>>, vector<1x1x9x1024xf32>
    %285 = vector.shape_cast %284 : vector<1x1x9x1024xf32> to vector<9x1024xf32>
    %286 = vector.extract_strided_slice %285 {offsets = [0, 0], sizes = [8, 1024], strides = [1, 1]} : vector<9x1024xf32> to vector<8x1024xf32>
    %287 = vector.broadcast %16 : f32 to vector<8x1024xf32>
    %288 = arith.mulf %287, %286 : vector<8x1024xf32>
    %289 = arith.addf %283, %288 : vector<8x1024xf32>
    %290 = vector.extract_strided_slice %285 {offsets = [1, 0], sizes = [8, 1024], strides = [1, 1]} : vector<9x1024xf32> to vector<8x1024xf32>
    %291 = vector.broadcast %32 : f32 to vector<8x1024xf32>
    %292 = arith.mulf %291, %290 : vector<8x1024xf32>
    %293 = arith.addf %289, %292 : vector<8x1024xf32>
    %c0_113 = arith.constant 0 : index
    %c1_114 = arith.constant 1 : index
    %c16_115 = arith.constant 16 : index
    %c0_116 = arith.constant 0 : index
    %294 = vector.load %arg5[%c0_113, %c1_114, %c16_115, %c0_116] : memref<1x2x32x1152xf32, #tpu.memory_space<vmem>>, vector<1x1x9x1024xf32>
    %295 = vector.shape_cast %294 : vector<1x1x9x1024xf32> to vector<9x1024xf32>
    %296 = vector.extract_strided_slice %295 {offsets = [0, 0], sizes = [8, 1024], strides = [1, 1]} : vector<9x1024xf32> to vector<8x1024xf32>
    %297 = vector.broadcast %36 : f32 to vector<8x1024xf32>
    %298 = arith.mulf %297, %296 : vector<8x1024xf32>
    %299 = arith.addf %293, %298 : vector<8x1024xf32>
    %300 = vector.extract_strided_slice %295 {offsets = [1, 0], sizes = [8, 1024], strides = [1, 1]} : vector<9x1024xf32> to vector<8x1024xf32>
    %301 = vector.broadcast %52 : f32 to vector<8x1024xf32>
    %302 = arith.mulf %301, %300 : vector<8x1024xf32>
    %303 = arith.addf %299, %302 : vector<8x1024xf32>
    %c0_117 = arith.constant 0 : index
    %c1_118 = arith.constant 1 : index
    %c16_119 = arith.constant 16 : index
    %c1_120 = arith.constant 1 : index
    %304 = vector.load %arg5[%c0_117, %c1_118, %c16_119, %c1_120] : memref<1x2x32x1152xf32, #tpu.memory_space<vmem>>, vector<1x1x9x1024xf32>
    %305 = vector.shape_cast %304 : vector<1x1x9x1024xf32> to vector<9x1024xf32>
    %306 = vector.extract_strided_slice %305 {offsets = [0, 0], sizes = [8, 1024], strides = [1, 1]} : vector<9x1024xf32> to vector<8x1024xf32>
    %307 = vector.broadcast %40 : f32 to vector<8x1024xf32>
    %308 = arith.mulf %307, %306 : vector<8x1024xf32>
    %309 = arith.addf %303, %308 : vector<8x1024xf32>
    %310 = vector.extract_strided_slice %305 {offsets = [1, 0], sizes = [8, 1024], strides = [1, 1]} : vector<9x1024xf32> to vector<8x1024xf32>
    %311 = vector.broadcast %56 : f32 to vector<8x1024xf32>
    %312 = arith.mulf %311, %310 : vector<8x1024xf32>
    %313 = arith.addf %309, %312 : vector<8x1024xf32>
    %c0_121 = arith.constant 0 : index
    %c1_122 = arith.constant 1 : index
    %c16_123 = arith.constant 16 : index
    %c32_124 = arith.constant 32 : index
    %314 = vector.load %arg5[%c0_121, %c1_122, %c16_123, %c32_124] : memref<1x2x32x1152xf32, #tpu.memory_space<vmem>>, vector<1x1x9x1024xf32>
    %315 = vector.shape_cast %314 : vector<1x1x9x1024xf32> to vector<9x1024xf32>
    %316 = vector.extract_strided_slice %315 {offsets = [0, 0], sizes = [8, 1024], strides = [1, 1]} : vector<9x1024xf32> to vector<8x1024xf32>
    %317 = vector.broadcast %44 : f32 to vector<8x1024xf32>
    %318 = arith.mulf %317, %316 : vector<8x1024xf32>
    %319 = arith.addf %313, %318 : vector<8x1024xf32>
    %320 = vector.extract_strided_slice %315 {offsets = [1, 0], sizes = [8, 1024], strides = [1, 1]} : vector<9x1024xf32> to vector<8x1024xf32>
    %321 = vector.broadcast %60 : f32 to vector<8x1024xf32>
    %322 = arith.mulf %321, %320 : vector<8x1024xf32>
    %323 = arith.addf %319, %322 : vector<8x1024xf32>
    %c0_125 = arith.constant 0 : index
    %c1_126 = arith.constant 1 : index
    %c16_127 = arith.constant 16 : index
    %c33_128 = arith.constant 33 : index
    %324 = vector.load %arg5[%c0_125, %c1_126, %c16_127, %c33_128] : memref<1x2x32x1152xf32, #tpu.memory_space<vmem>>, vector<1x1x9x1024xf32>
    %325 = vector.shape_cast %324 : vector<1x1x9x1024xf32> to vector<9x1024xf32>
    %326 = vector.extract_strided_slice %325 {offsets = [0, 0], sizes = [8, 1024], strides = [1, 1]} : vector<9x1024xf32> to vector<8x1024xf32>
    %327 = vector.broadcast %48 : f32 to vector<8x1024xf32>
    %328 = arith.mulf %327, %326 : vector<8x1024xf32>
    %329 = arith.addf %323, %328 : vector<8x1024xf32>
    %330 = vector.extract_strided_slice %325 {offsets = [1, 0], sizes = [8, 1024], strides = [1, 1]} : vector<9x1024xf32> to vector<8x1024xf32>
    %331 = vector.broadcast %64 : f32 to vector<8x1024xf32>
    %332 = arith.mulf %331, %330 : vector<8x1024xf32>
    %333 = arith.addf %329, %332 : vector<8x1024xf32>
    %334 = vector.broadcast %65 : f32 to vector<8x1024xf32>
    %335 = arith.mulf %333, %334 : vector<8x1024xf32>
    %336 = vector.broadcast %66 : f32 to vector<8x1024xf32>
    %337 = arith.addf %335, %336 : vector<8x1024xf32>
    %338 = arith.negf %337 : vector<8x1024xf32>
    %339 = math.exp %338 : vector<8x1024xf32>
    %cst_129 = arith.constant 1.000000e+00 : f32
    %340 = vector.broadcast %cst_129 : f32 to vector<8x1024xf32>
    %341 = arith.addf %340, %339 : vector<8x1024xf32>
    %342 = arith.divf %340, %341 : vector<8x1024xf32>
    %c0_130 = arith.constant 0 : index
    %c0_131 = arith.constant 0 : index
    %c0_132 = arith.constant 0 : index
    %c16_133 = arith.constant 16 : index
    %c0_134 = arith.constant 0 : index
    %343 = vector.load %arg6[%c0_130, %c0_131, %c0_132, %c16_133, %c0_134] : memref<1x1x1x31x1024xf32, #tpu.memory_space<vmem>>, vector<1x1x1x8x1024xf32>
    %344 = vector.shape_cast %343 : vector<1x1x1x8x1024xf32> to vector<8x1024xf32>
    %345 = vector.shape_cast %342 : vector<8x1024xf32> to vector<1x1x1x8x1024xf32>
    tpu.vector_store %arg6[%c0_130, %c0_131, %c0_132, %c16_133, %c0_134], %345 {strides = array<i32>} : memref<1x1x1x31x1024xf32, #tpu.memory_space<vmem>>, vector<1x1x1x8x1024xf32>,
    %cst_135 = arith.constant 0.000000e+00 : f32
    %346 = vector.broadcast %cst_135 : f32 to vector<7x1024xf32>
    %c0_136 = arith.constant 0 : index
    %c0_137 = arith.constant 0 : index
    %c24 = arith.constant 24 : index
    %c0_138 = arith.constant 0 : index
    %347 = vector.load %arg5[%c0_136, %c0_137, %c24, %c0_138] : memref<1x2x32x1152xf32, #tpu.memory_space<vmem>>, vector<1x1x8x1024xf32>
    %348 = vector.shape_cast %347 : vector<1x1x8x1024xf32> to vector<8x1024xf32>
    %349 = vector.extract_strided_slice %348 {offsets = [0, 0], sizes = [7, 1024], strides = [1, 1]} : vector<8x1024xf32> to vector<7x1024xf32>
    %350 = vector.broadcast %4 : f32 to vector<7x1024xf32>
    %351 = arith.mulf %350, %349 : vector<7x1024xf32>
    %352 = arith.addf %346, %351 : vector<7x1024xf32>
    %353 = vector.extract_strided_slice %348 {offsets = [1, 0], sizes = [7, 1024], strides = [1, 1]} : vector<8x1024xf32> to vector<7x1024xf32>
    %354 = vector.broadcast %20 : f32 to vector<7x1024xf32>
    %355 = arith.mulf %354, %353 : vector<7x1024xf32>
    %356 = arith.addf %352, %355 : vector<7x1024xf32>
    %c0_139 = arith.constant 0 : index
    %c0_140 = arith.constant 0 : index
    %c24_141 = arith.constant 24 : index
    %c1_142 = arith.constant 1 : index
    %357 = vector.load %arg5[%c0_139, %c0_140, %c24_141, %c1_142] : memref<1x2x32x1152xf32, #tpu.memory_space<vmem>>, vector<1x1x8x1024xf32>
    %358 = vector.shape_cast %357 : vector<1x1x8x1024xf32> to vector<8x1024xf32>
    %359 = vector.extract_strided_slice %358 {offsets = [0, 0], sizes = [7, 1024], strides = [1, 1]} : vector<8x1024xf32> to vector<7x1024xf32>
    %360 = vector.broadcast %8 : f32 to vector<7x1024xf32>
    %361 = arith.mulf %360, %359 : vector<7x1024xf32>
    %362 = arith.addf %356, %361 : vector<7x1024xf32>
    %363 = vector.extract_strided_slice %358 {offsets = [1, 0], sizes = [7, 1024], strides = [1, 1]} : vector<8x1024xf32> to vector<7x1024xf32>
    %364 = vector.broadcast %24 : f32 to vector<7x1024xf32>
    %365 = arith.mulf %364, %363 : vector<7x1024xf32>
    %366 = arith.addf %362, %365 : vector<7x1024xf32>
    %c0_143 = arith.constant 0 : index
    %c0_144 = arith.constant 0 : index
    %c24_145 = arith.constant 24 : index
    %c32_146 = arith.constant 32 : index
    %367 = vector.load %arg5[%c0_143, %c0_144, %c24_145, %c32_146] : memref<1x2x32x1152xf32, #tpu.memory_space<vmem>>, vector<1x1x8x1024xf32>
    %368 = vector.shape_cast %367 : vector<1x1x8x1024xf32> to vector<8x1024xf32>
    %369 = vector.extract_strided_slice %368 {offsets = [0, 0], sizes = [7, 1024], strides = [1, 1]} : vector<8x1024xf32> to vector<7x1024xf32>
    %370 = vector.broadcast %12 : f32 to vector<7x1024xf32>
    %371 = arith.mulf %370, %369 : vector<7x1024xf32>
    %372 = arith.addf %366, %371 : vector<7x1024xf32>
    %373 = vector.extract_strided_slice %368 {offsets = [1, 0], sizes = [7, 1024], strides = [1, 1]} : vector<8x1024xf32> to vector<7x1024xf32>
    %374 = vector.broadcast %28 : f32 to vector<7x1024xf32>
    %375 = arith.mulf %374, %373 : vector<7x1024xf32>
    %376 = arith.addf %372, %375 : vector<7x1024xf32>
    %c0_147 = arith.constant 0 : index
    %c0_148 = arith.constant 0 : index
    %c24_149 = arith.constant 24 : index
    %c33_150 = arith.constant 33 : index
    %377 = vector.load %arg5[%c0_147, %c0_148, %c24_149, %c33_150] : memref<1x2x32x1152xf32, #tpu.memory_space<vmem>>, vector<1x1x8x1024xf32>
    %378 = vector.shape_cast %377 : vector<1x1x8x1024xf32> to vector<8x1024xf32>
    %379 = vector.extract_strided_slice %378 {offsets = [0, 0], sizes = [7, 1024], strides = [1, 1]} : vector<8x1024xf32> to vector<7x1024xf32>
    %380 = vector.broadcast %16 : f32 to vector<7x1024xf32>
    %381 = arith.mulf %380, %379 : vector<7x1024xf32>
    %382 = arith.addf %376, %381 : vector<7x1024xf32>
    %383 = vector.extract_strided_slice %378 {offsets = [1, 0], sizes = [7, 1024], strides = [1, 1]} : vector<8x1024xf32> to vector<7x1024xf32>
    %384 = vector.broadcast %32 : f32 to vector<7x1024xf32>
    %385 = arith.mulf %384, %383 : vector<7x1024xf32>
    %386 = arith.addf %382, %385 : vector<7x1024xf32>
    %c0_151 = arith.constant 0 : index
    %c1_152 = arith.constant 1 : index
    %c24_153 = arith.constant 24 : index
    %c0_154 = arith.constant 0 : index
    %387 = vector.load %arg5[%c0_151, %c1_152, %c24_153, %c0_154] : memref<1x2x32x1152xf32, #tpu.memory_space<vmem>>, vector<1x1x8x1024xf32>
    %388 = vector.shape_cast %387 : vector<1x1x8x1024xf32> to vector<8x1024xf32>
    %389 = vector.extract_strided_slice %388 {offsets = [0, 0], sizes = [7, 1024], strides = [1, 1]} : vector<8x1024xf32> to vector<7x1024xf32>
    %390 = vector.broadcast %36 : f32 to vector<7x1024xf32>
    %391 = arith.mulf %390, %389 : vector<7x1024xf32>
    %392 = arith.addf %386, %391 : vector<7x1024xf32>
    %393 = vector.extract_strided_slice %388 {offsets = [1, 0], sizes = [7, 1024], strides = [1, 1]} : vector<8x1024xf32> to vector<7x1024xf32>
    %394 = vector.broadcast %52 : f32 to vector<7x1024xf32>
    %395 = arith.mulf %394, %393 : vector<7x1024xf32>
    %396 = arith.addf %392, %395 : vector<7x1024xf32>
    %c0_155 = arith.constant 0 : index
    %c1_156 = arith.constant 1 : index
    %c24_157 = arith.constant 24 : index
    %c1_158 = arith.constant 1 : index
    %397 = vector.load %arg5[%c0_155, %c1_156, %c24_157, %c1_158] : memref<1x2x32x1152xf32, #tpu.memory_space<vmem>>, vector<1x1x8x1024xf32>
    %398 = vector.shape_cast %397 : vector<1x1x8x1024xf32> to vector<8x1024xf32>
    %399 = vector.extract_strided_slice %398 {offsets = [0, 0], sizes = [7, 1024], strides = [1, 1]} : vector<8x1024xf32> to vector<7x1024xf32>
    %400 = vector.broadcast %40 : f32 to vector<7x1024xf32>
    %401 = arith.mulf %400, %399 : vector<7x1024xf32>
    %402 = arith.addf %396, %401 : vector<7x1024xf32>
    %403 = vector.extract_strided_slice %398 {offsets = [1, 0], sizes = [7, 1024], strides = [1, 1]} : vector<8x1024xf32> to vector<7x1024xf32>
    %404 = vector.broadcast %56 : f32 to vector<7x1024xf32>
    %405 = arith.mulf %404, %403 : vector<7x1024xf32>
    %406 = arith.addf %402, %405 : vector<7x1024xf32>
    %c0_159 = arith.constant 0 : index
    %c1_160 = arith.constant 1 : index
    %c24_161 = arith.constant 24 : index
    %c32_162 = arith.constant 32 : index
    %407 = vector.load %arg5[%c0_159, %c1_160, %c24_161, %c32_162] : memref<1x2x32x1152xf32, #tpu.memory_space<vmem>>, vector<1x1x8x1024xf32>
    %408 = vector.shape_cast %407 : vector<1x1x8x1024xf32> to vector<8x1024xf32>
    %409 = vector.extract_strided_slice %408 {offsets = [0, 0], sizes = [7, 1024], strides = [1, 1]} : vector<8x1024xf32> to vector<7x1024xf32>
    %410 = vector.broadcast %44 : f32 to vector<7x1024xf32>
    %411 = arith.mulf %410, %409 : vector<7x1024xf32>
    %412 = arith.addf %406, %411 : vector<7x1024xf32>
    %413 = vector.extract_strided_slice %408 {offsets = [1, 0], sizes = [7, 1024], strides = [1, 1]} : vector<8x1024xf32> to vector<7x1024xf32>
    %414 = vector.broadcast %60 : f32 to vector<7x1024xf32>
    %415 = arith.mulf %414, %413 : vector<7x1024xf32>
    %416 = arith.addf %412, %415 : vector<7x1024xf32>
    %c0_163 = arith.constant 0 : index
    %c1_164 = arith.constant 1 : index
    %c24_165 = arith.constant 24 : index
    %c33_166 = arith.constant 33 : index
    %417 = vector.load %arg5[%c0_163, %c1_164, %c24_165, %c33_166] : memref<1x2x32x1152xf32, #tpu.memory_space<vmem>>, vector<1x1x8x1024xf32>
    %418 = vector.shape_cast %417 : vector<1x1x8x1024xf32> to vector<8x1024xf32>
    %419 = vector.extract_strided_slice %418 {offsets = [0, 0], sizes = [7, 1024], strides = [1, 1]} : vector<8x1024xf32> to vector<7x1024xf32>
    %420 = vector.broadcast %48 : f32 to vector<7x1024xf32>
    %421 = arith.mulf %420, %419 : vector<7x1024xf32>
    %422 = arith.addf %416, %421 : vector<7x1024xf32>
    %423 = vector.extract_strided_slice %418 {offsets = [1, 0], sizes = [7, 1024], strides = [1, 1]} : vector<8x1024xf32> to vector<7x1024xf32>
    %424 = vector.broadcast %64 : f32 to vector<7x1024xf32>
    %425 = arith.mulf %424, %423 : vector<7x1024xf32>
    %426 = arith.addf %422, %425 : vector<7x1024xf32>
    %427 = vector.broadcast %65 : f32 to vector<7x1024xf32>
    %428 = arith.mulf %426, %427 : vector<7x1024xf32>
    %429 = vector.broadcast %66 : f32 to vector<7x1024xf32>
    %430 = arith.addf %428, %429 : vector<7x1024xf32>
    %431 = arith.negf %430 : vector<7x1024xf32>
    %432 = math.exp %431 : vector<7x1024xf32>
    %cst_167 = arith.constant 1.000000e+00 : f32
    %433 = vector.broadcast %cst_167 : f32 to vector<7x1024xf32>
    %434 = arith.addf %433, %432 : vector<7x1024xf32>
    %435 = arith.divf %433, %434 : vector<7x1024xf32>
    %c0_168 = arith.constant 0 : index
    %c0_169 = arith.constant 0 : index
    %c0_170 = arith.constant 0 : index
    %c24_171 = arith.constant 24 : index
    %c0_172 = arith.constant 0 : index
    %436 = vector.load %arg6[%c0_168, %c0_169, %c0_170, %c24_171, %c0_172] : memref<1x1x1x31x1024xf32, #tpu.memory_space<vmem>>, vector<1x1x1x7x1024xf32>
    %437 = vector.shape_cast %436 : vector<1x1x1x7x1024xf32> to vector<7x1024xf32>
    %438 = vector.shape_cast %435 : vector<7x1024xf32> to vector<1x1x1x7x1024xf32>
    tpu.vector_store %arg6[%c0_168, %c0_169, %c0_170, %c24_171, %c0_172], %438 {strides = array<i32>} : memref<1x1x1x31x1024xf32, #tpu.memory_space<vmem>>, vector<1x1x1x7x1024xf32>,
    return
  }
  func.func @transform_0(%arg0: i32, %arg1: i32) -> i32 {
    %c0_i32 = arith.constant 0 : i32
    %c0_i32_0 = arith.constant 0 : i32
    return %c0_i32 : i32
  }
  func.func @transform_1(%arg0: i32, %arg1: i32) -> i32 {
    %c0_i32 = arith.constant 0 : i32
    %c0_i32_0 = arith.constant 0 : i32
    return %c0_i32 : i32
  }
  func.func @transform_2(%arg0: i32, %arg1: i32) -> i32 {
    %c0_i32 = arith.constant 0 : i32
    %c0_i32_0 = arith.constant 0 : i32
    return %c0_i32 : i32
  }
  func.func @transform_3(%arg0: i32, %arg1: i32) -> (i32, i32, i32, i32) {
    %c0_i32 = arith.constant 0 : i32
    %c0_i32_0 = arith.constant 0 : i32
    %c0_i32_1 = arith.constant 0 : i32
    %c0_i32_2 = arith.constant 0 : i32
    return %arg0, %c0_i32, %c0_i32_0, %c0_i32_1 : i32, i32, i32, i32
  }
  func.func @transform_4(%arg0: i32, %arg1: i32) -> (i32, i32, i32, i32, i32) {
    %c0_i32 = arith.constant 0 : i32
    %c0_i32_0 = arith.constant 0 : i32
    %c0_i32_1 = arith.constant 0 : i32
    %c0_i32_2 = arith.constant 0 : i32
    return %arg0, %arg1, %c0_i32, %c0_i32_0, %c0_i32_1 : i32, i32, i32, i32, i32
  }
}

</mosaic_0001>

<bundles_post_ra>
// kernel: decoder_forward.6
= control target key start
LH: loop header
LB: loop body
LE: loop exit
PB: predicated region body
PF: predicated region fallthrough
CT: control target
= control target key end

     0   :  { %9 = vsyncpa [#allocation4], 0  ;;  %s1019_s0 = inlined_call_operand.vmem [shape: f32[128], index: 0, kind: input, shape index: {}]   ;;  %s1020_s1 = inlined_call_operand.hbm [shape: f32[2], index: 1, kind: input, shape index: {}]   ;;  %s1021_s2 = inlined_call_operand.vmem [shape: f32[2], index: 2, kind: input, shape index: {}]   ;;  %s1022_s3 = inlined_call_operand.vmem [shape: f32[2,1,4,256], index: 3, kind: input, shape index: {}]   ;;  %s1023_s4 = inlined_call_operand.vmem [shape: f32[2,8,2,3,128], index: 4, kind: output, shape index: {}]  }
   0x1   :  { %10 = vsyncpa [#allocation3], 0 }
   0x2   :  { %11 = vsyncpa [#allocation7], 0  ;;  %s808_s15 = smov 0   ;;  %s810_s16 = smov 0  }
   0x3   :  { %s812_s17 = smov 0   ;;  %s814_s18 = smov 0  }
   0x4   :  { %s816_s19 = smov 0  }
   0x5 LB: > { %s577_s20 = sadd.s32 4294967295, %s775_s19   ;;  %s26_s21 = sadd.s32 1, %s767_s17  ;;  %s775_s19 = sphi %s816_s19, %s17_s19   ;;  %s771_s18 = sphi %s814_s18, %s1030_s18   ;;  %s767_s17 = sphi %s812_s17, %s1029_s17   ;;  %s763_s16 = sphi %s810_s16, %s1028_s16   ;;  %s759_s15 = sphi %s808_s15, %s1027_s15  }
   0x6   : > { %p27_p0 = scmp.ge.s32.totalorder %s26_s21, 8  ;;  %s29_s22 = sadd.s32 1, %s771_s18 }
   0x7   : > { %p579_p1 = scmp.ge.s32.totalorder %s775_s19, 1  ;;  %p151_p2 = scmp.lt.s32.totalorder %s775_s19, 17 }
   0x8   : > { %s1032_s21 = smov (%p27_p0, %s26_s21), 0  ;;  %s1034_s22 = smov (!%p27_p0, %s29_s22), %s771_s18 }
   0x9   : > { %p841_p3 = pnand %p579_p1, %p151_p2  ;;  %p31_p4 = scmp.ge.s32.totalorder %s1034_s22, 2 }
   0xa   : > { %p845_p5 = scmp.eq.s32.totalorder %s577_s20, 0  ;;  %s164_s27 = sshll.u32 %s1019_s0, 4  ;;  %s165_s27 = int_to_ptr.vmem [resolvable:$true] %s164_s27 }
   0xb   : > { %p620_p6 = pneg %p841_p3  ;;  %s1036_s22 = smov (%p31_p4, %s1034_s22), 0 }
   0xc   : > { %s184_s5 = sshll.u32 %s1021_s2, 4  ;;  %s682_s6 = scalar_lea.vmem %s165_s27, 16  ;;  %s185_s5 = int_to_ptr.vmem [resolvable:$true] %s184_s5 }
   0xd   : > { %p858_p7 = pnand %p845_p5, %p620_p6  ;;  %p683_p8 = scmp.ne.s32.totalorder %s165_s27, %s682_s6 }
   0xe   : > { %p690_p12 = scmp.lt.s32.totalorder %s165_s27, %s165_s27  ;;  %p691_p13 = scmp.lt.s32.totalorder %s682_s6, %s682_s6 }
   0xf   : > { %p684_p9 = pneg %p858_p7 }
  0x10   : > { %p692_p0 = por %p691_p13, %p690_p12 }
  0x11   : > { %p685_p10 = pnand %p684_p9, %p683_p8 }
  0x13   : > { %p686_p11 = pneg %p685_p10 }
  0x15   : > { %p693_p1 = pnand %p692_p0, %p686_p11 }
  0x17   : > { %696 = shalt.err (!%p693_p1)
}
  0x18   : > { %s777_s7 = smov [#allocation2]   ;;  %s697_s10 = scalar_lea.hbm %s1020_s1, 16 }
  0x19   : > { %623 = dma.vmem_to_smem (!%p858_p7), %s165_s27, 16, %s777_s7, [#allocation4]  }
  0x1a   : > { %p698_p2 = scmp.ne.s32.totalorder %s1020_s1, %s697_s10  ;;  %p704_p8 = scmp.lt.u32.totalorder %s697_s10, %s1020_s1 }
  0x1c   : > { %p700_p4 = pnand %p698_p2, %p684_p9 }
  0x1e   : > { %p701_p6 = pneg %p700_p4 }
  0x20   : > { %p706_p10 = pnand %p704_p8, %p701_p6 }
  0x22   : > { %709 = shalt.err (!%p706_p10)
}
  0x23   : > { %s778_s20 = smov [#allocation5]   ;;  %s710_s27 = scalar_lea.vmem %s185_s5, 16 }
  0x24   : > { %626 = dma.hbm_to_smem (!%p858_p7), %s1020_s1, 16, %s778_s20, [#allocation3]  }
  0x25   : > { %p711_p11 = scmp.ne.s32.totalorder %s185_s5, %s710_s27  ;;  %p718_p0 = scmp.lt.s32.totalorder %s185_s5, %s185_s5 }
  0x26   : > { %p719_p1 = scmp.lt.s32.totalorder %s710_s27, %s710_s27 }
  0x27   : > { %p713_p12 = pnand %p711_p11, %p684_p9 }
  0x28   : > { %p720_p2 = por %p719_p1, %p718_p0 }
  0x29   : > { %p714_p13 = pneg %p713_p12 }
  0x2b   : > { %p721_p4 = pnand %p720_p2, %p714_p13 }
  0x2d   : > { %724 = shalt.err (!%p721_p4)
}
  0x2e   : > { %s779_s29 = smov [#allocation6]   ;;  %205 = sbr.rel (%p841_p3) target bundleno = 220 (0xdc), region = 36 }
  0x2f   : > { %629 = dma.vmem_to_smem (!%p858_p7), %s185_s5, 16, %s779_s29, [#allocation7]  }
  0x35   : > { %746 = dma.done.wait (%p845_p5), [#allocation4], 16  }
  0x36   : > { %748 = vsyncadd (%p845_p5), [#allocation4], 4294967280 }
  0x37   : > { %750 = dma.done.wait (%p845_p5), [#allocation3], 16  }
  0x38   : > { %752 = vsyncadd (%p845_p5), [#allocation3], 4294967280 }
  0x39   : > { %754 = dma.done.wait (%p845_p5), [#allocation7], 16  }
  0x3a   : > { %756 = vsyncadd (%p845_p5), [#allocation7], 4294967280 }
  0x3b   : > { %219 = sfence }
  0x3c   : > { %p244_p3 = scmp.lt.s32.totalorder %s763_s16, 1  ;;  %s910_s23 = sshll.u32 %s759_s15, 4  ;;  %vm322_vm0 = vcmask 1039360   ;;  %vm363_vm1 = vcmask 1014784   ;;  %vm404_vm2 = vcmask 1006592  }
  0x3d   : > { %s278_s28 = sadd.s32 10, %s910_s23  ;;  %s260_s24 = sadd.s32 1, %s910_s23 }
  0x3e   : > { %s1038_s16 = smov (!%p244_p3, %s763_s16), 1  ;;  %s279_s30 = sld [smem:[#allocation2 + %s278_s28]] }
  0x3f   : > { %s607_s5 = sshll.u32 %s1038_s16, 3  ;;  %s261_s6 = sld [smem:[#allocation2 + %s260_s24]] }
  0x40   : > { %s921_s9 = scalar_lea.vmem %s1022_s3, %s607_s5  ;;  %s268_s10 = sadd.s32 5, %s910_s23 }
  0x41   : > { %s276_s11 = sadd.s32 9, %s910_s23  ;;  %v926_v0 = vld [vmem:[%s921_s9] sm:$0xff]  ;;  %s269_s12 = sld [smem:[#allocation2 + %s268_s10]] }
  0x42   : > { %s277_s13 = sld [smem:[#allocation2 + %s276_s11]]  ;;  %s284_s14 = sadd.s32 13, %s910_s23  ;;  %v294_v20 = vld [vmem:[%s921_s9] sm:$0xf] }
  0x43   : > { %s262_s20 = sadd.s32 2, %s910_s23  ;;  %s285_s25 = sld [smem:[#allocation2 + %s284_s14]] }
  0x44   : > { %v367_v1 = vstv %s279_s30  ;;  %s930_s26 = sld [smem:[#allocation2 + %s262_s20]]  ;;  %s286_s27 = sadd.s32 14, %s910_s23 }
  0x45   : > { %v368_v2 = vmul.f32 %v367_v1, %v926_v0  ;;  %v316_v3 = vstv %s261_s6  ;;  %s270_s29 = sadd.s32 6, %s910_s23  ;;  %s936_s28 = sld [smem:[#allocation2 + %s286_s27]] }
  0x46   : > { %v317_v4 = vmul.f32 %v316_v3, %v926_v0  ;;  %s938_s24 = sld [smem:[#allocation2 + %s270_s29]]  ;;  %s780_s5 = smov 124  }
  0x47   : > { %370 = vrot.lane.b32.xlu1 %v368_v2, %s780_s5  ;;  %s280_s30 = sadd.s32 11, %s910_s23  ;;  %s781_s7 = smov 127   ;;  %v335_v5 = vstv %s269_s12 }
  0x48   : > { %319 = vrot.lane.b32.xlu0 %v317_v4, %s781_s7  ;;  %v326_v6 = vstv %s277_s13  ;;  %s943_s6 = sld [smem:[#allocation2 + %s280_s30]]  ;;  %s264_s8 = sadd.s32 3, %s910_s23  ;;  %v336_v7 = vmul.f32 %v335_v5, %v926_v0 }
  0x49   : > { %v327_v8 = vmul.f32 %v326_v6, %v926_v0  ;;  %s948_s10 = sld [smem:[#allocation2 + %s264_s8]]  ;;  %s288_s11 = sadd.s32 15, %s910_s23  ;;  %v346_v9 = vstv %s285_s25 }
  0x4a   : > { %v357_v10 = vstv %s930_s26  ;;  %s952_s14 = sld [smem:[#allocation2 + %s288_s11]]  ;;  %s272_s12 = sadd.s32 7, %s910_s23  ;;  %v598_v11 = vrot.slane %v336_v7, 9  ;;  %v347_v12 = vmul.f32 %v346_v9, %v926_v0 }
  0x4b   : > { %s956_s13 = sld [smem:[#allocation2 + %s272_s12]]  ;;  %v358_v13 = vmul.f32 %v357_v10, %v926_v0  ;;  %v387_v14 = vstv %s936_s28  ;;  %s266_s25 = sadd.s32 4, %s910_s23 }
  0x4c   : > { %s259_s20 = sld [smem:[#allocation2 + %s910_s23]]  ;;  %329 = vrot.lane.b32.xlu0 %v327_v8, %s781_s7  ;;  %v376_v15 = vstv %s938_s24  ;;  %s274_s26 = sadd.s32 8, %s910_s23  ;;  %340 = vrot.lane.b32.xlu1 %v598_v11, %s781_s7  ;;  %v599_v16 = vrot.slane %v347_v12, 9  ;;  %v388_v17 = vmul.f32 %v387_v14, %v926_v0 }
  0x4d   : > { %v377_v18 = vmul.f32 %v376_v15, %v926_v0  ;;  %s267_s27 = sld [smem:[#allocation2 + %s266_s25]]  ;;  %s282_s30 = sadd.s32 12, %s910_s23 }
  0x4e   : > { %s275_s29 = sld [smem:[#allocation2 + %s274_s26]]  ;;  %v601_v21 = vrot.slane %v388_v17, 9  ;;  %v408_v25 = vstv %s943_s6  ;;  %s782_s23 = smov 123  }
  0x4f   : > { %s283_s8 = sld [smem:[#allocation2 + %s282_s30]]  ;;  %v600_v19 = vrot.slane %v377_v18, 9  ;;  %v398_v22 = vstv %s948_s10  ;;  %v409_v34 = vmul.f32 %v408_v25, %v926_v0  ;;  %p251_p5 = scmp.lt.s32.totalorder %s759_s15, 7 }
  0x50   : > { %360 = vrot.lane.b32.xlu0 %v358_v13, %s780_s5  ;;  %351 = vrot.lane.b32.xlu1 %v599_v16, %s781_s7  ;;  %v428_v26 = vstv %s952_s14  ;;  %v399_v30 = vmul.f32 %v398_v22, %v926_v0  ;;  %s984_s9 = sld [smem:[#allocation5 + $0x1]]  ;;  %s986_s28 = sld [smem:[#allocation5]] }
  0x51   : > { %v417_v23 = vstv %s956_s13  ;;  %v429_v35 = vmul.f32 %v428_v26, %v926_v0  ;;  %s1040_s15 = smov (!%p251_p5, %s759_s15), 7  ;;  %s292_s24 = sld [smem:[#allocation6]] }
  0x52   : > { %v295_v24 = vstv %s259_s20  ;;  %v418_v31 = vmul.f32 %v417_v23, %v926_v0  ;;  %s590_s7 = sshll.u32 %s1040_s15, 1  ;;  %s591_s6 = sshll.u32 %s1038_s16, 4 }
  0x53   : > { %v296_v27 = vmul.f32 %v295_v24, %v294_v20  ;;  %v301_v28 = vstv %s267_s27  ;;  %v603_v42 = vrot.slane %v429_v35, 9  ;;  %s255_s10 = sadd.s32 %s591_s6, %s590_s7 }
  0x54   : > { %v298_v29 = vstv %s275_s29  ;;  %381 = vrot.lane.b32.xlu0 %v600_v19, %s780_s5  ;;  %v302_v32 = vmul.f32 %v301_v28, %v294_v20  ;;  %392 = vrot.lane.b32.xlu1 %v601_v21, %s780_s5  ;;  %v602_v39 = vrot.slane %v418_v31, 9  ;;  %s595_s5 = sld [smem:[#allocation6 + $0x1]]  ;;  %s592_s11 = sshll.u32 %s255_s10, 2 }
  0x55   : > { %v299_v33 = vmul.f32 %v298_v29, %v294_v20  ;;  %v308_v36 = vstv %s283_s8  ;;  %s257_s14 = scalar_lea.vmem %s1023_s4, %s592_s11 }
  0x56   : > { %v596_v37 = vrot.slane %v302_v32, 9  ;;  %v309_v38 = vmul.f32 %v308_v36, %v294_v20  ;;  %v439_v24 = vstv %s986_s28  ;;  %v447_v26 = vstv %s984_s9 }
  0x58   : > { %401 = vrot.lane.b32.xlu0 %v399_v30, %s782_s23  ;;  %v307_v40 = vadd.f32 %v596_v37, %v296_v27  ;;  %v597_v41 = vrot.slane %v309_v38, 9  ;;  %411 = vrot.lane.b32.xlu1 %v409_v34, %s782_s23  ;;  %v441_v30 = vstv %s292_s24 }
  0x5a   : > { %v314_v43 = vadd.f32 %v597_v41, %v299_v33  ;;  %v449_v31 = vstv %s595_s5 }
  0x5c   : > { %422 = vrot.lane.b32.xlu0 %v602_v39, %s782_s23  ;;  %433 = vrot.lane.b32.xlu1 %v603_v42, %s782_s23 }
  0xb9   : > { %v371_v44 = vpop.permute.xlu1 %370 }
  0xba   : > { %v320_v45 = vpop.permute.xlu0 %319  ;;  %v372_v58 = vrot.slane %v371_v44, 4 }
  0xbb   : > { %v321_v49 = vrot.slane %v320_v45, 4 }
  0xbc   : > { %v373_v4 = vsel %vm363_vm1, %v371_v44, %v372_v58 }
  0xbd   : > { %v323_v55 = vsel %vm322_vm0, %v320_v45, %v321_v49 }
  0xbe   : > { %v330_v46 = vpop.permute.xlu0 %329  ;;  %v341_v47 = vpop.permute.xlu1 %340  ;;  %v325_v1 = vadd.f32 %v323_v55, %v307_v40 }
  0xbf   : > { %v331_v48 = vrot.slane %v330_v46, 4  ;;  %v342_v52 = vrot.slane %v341_v47, 4 }
  0xc1   : > { %v332_v50 = vsel %vm322_vm0, %v330_v46, %v331_v48  ;;  %v343_v61 = vsel %vm322_vm0, %v341_v47, %v342_v52 }
  0xc2   : > { %v361_v51 = vpop.permute.xlu0 %360  ;;  %v352_v53 = vpop.permute.xlu1 %351  ;;  %v334_v56 = vadd.f32 %v332_v50, %v314_v43  ;;  %v345_v5 = vadd.f32 %v343_v61, %v325_v1 }
  0xc3   : > { %v353_v54 = vrot.slane %v352_v53, 4  ;;  %v362_v57 = vrot.slane %v361_v51, 4 }
  0xc5   : > { %v354_v59 = vsel %vm322_vm0, %v352_v53, %v353_v54  ;;  %v364_v3 = vsel %vm363_vm1, %v361_v51, %v362_v57 }
  0xc6   : > { %v382_v60 = vpop.permute.xlu0 %381  ;;  %v356_v62 = vadd.f32 %v354_v59, %v334_v56  ;;  %v393_v63 = vpop.permute.xlu1 %392  ;;  %v366_v11 = vadd.f32 %v364_v3, %v345_v5 }
  0xc7   : > { %v383_v0 = vrot.slane %v382_v60, 4  ;;  %v394_v2 = vrot.slane %v393_v63, 4 }
  0xc8   : > { %v375_v7 = vadd.f32 %v373_v4, %v356_v62 }
  0xc9   : > { %v384_v8 = vsel %vm363_vm1, %v382_v60, %v383_v0  ;;  %v395_v12 = vsel %vm363_vm1, %v393_v63, %v394_v2 }
  0xca   : > { %v402_v6 = vpop.permute.xlu0 %401  ;;  %v412_v9 = vpop.permute.xlu1 %411  ;;  %v386_v15 = vadd.f32 %v384_v8, %v366_v11  ;;  %v397_v18 = vadd.f32 %v395_v12, %v375_v7 }
  0xcb   : > { %v403_v10 = vrot.slane %v402_v6, 4  ;;  %v413_v13 = vrot.slane %v412_v9, 4 }
  0xcd   : > { %v405_v14 = vsel %vm404_vm2, %v402_v6, %v403_v10  ;;  %v414_v16 = vsel %vm404_vm2, %v412_v9, %v413_v13 }
  0xce   : > { %v423_v17 = vpop.permute.xlu0 %422  ;;  %v434_v19 = vpop.permute.xlu1 %433  ;;  %v407_v21 = vadd.f32 %v405_v14, %v386_v15  ;;  %v416_v23 = vadd.f32 %v414_v16, %v397_v18 }
  0xcf   : > { %v424_v20 = vrot.slane %v423_v17, 4  ;;  %v435_v22 = vrot.slane %v434_v19, 4 }
  0xd1   : > { %v425_v25 = vsel %vm404_vm2, %v423_v17, %v424_v20  ;;  %v436_v27 = vsel %vm404_vm2, %v434_v19, %v435_v22 }
  0xd2   : > { %v427_v28 = vadd.f32 %v425_v25, %v407_v21  ;;  %v438_v29 = vadd.f32 %v436_v27, %v416_v23 }
  0xd4   : > { %v440_v32 = vmul.f32 %v439_v24, %v427_v28  ;;  %v448_v33 = vmul.f32 %v447_v26, %v438_v29 }
  0xd6   : > { %v442_v34 = vadd.f32 %v441_v30, %v440_v32  ;;  %v450_v35 = vadd.f32 %v449_v31, %v448_v33 }
  0xd8   : > { %vm443_vm3 = vcmp.gt.f32.partialorder %v442_v34, 0.0  ;;  %v444_v36 = vmul.f32 0.01, %v442_v34  ;;  %vm451_vm4 = vcmp.gt.f32.partialorder %v450_v35, 0.0  ;;  %v452_v37 = vmul.f32 0.01, %v450_v35 }
  0xda   : > { %v445_v38 = vsel %vm443_vm3, %v442_v34, %v444_v36  ;;  %v453_v39 = vsel %vm451_vm4, %v450_v35, %v452_v37 }
  0xdb   : > { %446 = vst [vmem:[%s257_s14] sm:$0x7] %v445_v38  ;;  %604 = vst [vmem:[%s257_s14 + $0x4] sm:$0x7] %v453_v39 }
  0xdc PF: > { %s17_s19 = sadd.s32 1, %s775_s19   ;;  %s1027_s15 = smov %s767_s17 }
  0xdd   : > { %p14_p7 = scmp.ge.s32.totalorder %s17_s19, 18   ;;  %s1028_s16 = smov %s771_s18 }
  0xde   : > { %s1029_s17 = smov %s1032_s21  ;;  %s1030_s18 = smov %s1036_s22 }
  0xdf   :  { %16 = sbr.rel (!%p14_p7) target bundleno = 5 (0x5), region = 81 }
  0xe6   :  { %485 = vsyncpa [#allocation3], 1 }
  0xe7   :  { %487 = vsyncpa [#allocation3 + $0x1], 1 }
  0xe8   :  { %488 = vsyncpa [#allocation4], 1 }
  0xe9   :  { %490 = vsyncpa [#allocation4 + $0x1], 1 }
  0xea   :  { %491 = vsyncpa [#allocation7], 1 }

// kernel: decoder_forward.5
= control target key start
LH: loop header
LB: loop body
LE: loop exit
PB: predicated region body
PF: predicated region fallthrough
CT: control target
= control target key end

     0   :  { %12 = vsyncpa [#allocation3], 0  ;;  %s721_s0 = inlined_call_operand.hbm [shape: f32[2,10], index: 0, kind: input, shape index: {}]   ;;  %s722_s1 = inlined_call_operand.vmem [shape: f32[2,8,6], index: 1, kind: input, shape index: {}]   ;;  %s723_s2 = inlined_call_operand.hbm [shape: f32[10,50], index: 2, kind: input, shape index: {}]   ;;  %s724_s3 = inlined_call_operand.hbm [shape: f32[6,50], index: 3, kind: input, shape index: {}]   ;;  %s725_s4 = inlined_call_operand.hbm [shape: f32[1,50], index: 4, kind: input, shape index: {}]   ;;  %s726_s5 = inlined_call_operand.vmem [shape: f32[50,8], index: 5, kind: input, shape index: {}]   ;;  %s727_s6 = inlined_call_operand.hbm [shape: f32[1,8], index: 6, kind: input, shape index: {}]   ;;  %s728_s7 = inlined_call_operand.vmem [shape: f32[2,8], index: 7, kind: output, shape index: {}]  }
   0x1   :  { %13 = vsyncpa [#allocation5], 0 }
   0x2   :  { %14 = vsyncpa [#allocation8], 0  ;;  %s572_s24 = smov [#allocation4]   ;;  %s456_s28 = scalar_lea.hbm %s723_s2, 256 }
   0x3   :  { %s32_s25 = sshll.u32 %s572_s24, 4  ;;  %p457_p0 = scmp.ne.s32.totalorder %s723_s2, %s456_s28  ;;  %s33_s25 = int_to_ptr.vmem [resolvable:$true] %s32_s25 }
   0x4   :  { %p460_p1 = scmp.lt.u32.totalorder %s456_s28, %s723_s2 }
   0x6   :  { %p462_p2 = pnand %p460_p1, %p457_p0 }
   0x8   :  { %465 = shalt.err (!%p462_p2)
}
   0x9   :  { %s466_s10 = scalar_lea.vmem %s33_s25, 256  ;;  %p471_p4 = scmp.lt.s32.totalorder %s33_s25, %s33_s25 }
   0xa   :  { %p467_p3 = scmp.ne.s32.totalorder %s33_s25, %s466_s10  ;;  %p472_p5 = scmp.lt.s32.totalorder %s466_s10, %s466_s10 }
   0xc   :  { %p473_p6 = por %p472_p5, %p471_p4 }
   0xe   :  { %p474_p7 = pnand %p473_p6, %p467_p3 }
  0x10   :  { %477 = shalt.err (!%p474_p7)
}
  0x11   :  { %s573_s11 = smov 128   ;;  %s574_s12 = smov 8  }
  0x12   :  { %38 = dma.hbm_to_vmem [thread:$0]  %s723_s2, 256, %s33_s25, [#allocation5], %s573_s11, %s573_s11, %s574_s12  }
  0x13   :  { %s575_s15 = smov [#allocation7]   ;;  %s576_s17 = smov [#allocation2]  }
  0x14   :  { %s55_s16 = sshll.u32 %s575_s15, 4  ;;  %s21_s18 = sshll.u32 %s576_s17, 4  ;;  %s56_s16 = int_to_ptr.vmem [resolvable:$true] %s55_s16  ;;  %s22_s18 = int_to_ptr.vmem [resolvable:$true] %s21_s18 }
  0x15   :  { %s478_s21 = scalar_lea.hbm %s725_s4, 16 }
  0x16   :  { %p479_p8 = scmp.ne.s32.totalorder %s725_s4, %s478_s21  ;;  %p482_p9 = scmp.lt.u32.totalorder %s478_s21, %s725_s4 }
  0x18   :  { %p484_p10 = pnand %p482_p9, %p479_p8 }
  0x1a   :  { %487 = shalt.err (!%p484_p10)
}
  0x1b   :  { %s488_s2 = scalar_lea.vmem %s56_s16, 16  ;;  %s492_s25 = scalar_lea.vmem %s56_s16, 32 }
  0x1c   :  { %p489_p11 = scmp.ne.s32.totalorder %s56_s16, %s488_s2  ;;  %p493_p12 = scmp.lt.s32.totalorder %s56_s16, %s56_s16 }
  0x1d   :  { %p494_p13 = scmp.lt.s32.totalorder %s492_s25, %s488_s2 }
  0x1f   :  { %p495_p0 = por %p494_p13, %p493_p12 }
  0x21   :  { %p496_p1 = pnand %p495_p0, %p489_p11 }
  0x23   :  { %499 = shalt.err (!%p496_p1)
}
  0x24   :  { %58 = dma.hbm_to_vmem [thread:$0]  %s725_s4, 16, %s56_s16, [#allocation8]  }
  0x25   :  { %s500_s8 = scalar_lea.hbm %s721_s0, 32 }
  0x26   :  { %p501_p2 = scmp.ne.s32.totalorder %s721_s0, %s500_s8  ;;  %p504_p3 = scmp.lt.u32.totalorder %s500_s8, %s721_s0 }
  0x28   :  { %p506_p4 = pnand %p504_p3, %p501_p2 }
  0x2a   :  { %509 = shalt.err (!%p506_p4)
}
  0x2b   :  { %s510_s13 = scalar_lea.vmem %s22_s18, 32  ;;  %p515_p6 = scmp.lt.s32.totalorder %s22_s18, %s22_s18 }
  0x2c   :  { %p511_p5 = scmp.ne.s32.totalorder %s22_s18, %s510_s13  ;;  %p516_p7 = scmp.lt.s32.totalorder %s510_s13, %s510_s13 }
  0x2e   :  { %p517_p8 = por %p516_p7, %p515_p6 }
  0x30   :  { %p518_p9 = pnand %p517_p8, %p511_p5 }
  0x32   :  { %521 = shalt.err (!%p518_p9)
}
  0x33   :  { %24 = dma.hbm_to_vmem [thread:$0]  %s721_s0, 32, %s22_s18, [#allocation3]  }
  0x34   :  { %s577_s15 = smov [#allocation6]   ;;  %s578_s17 = smov [#allocation9]  }
  0x35   :  { %s45_s16 = sshll.u32 %s577_s15, 4  ;;  %s67_s19 = sshll.u32 %s578_s17, 4  ;;  %s46_s16 = int_to_ptr.vmem [resolvable:$true] %s45_s16  ;;  %s68_s19 = int_to_ptr.vmem [resolvable:$true] %s67_s19 }
  0x36   :  { %s522_s22 = scalar_lea.hbm %s724_s3, 128 }
  0x37   :  { %p523_p10 = scmp.ne.s32.totalorder %s724_s3, %s522_s22  ;;  %p526_p11 = scmp.lt.u32.totalorder %s522_s22, %s724_s3 }
  0x39   :  { %p528_p12 = pnand %p526_p11, %p523_p10 }
  0x3b   :  { %531 = shalt.err (!%p528_p12)
}
  0x3c   :  { %s532_s0 = scalar_lea.vmem %s46_s16, 128  ;;  %p537_p0 = scmp.lt.s32.totalorder %s46_s16, %s46_s16 }
  0x3d   :  { %p533_p13 = scmp.ne.s32.totalorder %s46_s16, %s532_s0  ;;  %p538_p1 = scmp.lt.s32.totalorder %s532_s0, %s532_s0 }
  0x3f   :  { %p539_p2 = por %p538_p1, %p537_p0 }
  0x41   :  { %p540_p3 = pnand %p539_p2, %p533_p13 }
  0x43   :  { %543 = shalt.err (!%p540_p3)
}
  0x44   :  { %48 = dma.hbm_to_vmem [thread:$0]  %s724_s3, 128, %s46_s16, [#allocation5]  }
  0x45   :  { %s544_s29 = scalar_lea.hbm %s727_s6, 16 }
  0x46   :  { %p545_p4 = scmp.ne.s32.totalorder %s727_s6, %s544_s29  ;;  %p548_p5 = scmp.lt.u32.totalorder %s544_s29, %s727_s6 }
  0x48   :  { %p550_p6 = pnand %p548_p5, %p545_p4 }
  0x4a   :  { %553 = shalt.err (!%p550_p6)
}
  0x4b   :  { %s554_s11 = scalar_lea.vmem %s68_s19, 16  ;;  %s558_s12 = scalar_lea.vmem %s68_s19, 32 }
  0x4c   :  { %p555_p7 = scmp.ne.s32.totalorder %s68_s19, %s554_s11  ;;  %p559_p8 = scmp.lt.s32.totalorder %s68_s19, %s68_s19 }
  0x4d   :  { %p560_p9 = scmp.lt.s32.totalorder %s558_s12, %s554_s11 }
  0x4f   :  { %p561_p10 = por %p560_p9, %p559_p8 }
  0x51   :  { %p562_p11 = pnand %p561_p10, %p555_p7 }
  0x53   :  { %565 = shalt.err (!%p562_p11)
}
  0x54   :  { %70 = dma.hbm_to_vmem [thread:$0]  %s727_s6, 16, %s68_s19, [#allocation8]  }
  0x55   :  { %566 = dma.done.wait [#allocation3], 32  }
  0x56   :  { %567 = vsyncadd [#allocation3], 4294967264 }
  0x57   :  { %568 = dma.done.wait [#allocation5], 384  }
  0x58   :  { %569 = vsyncadd [#allocation5], 4294966912 }
  0x59   :  { %570 = dma.done.wait [#allocation8], 32  }
  0x5a   :  { %571 = vsyncadd [#allocation8], 4294967264  ;;  %v579_v0 = vmov 0.0   ;;  %vm580_vm0 = vmmov 0   ;;  %v581_v1 = vmov 0.0|0.0   ;;  %vm116_vm1 = vcmask 1045504  }
  0x5b   :  { %403 = vmatprep.subr.mxu1 %v579_v0  ;;  %405 = vmatprep.mubr.msk.f32.mxu1 %vm580_vm0, %v579_v0  ;;  %vm88_vm2 = vcmask 48128   ;;  %v109_v2 = vld [vmem:[#allocation6] sm:$0x3f]  ;;  %v86_v3 = vld [vmem:[%s722_s1] sm:$0xff]  ;;  %v87_v4 = vld [vmem:[%s722_s1 + $0x8] sm:$0xff]  ;;  %vm194_vm3 = vcmask 1041408  }
  0x5c   :  { %436 = vmatprep.subr.bf16.mxu0 %v581_v1  ;;  %429 = vmatprep.mubr.msk.f32.mxu0 %vm580_vm0, %v579_v0  ;;  %v89_v5 = vsel %vm88_vm2, %v86_v3, 0.0  ;;  %v96_v6 = vsel %vm88_vm2, %v87_v4, 0.0  ;;  %v279_v7 = vld [vmem:[%s726_s5] sm:$0xff]  ;;  %v280_v10 = vld [vmem:[%s726_s5 + $0x8] sm:$0xff]  ;;  %vm112_vm4 = vcmask 1041409   ;;  %vm582_vm5 = vmmov 1  }
  0x5d   :  { %404 = vmatpush3.msk.msra.mxu1 %vm116_vm1, %v109_v2  ;;  %v90_v8 = vrot.slane %v89_v5, 4  ;;  %v97_v9 = vrot.slane %v96_v6, 4  ;;  %v437_v11 = vpack.c.bf16 %v280_v10, %v279_v7  ;;  %v107_v20 = vld [vmem:[#allocation4] sm:$0xff]  ;;  %v108_v21 = vld [vmem:[#allocation4 + $0x8] sm:$0x3]  ;;  %vm434_vm6 = vmpackc.low %vm194_vm3, %vm582_vm5  ;;  %vm190_vm7 = vcmask 80896  }
  0x5e   :  { %432 = vmatprep.subr.bf16.mxu1 %v581_v1  ;;  %v433_v26 = vpack.c.bf16 %v108_v21, %v107_v20  ;;  %v106_v28 = vld [vmem:[#allocation2] sm:$0x3]  ;;  %v281_v29 = vld [vmem:[%s726_s5 + $0x10] sm:$0xff]  ;;  %v282_v30 = vld [vmem:[%s726_s5 + $0x18] sm:$0xff]  ;;  %vm293_vm9 = vcmask 408576   ;;  %vm373_vm11 = vcmask 58368  }
  0x5f   :  { %v91_v12 = vadd.f32 %v90_v8, %v89_v5  ;;  %v98_v13 = vadd.f32 %v97_v9, %v96_v6  ;;  %438 = vmatpush3.bf16.msra.mxu0 %v437_v11  ;;  %v440_v31 = vpack.c.bf16 %v282_v30, %v281_v29  ;;  %v283_v32 = vld [vmem:[%s726_s5 + $0x20] sm:$0xff]  ;;  %v284_v33 = vld [vmem:[%s726_s5 + $0x28] sm:$0xff]  ;;  %v285_v35 = vld [vmem:[%s726_s5 + $0x30] sm:$0x3] }
  0x60   :  { %439 = vmatprep.subr.bf16.mxu0 %v581_v1  ;;  %v443_v34 = vpack.c.bf16 %v284_v33, %v283_v32  ;;  %v386_v39 = vld [vmem:[#allocation7] ss:$0 sm:$0xff]  ;;  %v387_v45 = vld [vmem:[#allocation9] ss:$0 sm:$0xff] }
  0x61   :  { %v92_v14 = vrot.slane %v91_v12, 2  ;;  %v99_v15 = vrot.slane %v98_v13, 2 }
  0x63   :  { %v93_v16 = vadd.f32 %v92_v14, %v91_v12  ;;  %v100_v17 = vadd.f32 %v99_v15, %v98_v13  ;;  %441 = vmatpush3.bf16.msra.mxu0 %v440_v31 }
  0x64   :  { %442 = vmatprep.subr.bf16.mxu0 %v581_v1 }
  0x65   :  { %v94_v18 = vrot.slane %v93_v16, 1  ;;  %v101_v19 = vrot.slane %v100_v17, 1 }
  0x67   :  { %v95_v22 = vadd.f32 %v94_v18, %v93_v16  ;;  %v102_v23 = vadd.f32 %v101_v19, %v100_v17  ;;  %444 = vmatpush3.bf16.msra.mxu0 %v443_v34 }
  0x68   :  { %427 = vmatprep.subr.mxu0 %v579_v0 }
  0x69   :  { %v104_v24 = vmul.f32 0.125, %v95_v22  ;;  %v105_v25 = vmul.f32 0.125, %v102_v23 }
  0x6b   :  { %v113_v27 = vsel %vm112_vm4, %v105_v25, %v104_v24  ;;  %428 = vmatpush3.msk.msra.mxu0 %vm194_vm3, %v285_v35 }
  0x6c   :  { %406 = vmatmul.mubr.msk.f32.vlgmr.msra.gmra.mrb[0].mxu1 %vm88_vm2, %v113_v27 }
  0x6d   :  { %435 = vmatpush3.bf16.msk.msra.mxu1 %vm434_vm6, %v433_v26  ;;  %412 = vmatprep.mubr.msk.f32.mxu1 %vm580_vm0, %v579_v0 }
  0x70   :  { %413 = vmatmul.mubr.msk.f32.vlgmr.msra.gmra.mrb[2].mxu1 %vm190_vm7, %v106_v28 }
 0x13f   :  { %v186_v36 = vpop.f32.mrb[0].mxu1 }
 0x140   :  { %v407_v37 = vpop.f32.mrb[1].mxu1 }
 0x143   :  { %v264_v38 = vpop.f32.mrb[2].mxu1 }
 0x144   :  { %v265_v40 = vadd.f32 %v264_v38, %v186_v36  ;;  %v414_v41 = vpop.f32.mrb[3].mxu1 }
 0x146   :  { %v275_v42 = vadd.f32 %v386_v39, %v265_v40 }
 0x148   :  { %v277_v43 = vmul.f32 0.01, %v275_v42  ;;  %vm276_vm8 = vcmp.gt.f32.partialorder %v275_v42, 0.0 }
 0x14a   :  { %v278_v44 = vsel %vm276_vm8, %v275_v42, %v277_v43 }
 0x14b   :  { %430 = vmatmul.mubr.msk.f32.vlgmr.msra.gmra.mrb[0].mxu0 %vm293_vm9, %v278_v44 }
 0x21e   :  { %v366_v46 = vpop.f32.mrb[0].mxu0 }
 0x21f   :  { %v367_v47 = vadd.f32 %v387_v45, %v366_v46  ;;  %v431_v48 = vpop.f32.mrb[1].mxu0 }
 0x221   :  { %vm370_vm10 = vcmp.gt.f32.partialorder %v367_v47, 0.0  ;;  %v371_v49 = vmul.f32 0.01, %v367_v47 }
 0x223   :  { %v372_v50 = vsel %vm370_vm10, %v367_v47, %v371_v49 }
 0x224   :  { %374 = vst.msk [vmem:[%s728_s7] sm:$0x3] %vm373_vm11, %v372_v50 }
 0x225   :  { %379 = vsyncpa [#allocation3], 1 }
 0x226   :  { %380 = vsyncpa [#allocation5], 1 }
 0x227   :  { %381 = vsyncpa [#allocation8], 1 }

// kernel: decoder_forward.7
= control target key start
LH: loop header
LB: loop body
LE: loop exit
PB: predicated region body
PF: predicated region fallthrough
CT: control target
= control target key end

     0   :  { %9 = vsyncpa [#allocation4], 0  ;;  %s1075_s0 = inlined_call_operand.vmem [shape: f32[128], index: 0, kind: input, shape index: {}]   ;;  %s1076_s1 = inlined_call_operand.hbm [shape: f32[2], index: 1, kind: input, shape index: {}]   ;;  %s1077_s2 = inlined_call_operand.vmem [shape: f32[2], index: 2, kind: input, shape index: {}]   ;;  %s1078_s3 = inlined_call_operand.vmem [shape: f32[2,2,8,256], index: 3, kind: input, shape index: {}]   ;;  %s1079_s4 = inlined_call_operand.vmem [shape: f32[2,8,2,7,128], index: 4, kind: output, shape index: {}]  }
   0x1   :  { %10 = vsyncpa [#allocation3], 0 }
   0x2   :  { %11 = vsyncpa [#allocation7], 0  ;;  %s839_s15 = smov 0   ;;  %s841_s16 = smov 0  }
   0x3   :  { %s843_s17 = smov 0   ;;  %s845_s18 = smov 0  }
   0x4   :  { %s847_s19 = smov 0  }
   0x5 LB: > { %s614_s20 = sadd.s32 4294967295, %s806_s19   ;;  %s26_s21 = sadd.s32 1, %s798_s17  ;;  %s806_s19 = sphi %s847_s19, %s17_s19   ;;  %s802_s18 = sphi %s845_s18, %s1086_s18   ;;  %s798_s17 = sphi %s843_s17, %s1085_s17   ;;  %s794_s16 = sphi %s841_s16, %s1084_s16   ;;  %s790_s15 = sphi %s839_s15, %s1083_s15  }
   0x6   : > { %p27_p0 = scmp.ge.s32.totalorder %s26_s21, 8  ;;  %s29_s22 = sadd.s32 1, %s802_s18 }
   0x7   : > { %p616_p1 = scmp.ge.s32.totalorder %s806_s19, 1  ;;  %p151_p2 = scmp.lt.s32.totalorder %s806_s19, 17 }
   0x8   : > { %s1088_s21 = smov (%p27_p0, %s26_s21), 0  ;;  %s1090_s22 = smov (!%p27_p0, %s29_s22), %s802_s18 }
   0x9   : > { %p872_p3 = pnand %p616_p1, %p151_p2  ;;  %p31_p4 = scmp.ge.s32.totalorder %s1090_s22, 2 }
   0xa   : > { %p876_p5 = scmp.eq.s32.totalorder %s614_s20, 0  ;;  %s164_s27 = sshll.u32 %s1075_s0, 4  ;;  %s165_s27 = int_to_ptr.vmem [resolvable:$true] %s164_s27 }
   0xb   : > { %p651_p6 = pneg %p872_p3  ;;  %s1092_s22 = smov (%p31_p4, %s1090_s22), 0 }
   0xc   : > { %s184_s5 = sshll.u32 %s1077_s2, 4  ;;  %s713_s6 = scalar_lea.vmem %s165_s27, 16  ;;  %s185_s5 = int_to_ptr.vmem [resolvable:$true] %s184_s5 }
   0xd   : > { %p889_p7 = pnand %p876_p5, %p651_p6  ;;  %p714_p8 = scmp.ne.s32.totalorder %s165_s27, %s713_s6 }
   0xe   : > { %p721_p12 = scmp.lt.s32.totalorder %s165_s27, %s165_s27  ;;  %p722_p13 = scmp.lt.s32.totalorder %s713_s6, %s713_s6 }
   0xf   : > { %p715_p9 = pneg %p889_p7 }
  0x10   : > { %p723_p0 = por %p722_p13, %p721_p12 }
  0x11   : > { %p716_p10 = pnand %p715_p9, %p714_p8 }
  0x13   : > { %p717_p11 = pneg %p716_p10 }
  0x15   : > { %p724_p1 = pnand %p723_p0, %p717_p11 }
  0x17   : > { %727 = shalt.err (!%p724_p1)
}
  0x18   : > { %s808_s7 = smov [#allocation2]   ;;  %s728_s10 = scalar_lea.hbm %s1076_s1, 16 }
  0x19   : > { %654 = dma.vmem_to_smem (!%p889_p7), %s165_s27, 16, %s808_s7, [#allocation4]  }
  0x1a   : > { %p729_p2 = scmp.ne.s32.totalorder %s1076_s1, %s728_s10  ;;  %p735_p8 = scmp.lt.u32.totalorder %s728_s10, %s1076_s1 }
  0x1c   : > { %p731_p4 = pnand %p729_p2, %p715_p9 }
  0x1e   : > { %p732_p6 = pneg %p731_p4 }
  0x20   : > { %p737_p10 = pnand %p735_p8, %p732_p6 }
  0x22   : > { %740 = shalt.err (!%p737_p10)
}
  0x23   : > { %s809_s20 = smov [#allocation5]   ;;  %s741_s27 = scalar_lea.vmem %s185_s5, 16 }
  0x24   : > { %657 = dma.hbm_to_smem (!%p889_p7), %s1076_s1, 16, %s809_s20, [#allocation3]  }
  0x25   : > { %p742_p11 = scmp.ne.s32.totalorder %s185_s5, %s741_s27  ;;  %p749_p0 = scmp.lt.s32.totalorder %s185_s5, %s185_s5 }
  0x26   : > { %p750_p1 = scmp.lt.s32.totalorder %s741_s27, %s741_s27 }
  0x27   : > { %p744_p12 = pnand %p742_p11, %p715_p9 }
  0x28   : > { %p751_p2 = por %p750_p1, %p749_p0 }
  0x29   : > { %p745_p13 = pneg %p744_p12 }
  0x2b   : > { %p752_p4 = pnand %p751_p2, %p745_p13 }
  0x2d   : > { %755 = shalt.err (!%p752_p4)
}
  0x2e   : > { %s810_s29 = smov [#allocation6]   ;;  %205 = sbr.rel (%p872_p3) target bundleno = 242 (0xf2), region = 36 }
  0x2f   : > { %660 = dma.vmem_to_smem (!%p889_p7), %s185_s5, 16, %s810_s29, [#allocation7]  }
  0x35   : > { %777 = dma.done.wait (%p876_p5), [#allocation4], 16  }
  0x36   : > { %779 = vsyncadd (%p876_p5), [#allocation4], 4294967280 }
  0x37   : > { %781 = dma.done.wait (%p876_p5), [#allocation3], 16  }
  0x38   : > { %783 = vsyncadd (%p876_p5), [#allocation3], 4294967280 }
  0x39   : > { %785 = dma.done.wait (%p876_p5), [#allocation7], 16  }
  0x3a   : > { %787 = vsyncadd (%p876_p5), [#allocation7], 4294967280 }
  0x3b   : > { %219 = sfence }
  0x3c   : > { %p244_p3 = scmp.lt.s32.totalorder %s794_s16, 1  ;;  %s941_s23 = sshll.u32 %s790_s15, 4  ;;  %vm314_vm0 = vcmask 1039360   ;;  %vm341_vm1 = vcmask 982016   ;;  %vm368_vm2 = vcmask 973824  }
  0x3d   : > { %s276_s28 = sadd.s32 9, %s941_s23  ;;  %s260_s5 = sadd.s32 1, %s941_s23 }
  0x3e   : > { %s1094_s16 = smov (!%p244_p3, %s794_s16), 1  ;;  %s277_s30 = sld [smem:[#allocation2 + %s276_s28]] }
  0x3f   : > { %s638_s24 = sshll.u32 %s1094_s16, 5  ;;  %s261_s6 = sld [smem:[#allocation2 + %s260_s5]] }
  0x40   : > { %s248_s9 = scalar_lea.vmem %s1078_s3, %s638_s24  ;;  %s268_s10 = sadd.s32 5, %s941_s23 }
  0x41   : > { %s269_s11 = sld [smem:[#allocation2 + %s268_s10]]  ;;  %s284_s12 = sadd.s32 13, %s941_s23  ;;  %v954_v0 = vld [vmem:[%s248_s9 + $0x10] sm:$0xff]  ;;  %v956_v1 = vld [vmem:[%s248_s9] sm:$0xff]  ;;  %v958_v2 = vld [vmem:[%s248_s9 + $0x18] sm:$0xff] }
  0x42   : > { %s285_s13 = sld [smem:[#allocation2 + %s284_s12]]  ;;  %v961_v5 = vld [vmem:[%s248_s9 + $0x8] sm:$0xff]  ;;  %s262_s14 = sadd.s32 2, %s941_s23 }
  0x43   : > { %s811_s20 = smov 127   ;;  %s278_s25 = sadd.s32 10, %s941_s23 }
  0x44   : > { %v398_v3 = vstv %s277_s30  ;;  %s270_s26 = sadd.s32 6, %s941_s23  ;;  %s263_s27 = sld [smem:[#allocation2 + %s262_s14]] }
  0x45   : > { %v399_v4 = vmul.f32 %v954_v0, %v398_v3  ;;  %v305_v6 = vstv %s261_s6  ;;  %v400_v8 = vmul.f32 %v958_v2, %v398_v3  ;;  %s973_s29 = sld [smem:[#allocation2 + %s278_s25]]  ;;  %s286_s30 = sadd.s32 14, %s941_s23 }
  0x46   : > { %v306_v7 = vmul.f32 %v305_v6, %v956_v1  ;;  %v307_v10 = vmul.f32 %v305_v6, %v961_v5  ;;  %s975_s28 = sld [smem:[#allocation2 + %s270_s26]]  ;;  %s274_s5 = sadd.s32 8, %s941_s23 }
  0x47   : > { %403 = vrot.lane.b32.xlu1 %v399_v4, %s811_s20  ;;  %v318_v9 = vstv %s269_s11  ;;  %s275_s24 = sld [smem:[#allocation2 + %s274_s5]]  ;;  %s282_s6 = sadd.s32 12, %s941_s23 }
  0x48   : > { %310 = vrot.lane.b32.xlu0 %v306_v7, %s811_s20  ;;  %v320_v11 = vmul.f32 %v318_v9, %v961_v5  ;;  %v319_v12 = vmul.f32 %v318_v9, %v956_v1  ;;  %v410_v13 = vstv %s285_s13  ;;  %s283_s7 = sld [smem:[#allocation2 + %s282_s6]]  ;;  %s266_s9 = sadd.s32 4, %s941_s23 }
  0x49   : > { %v412_v15 = vmul.f32 %v958_v2, %v410_v13  ;;  %v411_v17 = vmul.f32 %v954_v0, %v410_v13  ;;  %s259_s8 = sld [smem:[#allocation2 + %s941_s23]]  ;;  %s264_s12 = sadd.s32 3, %s941_s23 }
  0x4a   : > { %v324_v14 = vrot.slane %v320_v11, 1  ;;  %v323_v16 = vrot.slane %v319_v12, 1  ;;  %s267_s10 = sld [smem:[#allocation2 + %s266_s9]]  ;;  %v332_v20 = vstv %s263_s27  ;;  %s812_s13 = smov 120  }
  0x4b   : > { %405 = vrot.lane.b32.xlu1 %v400_v8, %s811_s20  ;;  %v416_v18 = vrot.slane %v412_v15, 1  ;;  %v415_v19 = vrot.slane %v411_v17, 1  ;;  %s988_s11 = sld [smem:[#allocation2 + %s286_s30]]  ;;  %v334_v21 = vmul.f32 %v332_v20, %v961_v5  ;;  %v333_v25 = vmul.f32 %v332_v20, %v956_v1  ;;  %s272_s25 = sadd.s32 7, %s941_s23 }
  0x4c   : > { %312 = vrot.lane.b32.xlu0 %v307_v10, %s811_s20  ;;  %v424_v26 = vstv %s973_s29  ;;  %v345_v27 = vstv %s975_s28  ;;  %s265_s14 = sld [smem:[#allocation2 + %s264_s12]]  ;;  %s288_s29 = sadd.s32 15, %s941_s23 }
  0x4d   : > { %v388_v22 = vstv %s275_s24  ;;  %v426_v33 = vmul.f32 %v958_v2, %v424_v26  ;;  %v347_v34 = vmul.f32 %v345_v27, %v961_v5  ;;  %v425_v36 = vmul.f32 %v954_v0, %v424_v26  ;;  %s273_s27 = sld [smem:[#allocation2 + %s272_s25]]  ;;  %s813_s30 = smov 119  }
  0x4e   : > { %v391_v23 = vstv %s283_s7  ;;  %v389_v28 = vmul.f32 %v954_v0, %v388_v22  ;;  %v346_v37 = vmul.f32 %v345_v27, %v956_v1  ;;  %s289_s28 = sld [smem:[#allocation2 + %s288_s29]]  ;;  %p251_p5 = scmp.lt.s32.totalorder %s790_s15, 7 }
  0x4f   : > { %327 = vrot.lane.b32.xlu1 %v324_v14, %s811_s20  ;;  %v295_v24 = vstv %s259_s8  ;;  %v392_v29 = vmul.f32 %v954_v0, %v391_v23  ;;  %v351_v42 = vrot.slane %v347_v34, 1  ;;  %s1039_s5 = sld [smem:[#allocation6]]  ;;  %s1047_s24 = sld [smem:[#allocation5 + $0x1]] }
  0x50   : > { %325 = vrot.lane.b32.xlu0 %v323_v16, %s811_s20  ;;  %v298_v30 = vstv %s267_s10  ;;  %v296_v31 = vmul.f32 %v295_v24, %v956_v1  ;;  %v350_v44 = vrot.slane %v346_v37, 1  ;;  %s1096_s15 = smov (!%p251_p5, %s790_s15), 7  ;;  %s628_s6 = sshll.u32 %s1094_s16, 4 }
  0x51   : > { %v299_v32 = vmul.f32 %v298_v30, %v956_v1  ;;  %v394_v35 = vrot.slane %v392_v29, 1  ;;  %v436_v38 = vstv %s988_s11  ;;  %s627_s7 = sshll.u32 %s1096_s15, 1  ;;  %s632_s8 = sld [smem:[#allocation6 + $0x1]] }
  0x52   : > { %v438_v43 = vmul.f32 %v958_v2, %v436_v38  ;;  %v437_v45 = vmul.f32 %v954_v0, %v436_v38  ;;  %v359_v48 = vstv %s265_s14  ;;  %s255_s9 = sadd.s32 %s628_s6, %s627_s7 }
  0x53   : > { %419 = vrot.lane.b32.xlu1 %v416_v18, %s811_s20  ;;  %v301_v39 = vrot.slane %v299_v32, 1  ;;  %v1010_v40 = vadd.f32 %v394_v35, %v389_v28  ;;  %v361_v49 = vmul.f32 %v359_v48, %v961_v5  ;;  %v360_v50 = vmul.f32 %v359_v48, %v956_v1  ;;  %s629_s16 = sshll.u32 %s255_s9, 3 }
  0x54   : > { %417 = vrot.lane.b32.xlu0 %v415_v19, %s811_s20  ;;  %s280_s20 = sadd.s32 11, %s941_s23  ;;  %v442_v46 = vrot.slane %v438_v43, 1  ;;  %v441_v47 = vrot.slane %v437_v45, 1  ;;  %v372_v52 = vstv %s273_s27  ;;  %v462_v57 = vstv %s289_s28  ;;  %s1037_s23 = sld [smem:[#allocation5]] }
  0x55   : > { %v1012_v41 = vadd.f32 %v301_v39, %v296_v31  ;;  %s281_s26 = sld [smem:[#allocation2 + %s280_s20]]  ;;  %v374_v54 = vmul.f32 %v372_v52, %v961_v5  ;;  %v373_v56 = vmul.f32 %v372_v52, %v956_v1  ;;  %v464_v59 = vmul.f32 %v958_v2, %v462_v57  ;;  %s257_s11 = scalar_lea.vmem %s1079_s4, %s629_s16 }
  0x56   : > { %v463_v61 = vmul.f32 %v954_v0, %v462_v57 }
  0x57   : > { %339 = vrot.lane.b32.xlu1 %v334_v21, %s812_s13  ;;  %v378_v58 = vrot.slane %v374_v54, 1  ;;  %v377_v60 = vrot.slane %v373_v56, 1  ;;  %v468_v62 = vrot.slane %v464_v59, 1 }
  0x58   : > { %337 = vrot.lane.b32.xlu0 %v333_v25, %s812_s13  ;;  %v467_v63 = vrot.slane %v463_v61, 1 }
  0x5b   : > { %431 = vrot.lane.b32.xlu1 %v426_v33, %s812_s13  ;;  %v450_v51 = vstv %s281_s26 }
  0x5c   : > { %429 = vrot.lane.b32.xlu0 %v425_v36, %s812_s13  ;;  %v452_v53 = vmul.f32 %v958_v2, %v450_v51  ;;  %v451_v55 = vmul.f32 %v954_v0, %v450_v51 }
  0x5f   : > { %354 = vrot.lane.b32.xlu1 %v351_v42, %s812_s13 }
  0x60   : > { %352 = vrot.lane.b32.xlu0 %v350_v44, %s812_s13  ;;  %v478_v44 = vstv %s1039_s5 }
  0x63   : > { %445 = vrot.lane.b32.xlu1 %v442_v46, %s812_s13 }
  0x64   : > { %443 = vrot.lane.b32.xlu0 %v441_v47, %s812_s13 }
  0x67   : > { %366 = vrot.lane.b32.xlu1 %v361_v49, %s813_s30  ;;  %v484_v49 = vstv %s1047_s24 }
  0x68   : > { %364 = vrot.lane.b32.xlu0 %v360_v50, %s813_s30 }
  0x6b   : > { %457 = vrot.lane.b32.xlu1 %v452_v53, %s813_s30  ;;  %v486_v53 = vstv %s632_s8 }
  0x6c   : > { %455 = vrot.lane.b32.xlu0 %v451_v55, %s813_s30 }
  0x6f   : > { %381 = vrot.lane.b32.xlu1 %v378_v58, %s813_s30 }
  0x70   : > { %379 = vrot.lane.b32.xlu0 %v377_v60, %s813_s30 }
  0x73   : > { %471 = vrot.lane.b32.xlu1 %v468_v62, %s813_s30 }
  0x74   : > { %469 = vrot.lane.b32.xlu0 %v467_v63, %s813_s30 }
  0xb9   : > { %v404_v3 = vpop.permute.xlu1 %403 }
  0xba   : > { %v311_v4 = vpop.permute.xlu0 %310 }
  0xbd   : > { %v406_v5 = vpop.permute.xlu1 %405 }
  0xbe   : > { %v313_v6 = vpop.permute.xlu0 %312  ;;  %v407_v21 = vsel %vm314_vm0, %v404_v3, %v406_v5 }
  0xbf   : > { %v315_v16 = vsel %vm314_vm0, %v311_v4, %v313_v6  ;;  %v409_v27 = vadd.f32 %v407_v21, %v1010_v40  ;;  %v476_v40 = vstv %s1037_s23 }
  0xc0   : > { %v317_v19 = vadd.f32 %v315_v16, %v1012_v41 }
  0xc1   : > { %v328_v1 = vpop.permute.xlu1 %327 }
  0xc2   : > { %v326_v7 = vpop.permute.xlu0 %325 }
  0xc3   : > { %v329_v17 = vsel %vm314_vm0, %v326_v7, %v328_v1 }
  0xc4   : > { %v331_v23 = vadd.f32 %v329_v17, %v317_v19 }
  0xc5   : > { %v420_v8 = vpop.permute.xlu1 %419 }
  0xc6   : > { %v418_v9 = vpop.permute.xlu0 %417 }
  0xc7   : > { %v421_v24 = vsel %vm314_vm0, %v418_v9, %v420_v8 }
  0xc8   : > { %v423_v32 = vadd.f32 %v421_v24, %v409_v27 }
  0xc9   : > { %v340_v2 = vpop.permute.xlu1 %339 }
  0xca   : > { %v338_v10 = vpop.permute.xlu0 %337 }
  0xcb   : > { %v342_v22 = vsel %vm341_vm1, %v338_v10, %v340_v2 }
  0xcc   : > { %v344_v28 = vadd.f32 %v342_v22, %v331_v23 }
  0xcd   : > { %v432_v11 = vpop.permute.xlu1 %431 }
  0xce   : > { %v430_v12 = vpop.permute.xlu0 %429 }
  0xcf   : > { %v433_v30 = vsel %vm341_vm1, %v430_v12, %v432_v11 }
  0xd0   : > { %v435_v36 = vadd.f32 %v433_v30, %v423_v32 }
  0xd1   : > { %v355_v0 = vpop.permute.xlu1 %354 }
  0xd2   : > { %v353_v13 = vpop.permute.xlu0 %352 }
  0xd3   : > { %v356_v25 = vsel %vm341_vm1, %v353_v13, %v355_v0 }
  0xd4   : > { %v358_v33 = vadd.f32 %v356_v25, %v344_v28 }
  0xd5   : > { %v446_v14 = vpop.permute.xlu1 %445 }
  0xd6   : > { %v444_v15 = vpop.permute.xlu0 %443 }
  0xd7   : > { %v447_v34 = vsel %vm341_vm1, %v444_v15, %v446_v14 }
  0xd8   : > { %v449_v42 = vadd.f32 %v447_v34, %v435_v36 }
  0xd9   : > { %v367_v18 = vpop.permute.xlu1 %366 }
  0xda   : > { %v365_v20 = vpop.permute.xlu0 %364 }
  0xdb   : > { %v369_v31 = vsel %vm368_vm2, %v365_v20, %v367_v18 }
  0xdc   : > { %v371_v37 = vadd.f32 %v369_v31, %v358_v33 }
  0xdd   : > { %v458_v26 = vpop.permute.xlu1 %457 }
  0xde   : > { %v456_v29 = vpop.permute.xlu0 %455 }
  0xdf   : > { %v459_v39 = vsel %vm368_vm2, %v456_v29, %v458_v26 }
  0xe0   : > { %v461_v46 = vadd.f32 %v459_v39, %v449_v42 }
  0xe1   : > { %v382_v35 = vpop.permute.xlu1 %381 }
  0xe2   : > { %v380_v38 = vpop.permute.xlu0 %379 }
  0xe3   : > { %v383_v41 = vsel %vm368_vm2, %v380_v38, %v382_v35 }
  0xe4   : > { %v385_v43 = vadd.f32 %v383_v41, %v371_v37 }
  0xe5   : > { %v472_v45 = vpop.permute.xlu1 %471 }
  0xe6   : > { %v477_v47 = vmul.f32 %v476_v40, %v385_v43  ;;  %v470_v48 = vpop.permute.xlu0 %469 }
  0xe7   : > { %v473_v50 = vsel %vm368_vm2, %v470_v48, %v472_v45 }
  0xe8   : > { %v479_v51 = vadd.f32 %v478_v44, %v477_v47  ;;  %v475_v52 = vadd.f32 %v473_v50, %v461_v46 }
  0xea   : > { %vm480_vm3 = vcmp.gt.f32.partialorder %v479_v51, 0.0  ;;  %v481_v54 = vmul.f32 0.01, %v479_v51  ;;  %v485_v55 = vmul.f32 %v484_v49, %v475_v52 }
  0xec   : > { %v482_v56 = vsel %vm480_vm3, %v479_v51, %v481_v54  ;;  %v487_v57 = vadd.f32 %v486_v53, %v485_v55 }
  0xed   : > { %483 = vst [vmem:[%s257_s11] sm:$0x7f] %v482_v56 }
  0xee   : > { %vm488_vm4 = vcmp.gt.f32.partialorder %v487_v57, 0.0  ;;  %v489_v58 = vmul.f32 0.01, %v487_v57 }
  0xf0   : > { %v490_v59 = vsel %vm488_vm4, %v487_v57, %v489_v58 }
  0xf1   : > { %635 = vst [vmem:[%s257_s11 + $0x8] sm:$0x7f] %v490_v59 }
  0xf2 PF: > { %s17_s19 = sadd.s32 1, %s806_s19   ;;  %s1083_s15 = smov %s798_s17 }
  0xf3   : > { %p14_p7 = scmp.ge.s32.totalorder %s17_s19, 18   ;;  %s1084_s16 = smov %s802_s18 }
  0xf4   : > { %s1085_s17 = smov %s1088_s21  ;;  %s1086_s18 = smov %s1092_s22 }
  0xf5   :  { %16 = sbr.rel (!%p14_p7) target bundleno = 5 (0x5), region = 82 }
  0xfc   :  { %522 = vsyncpa [#allocation3], 1 }
  0xfd   :  { %524 = vsyncpa [#allocation3 + $0x1], 1 }
  0xfe   :  { %525 = vsyncpa [#allocation4], 1 }
  0xff   :  { %527 = vsyncpa [#allocation4 + $0x1], 1 }
 0x100   :  { %528 = vsyncpa [#allocation7], 1 }

// kernel: decoder_forward.8
= control target key start
LH: loop header
LB: loop body
LE: loop exit
PB: predicated region body
PF: predicated region fallthrough
CT: control target
= control target key end

     0   :  { %9 = vsyncpa [#allocation3], 0  ;;  %s2093_s0 = inlined_call_operand.vmem [shape: f32[128], index: 0, kind: input, shape index: {}]   ;;  %s2094_s1 = inlined_call_operand.vmem [shape: f32[2], index: 1, kind: input, shape index: {}]   ;;  %s2095_s2 = inlined_call_operand.vmem [shape: f32[2], index: 2, kind: input, shape index: {}]   ;;  %s2096_s3 = inlined_call_operand.vmem [shape: f32[2,2,16,384], index: 3, kind: input, shape index: {}]   ;;  %s2097_s4 = inlined_call_operand.vmem [shape: f32[2,8,2,15,256], index: 4, kind: output, shape index: {}]  }
   0x1   :  { %10 = vsyncpa [#allocation5], 0  ;;  %s1349_s15 = smov 0   ;;  %s1351_s16 = smov 0  }
   0x2   :  { %s1353_s17 = smov 0   ;;  %s1355_s18 = smov 0  }
   0x3   :  { %s1357_s19 = smov 0  }
   0x4 LB: > { %s174_s22 = sshll.u32 %s2094_s1, 4  ;;  %s1117_s23 = sadd.s32 4294967295, %s1316_s19   ;;  %s1316_s19 = sphi %s1357_s19, %s16_s19   ;;  %s1312_s18 = sphi %s1355_s18, %s2122_s18   ;;  %s1308_s17 = sphi %s1353_s17, %s2121_s17   ;;  %s1304_s16 = sphi %s1351_s16, %s2120_s16   ;;  %s1300_s15 = sphi %s1349_s15, %s2119_s15   ;;  %s175_s22 = int_to_ptr.vmem [resolvable:$true] %s174_s22 }
   0x5   : > { %p1119_p0 = scmp.ge.s32.totalorder %s1316_s19, 1  ;;  %p150_p1 = scmp.lt.s32.totalorder %s1316_s19, 17 }
   0x6   : > { %p1380_p2 = scmp.eq.s32.totalorder %s1117_s23, 0  ;;  %s25_s27 = sadd.s32 1, %s1308_s17 }
   0x7   : > { %p1384_p3 = pnand %p1119_p0, %p150_p1  ;;  %p1397_p6 = scmp.ge.s32.totalorder %s25_s27, 8 }
   0x8   : > { %s2101_s24 = scalar_select %p1380_p2, 1, 0 }
   0x9   : > { %s2102_s25 = scalar_select %p1384_p3, 1, 0 }
   0xa   : > { %p1163_p4 = pneg %p1384_p3  ;;  %s1225_s29 = scalar_lea.vmem %s175_s22, 16 }
   0xb   : > { %p1226_p7 = scmp.ne.s32.totalorder %s175_s22, %s1225_s29  ;;  %p1233_p11 = scmp.lt.s32.totalorder %s175_s22, %s175_s22 }
   0xc   : > { %p1392_p5 = pnand %p1380_p2, %p1163_p4  ;;  %p1234_p12 = scmp.lt.s32.totalorder %s1225_s29, %s1225_s29 }
   0xe   : > { %p1227_p8 = pneg %p1392_p5  ;;  %p1235_p13 = por %p1234_p12, %p1233_p11 }
  0x10   : > { %p1228_p9 = pnand %p1227_p8, %p1226_p7 }
  0x12   : > { %p1229_p10 = pneg %p1228_p9 }
  0x14   : > { %p1236_p0 = pnand %p1235_p13, %p1229_p10 }
  0x16   : > { %1239 = shalt.err (!%p1236_p0)
}
  0x17   : > { %s1318_s30 = smov [#allocation4]   ;;  %s2124_s27 = smov (%p1397_p6, %s25_s27), 0 }
  0x18   : > { %1169 = dma.vmem_to_smem (!%p1392_p5), %s175_s22, 16, %s1318_s30, [#allocation5]  }
  0x19   : > { %s28_s5 = sadd.s32 1, %s1312_s18  ;;  %s163_s8 = sshll.u32 %s2093_s0, 4  ;;  %s164_s8 = int_to_ptr.vmem [resolvable:$true] %s163_s8 }
  0x1a   : > { %s2126_s5 = smov (!%p1397_p6, %s28_s5), %s1312_s18  ;;  %s185_s11 = sshll.u32 %s2095_s2, 4  ;;  %s186_s11 = int_to_ptr.vmem [resolvable:$true] %s185_s11 }
  0x1b   : > { %p30_p1 = scmp.ge.s32.totalorder %s2126_s5, 2  ;;  %s1240_s12 = scalar_lea.vmem %s164_s8, 16 }
  0x1c   : > { %p1241_p4 = scmp.ne.s32.totalorder %s164_s8, %s1240_s12  ;;  %p1248_p10 = scmp.lt.s32.totalorder %s164_s8, %s164_s8 }
  0x1d   : > { %p1249_p11 = scmp.lt.s32.totalorder %s1240_s12, %s1240_s12 }
  0x1e   : > { %p1243_p7 = pnand %p1241_p4, %p1227_p8 }
  0x1f   : > { %p1250_p12 = por %p1249_p11, %p1248_p10 }
  0x20   : > { %p1244_p9 = pneg %p1243_p7 }
  0x22   : > { %p1251_p13 = pnand %p1250_p12, %p1244_p9 }
  0x24   : > { %1254 = shalt.err (!%p1251_p13)
}
  0x25   : > { %s1319_s13 = smov [#allocation2]   ;;  %s2128_s5 = smov (%p30_p1, %s2126_s5), 0 }
  0x26   : > { %1166 = dma.vmem_to_smem (!%p1392_p5), %s164_s8, 16, %s1319_s13, [#allocation3]  }
  0x27   : > { %s1255_s14 = scalar_lea.vmem %s186_s11, 16  ;;  %p1263_p7 = scmp.lt.s32.totalorder %s186_s11, %s186_s11 }
  0x28   : > { %p1256_p6 = scmp.ne.s32.totalorder %s186_s11, %s1255_s14  ;;  %p1264_p2 = scmp.lt.s32.totalorder %s1255_s14, %s1255_s14 }
  0x2a   : > { %p1258_p0 = pnand %p1256_p6, %p1227_p8  ;;  %p1265_p3 = por %p1264_p2, %p1263_p7 }
  0x2c   : > { %p1259_p4 = pneg %p1258_p0 }
  0x2e   : > { %p1266_p10 = pnand %p1265_p3, %p1259_p4 }
  0x30   : > { %1269 = shalt.err (!%p1266_p10)
}
  0x31   : > { %s1320_s20 = smov [#allocation6]   ;;  %p2105_p9 = scmp.ne.s32.totalorder %s2102_s25, 0 }
  0x32   : > { %1172 = dma.vmem_to_smem (!%p1392_p5), %s186_s11, 16, %s1320_s20, [#allocation5]  }
  0x33   : > { %206 = sbr.rel (%p2105_p9) target bundleno = 342 (0x156), region = 36 }
  0x3a   : > { %p2106_p1 = scmp.ne.s32.totalorder %s2101_s24, 0 }
  0x3c   : > { %1291 = dma.done.wait (%p2106_p1), [#allocation3], 16  }
  0x3d   : > { %1293 = vsyncadd (%p2106_p1), [#allocation3], 4294967280 }
  0x3e   : > { %1295 = dma.done.wait (%p2106_p1), [#allocation5], 32  }
  0x3f   : > { %1297 = vsyncadd (%p2106_p1), [#allocation5], 4294967264 }
  0x40   : > { %220 = sfence }
  0x41   : > { %p245_p2 = scmp.lt.s32.totalorder %s1304_s16, 1  ;;  %s1446_s21 = sshll.u32 %s1300_s15, 4  ;;  %vm313_vm0 = vcmask 1046528   ;;  %vm339_vm1 = vcmask 1039360   ;;  %vm393_vm2 = vcmask 916480   ;;  %vm447_vm3 = vcmask 908288  }
  0x42   : > { %s261_s22 = sadd.s32 1, %s1446_s21  ;;  %s263_s25 = sadd.s32 2, %s1446_s21 }
  0x43   : > { %s2130_s16 = smov (!%p245_p2, %s1304_s16), 1  ;;  %s262_s23 = sld [smem:[#allocation2 + %s261_s22]] }
  0x44   : > { %s1150_s26 = smul.u32 96, %s2130_s16  ;;  %s264_s24 = sld [smem:[#allocation2 + %s263_s25]] }
  0x45   : > { %s269_s28 = sadd.s32 5, %s1446_s21  ;;  %s271_s8 = sadd.s32 6, %s1446_s21 }
  0x46   : > { %s1458_s6 = scalar_lea.vmem %s2096_s3, %s1150_s26  ;;  %s270_s7 = sld [smem:[#allocation2 + %s269_s28]] }
  0x47   : > { %v1461_v0 = vld [vmem:[%s1458_s6 + $0x10] sm:$0xff]  ;;  %v1464_v1 = vld [vmem:[%s1458_s6] sm:$0xff]  ;;  %v1468_v2 = vld [vmem:[%s1458_s6 + $0x8] sm:$0xff]  ;;  %s1470_s9 = sld [smem:[#allocation2 + %s271_s8]]  ;;  %s1321_s10 = smov 127  }
  0x48   : > { %v1477_v7 = vld [vmem:[%s1458_s6 + $0x18] sm:$0x1]  ;;  %v1480_v8 = vld [vmem:[%s1458_s6 + $0x28] sm:$0x1]  ;;  %v1489_v12 = vld [vmem:[%s1458_s6 + $0x20] sm:$0x1] }
  0x49   : > { %v326_v3 = vstv %s262_s23  ;;  %v1483_v9 = vld [vmem:[%s1458_s6 + $0x18] sm:$0xff]  ;;  %v1495_v14 = vld [vmem:[%s1458_s6 + $0x28] sm:$0xff]  ;;  %v1498_v15 = vld [vmem:[%s1458_s6 + $0x20] sm:$0xff]  ;;  %s273_s11 = sadd.s32 7, %s1446_s21  ;;  %s1322_s12 = smov 112  }
  0x4a   : > { %v329_v4 = vmul.f32 %v326_v3, %v1461_v0  ;;  %v327_v5 = vmul.f32 %v326_v3, %v1464_v1  ;;  %v1474_v6 = vstv %s264_s24  ;;  %v328_v11 = vmul.f32 %v326_v3, %v1468_v2  ;;  %s265_s13 = sadd.s32 3, %s1446_s21  ;;  %s274_s14 = sld [smem:[#allocation2 + %s273_s11]]  ;;  %v1588_v61 = vld [vmem:[%s1458_s6 + $0x30] sm:$0xff] }
  0x4b   : > { %v382_v10 = vmul.f32 %v1474_v6, %v1468_v2  ;;  %v1492_v13 = vmul.f32 %v1483_v9, %v326_v3  ;;  %v1505_v17 = vmul.f32 %v1495_v14, %v326_v3  ;;  %v1508_v18 = vmul.f32 %v1498_v15, %v326_v3  ;;  %s266_s20 = sld [smem:[#allocation2 + %s265_s13]]  ;;  %s285_s22 = sadd.s32 13, %s1446_s21 }
  0x4c   : > { %337 = vrot.lane.b32.xlu1 %v329_v4, %s1321_s10  ;;  %333 = vrot.lane.b32.xlu0 %v327_v5, %s1321_s10  ;;  %v1502_v16 = vstv %s270_s7  ;;  %v1512_v19 = vmul.f32 %v1483_v9, %v1474_v6  ;;  %v381_v32 = vmul.f32 %v1474_v6, %v1464_v1  ;;  %s277_s23 = sadd.s32 9, %s1446_s21  ;;  %s286_s25 = sld [smem:[#allocation2 + %s285_s22]]  ;;  %v383_v47 = vmul.f32 %v1474_v6, %v1461_v0  ;;  %v1601_v5 = vld [vmem:[%s1458_s6 + $0x48] sm:$0x1] }
  0x4d   : > { %v347_v20 = vmul.f32 %v1502_v16, %v1464_v1  ;;  %v350_v21 = vmul.f32 %v1502_v16, %v1477_v7  ;;  %v349_v22 = vmul.f32 %v1502_v16, %v1461_v0  ;;  %v352_v23 = vmul.f32 %v1502_v16, %v1480_v8  ;;  %s278_s26 = sld [smem:[#allocation2 + %s277_s23]]  ;;  %s279_s24 = sadd.s32 10, %s1446_s21 }
  0x4e   : > { %v348_v24 = vmul.f32 %v1502_v16, %v1468_v2  ;;  %v351_v25 = vmul.f32 %v1502_v16, %v1489_v12  ;;  %v1528_v26 = vmul.f32 %v1483_v9, %v1502_v16  ;;  %v1532_v27 = vmul.f32 %v1495_v14, %v1502_v16  ;;  %s1580_s28 = sld [smem:[#allocation2 + %s279_s24]]  ;;  %s287_s29 = sadd.s32 14, %s1446_s21 }
  0x4f   : > { %v359_v28 = vrot.slane %v347_v20, 1  ;;  %v360_v29 = vrot.slane %v350_v21, 1  ;;  %v365_v30 = vrot.slane %v349_v22, 1  ;;  %v366_v31 = vrot.slane %v352_v23, 1  ;;  %v1609_v22 = vld [vmem:[%s1458_s6 + $0x58] sm:$0x1] }
  0x50   : > { %389 = vrot.lane.b32.xlu1 %v382_v10, %s1322_s12  ;;  %335 = vrot.lane.b32.xlu0 %v328_v11, %s1321_s10  ;;  %v362_v33 = vrot.slane %v348_v24, 1  ;;  %v363_v34 = vrot.slane %v351_v25, 1  ;;  %v1540_v35 = vstv %s1470_s9  ;;  %v1567_v53 = vstv %s274_s14  ;;  %s1611_s30 = sld [smem:[#allocation2 + %s287_s29]]  ;;  %s281_s7 = sadd.s32 11, %s1446_s21 }
  0x51   : > { %v361_v36 = vsel %vm313_vm0, %v359_v28, %v360_v29  ;;  %v401_v37 = vmul.f32 %v1540_v35, %v1464_v1  ;;  %v404_v38 = vmul.f32 %v1540_v35, %v1477_v7  ;;  %v367_v39 = vsel %vm313_vm0, %v365_v30, %v366_v31  ;;  %v1604_v10 = vld [vmem:[%s1458_s6 + $0x40] sm:$0xff]  ;;  %v1615_v23 = vld [vmem:[%s1458_s6 + $0x38] sm:$0xff]  ;;  %s267_s8 = sadd.s32 4, %s1446_s21  ;;  %s1323_s9 = smov 111  }
  0x52   : > { %v364_v40 = vsel %vm313_vm0, %v362_v33, %v363_v34  ;;  %v403_v41 = vmul.f32 %v1540_v35, %v1461_v0  ;;  %v406_v42 = vmul.f32 %v1540_v35, %v1480_v8  ;;  %v402_v45 = vmul.f32 %v1540_v35, %v1468_v2  ;;  %s1635_s11 = sld [smem:[#allocation2 + %s281_s7]]  ;;  %s275_s23 = sadd.s32 8, %s1446_s21 }
  0x53   : > { %v413_v43 = vrot.slane %v401_v37, 1  ;;  %v414_v44 = vrot.slane %v404_v38, 1  ;;  %v405_v46 = vmul.f32 %v1540_v35, %v1489_v12  ;;  %v1572_v54 = vstv %s266_s20  ;;  %s1638_s13 = sld [smem:[#allocation2 + %s1446_s21]]  ;;  %s289_s20 = sadd.s32 15, %s1446_s21 }
  0x54   : > { %368 = vrot.lane.b32.xlu1 %v361_v36, %s1321_s10  ;;  %387 = vrot.lane.b32.xlu0 %v381_v32, %s1322_s12  ;;  %v419_v48 = vrot.slane %v403_v41, 1  ;;  %v420_v50 = vrot.slane %v406_v42, 1  ;;  %v416_v51 = vrot.slane %v402_v45, 1  ;;  %v455_v57 = vmul.f32 %v1567_v53, %v1464_v1  ;;  %s1645_s14 = sld [smem:[#allocation2 + %s267_s8]]  ;;  %p252_p3 = scmp.lt.s32.totalorder %s1300_s15, 7 }
  0x55   : > { %v415_v49 = vsel %vm313_vm0, %v413_v43, %v414_v44  ;;  %v417_v52 = vrot.slane %v405_v46, 1  ;;  %v458_v58 = vmul.f32 %v1567_v53, %v1477_v7  ;;  %v436_v59 = vmul.f32 %v1572_v54, %v1468_v2  ;;  %s1672_s22 = sld [smem:[#allocation2 + %s289_s20]]  ;;  %s1130_s24 = sshll.u32 %s2130_s16, 6 }
  0x56   : > { %v421_v55 = vsel %vm313_vm0, %v419_v48, %v420_v50  ;;  %v457_v60 = vmul.f32 %v1567_v53, %v1461_v0  ;;  %v1590_v62 = vstv %s286_s25  ;;  %v435_v63 = vmul.f32 %v1572_v54, %v1464_v1  ;;  %s283_s25 = sadd.s32 12, %s1446_s21  ;;  %s1762_s21 = sld [smem:[#allocation2 + %s275_s23]] }
  0x57   : > { %v418_v56 = vsel %vm313_vm0, %v416_v51, %v417_v52  ;;  %v460_v3 = vmul.f32 %v1567_v53, %v1480_v8  ;;  %v456_v4 = vmul.f32 %v1567_v53, %v1468_v2  ;;  %v467_v11 = vrot.slane %v455_v57, 1  ;;  %s2132_s15 = smov (!%p252_p3, %s1300_s15), 7  ;;  %s1133_s7 = sld [smem:[#allocation4 + $0x1]] }
  0x58   : > { %372 = vrot.lane.b32.xlu1 %v367_v39, %s1321_s10  ;;  %370 = vrot.lane.b32.xlu0 %v364_v40, %s1321_s10  ;;  %v468_v20 = vrot.slane %v458_v58, 1  ;;  %v459_v21 = vmul.f32 %v1567_v53, %v1489_v12  ;;  %v1617_v8 = vstv %s278_s26  ;;  %v539_v24 = vmul.f32 %v1588_v61, %v1590_v62  ;;  %s1768_s26 = sld [smem:[#allocation2 + %s283_s25]] }
  0x59   : > { %v437_v25 = vmul.f32 %v1572_v54, %v1461_v0  ;;  %v473_v28 = vrot.slane %v457_v60, 1  ;;  %v542_v29 = vmul.f32 %v1601_v5, %v1590_v62  ;;  %v474_v30 = vrot.slane %v460_v3, 1  ;;  %v1633_v0 = vld [vmem:[%s1458_s6 + $0x50] sm:$0x1]  ;;  %s1134_s8 = sld [smem:[#allocation6 + $0x1]] }
  0x5a   : > { %v470_v31 = vrot.slane %v456_v4, 1  ;;  %v541_v32 = vmul.f32 %v1604_v10, %v1590_v62  ;;  %v544_v33 = vmul.f32 %v1609_v22, %v1590_v62  ;;  %v469_v34 = vsel %vm313_vm0, %v467_v11, %v468_v20 }
  0x5b   : > { %v471_v36 = vrot.slane %v459_v21, 1  ;;  %v521_v37 = vmul.f32 %v1615_v23, %v1617_v8  ;;  %v520_v38 = vmul.f32 %v1588_v61, %v1617_v8  ;;  %v551_v39 = vrot.slane %v539_v24, 1 }
  0x5c   : > { %422 = vrot.lane.b32.xlu1 %v415_v49, %s1322_s12  ;;  %391 = vrot.lane.b32.xlu0 %v383_v47, %s1322_s12  ;;  %v540_v40 = vmul.f32 %v1615_v23, %v1590_v62  ;;  %v1651_v41 = vstv %s1580_s28  ;;  %v1655_v42 = vmul.f32 %v1498_v15, %v1502_v16  ;;  %v552_v43 = vrot.slane %v542_v29, 1 }
  0x5d   : > { %v543_v44 = vmul.f32 %v1633_v0, %v1590_v62  ;;  %v1661_v45 = vmul.f32 %v1495_v14, %v1474_v6  ;;  %v1665_v46 = vmul.f32 %v1498_v15, %v1474_v6  ;;  %v475_v47 = vsel %vm313_vm0, %v473_v28, %v474_v30 }
  0x5e   : > { %v522_v16 = vmul.f32 %v1604_v10, %v1617_v8  ;;  %v557_v48 = vrot.slane %v541_v32, 1  ;;  %v558_v49 = vrot.slane %v544_v33, 1  ;;  %v472_v50 = vsel %vm313_vm0, %v470_v31, %v471_v36 }
  0x5f   : > { %v1677_v51 = vmul.f32 %v1615_v23, %v1651_v41  ;;  %v1680_v6 = vstv %s1611_s30  ;;  %v1684_v52 = vmul.f32 %v1483_v9, %v1540_v35  ;;  %v1692_v57 = vmul.f32 %v1495_v14, %v1540_v35 }
  0x60   : > { %426 = vrot.lane.b32.xlu1 %v421_v55, %s1322_s12  ;;  %424 = vrot.lane.b32.xlu0 %v418_v56, %s1322_s12  ;;  %v554_v55 = vrot.slane %v540_v40, 1  ;;  %v1688_v56 = vmul.f32 %v1588_v61, %v1651_v41  ;;  %v1696_v58 = vmul.f32 %v1498_v15, %v1540_v35  ;;  %v555_v60 = vrot.slane %v543_v44, 1 }
  0x61   : > { %v1705_v3 = vmul.f32 %v1495_v14, %v1572_v54  ;;  %v559_v4 = vsel %vm313_vm0, %v557_v48, %v558_v49  ;;  %v1712_v35 = vmul.f32 %v1588_v61, %v1680_v6  ;;  %v1716_v11 = vmul.f32 %v1601_v5, %v1680_v6 }
  0x62   : > { %v1719_v20 = vstv %s1635_s11  ;;  %v1723_v21 = vmul.f32 %v1498_v15, %v1572_v54  ;;  %v1726_v24 = vstv %s1638_s13  ;;  %v1743_v32 = vmul.f32 %v1604_v10, %v1680_v6 }
  0x63   : > { %v301_v28 = vmul.f32 %v1726_v24, %v1468_v2  ;;  %v300_v33 = vmul.f32 %v1726_v24, %v1464_v1 }
  0x64   : > { %443 = vrot.lane.b32.xlu1 %v436_v59, %s1323_s9  ;;  %441 = vrot.lane.b32.xlu0 %v435_v63, %s1323_s9  ;;  %v553_v59 = vsel %vm313_vm0, %v551_v39, %v552_v43  ;;  %v1701_v63 = vmul.f32 %v1483_v9, %v1572_v54  ;;  %v556_v54 = vsel %vm313_vm0, %v554_v55, %v555_v60  ;;  %v644_v39 = vstv %s1672_s22 }
  0x65   : > { %v645_v43 = vmul.f32 %v1588_v61, %v644_v39  ;;  %v648_v44 = vmul.f32 %v1601_v5, %v644_v39  ;;  %v646_v48 = vmul.f32 %v1615_v23, %v644_v39 }
  0x67   : > { %v657_v55 = vrot.slane %v645_v43, 1  ;;  %v658_v60 = vrot.slane %v648_v44, 1  ;;  %v1800_v43 = vmul.f32 %v1495_v14, %v1567_v53  ;;  %v604_v44 = vrot.slane %v1712_v35, 1 }
  0x68   : > { %476 = vrot.lane.b32.xlu1 %v469_v34, %s1323_s9  ;;  %445 = vrot.lane.b32.xlu0 %v437_v25, %s1323_s9  ;;  %v1729_v25 = vstv %s1645_s14  ;;  %v605_v14 = vrot.slane %v1716_v11, 1 }
  0x69   : > { %v306_v29 = vmul.f32 %v1729_v25, %v1468_v2  ;;  %v307_v30 = vmul.f32 %v1729_v25, %v1477_v7  ;;  %v308_v31 = vmul.f32 %v1729_v25, %v1489_v12  ;;  %v305_v34 = vmul.f32 %v1729_v25, %v1464_v1  ;;  %v1753_v2 = vld [vmem:[%s1458_s6 + $0x58] sm:$0xff]  ;;  %2110 = vst [vmem:[#allocation12_spill] sm:$0xff] %v1800_v43 }
  0x6b   : > { %v315_v7 = vrot.slane %v307_v30, 1  ;;  %v317_v12 = vrot.slane %v306_v29, 1  ;;  %v318_v36 = vrot.slane %v308_v31, 1  ;;  %v314_v40 = vrot.slane %v305_v34, 1 }
  0x6c   : > { %480 = vrot.lane.b32.xlu1 %v475_v47, %s1323_s9  ;;  %478 = vrot.lane.b32.xlu0 %v472_v50, %s1323_s9  ;;  %v1760_v47 = vmul.f32 %v1753_v2, %v1719_v20  ;;  %v649_v34 = vmul.f32 %v1633_v0, %v644_v39 }
  0x6d   : > { %v319_v1 = vsel %vm313_vm0, %v317_v12, %v318_v36  ;;  %v316_v50 = vsel %vm313_vm0, %v314_v40, %v315_v7  ;;  %v1779_v12 = vld [vmem:[%s1458_s6 + $0x48] sm:$0xff]  ;;  %v660_v36 = vrot.slane %v646_v48, 1  ;;  %v1786_v7 = vmul.f32 %v1498_v15, %v1567_v53 }
  0x6e   : > { %v1770_v49 = vadd.f32 %v319_v1, %v301_v28  ;;  %v1775_v29 = vadd.f32 %v316_v50, %v300_v33  ;;  %v1782_v28 = vsel %vm313_vm0, %v657_v55, %v658_v60  ;;  %v661_v33 = vrot.slane %v649_v34, 1 }
  0x6f   : > { %v1796_v40 = vmul.f32 %v1779_v12, %v644_v39  ;;  %v597_v1 = vmul.f32 %v1609_v22, %v1680_v6  ;;  %v1811_v48 = vmul.f32 %v1753_v2, %v644_v39  ;;  %v575_v50 = vmul.f32 %v1604_v10, %v1651_v41 }
  0x70   : > { %528 = vrot.lane.b32.xlu1 %v521_v37, %s1321_s10  ;;  %526 = vrot.lane.b32.xlu0 %v520_v38, %s1321_s10  ;;  %v647_v37 = vmul.f32 %v1604_v10, %v644_v39  ;;  %v650_v38 = vmul.f32 %v1609_v22, %v644_v39  ;;  %2107 = vst [vmem:[#allocation9_spill] sm:$0xff] %v1770_v49  ;;  %2108 = vst [vmem:[#allocation10_spill] sm:$0xff] %v1775_v29  ;;  %v493_v55 = vstv %s1762_s21 }
  0x71   : > { %2109 = vst [vmem:[#allocation11_spill] sm:$0xff] %v1796_v40  ;;  %2111 = vst [vmem:[#allocation13_spill] sm:$0xff] %v1811_v48  ;;  %v1819_v35 = vsel %vm313_vm0, %v660_v36, %v661_v33  ;;  %v610_v60 = vrot.slane %v1743_v32, 1  ;;  %v495_v11 = vmul.f32 %v1615_v23, %v493_v55  ;;  %v606_v32 = vsel %vm313_vm0, %v604_v44, %v605_v14 }
  0x72   : > { %v663_v30 = vrot.slane %v647_v37, 1  ;;  %v664_v31 = vrot.slane %v650_v38, 1  ;;  %v593_v37 = vmul.f32 %v1615_v23, %v1680_v6  ;;  %v1808_v38 = vld [vmem:[%s1458_s6 + $0x50] sm:$0xff]  ;;  %v611_v36 = vrot.slane %v597_v1, 1  ;;  %s291_s6 = sld [smem:[#allocation4]] }
  0x73   : > { %v1822_v22 = vmul.f32 %v1808_v38, %v644_v39  ;;  %v709_v1 = vmul.f32 %v1483_v9, %v1726_v24 }
  0x74   : > { %560 = vrot.lane.b32.xlu1 %v553_v59, %s1321_s10  ;;  %530 = vrot.lane.b32.xlu0 %v522_v16, %s1321_s10  ;;  %v1790_v16 = vmul.f32 %v1483_v9, %v1567_v53  ;;  %v1793_v59 = vsel %vm313_vm0, %v663_v30, %v664_v31  ;;  %v596_v53 = vmul.f32 %v1633_v0, %v1680_v6  ;;  %v607_v33 = vrot.slane %v593_v37, 1 }
  0x75   : > { %2112 = vst [vmem:[#allocation14_spill] sm:$0xff] %v1822_v22  ;;  %v612_v14 = vsel %vm313_vm0, %v610_v60, %v611_v36  ;;  %v628_v60 = vmul.f32 %v1604_v10, %v1719_v20  ;;  %v858_v10 = vmul.f32 %v1779_v12, %v1617_v8  ;;  %v917_v36 = vmul.f32 %v1753_v2, %v1680_v6 }
  0x76   : > { %v608_v49 = vrot.slane %v596_v53, 1 }
  0x78   : > { %564 = vrot.lane.b32.xlu1 %v559_v4, %s1321_s10  ;;  %562 = vrot.lane.b32.xlu0 %v556_v54, %s1321_s10  ;;  %v494_v4 = vmul.f32 %v1588_v61, %v493_v55  ;;  %v498_v54 = vstv %s1768_s26 }
  0x79   : > { %v499_v30 = vmul.f32 %v1588_v61, %v498_v54  ;;  %v501_v31 = vmul.f32 %v1601_v5, %v498_v54  ;;  %v500_v34 = vmul.f32 %v1615_v23, %v498_v54  ;;  %v502_v39 = vmul.f32 %v1633_v0, %v498_v54 }
  0x7a   : > { %v713_v5 = vmul.f32 %v1483_v9, %v1729_v25  ;;  %v714_v0 = vmul.f32 %v1498_v15, %v1729_v25  ;;  %v609_v25 = vsel %vm313_vm0, %v607_v33, %v608_v49  ;;  %v847_v53 = vmul.f32 %v1779_v12, %v498_v54 }
  0x7b   : > { %v507_v22 = vrot.slane %v499_v30, 1  ;;  %v508_v48 = vrot.slane %v501_v31, 1  ;;  %v510_v29 = vrot.slane %v500_v34, 1  ;;  %v511_v43 = vrot.slane %v502_v39, 1 }
  0x7c   : > { %581 = vrot.lane.b32.xlu1 %v1677_v51, %s1322_s12  ;;  %579 = vrot.lane.b32.xlu0 %v1688_v56, %s1322_s12  ;;  %v717_v37 = vrot.slane %v713_v5, 1  ;;  %v627_v9 = vmul.f32 %v1615_v23, %v1719_v20  ;;  %v626_v49 = vmul.f32 %v1588_v61, %v1719_v20  ;;  %v859_v61 = vmul.f32 %v1808_v38, %v1617_v8 }
  0x7d   : > { %v509_v51 = vsel %vm313_vm0, %v507_v22, %v508_v48  ;;  %v512_v40 = vsel %vm313_vm0, %v510_v29, %v511_v43  ;;  %v710_v48 = vmul.f32 %v1498_v15, %v1726_v24  ;;  %v718_v29 = vrot.slane %v714_v0, 1 }
  0x7e   : > { %v1848_v56 = vadd.f32 %v509_v51, %v494_v4  ;;  %v1850_v44 = vadd.f32 %v512_v40, %v495_v11  ;;  %v1858_v43 = vadd.f32 %v717_v37, %v709_v1  ;;  %v843_v40 = vmul.f32 %v1779_v12, %v493_v55  ;;  %v2114_v37 = vld [vmem:[#allocation12_spill] sm:$0xff] }
  0x7f   : > { %v1861_v22 = vadd.f32 %v718_v29, %v710_v48  ;;  %v851_v15 = vrot.slane %v847_v53, 1  ;;  %v844_v4 = vmul.f32 %v1808_v38, %v493_v55  ;;  %v860_v55 = vmul.f32 %v1753_v2, %v1617_v8  ;;  %v2115_v48 = vld [vmem:[#allocation10_spill] sm:$0xff]  ;;  %v2116_v53 = vld [vmem:[#allocation13_spill] sm:$0xff] }
  0x80   : > { %613 = vrot.lane.b32.xlu1 %v606_v32, %s1322_s12  ;;  %583 = vrot.lane.b32.xlu0 %v575_v50, %s1322_s12  ;;  %v848_v50 = vmul.f32 %v1808_v38, %v498_v54  ;;  %v877_v54 = vmul.f32 %v1808_v38, %v1590_v62  ;;  %v876_v30 = vmul.f32 %v1779_v12, %v1590_v62 }
  0x81   : > { %v1870_v24 = vadd.f32 %v851_v15, %v843_v40  ;;  %v878_v31 = vmul.f32 %v1753_v2, %v1590_v62  ;;  %v897_v62 = vmul.f32 %v1779_v12, %v1651_v41  ;;  %v899_v34 = vmul.f32 %v1753_v2, %v1651_v41 }
  0x82   : > { %v852_v23 = vrot.slane %v848_v50, 1  ;;  %v882_v8 = vrot.slane %v876_v30, 1  ;;  %v916_v39 = vmul.f32 %v1808_v38, %v1680_v6  ;;  %v915_v32 = vmul.f32 %v1779_v12, %v1680_v6  ;;  %v2118_v50 = vld [vmem:[#allocation9_spill] sm:$0xff] }
  0x83   : > { %v937_v6 = vmul.f32 %v1808_v38, %v1719_v20  ;;  %v936_v2 = vmul.f32 %v1779_v12, %v1719_v20  ;;  %v827_v20 = vrot.slane %v1786_v7, 1  ;;  %v826_v12 = vrot.slane %v1790_v16, 1 }
  0x84   : > { %617 = vrot.lane.b32.xlu1 %v612_v14, %s1322_s12  ;;  %615 = vrot.lane.b32.xlu0 %v609_v25, %s1322_s12  ;;  %v1878_v11 = vadd.f32 %v852_v23, %v844_v4  ;;  %v828_v14 = vrot.slane %v2114_v37, 1 }
  0x88   : > { %634 = vrot.lane.b32.xlu1 %v627_v9, %s1323_s9  ;;  %632 = vrot.lane.b32.xlu0 %v626_v49, %s1323_s9  ;;  %v962_v9 = vrot.slane %v2116_v53, 1  ;;  %v2117_v49 = vld [vmem:[#allocation14_spill] sm:$0xff] }
  0x89   : > { %v961_v40 = vrot.slane %v2117_v49, 1 }
  0x8c   : > { %730 = vrot.lane.b32.xlu1 %v1492_v13, %s1321_s10  ;;  %636 = vrot.lane.b32.xlu0 %v628_v60, %s1323_s9  ;;  %v748_v13 = vrot.slane %v1528_v26, 1  ;;  %v883_v26 = vrot.slane %v877_v54, 1 }
  0x90   : > { %734 = vrot.lane.b32.xlu1 %v1505_v17, %s1321_s10  ;;  %732 = vrot.lane.b32.xlu0 %v1508_v18, %s1321_s10  ;;  %v750_v17 = vrot.slane %v1532_v27, 1  ;;  %v749_v18 = vrot.slane %v1655_v42, 1  ;;  %v884_v27 = vrot.slane %v878_v31, 1  ;;  %v898_v42 = vmul.f32 %v1808_v38, %v1651_v41 }
  0x91   : > { %v921_v41 = vrot.slane %v915_v32, 1 }
  0x94   : > { %866 = vrot.lane.b32.xlu1 %v859_v61, %s1321_s10  ;;  %864 = vrot.lane.b32.xlu0 %v858_v10, %s1321_s10 }
  0x98   : > { %751 = vrot.lane.b32.xlu1 %v748_v13, %s1321_s10  ;;  %868 = vrot.lane.b32.xlu0 %v860_v55, %s1321_s10 }
  0x9c   : > { %755 = vrot.lane.b32.xlu1 %v750_v17, %s1321_s10  ;;  %753 = vrot.lane.b32.xlu0 %v749_v18, %s1321_s10 }
  0xa0   : > { %887 = vrot.lane.b32.xlu1 %v883_v26, %s1321_s10  ;;  %885 = vrot.lane.b32.xlu0 %v882_v8, %s1321_s10 }
  0xa4   : > { %769 = vrot.lane.b32.xlu1 %v1512_v19, %s1322_s12  ;;  %889 = vrot.lane.b32.xlu0 %v884_v27, %s1321_s10  ;;  %v787_v19 = vrot.slane %v1684_v52, 1  ;;  %v922_v52 = vrot.slane %v916_v39, 1  ;;  %s293_s10 = sld [smem:[#allocation6]]  ;;  %v1990_v39 = vstv %s291_s6 }
  0xa8   : > { %773 = vrot.lane.b32.xlu1 %v1661_v45, %s1322_s12  ;;  %771 = vrot.lane.b32.xlu0 %v1665_v46, %s1322_s12  ;;  %v789_v45 = vrot.slane %v1692_v57, 1  ;;  %v788_v46 = vrot.slane %v1696_v58, 1  ;;  %v923_v57 = vrot.slane %v917_v36, 1 }
  0xac   : > { %905 = vrot.lane.b32.xlu1 %v898_v42, %s1322_s12  ;;  %903 = vrot.lane.b32.xlu0 %v897_v62, %s1322_s12 }
  0xb0   : > { %790 = vrot.lane.b32.xlu1 %v787_v19, %s1322_s12  ;;  %907 = vrot.lane.b32.xlu0 %v899_v34, %s1322_s12 }
  0xb4   : > { %794 = vrot.lane.b32.xlu1 %v789_v45, %s1322_s12  ;;  %792 = vrot.lane.b32.xlu0 %v788_v46, %s1322_s12 }
  0xb8   : > { %926 = vrot.lane.b32.xlu1 %v922_v52, %s1322_s12  ;;  %924 = vrot.lane.b32.xlu0 %v921_v41, %s1322_s12 }
  0xbc   : > { %808 = vrot.lane.b32.xlu1 %v1701_v63, %s1323_s9  ;;  %928 = vrot.lane.b32.xlu0 %v923_v57, %s1322_s12  ;;  %s1129_s12 = sshll.u32 %s2132_s15, 3  ;;  %v1994_v57 = vstv %s293_s10 }
  0xbd   : > { %s256_s28 = sadd.s32 %s1130_s24, %s1129_s12 }
  0xbe   : > { %v338_v58 = vpop.permute.xlu1 %337  ;;  %v334_v33 = vpop.permute.xlu0 %333  ;;  %s1131_s15 = sshll.u32 %s256_s28, 3 }
  0xbf   : > { %s2005_s30 = scalar_lea.vmem %s2097_s4, %s1131_s15 }
  0xc0   : > { %812 = vrot.lane.b32.xlu1 %v1705_v3, %s1323_s9  ;;  %810 = vrot.lane.b32.xlu0 %v1723_v21, %s1323_s9 }
  0xc2   : > { %v390_v5 = vpop.permute.xlu1 %389  ;;  %v336_v0 = vpop.permute.xlu0 %335 }
  0xc3   : > { %v341_v7 = vsel %vm339_vm1, %v336_v0, %v338_v58 }
  0xc4   : > { %944 = vrot.lane.b32.xlu1 %v937_v6, %s1323_s9  ;;  %942 = vrot.lane.b32.xlu0 %v936_v2, %s1323_s9  ;;  %v345_v60 = vadd.f32 %v341_v7, %v2118_v50 }
  0xc6   : > { %v369_v63 = vpop.permute.xlu1 %368  ;;  %v388_v51 = vpop.permute.xlu0 %387 }
  0xc7   : > { %v394_v55 = vsel %vm393_vm2, %v388_v51, %v390_v5 }
  0xc8   : > { %666 = vrot.lane.b32.xlu1 %v1782_v28, %s1323_s9  ;;  %946 = vrot.lane.b32.xlu0 %v1760_v47, %s1323_s9  ;;  %v2113_v47 = vld [vmem:[#allocation11_spill] sm:$0xff] }
  0xc9   : > { %v960_v28 = vrot.slane %v2113_v47, 1 }
  0xca   : > { %v373_v3 = vpop.permute.xlu1 %372  ;;  %v371_v21 = vpop.permute.xlu0 %370 }
  0xcb   : > { %v374_v16 = vsel %vm339_vm1, %v369_v63, %v371_v21  ;;  %v375_v15 = vsel %vm339_vm1, %v371_v21, %v373_v3 }
  0xcc   : > { %670 = vrot.lane.b32.xlu1 %v1793_v59, %s1323_s9  ;;  %668 = vrot.lane.b32.xlu0 %v1819_v35, %s1323_s9  ;;  %v340_v59 = vsel %vm339_vm1, %v334_v33, %v336_v0  ;;  %v379_v13 = vadd.f32 %v375_v15, %v345_v60 }
  0xcd   : > { %v344_v29 = vadd.f32 %v340_v59, %v2115_v48 }
  0xce   : > { %v423_v38 = vpop.permute.xlu1 %422  ;;  %v392_v1 = vpop.permute.xlu0 %391 }
  0xcf   : > { %v378_v4 = vadd.f32 %v374_v16, %v344_v29  ;;  %v395_v10 = vsel %vm393_vm2, %v390_v5, %v392_v1 }
  0xd0   : > { %831 = vrot.lane.b32.xlu1 %v827_v20, %s1323_s9  ;;  %829 = vrot.lane.b32.xlu0 %v826_v12, %s1323_s9  ;;  %v399_v54 = vadd.f32 %v395_v10, %v379_v13 }
  0xd1   : > { %v398_v30 = vadd.f32 %v394_v55, %v378_v4 }
  0xd2   : > { %v427_v25 = vpop.permute.xlu1 %426  ;;  %v425_v35 = vpop.permute.xlu0 %424 }
  0xd3   : > { %v428_v17 = vsel %vm393_vm2, %v423_v38, %v425_v35  ;;  %v429_v18 = vsel %vm393_vm2, %v425_v35, %v427_v25 }
  0xd4   : > { %963 = vrot.lane.b32.xlu1 %v960_v28, %s1323_s9  ;;  %833 = vrot.lane.b32.xlu0 %v828_v14, %s1323_s9  ;;  %v432_v42 = vadd.f32 %v428_v17, %v398_v30  ;;  %v433_v62 = vadd.f32 %v429_v18, %v399_v54 }
  0xd6   : > { %v444_v23 = vpop.permute.xlu1 %443  ;;  %v442_v61 = vpop.permute.xlu0 %441 }
  0xd7   : > { %v448_v31 = vsel %vm447_vm3, %v442_v61, %v444_v23 }
  0xd8   : > { %967 = vrot.lane.b32.xlu1 %v962_v9, %s1323_s9  ;;  %965 = vrot.lane.b32.xlu0 %v961_v40, %s1323_s9  ;;  %v452_v19 = vadd.f32 %v448_v31, %v432_v42 }
  0xda   : > { %v477_v26 = vpop.permute.xlu1 %476  ;;  %v446_v8 = vpop.permute.xlu0 %445 }
  0xdb   : > { %v449_v27 = vsel %vm447_vm3, %v444_v23, %v446_v8 }
  0xdc   : > { %v453_v34 = vadd.f32 %v449_v27, %v433_v62 }
  0xde   : > { %v481_v45 = vpop.permute.xlu1 %480  ;;  %v479_v46 = vpop.permute.xlu0 %478 }
  0xdf   : > { %v482_v32 = vsel %vm447_vm3, %v477_v26, %v479_v46  ;;  %v483_v52 = vsel %vm447_vm3, %v479_v46, %v481_v45 }
  0xe0   : > { %v486_v41 = vadd.f32 %v482_v32, %v452_v19  ;;  %v487_v36 = vadd.f32 %v483_v52, %v453_v34 }
  0xe2   : > { %v679_v58 = vmul.f32 %v1990_v39, %v486_v41  ;;  %v680_v33 = vmul.f32 %v1990_v39, %v487_v36  ;;  %v529_v6 = vpop.permute.xlu1 %528  ;;  %v527_v2 = vpop.permute.xlu0 %526 }
  0xe3   : > { %v532_v5 = vsel %vm339_vm1, %v527_v2, %v529_v6 }
  0xe4   : > { %v682_v0 = vadd.f32 %v1994_v57, %v679_v58  ;;  %v683_v63 = vadd.f32 %v1994_v57, %v680_v33  ;;  %v536_v51 = vadd.f32 %v532_v5, %v1848_v56 }
  0xe6   : > { %vm684_vm4 = vcmp.gt.f32.partialorder %v682_v0, 0.0  ;;  %vm685_vm5 = vcmp.gt.f32.partialorder %v683_v63, 0.0  ;;  %v686_v3 = vmul.f32 0.01, %v682_v0  ;;  %v687_v21 = vmul.f32 0.01, %v683_v63  ;;  %v561_v20 = vpop.permute.xlu1 %560  ;;  %v531_v12 = vpop.permute.xlu0 %530 }
  0xe7   : > { %v533_v38 = vsel %vm339_vm1, %v529_v6, %v531_v12 }
  0xe8   : > { %v688_v1 = vsel %vm684_vm4, %v682_v0, %v686_v3  ;;  %v689_v47 = vsel %vm685_vm5, %v683_v63, %v687_v21  ;;  %v537_v28 = vadd.f32 %v533_v38, %v1850_v44 }
  0xe9   : > { %690 = vst [vmem:[%s2005_s30] sm:$0xff] %v688_v1  ;;  %691 = vst [vmem:[%s2005_s30 + $0x8] sm:$0xff] %v689_v47 }
  0xea   : > { %v565_v56 = vpop.permute.xlu1 %564  ;;  %v563_v37 = vpop.permute.xlu0 %562 }
  0xeb   : > { %v566_v14 = vsel %vm339_vm1, %v561_v20, %v563_v37  ;;  %v567_v59 = vsel %vm339_vm1, %v563_v37, %v565_v56 }
  0xec   : > { %v570_v25 = vadd.f32 %v566_v14, %v536_v51  ;;  %v571_v35 = vadd.f32 %v567_v59, %v537_v28 }
  0xee   : > { %v582_v7 = vpop.permute.xlu1 %581  ;;  %v580_v16 = vpop.permute.xlu0 %579 }
  0xef   : > { %v585_v48 = vsel %vm393_vm2, %v580_v16, %v582_v7 }
  0xf0   : > { %v589_v29 = vadd.f32 %v585_v48, %v570_v25 }
  0xf2   : > { %v614_v53 = vpop.permute.xlu1 %613  ;;  %v584_v9 = vpop.permute.xlu0 %583 }
  0xf3   : > { %v586_v49 = vsel %vm393_vm2, %v582_v7, %v584_v9  ;;  %v2034_v9 = vstv %s1134_s8 }
  0xf4   : > { %v590_v44 = vadd.f32 %v586_v49, %v571_v35 }
  0xf6   : > { %v618_v40 = vpop.permute.xlu1 %617  ;;  %v616_v15 = vpop.permute.xlu0 %615 }
  0xf7   : > { %v619_v50 = vsel %vm393_vm2, %v614_v53, %v616_v15  ;;  %v620_v60 = vsel %vm393_vm2, %v616_v15, %v618_v40  ;;  %v2032_v53 = vstv %s1133_s7 }
  0xf8   : > { %v623_v4 = vadd.f32 %v619_v50, %v589_v29  ;;  %v624_v23 = vadd.f32 %v620_v60, %v590_v44 }
  0xfa   : > { %v635_v61 = vpop.permute.xlu1 %634  ;;  %v633_v10 = vpop.permute.xlu0 %632 }
  0xfb   : > { %v638_v13 = vsel %vm447_vm3, %v633_v10, %v635_v61 }
  0xfc   : > { %v2018_v55 = vadd.f32 %v638_v13, %v623_v4 }
  0xfe   : > { %v731_v17 = vpop.permute.xlu1 %730  ;;  %v637_v18 = vpop.permute.xlu0 %636 }
  0xff   : > { %v639_v54 = vsel %vm447_vm3, %v635_v61, %v637_v18 }
 0x100   : > { %v643_v30 = vadd.f32 %v639_v54, %v624_v23 }
 0x102   : > { %v735_v26 = vpop.permute.xlu1 %734  ;;  %v733_v8 = vpop.permute.xlu0 %732 }
 0x103   : > { %v736_v47 = vsel %vm339_vm1, %v731_v17, %v733_v8  ;;  %v737_v28 = vsel %vm339_vm1, %v733_v8, %v735_v26 }
 0x104   : > { %v740_v37 = vadd.f32 %v736_v47, %v1858_v43  ;;  %v741_v16 = vadd.f32 %v737_v28, %v1861_v22 }
 0x106   : > { %v867_v31 = vpop.permute.xlu1 %866  ;;  %v865_v27 = vpop.permute.xlu0 %864 }
 0x107   : > { %v870_v14 = vsel %vm339_vm1, %v865_v27, %v867_v31 }
 0x108   : > { %v874_v49 = vadd.f32 %v870_v14, %v1870_v24 }
 0x10a   : > { %v752_v42 = vpop.permute.xlu1 %751  ;;  %v869_v62 = vpop.permute.xlu0 %868 }
 0x10b   : > { %v871_v59 = vsel %vm339_vm1, %v867_v31, %v869_v62 }
 0x10c   : > { %v875_v43 = vadd.f32 %v871_v59, %v1878_v11 }
 0x10e   : > { %v756_v19 = vpop.permute.xlu1 %755  ;;  %v754_v34 = vpop.permute.xlu0 %753 }
 0x10f   : > { %v757_v56 = vsel %vm339_vm1, %v752_v42, %v754_v34  ;;  %v758_v25 = vsel %vm339_vm1, %v754_v34, %v756_v19 }
 0x110   : > { %v761_v29 = vadd.f32 %v757_v56, %v740_v37  ;;  %v762_v44 = vadd.f32 %v758_v25, %v741_v16 }
 0x112   : > { %v888_v45 = vpop.permute.xlu1 %887  ;;  %v886_v46 = vpop.permute.xlu0 %885 }
 0x113   : > { %v891_v15 = vsel %vm339_vm1, %v886_v46, %v888_v45 }
 0x114   : > { %v895_v26 = vadd.f32 %v891_v15, %v874_v49 }
 0x116   : > { %v770_v32 = vpop.permute.xlu1 %769  ;;  %v890_v52 = vpop.permute.xlu0 %889 }
 0x117   : > { %v892_v50 = vsel %vm339_vm1, %v888_v45, %v890_v52 }
 0x11a   : > { %v774_v41 = vpop.permute.xlu1 %773  ;;  %v772_v36 = vpop.permute.xlu0 %771 }
 0x11b   : > { %v775_v48 = vsel %vm393_vm2, %v770_v32, %v772_v36  ;;  %v776_v22 = vsel %vm393_vm2, %v772_v36, %v774_v41  ;;  %v896_v32 = vadd.f32 %v892_v50, %v875_v43 }
 0x11c   : > { %v779_v60 = vadd.f32 %v775_v48, %v761_v29  ;;  %v780_v8 = vadd.f32 %v776_v22, %v762_v44 }
 0x11e   : > { %v906_v58 = vpop.permute.xlu1 %905  ;;  %v904_v33 = vpop.permute.xlu0 %903 }
 0x11f   : > { %v909_v61 = vsel %vm393_vm2, %v904_v33, %v906_v58 }
 0x120   : > { %v913_v52 = vadd.f32 %v909_v61, %v895_v26 }
 0x122   : > { %v791_v6 = vpop.permute.xlu1 %790  ;;  %v908_v2 = vpop.permute.xlu0 %907 }
 0x123   : > { %v910_v31 = vsel %vm393_vm2, %v906_v58, %v908_v2 }
 0x124   : > { %v914_v33 = vadd.f32 %v910_v31, %v896_v32 }
 0x126   : > { %v795_v5 = vpop.permute.xlu1 %794  ;;  %v793_v0 = vpop.permute.xlu0 %792 }
 0x127   : > { %v796_v40 = vsel %vm393_vm2, %v791_v6, %v793_v0  ;;  %v797_v13 = vsel %vm393_vm2, %v793_v0, %v795_v5 }
 0x128   : > { %v800_v17 = vadd.f32 %v796_v40, %v779_v60  ;;  %v801_v41 = vadd.f32 %v797_v13, %v780_v8 }
 0x12a   : > { %v927_v63 = vpop.permute.xlu1 %926  ;;  %v925_v51 = vpop.permute.xlu0 %924 }
 0x12b   : > { %v930_v27 = vsel %vm393_vm2, %v925_v51, %v927_v63 }
 0x12c   : > { %v934_v6 = vadd.f32 %v930_v27, %v913_v52 }
 0x12e   : > { %v809_v3 = vpop.permute.xlu1 %808  ;;  %v929_v21 = vpop.permute.xlu0 %928 }
 0x12f   : > { %v931_v2 = vsel %vm393_vm2, %v927_v63, %v929_v21 }
 0x130   : > { %v935_v63 = vadd.f32 %v931_v2, %v914_v33 }
 0x132   : > { %v813_v20 = vpop.permute.xlu1 %812  ;;  %v811_v12 = vpop.permute.xlu0 %810 }
 0x133   : > { %v814_v10 = vsel %vm447_vm3, %v809_v3, %v811_v12  ;;  %v815_v42 = vsel %vm447_vm3, %v811_v12, %v813_v20 }
 0x134   : > { %v818_v62 = vadd.f32 %v814_v10, %v800_v17  ;;  %v819_v5 = vadd.f32 %v815_v42, %v801_v41 }
 0x136   : > { %v2021_v38 = vpop.permute.xlu1 %944  ;;  %v943_v1 = vpop.permute.xlu0 %942 }
 0x137   : > { %v948_v12 = vsel %vm447_vm3, %v943_v1, %v2021_v38 }
 0x138   : > { %v952_v25 = vadd.f32 %v948_v12, %v934_v6 }
 0x13a   : > { %v667_v35 = vpop.permute.xlu1 %666  ;;  %v947_v7 = vpop.permute.xlu0 %946 }
 0x13b   : > { %v949_v47 = vsel %vm447_vm3, %v2021_v38, %v947_v7 }
 0x13e   : > { %v671_v4 = vpop.permute.xlu1 %670  ;;  %v669_v23 = vpop.permute.xlu0 %668 }
 0x13f   : > { %v672_v24 = vsel %vm447_vm3, %v667_v35, %v669_v23  ;;  %v673_v11 = vsel %vm447_vm3, %v669_v23, %v671_v4  ;;  %v953_v35 = vadd.f32 %v949_v47, %v935_v63 }
 0x140   : > { %v676_v18 = vadd.f32 %v672_v24, %v2018_v55  ;;  %v677_v54 = vadd.f32 %v673_v11, %v643_v30 }
 0x142   : > { %v693_v19 = vmul.f32 %v2032_v53, %v676_v18  ;;  %v694_v34 = vmul.f32 %v2032_v53, %v677_v54  ;;  %v832_v45 = vpop.permute.xlu1 %831  ;;  %v830_v46 = vpop.permute.xlu0 %829 }
 0x143   : > { %v835_v55 = vsel %vm447_vm3, %v830_v46, %v832_v45 }
 0x144   : > { %v696_v30 = vadd.f32 %v2034_v9, %v693_v19  ;;  %v697_v36 = vadd.f32 %v2034_v9, %v694_v34  ;;  %v839_v58 = vadd.f32 %v835_v55, %v818_v62 }
 0x146   : > { %vm698_vm6 = vcmp.gt.f32.partialorder %v696_v30, 0.0  ;;  %vm699_vm7 = vcmp.gt.f32.partialorder %v697_v36, 0.0  ;;  %v700_v0 = vmul.f32 0.01, %v696_v30  ;;  %v701_v51 = vmul.f32 0.01, %v697_v36  ;;  %v964_v3 = vpop.permute.xlu1 %963  ;;  %v834_v20 = vpop.permute.xlu0 %833 }
 0x147   : > { %v975_v28 = vmul.f32 %v839_v58, %v1990_v39  ;;  %v836_v56 = vsel %vm447_vm3, %v832_v45, %v834_v20 }
 0x148   : > { %v702_v21 = vsel %vm698_vm6, %v696_v30, %v700_v0  ;;  %v703_v37 = vsel %vm699_vm7, %v697_v36, %v701_v51  ;;  %v840_v14 = vadd.f32 %v836_v56, %v819_v5 }
 0x149   : > { %1141 = vst [vmem:[%s2005_s30 + $0x20] sm:$0xff] %v702_v21  ;;  %1142 = vst [vmem:[%s2005_s30 + $0x28] sm:$0xff] %v703_v37  ;;  %v977_v59 = vadd.f32 %v975_v28, %v1994_v57 }
 0x14a   : > { %v976_v1 = vmul.f32 %v840_v14, %v1990_v39  ;;  %v968_v16 = vpop.permute.xlu1 %967  ;;  %v966_v48 = vpop.permute.xlu0 %965 }
 0x14b   : > { %vm979_vm8 = vcmp.gt.f32.partialorder %v977_v59, 0.0  ;;  %v981_v38 = vmul.f32 0.01, %v977_v59  ;;  %v969_v7 = vsel %vm447_vm3, %v964_v3, %v966_v48  ;;  %v970_v29 = vsel %vm447_vm3, %v966_v48, %v968_v16 }
 0x14c   : > { %v978_v49 = vadd.f32 %v976_v1, %v1994_v57  ;;  %v973_v43 = vadd.f32 %v969_v7, %v952_v25  ;;  %v974_v44 = vadd.f32 %v970_v29, %v953_v35 }
 0x14d   : > { %v983_v40 = vsel %vm979_vm8, %v977_v59, %v981_v38 }
 0x14e   : > { %985 = vst [vmem:[%s2005_s30 + $0x10] sm:$0x7f] %v983_v40  ;;  %vm980_vm9 = vcmp.gt.f32.partialorder %v978_v49, 0.0  ;;  %v982_v15 = vmul.f32 0.01, %v978_v49  ;;  %v987_v39 = vmul.f32 %v973_v43, %v2032_v53  ;;  %v988_v50 = vmul.f32 %v974_v44, %v2032_v53 }
 0x150   : > { %v984_v22 = vsel %vm980_vm9, %v978_v49, %v982_v15  ;;  %v989_v60 = vadd.f32 %v987_v39, %v2034_v9  ;;  %v990_v4 = vadd.f32 %v988_v50, %v2034_v9 }
 0x151   : > { %986 = vst [vmem:[%s2005_s30 + $0x18] sm:$0x7f] %v984_v22 }
 0x152   : > { %vm991_vm10 = vcmp.gt.f32.partialorder %v989_v60, 0.0  ;;  %vm992_vm11 = vcmp.gt.f32.partialorder %v990_v4, 0.0  ;;  %v993_v57 = vmul.f32 0.01, %v989_v60  ;;  %v994_v23 = vmul.f32 0.01, %v990_v4 }
 0x154   : > { %v995_v61 = vsel %vm991_vm10, %v989_v60, %v993_v57  ;;  %v996_v10 = vsel %vm992_vm11, %v990_v4, %v994_v23 }
 0x155   : > { %1146 = vst [vmem:[%s2005_s30 + $0x30] sm:$0x7f] %v995_v61  ;;  %1147 = vst [vmem:[%s2005_s30 + $0x38] sm:$0x7f] %v996_v10 }
 0x156 PF: > { %s16_s19 = sadd.s32 1, %s1316_s19   ;;  %s2119_s15 = smov %s1308_s17 }
 0x157   : > { %p13_p5 = scmp.ge.s32.totalorder %s16_s19, 18   ;;  %s2120_s16 = smov %s1312_s18 }
 0x158   : > { %s2121_s17 = smov %s2124_s27  ;;  %s2122_s18 = smov %s2128_s5 }
 0x159   :  { %15 = sbr.rel (!%p13_p5) target bundleno = 4 (0x4), region = 81 }
 0x160   :  { %1028 = vsyncpa [#allocation3], 1 }
 0x161   :  { %1030 = vsyncpa [#allocation3 + $0x1], 1 }
 0x162   :  { %1031 = vsyncpa [#allocation5], 1 }

// kernel: decoder_forward.9
= control target key start
LH: loop header
LB: loop body
LE: loop exit
PB: predicated region body
PF: predicated region fallthrough
CT: control target
= control target key end

     0   :  { %s10682_s0 = inlined_call_operand.vmem [shape: f32[128], index: 0, kind: input, shape index: {}]   ;;  %s10683_s1 = inlined_call_operand.<no memory space> [shape: f32[1], index: 1, kind: input, shape index: {}]   ;;  %s10684_s2 = inlined_call_operand.<no memory space> [shape: f32[1], index: 2, kind: input, shape index: {}]   ;;  %s10685_s3 = inlined_call_operand.vmem [shape: f32[2,2,32,1152], index: 3, kind: input, shape index: {}]   ;;  %s10686_s4 = inlined_call_operand.vmem [shape: f32[2,8,1,31,1024], index: 4, kind: output, shape index: {}]  }
   0x1   :  { %9 = sst [smem:[#allocation2]] %s10683_s1 }
   0x2   :  { %10 = sst [smem:[#allocation3]] %s10684_s2 }
   0x3   :  { %11 = vsyncpa [#allocation5], 0  ;;  %s5630_s19 = smov 0   ;;  %s5632_s20 = smov 0  }
   0x4   :  { %s5634_s21 = smov 0   ;;  %s5636_s22 = smov 0  }
   0x5   :  { %s5638_s23 = smov 0  }
   0x6 LB: > { %s5190_s1 = sadd.s32 4294967295, %s5593_s23   ;;  %s26_s2 = sadd.s32 1, %s5585_s21  ;;  %s5593_s23 = sphi %s5638_s23, %s17_s23   ;;  %s5589_s22 = sphi %s5636_s22, %s11469_s22   ;;  %s5585_s21 = sphi %s5634_s21, %s11468_s21   ;;  %s5581_s20 = sphi %s5632_s20, %s11467_s20   ;;  %s5577_s19 = sphi %s5630_s19, %s11466_s19  }
   0x7   : > { %p27_p0 = scmp.ge.s32.totalorder %s26_s2, 8  ;;  %s29_s24 = sadd.s32 1, %s5589_s22 }
   0x8   : > { %p5192_p1 = scmp.ge.s32.totalorder %s5593_s23, 1  ;;  %p151_p2 = scmp.lt.s32.totalorder %s5593_s23, 17 }
   0x9   : > { %s11471_s2 = smov (%p27_p0, %s26_s2), 0  ;;  %s11473_s24 = smov (!%p27_p0, %s29_s24), %s5589_s22 }
   0xa   : > { %p5663_p3 = pnand %p5192_p1, %p151_p2  ;;  %p31_p4 = scmp.ge.s32.totalorder %s11473_s24, 2 }
   0xb   : > { %p5667_p5 = scmp.eq.s32.totalorder %s5190_s1, 0  ;;  %s164_s29 = sshll.u32 %s10682_s0, 4  ;;  %s165_s29 = int_to_ptr.vmem [resolvable:$true] %s164_s29 }
   0xc   : > { %p5304_p6 = pneg %p5663_p3  ;;  %s11475_s24 = smov (%p31_p4, %s11473_s24), 0 }
   0xd   : > { %s5536_s30 = scalar_lea.vmem %s165_s29, 16  ;;  %p5544_p12 = scmp.lt.s32.totalorder %s165_s29, %s165_s29 }
   0xe   : > { %p5305_p7 = pnand %p5667_p5, %p5304_p6  ;;  %p5537_p8 = scmp.ne.s32.totalorder %s165_s29, %s5536_s30 }
   0xf   : > { %p5545_p13 = scmp.lt.s32.totalorder %s5536_s30, %s5536_s30 }
  0x10   : > { %p5538_p9 = pneg %p5305_p7 }
  0x11   : > { %p5546_p0 = por %p5545_p13, %p5544_p12 }
  0x12   : > { %p5539_p10 = pnand %p5538_p9, %p5537_p8 }
  0x14   : > { %p5540_p11 = pneg %p5539_p10 }
  0x16   : > { %p5547_p1 = pnand %p5546_p0, %p5540_p11 }
  0x18   : > { %5550 = shalt.err (!%p5547_p1)
}
  0x19   : > { %s5595_s5 = smov [#allocation4]   ;;  %191 = sbr.rel (%p5663_p3) target bundleno = 1059 (0x423), region = 36 }
  0x1a   : > { %5307 = dma.vmem_to_smem (!%p5305_p7), %s165_s29, 16, %s5595_s5, [#allocation5]  }
  0x20   : > { %5572 = dma.done.wait (%p5667_p5), [#allocation5], 16  }
  0x21   : > { %5574 = vsyncadd (%p5667_p5), [#allocation5], 4294967280 }
  0x22   : > { %197 = sfence }
  0x23   : > { %p222_p2 = scmp.lt.s32.totalorder %s5581_s20, 1  ;;  %s5688_s6 = sshll.u32 %s5577_s19, 4  ;;  %vm336_vm0 = vcmask 1046528   ;;  %vm416_vm1 = vcmask 1039360   ;;  %vm584_vm2 = vcmask 785408   ;;  %vm752_vm3 = vcmask 777216  }
  0x24   : > { %s238_s7 = sadd.s32 1, %s5688_s6  ;;  %s246_s9 = sadd.s32 5, %s5688_s6 }
  0x25   : > { %s11477_s20 = smov (!%p222_p2, %s5581_s20), 1  ;;  %s239_s8 = sld [smem:[#allocation4 + %s238_s7]] }
  0x26   : > { %s5299_s10 = smul.u32 576, %s11477_s20  ;;  %s247_s14 = sld [smem:[#allocation4 + %s246_s9]] }
  0x27   : > { %s5596_s15 = smov 127   ;;  %s240_s16 = sadd.s32 2, %s5688_s6 }
  0x28   : > { %s5699_s13 = scalar_lea.vmem %s10685_s3, %s5299_s10  ;;  %s248_s17 = sadd.s32 6, %s5688_s6 }
  0x29   : > { %v5702_v0 = vld [vmem:[%s5699_s13 + $0x10] sm:$0xff]  ;;  %v5705_v1 = vld [vmem:[%s5699_s13] sm:$0xff]  ;;  %v5710_v3 = vld [vmem:[%s5699_s13 + $0x18] sm:$0xff]  ;;  %s5800_s18 = sld [smem:[#allocation4 + %s240_s16]]  ;;  %s250_s25 = sadd.s32 7, %s5688_s6 }
  0x2a   : > { %v5713_v4 = vld [vmem:[%s5699_s13 + $0x8] sm:$0xff]  ;;  %v5729_v10 = vld [vmem:[%s5699_s13 + $0x20] sm:$0xff]  ;;  %v5743_v15 = vld [vmem:[%s5699_s13 + $0x58] sm:$0x1]  ;;  %s249_s1 = sld [smem:[#allocation4 + %s248_s17]]  ;;  %s244_s27 = sadd.s32 4, %s5688_s6 }
  0x2b   : > { %v5707_v2 = vstv %s239_s8  ;;  %v5726_v9 = vld [vmem:[%s5699_s13 + $0x28] sm:$0xff]  ;;  %v5746_v16 = vld [vmem:[%s5699_s13 + $0x50] sm:$0x1]  ;;  %v5749_v17 = vld [vmem:[%s5699_s13 + $0x38] sm:$0xff]  ;;  %s5831_s26 = sld [smem:[#allocation4 + %s250_s25]]  ;;  %s5597_s30 = smov 96  }
  0x2c   : > { %10931 = vst [vmem:[#allocation7_spill] sm:$0xff] %v5707_v2  ;;  %v382_v5 = vmul.f32 %v5707_v2, %v5702_v0  ;;  %v380_v6 = vmul.f32 %v5707_v2, %v5705_v1  ;;  %v383_v7 = vmul.f32 %v5707_v2, %v5710_v3  ;;  %v381_v8 = vmul.f32 %v5707_v2, %v5713_v4  ;;  %v5732_v11 = vld [vmem:[%s5699_s13 + $0x48] sm:$0x1]  ;;  %v5752_v18 = vld [vmem:[%s5699_s13 + $0x30] sm:$0xff]  ;;  %v5761_v22 = vld [vmem:[%s5699_s13 + $0x40] sm:$0xff]  ;;  %s5959_s28 = sld [smem:[#allocation4 + %s5688_s6]] }
  0x2d   : > { %v5734_v12 = vstv %s247_s14  ;;  %v385_v13 = vmul.f32 %v5707_v2, %v5726_v9  ;;  %v384_v14 = vmul.f32 %v5707_v2, %v5729_v10  ;;  %v5770_v26 = vld [vmem:[%s5699_s13 + $0x68] sm:$0x1]  ;;  %v387_v27 = vmul.f32 %v5707_v2, %v5749_v17  ;;  %v5781_v31 = vld [vmem:[%s5699_s13 + $0x60] sm:$0x1]  ;;  %v5784_v32 = vld [vmem:[%s5699_s13 + $0x78] sm:$0x1] }
  0x2e   : > { %402 = vrot.lane.b32.xlu1 %v382_v5, %s5596_s15  ;;  %398 = vrot.lane.b32.xlu0 %v380_v6, %s5596_s15  ;;  %10932 = vst [vmem:[#allocation8_spill] sm:$0xff] %v5734_v12  ;;  %v442_v19 = vmul.f32 %v5734_v12, %v5705_v1  ;;  %v451_v20 = vmul.f32 %v5734_v12, %v5732_v11  ;;  %v5793_v37 = vld [vmem:[%s5699_s13 + $0x70] sm:$0x1]  ;;  %v5798_v42 = vld [vmem:[%s5699_s13 + $0x88] sm:$0x1]  ;;  %s5971_s29 = sld [smem:[#allocation4 + %s244_s27]] }
  0x2f   : > { %v444_v21 = vmul.f32 %v5734_v12, %v5702_v0  ;;  %v453_v23 = vmul.f32 %v5734_v12, %v5743_v15  ;;  %v443_v24 = vmul.f32 %v5734_v12, %v5713_v4  ;;  %v452_v25 = vmul.f32 %v5734_v12, %v5746_v16  ;;  %v5820_v51 = vld [vmem:[%s5699_s13 + $0x80] sm:$0x1]  ;;  %s242_s5 = sadd.s32 3, %s5688_s6  ;;  %s5598_s8 = smov 95  }
  0x30   : > { %v386_v28 = vmul.f32 %v5707_v2, %v5752_v18  ;;  %v478_v29 = vrot.slane %v442_v19, 1  ;;  %v479_v30 = vrot.slane %v451_v20, 1  ;;  %v388_v33 = vmul.f32 %v5707_v2, %v5761_v22  ;;  %s243_s7 = sld [smem:[#allocation4 + %s242_s5]]  ;;  %s266_s9 = sadd.s32 15, %s5688_s6 }
  0x31   : > { %v484_v34 = vrot.slane %v444_v21, 1  ;;  %v446_v35 = vmul.f32 %v5734_v12, %v5729_v10  ;;  %v455_v36 = vmul.f32 %v5734_v12, %v5770_v26  ;;  %v485_v38 = vrot.slane %v453_v23, 1  ;;  %s267_s10 = sld [smem:[#allocation4 + %s266_s9]]  ;;  %s254_s11 = sadd.s32 9, %s5688_s6 }
  0x32   : > { %404 = vrot.lane.b32.xlu1 %v383_v7, %s5596_s15  ;;  %400 = vrot.lane.b32.xlu0 %v381_v8, %s5596_s15  ;;  %v481_v39 = vrot.slane %v443_v24, 1  ;;  %v482_v40 = vrot.slane %v452_v25, 1  ;;  %v445_v41 = vmul.f32 %v5734_v12, %v5710_v3  ;;  %v454_v43 = vmul.f32 %v5734_v12, %v5781_v31  ;;  %s260_s12 = sadd.s32 12, %s5688_s6  ;;  %s255_s14 = sld [smem:[#allocation4 + %s254_s11]] }
  0x33   : > { %v448_v44 = vmul.f32 %v5734_v12, %v5752_v18  ;;  %v457_v45 = vmul.f32 %v5734_v12, %v5784_v32  ;;  %v480_v46 = vsel %vm336_vm0, %v478_v29, %v479_v30  ;;  %v447_v47 = vmul.f32 %v5734_v12, %v5726_v9  ;;  %s261_s16 = sld [smem:[#allocation4 + %s260_s12]]  ;;  %s262_s17 = sadd.s32 13, %s5688_s6 }
  0x34   : > { %v456_v48 = vmul.f32 %v5734_v12, %v5793_v37  ;;  %v450_v49 = vmul.f32 %v5734_v12, %v5761_v22  ;;  %v459_v50 = vmul.f32 %v5734_v12, %v5798_v42  ;;  %v486_v52 = vsel %vm336_vm0, %v484_v34, %v485_v38  ;;  %s252_s5 = sadd.s32 8, %s5688_s6  ;;  %s7424_s9 = sld [smem:[#allocation3]] }
  0x35   : > { %v483_v53 = vsel %vm336_vm0, %v481_v39, %v482_v40  ;;  %v490_v54 = vrot.slane %v446_v35, 1  ;;  %v491_v55 = vrot.slane %v455_v36, 1  ;;  %v487_v56 = vrot.slane %v445_v41, 1  ;;  %p229_p3 = scmp.lt.s32.totalorder %s5577_s19, 7  ;;  %s5199_s11 = sshll.u32 %s11477_s20, 8 }
  0x36   : > { %408 = vrot.lane.b32.xlu1 %v385_v13, %s5596_s15  ;;  %406 = vrot.lane.b32.xlu0 %v384_v14, %s5596_s15  ;;  %v488_v57 = vrot.slane %v454_v43, 1  ;;  %v496_v58 = vrot.slane %v448_v44, 1  ;;  %v497_v59 = vrot.slane %v457_v45, 1  ;;  %v493_v60 = vrot.slane %v447_v47, 1 }
  0x37   : > { %v494_v61 = vrot.slane %v456_v48, 1  ;;  %v449_v62 = vmul.f32 %v5734_v12, %v5749_v17  ;;  %v458_v63 = vmul.f32 %v5734_v12, %v5820_v51  ;;  %v502_v5 = vrot.slane %v450_v49, 1  ;;  %s11479_s19 = smov (!%p229_p3, %s5577_s19), 7 }
  0x38   : > { %v503_v6 = vrot.slane %v459_v50, 1  ;;  %v5834_v7 = vstv %s5800_s18  ;;  %v492_v8 = vsel %vm336_vm0, %v490_v54, %v491_v55  ;;  %v489_v13 = vsel %vm336_vm0, %v487_v56, %v488_v57  ;;  %s6304_s18 = sld [smem:[#allocation4 + %s262_s17]] }
  0x39   : > { %10933 = vst [vmem:[#allocation9_spill] sm:$0xff] %v5834_v7  ;;  %v5840_v14 = vstv %s249_s1  ;;  %v498_v19 = vsel %vm336_vm0, %v496_v58, %v497_v59  ;;  %v495_v20 = vsel %vm336_vm0, %v493_v60, %v494_v61  ;;  %v499_v21 = vrot.slane %v449_v62, 1  ;;  %s256_s1 = sadd.s32 10, %s5688_s6 }
  0x3a   : > { %412 = vrot.lane.b32.xlu1 %v387_v27, %s5596_s15  ;;  %410 = vrot.lane.b32.xlu0 %v386_v28, %s5596_s15  ;;  %10934 = vst [vmem:[#allocation10_spill] sm:$0xff] %v5840_v14  ;;  %v500_v23 = vrot.slane %v458_v63, 1  ;;  %v504_v24 = vsel %vm336_vm0, %v502_v5, %v503_v6  ;;  %v5847_v25 = vmul.f32 %v5834_v7, %v5713_v4  ;;  %v5913_v47 = vstv %s5831_s26  ;;  %s257_s25 = sld [smem:[#allocation4 + %s256_s1]]  ;;  %s264_s26 = sadd.s32 14, %s5688_s6 }
  0x3b   : > { %v5851_v27 = vmul.f32 %v5834_v7, %v5705_v1  ;;  %v5855_v28 = vmul.f32 %v5834_v7, %v5710_v3  ;;  %v5859_v29 = vmul.f32 %v5840_v14, %v5705_v1  ;;  %v5863_v30 = vmul.f32 %v5840_v14, %v5732_v11  ;;  %10935 = vst [vmem:[#allocation11_spill] sm:$0xff] %v5913_v47  ;;  %s265_s27 = sld [smem:[#allocation4 + %s264_s26]] }
  0x3c   : > { %v5871_v34 = vmul.f32 %v5840_v14, %v5743_v15  ;;  %v5877_v35 = vmul.f32 %v5840_v14, %v5713_v4  ;;  %v5881_v36 = vmul.f32 %v5840_v14, %v5746_v16  ;;  %v5885_v38 = vmul.f32 %v5840_v14, %v5729_v10 }
  0x3d   : > { %v501_v39 = vsel %vm336_vm0, %v499_v21, %v500_v23  ;;  %v5890_v40 = vmul.f32 %v5834_v7, %v5702_v0  ;;  %v5894_v41 = vmul.f32 %v5834_v7, %v5726_v9  ;;  %v5898_v43 = vmul.f32 %v5834_v7, %v5729_v10 }
  0x3e   : > { %505 = vrot.lane.b32.xlu1 %v480_v46, %s5596_s15  ;;  %414 = vrot.lane.b32.xlu0 %v388_v33, %s5596_s15  ;;  %v5867_v33 = vmul.f32 %v5840_v14, %v5702_v0  ;;  %v5902_v44 = vmul.f32 %v5834_v7, %v5749_v17  ;;  %v5906_v45 = vmul.f32 %v5834_v7, %v5752_v18  ;;  %v646_v48 = vrot.slane %v5859_v29, 1 }
  0x3f   : > { %v5910_v46 = vmul.f32 %v5834_v7, %v5761_v22  ;;  %v647_v49 = vrot.slane %v5863_v30, 1  ;;  %v650_v54 = vrot.slane %v5881_v36, 1  ;;  %v5925_v55 = vmul.f32 %v5840_v14, %v5770_v26 }
  0x40   : > { %v652_v50 = vrot.slane %v5867_v33, 1  ;;  %v658_v56 = vrot.slane %v5885_v38, 1  ;;  %v5930_v57 = vmul.f32 %v5840_v14, %v5710_v3  ;;  %v778_v58 = vmul.f32 %v5913_v47, %v5705_v1 }
  0x41   : > { %v787_v59 = vmul.f32 %v5913_v47, %v5732_v11  ;;  %v780_v60 = vmul.f32 %v5913_v47, %v5702_v0  ;;  %v789_v61 = vmul.f32 %v5913_v47, %v5743_v15  ;;  %v779_v62 = vmul.f32 %v5913_v47, %v5713_v4 }
  0x42   : > { %509 = vrot.lane.b32.xlu1 %v486_v52, %s5596_s15  ;;  %507 = vrot.lane.b32.xlu0 %v483_v53, %s5596_s15  ;;  %v653_v52 = vrot.slane %v5871_v34, 1  ;;  %v649_v53 = vrot.slane %v5877_v35, 1  ;;  %v788_v63 = vmul.f32 %v5913_v47, %v5746_v16  ;;  %v782_v5 = vmul.f32 %v5913_v47, %v5729_v10 }
  0x43   : > { %v814_v6 = vrot.slane %v778_v58, 1  ;;  %v817_v21 = vrot.slane %v779_v62, 1  ;;  %v781_v34 = vmul.f32 %v5913_v47, %v5710_v3  ;;  %v790_v36 = vmul.f32 %v5913_v47, %v5781_v31 }
  0x44   : > { %v818_v23 = vrot.slane %v788_v63, 1  ;;  %v826_v29 = vrot.slane %v782_v5, 1  ;;  %v784_v58 = vmul.f32 %v5913_v47, %v5752_v18  ;;  %v783_v63 = vmul.f32 %v5913_v47, %v5726_v9 }
  0x45   : > { %v824_v62 = vrot.slane %v790_v36, 1  ;;  %v6000_v36 = vsel %vm336_vm0, %v652_v50, %v653_v52  ;;  %v6027_v50 = vstv %s5959_s28  ;;  %s258_s28 = sadd.s32 11, %s5688_s6  ;;  %s7398_s6 = sld [smem:[#allocation2]] }
  0x46   : > { %513 = vrot.lane.b32.xlu1 %v492_v8, %s5596_s15  ;;  %511 = vrot.lane.b32.xlu0 %v489_v13, %s5596_s15  ;;  %v815_v8 = vrot.slane %v787_v59, 1  ;;  %v820_v13 = vrot.slane %v780_v60, 1  ;;  %v793_v59 = vmul.f32 %v5913_v47, %v5784_v32  ;;  %v832_v5 = vrot.slane %v784_v58, 1  ;;  %10936 = vst [vmem:[#allocation12_spill] sm:$0xff] %v6027_v50 }
  0x47   : > { %v289_v35 = vmul.f32 %v6027_v50, %v5702_v0 }
  0x48   : > { %v5952_v30 = vsel %vm336_vm0, %v814_v6, %v815_v8  ;;  %v833_v6 = vrot.slane %v793_v59, 1  ;;  %v792_v8 = vmul.f32 %v5913_v47, %v5793_v37 }
  0x4a   : > { %517 = vrot.lane.b32.xlu1 %v498_v19, %s5596_s15  ;;  %515 = vrot.lane.b32.xlu0 %v495_v20, %s5596_s15  ;;  %v791_v19 = vmul.f32 %v5913_v47, %v5770_v26  ;;  %v821_v20 = vrot.slane %v789_v61, 1  ;;  %v823_v61 = vrot.slane %v781_v34, 1  ;;  %v648_v34 = vsel %vm336_vm0, %v646_v48, %v647_v49 }
  0x4b   : > { %v6017_v49 = vsel %vm336_vm0, %v649_v53, %v650_v54  ;;  %v288_v53 = vmul.f32 %v6027_v50, %v5713_v4 }
  0x4c   : > { %v827_v33 = vrot.slane %v791_v19, 1  ;;  %v5987_v19 = vsel %vm336_vm0, %v823_v61, %v824_v62  ;;  %v659_v61 = vrot.slane %v5925_v55, 1  ;;  %v6009_v62 = vmul.f32 %v5840_v14, %v5781_v31 }
  0x4d   : > { %v6033_v55 = vstv %s5971_s29  ;;  %s259_s29 = sld [smem:[#allocation4 + %s258_s28]] }
  0x4e   : > { %521 = vrot.lane.b32.xlu1 %v504_v24, %s5596_s15  ;;  %519 = vrot.lane.b32.xlu0 %v501_v39, %s5596_s15  ;;  %v5962_v24 = vsel %vm336_vm0, %v820_v13, %v821_v20  ;;  %v5965_v39 = vsel %vm336_vm0, %v817_v21, %v818_v23  ;;  %v5974_v60 = vsel %vm336_vm0, %v826_v29, %v827_v33  ;;  %v829_v20 = vrot.slane %v783_v63, 1 }
  0x4f   : > { %v786_v13 = vmul.f32 %v5913_v47, %v5761_v22  ;;  %v795_v21 = vmul.f32 %v5913_v47, %v5798_v42  ;;  %v830_v23 = vrot.slane %v792_v8, 1  ;;  %v794_v33 = vmul.f32 %v5913_v47, %v5820_v51  ;;  %10937 = vst [vmem:[#allocation13_spill] sm:$0xff] %v6033_v55 }
  0x50   : > { %v314_v54 = vmul.f32 %v6033_v55, %v5743_v15  ;;  %v312_v8 = vmul.f32 %v6033_v55, %v5732_v11  ;;  %v313_v15 = vmul.f32 %v6033_v55, %v5746_v16  ;;  %v6065_v16 = vmul.f32 %v5840_v14, %v5726_v9 }
  0x51   : > { %v838_v29 = vrot.slane %v786_v13, 1  ;;  %v839_v58 = vrot.slane %v795_v21, 1  ;;  %v6012_v63 = vsel %vm336_vm0, %v829_v20, %v830_v23  ;;  %v836_v48 = vrot.slane %v794_v33, 1 }
  0x52   : > { %568 = vrot.lane.b32.xlu1 %v5847_v25, %s5597_s30  ;;  %566 = vrot.lane.b32.xlu0 %v5851_v27, %s5597_s30  ;;  %v785_v25 = vmul.f32 %v5913_v47, %v5749_v17  ;;  %v5994_v27 = vsel %vm336_vm0, %v832_v5, %v833_v6  ;;  %v306_v5 = vmul.f32 %v6033_v55, %v5702_v0  ;;  %v655_v13 = vrot.slane %v5930_v57, 1 }
  0x53   : > { %v305_v6 = vmul.f32 %v6033_v55, %v5713_v4  ;;  %v287_v20 = vmul.f32 %v6027_v50, %v5705_v1  ;;  %v304_v21 = vmul.f32 %v6033_v55, %v5705_v1  ;;  %v338_v11 = vrot.slane %v312_v8, 1 }
  0x54   : > { %v835_v59 = vrot.slane %v785_v25, 1  ;;  %v344_v25 = vrot.slane %v314_v54, 1  ;;  %v343_v23 = vrot.slane %v306_v5, 1  ;;  %v341_v57 = vrot.slane %v313_v15, 1 }
  0x55   : > { %v337_v33 = vrot.slane %v304_v21, 1  ;;  %v307_v38 = vmul.f32 %v6033_v55, %v5710_v3  ;;  %v308_v8 = vmul.f32 %v6033_v55, %v5729_v10 }
  0x56   : > { %572 = vrot.lane.b32.xlu1 %v5855_v28, %s5597_s30  ;;  %570 = vrot.lane.b32.xlu0 %v5890_v40, %s5597_s30  ;;  %v6021_v28 = vmul.f32 %v5840_v14, %v5752_v18  ;;  %v6024_v40 = vsel %vm336_vm0, %v838_v29, %v839_v58  ;;  %v6030_v52 = vsel %vm336_vm0, %v835_v59, %v836_v48  ;;  %v340_v29 = vrot.slane %v305_v6, 1 }
  0x57   : > { %v6069_v58 = vmul.f32 %v5840_v14, %v5793_v37  ;;  %v345_v59 = vsel %vm336_vm0, %v343_v23, %v344_v25  ;;  %v339_v54 = vsel %vm336_vm0, %v337_v33, %v338_v11  ;;  %v346_v15 = vrot.slane %v307_v38, 1 }
  0x58   : > { %v342_v48 = vsel %vm336_vm0, %v340_v29, %v341_v57  ;;  %v6085_v6 = vadd.f32 %v339_v54, %v287_v20  ;;  %v291_v20 = vmul.f32 %v6027_v50, %v5729_v10  ;;  %v349_v25 = vrot.slane %v308_v8, 1 }
  0x59   : > { %v6083_v5 = vadd.f32 %v342_v48, %v288_v53  ;;  %v292_v23 = vmul.f32 %v6027_v50, %v5726_v9  ;;  %v309_v29 = vmul.f32 %v6033_v55, %v5726_v9  ;;  %v318_v33 = vmul.f32 %v6033_v55, %v5784_v32 }
  0x5a   : > { %576 = vrot.lane.b32.xlu1 %v5894_v41, %s5597_s30  ;;  %574 = vrot.lane.b32.xlu0 %v5898_v43, %s5597_s30  ;;  %v660_v41 = vsel %vm336_vm0, %v658_v56, %v659_v61  ;;  %v625_v43 = vmul.f32 %v5840_v14, %v5784_v32  ;;  %v656_v56 = vrot.slane %v6009_v62, 1  ;;  %v6079_v61 = vadd.f32 %v345_v59, %v289_v35 }
  0x5b   : > { %v290_v62 = vmul.f32 %v6027_v50, %v5710_v3  ;;  %v316_v35 = vmul.f32 %v6033_v55, %v5770_v26  ;;  %v352_v38 = vrot.slane %v309_v29, 1  ;;  %v661_v8 = vrot.slane %v6065_v16, 1 }
  0x5c   : > { %v665_v53 = vrot.slane %v625_v43, 1  ;;  %v617_v32 = vmul.f32 %v5840_v14, %v5749_v17 }
  0x5d   : > { %v350_v26 = vrot.slane %v316_v35, 1  ;;  %v626_v35 = vmul.f32 %v5840_v14, %v5820_v51 }
  0x5e   : > { %580 = vrot.lane.b32.xlu1 %v5902_v44, %s5597_s30  ;;  %578 = vrot.lane.b32.xlu0 %v5906_v45, %s5597_s30  ;;  %v315_v44 = vmul.f32 %v6033_v55, %v5781_v31  ;;  %v664_v45 = vrot.slane %v6021_v28, 1  ;;  %v618_v31 = vmul.f32 %v5840_v14, %v5761_v22  ;;  %v627_v28 = vmul.f32 %v5840_v14, %v5798_v42 }
  0x5f   : > { %v351_v43 = vsel %vm336_vm0, %v349_v25, %v350_v26  ;;  %v293_v42 = vmul.f32 %v6027_v50, %v5752_v18  ;;  %v294_v25 = vmul.f32 %v6027_v50, %v5749_v17  ;;  %v668_v29 = vrot.slane %v626_v35, 1 }
  0x60   : > { %v347_v21 = vrot.slane %v315_v44, 1  ;;  %v6122_v59 = vadd.f32 %v351_v43, %v291_v20  ;;  %v662_v44 = vrot.slane %v6069_v58, 1  ;;  %v666_v16 = vsel %vm336_vm0, %v664_v45, %v665_v53 }
  0x61   : > { %v670_v20 = vrot.slane %v618_v31, 1 }
  0x62   : > { %673 = vrot.lane.b32.xlu1 %v648_v34, %s5597_s30  ;;  %582 = vrot.lane.b32.xlu0 %v5910_v46, %s5597_s30  ;;  %v348_v11 = vsel %vm336_vm0, %v346_v15, %v347_v21  ;;  %v310_v34 = vmul.f32 %v6033_v55, %v5752_v18  ;;  %v317_v46 = vmul.f32 %v6033_v55, %v5793_v37  ;;  %v671_v21 = vrot.slane %v627_v28, 1 }
  0x63   : > { %v6116_v57 = vadd.f32 %v348_v11, %v290_v62  ;;  %v657_v37 = vsel %vm336_vm0, %v655_v13, %v656_v56  ;;  %v356_v62 = vrot.slane %v318_v33, 1  ;;  %v319_v56 = vmul.f32 %v6033_v55, %v5820_v51 }
  0x64   : > { %v353_v48 = vrot.slane %v317_v46, 1  ;;  %v355_v54 = vrot.slane %v310_v34, 1  ;;  %v667_v11 = vrot.slane %v617_v32, 1  ;;  %v6158_v28 = vstv %s243_s7  ;;  %v6221_v32 = vld [vmem:[%s5699_s13 + $0x188] sm:$0x1]  ;;  %s253_s7 = sld [smem:[#allocation4 + %s252_s5]] }
  0x65   : > { %v359_v45 = vrot.slane %v319_v56, 1  ;;  %10939 = vst [vmem:[#allocation15_spill] sm:$0xff] %v6158_v28  ;;  %v717_v34 = vmul.f32 %v6158_v28, %v5713_v4  ;;  %v716_v46 = vmul.f32 %v6158_v28, %v5705_v1  ;;  %v719_v43 = vmul.f32 %v6158_v28, %v5710_v3 }
  0x66   : > { %677 = vrot.lane.b32.xlu1 %v6000_v36, %s5597_s30  ;;  %675 = vrot.lane.b32.xlu0 %v6017_v49, %s5597_s30  ;;  %v354_v15 = vsel %vm336_vm0, %v352_v38, %v353_v48  ;;  %v311_v36 = vmul.f32 %v6033_v55, %v5749_v17  ;;  %v357_v49 = vsel %vm336_vm0, %v355_v54, %v356_v62  ;;  %v6192_v33 = vstv %s267_s10  ;;  %v6195_v38 = vld [vmem:[%s5699_s13 + $0x130] sm:$0xff]  ;;  %s5198_s10 = sshll.u32 %s11479_s19, 5 }
  0x67   : > { %v6139_v13 = vadd.f32 %v354_v15, %v292_v23  ;;  %v6142_v58 = vadd.f32 %v357_v49, %v293_v42  ;;  %v663_v23 = vsel %vm336_vm0, %v661_v8, %v662_v44  ;;  %v669_v31 = vsel %vm336_vm0, %v667_v11, %v668_v29  ;;  %10940 = vst [vmem:[#allocation16_spill] sm:$0xff] %v6192_v33  ;;  %v6198_v48 = vld [vmem:[%s5699_s13 + $0x168] sm:$0x1]  ;;  %s7622_s19 = sadd.s32 %s5199_s11, %s5198_s10 }
  0x68   : > { %v358_v26 = vrot.slane %v311_v36, 1  ;;  %v718_v42 = vmul.f32 %v6158_v28, %v5702_v0  ;;  %v721_v1 = vmul.f32 %v6158_v28, %v5726_v9  ;;  %v720_v4 = vmul.f32 %v6158_v28, %v5729_v10  ;;  %v6190_v10 = vld [vmem:[%s5699_s13 + $0x120] sm:$0xff]  ;;  %v6206_v54 = vld [vmem:[%s5699_s13 + $0x128] sm:$0xff]  ;;  %s5200_s20 = sshll.u32 %s7622_s19, 3 }
  0x69   : > { %v723_v0 = vmul.f32 %v6158_v28, %v5749_v17  ;;  %v722_v3 = vmul.f32 %v6158_v28, %v5752_v18  ;;  %v724_v9 = vmul.f32 %v6158_v28, %v5761_v22  ;;  %v6201_v17 = vld [vmem:[%s5699_s13 + $0x178] sm:$0x1]  ;;  %v1388_v18 = vmul.f32 %v6190_v10, %v6192_v33  ;;  %v6212_v22 = vld [vmem:[%s5699_s13 + $0x170] sm:$0x1] }
  0x6a   : > { %681 = vrot.lane.b32.xlu1 %v660_v41, %s5597_s30  ;;  %679 = vrot.lane.b32.xlu0 %v657_v37, %s5597_s30  ;;  %v360_v53 = vsel %vm336_vm0, %v358_v26, %v359_v45  ;;  %v672_v41 = vsel %vm336_vm0, %v670_v20, %v671_v21  ;;  %v6209_v37 = vld [vmem:[%s5699_s13 + $0x140] sm:$0xff]  ;;  %v1397_v8 = vmul.f32 %v6198_v48, %v6192_v33  ;;  %v6245_v45 = vld [vmem:[%s5699_s13 + $0x150] sm:$0xff] }
  0x6b   : > { %v6154_v51 = vadd.f32 %v360_v53, %v294_v25  ;;  %v1390_v44 = vmul.f32 %v6195_v38, %v6192_v33  ;;  %v1399_v62 = vmul.f32 %v6201_v17, %v6192_v33  ;;  %v1424_v35 = vrot.slane %v1388_v18, 1  ;;  %v6239_v26 = vld [vmem:[%s5699_s13 + $0x180] sm:$0x1] }
  0x6c   : > { %v1389_v15 = vmul.f32 %v6206_v54, %v6192_v33  ;;  %v1398_v36 = vmul.f32 %v6212_v22, %v6192_v33  ;;  %v1392_v49 = vmul.f32 %v6209_v37, %v6192_v33  ;;  %v1425_v56 = vrot.slane %v1397_v8, 1  ;;  %v6276_v8 = vld [vmem:[%s5699_s13 + $0x1a8] sm:$0x1] }
  0x6d   : > { %10938 = vst [vmem:[#allocation14_spill] sm:$0xff] %v6154_v51  ;;  %v1430_v20 = vrot.slane %v1390_v44, 1  ;;  %v1431_v21 = vrot.slane %v1399_v62, 1  ;;  %v1401_v25 = vmul.f32 %v6221_v32, %v6192_v33  ;;  %v1405_v62 = vmul.f32 %v6276_v8, %v6192_v33 }
  0x6e   : > { %685 = vrot.lane.b32.xlu1 %v666_v16, %s5597_s30  ;;  %683 = vrot.lane.b32.xlu0 %v663_v23, %s5597_s30  ;;  %v6234_v16 = vld [vmem:[%s5699_s13 + $0x138] sm:$0xff]  ;;  %v1427_v23 = vrot.slane %v1389_v15, 1  ;;  %v1428_v11 = vrot.slane %v1398_v36, 1  ;;  %v1436_v29 = vrot.slane %v1392_v49, 1  ;;  %v6248_v53 = vsel %vm336_vm0, %v1424_v35, %v1425_v56 }
  0x6f   : > { %10941 = vst [vmem:[#allocation17_spill] sm:$0xff] %v6248_v53  ;;  %v1449_v36 = vrot.slane %v1405_v62, 1  ;;  %v6293_v49 = vstv %s255_s14 }
  0x70   : > { %10947 = vst [vmem:[#allocation23_spill] sm:$0xff] %v6293_v49 }
  0x72   : > { %689 = vrot.lane.b32.xlu1 %v672_v41, %s5597_s30  ;;  %687 = vrot.lane.b32.xlu0 %v669_v31, %s5597_s30  ;;  %v6251_v41 = vsel %vm336_vm0, %v1430_v20, %v1431_v21  ;;  %v1437_v31 = vrot.slane %v1401_v25, 1  ;;  %v994_v25 = vmul.f32 %v6206_v54, %v6293_v49 }
  0x73   : > { %10942 = vst [vmem:[#allocation18_spill] sm:$0xff] %v6251_v41 }
  0x76   : > { %736 = vrot.lane.b32.xlu1 %v717_v34, %s5598_s8  ;;  %734 = vrot.lane.b32.xlu0 %v716_v46, %s5598_s8  ;;  %v1400_v34 = vmul.f32 %v6239_v26, %v6192_v33  ;;  %v6256_v46 = vsel %vm336_vm0, %v1427_v23, %v1428_v11  ;;  %v993_v11 = vmul.f32 %v6190_v10, %v6293_v49 }
  0x77   : > { %10943 = vst [vmem:[#allocation19_spill] sm:$0xff] %v6256_v46 }
  0x7a   : > { %740 = vrot.lane.b32.xlu1 %v719_v43, %s5598_s8  ;;  %738 = vrot.lane.b32.xlu0 %v718_v42, %s5598_s8  ;;  %v1394_v42 = vmul.f32 %v6245_v45, %v6192_v33 }
  0x7c   : > { %v1442_v18 = vrot.slane %v1394_v42, 1 }
  0x7e   : > { %744 = vrot.lane.b32.xlu1 %v721_v1, %s5598_s8  ;;  %742 = vrot.lane.b32.xlu0 %v720_v4, %s5598_s8  ;;  %v6265_v1 = vld [vmem:[%s5699_s13 + $0x198] sm:$0x1]  ;;  %v6268_v4 = vsel %vm336_vm0, %v1436_v29, %v1437_v31 }
  0x7f   : > { %10944 = vst [vmem:[#allocation20_spill] sm:$0xff] %v6268_v4 }
  0x82   : > { %748 = vrot.lane.b32.xlu1 %v723_v0, %s5598_s8  ;;  %746 = vrot.lane.b32.xlu0 %v722_v3, %s5598_s8  ;;  %v1434_v0 = vrot.slane %v1400_v34, 1  ;;  %v6271_v3 = vld [vmem:[%s5699_s13 + $0x160] sm:$0xff] }
  0x86   : > { %841 = vrot.lane.b32.xlu1 %v5952_v30, %s5598_s8  ;;  %750 = vrot.lane.b32.xlu0 %v724_v9, %s5598_s8  ;;  %v1391_v30 = vmul.f32 %v6234_v16, %v6192_v33  ;;  %v1403_v9 = vmul.f32 %v6265_v1, %v6192_v33 }
  0x88   : > { %v1433_v43 = vrot.slane %v1391_v30, 1  ;;  %v1443_v44 = vrot.slane %v1403_v9, 1 }
  0x8a   : > { %845 = vrot.lane.b32.xlu1 %v5962_v24, %s5598_s8  ;;  %843 = vrot.lane.b32.xlu0 %v5965_v39, %s5598_s8  ;;  %v6279_v24 = vsel %vm336_vm0, %v1433_v43, %v1434_v0  ;;  %v1396_v39 = vmul.f32 %v6271_v3, %v6192_v33  ;;  %v6290_v15 = vsel %vm336_vm0, %v1442_v18, %v1443_v44 }
  0x8b   : > { %10945 = vst [vmem:[#allocation21_spill] sm:$0xff] %v6279_v24  ;;  %10946 = vst [vmem:[#allocation22_spill] sm:$0xff] %v6290_v15 }
  0x8c   : > { %v1448_v35 = vrot.slane %v1396_v39, 1 }
  0x8e   : > { %849 = vrot.lane.b32.xlu1 %v5974_v60, %s5598_s8  ;;  %847 = vrot.lane.b32.xlu0 %v5987_v19, %s5598_s8  ;;  %v6296_v56 = vsel %vm336_vm0, %v1448_v35, %v1449_v36  ;;  %v6302_v60 = vstv %s261_s16  ;;  %s7655_s16 = scalar_lea.vmem %s10686_s4, %s5200_s20 }
  0x8f   : > { %10948 = vst [vmem:[#allocation24_spill] sm:$0xff] %v6296_v56  ;;  %10949 = vst [vmem:[#allocation25_spill] sm:$0xff] %v6302_v60  ;;  %v918_v19 = vmul.f32 %v6190_v10, %v6302_v60  ;;  %v926_v20 = vmul.f32 %v6198_v48, %v6302_v60  ;;  %v919_v21 = vmul.f32 %v6206_v54, %v6302_v60 }
  0x90   : > { %v928_v23 = vmul.f32 %v6201_v17, %v6302_v60  ;;  %v921_v0 = vmul.f32 %v6234_v16, %v6302_v60  ;;  %v922_v18 = vmul.f32 %v6209_v37, %v6302_v60 }
  0x91   : > { %v950_v29 = vrot.slane %v918_v19, 1  ;;  %v951_v30 = vrot.slane %v926_v20, 1  ;;  %v953_v31 = vrot.slane %v919_v21, 1  ;;  %v996_v20 = vmul.f32 %v6234_v16, %v6293_v49 }
  0x92   : > { %853 = vrot.lane.b32.xlu1 %v5994_v27, %s5598_s8  ;;  %851 = vrot.lane.b32.xlu0 %v6012_v63, %s5598_s8  ;;  %v920_v27 = vmul.f32 %v6195_v38, %v6302_v60  ;;  %v927_v63 = vmul.f32 %v6212_v22, %v6302_v60  ;;  %v957_v42 = vrot.slane %v928_v23, 1  ;;  %v959_v62 = vrot.slane %v921_v0, 1 }
  0x93   : > { %v6329_v9 = vsel %vm336_vm0, %v950_v29, %v951_v30  ;;  %v962_v36 = vrot.slane %v922_v18, 1  ;;  %v995_v21 = vmul.f32 %v6195_v38, %v6293_v49  ;;  %v6355_v23 = vstv %s6304_s18  ;;  %v6376_v18 = vld [vmem:[%s5699_s13 + $0x158] sm:$0xff] }
  0x94   : > { %v954_v34 = vrot.slane %v927_v63, 1  ;;  %v956_v43 = vrot.slane %v920_v27, 1  ;;  %10950 = vst [vmem:[#allocation26_spill] sm:$0xff] %v6329_v9  ;;  %v6350_v27 = vld [vmem:[%s5699_s13 + $0x148] sm:$0xff]  ;;  %v924_v63 = vmul.f32 %v6245_v45, %v6302_v60  ;;  %10953 = vst [vmem:[#allocation29_spill] sm:$0xff] %v6355_v23  ;;  %v1057_v55 = vmul.f32 %v6234_v16, %v6355_v23 }
  0x95   : > { %v1066_v28 = vmul.f32 %v6239_v26, %v6355_v23 }
  0x96   : > { %857 = vrot.lane.b32.xlu1 %v6024_v40, %s5598_s8  ;;  %855 = vrot.lane.b32.xlu0 %v6030_v52, %s5598_s8  ;;  %v929_v40 = vmul.f32 %v6239_v26, %v6302_v60  ;;  %v930_v52 = vmul.f32 %v6221_v32, %v6302_v60  ;;  %v6338_v39 = vsel %vm336_vm0, %v953_v31, %v954_v34  ;;  %v968_v30 = vrot.slane %v924_v63, 1 }
  0x97   : > { %10951 = vst [vmem:[#allocation27_spill] sm:$0xff] %v6338_v39  ;;  %v6341_v44 = vsel %vm336_vm0, %v956_v43, %v957_v42  ;;  %v998_v31 = vmul.f32 %v6350_v27, %v6293_v49  ;;  %v997_v34 = vmul.f32 %v6209_v37, %v6293_v49  ;;  %v1054_v43 = vmul.f32 %v6190_v10, %v6355_v23 }
  0x98   : > { %10952 = vst [vmem:[#allocation28_spill] sm:$0xff] %v6341_v44  ;;  %v960_v35 = vrot.slane %v929_v40, 1  ;;  %v963_v19 = vrot.slane %v930_v52, 1  ;;  %v1063_v42 = vmul.f32 %v6198_v48, %v6355_v23  ;;  %v1065_v63 = vmul.f32 %v6201_v17, %v6355_v23 }
  0x99   : > { %v1071_v39 = vmul.f32 %v6276_v8, %v6355_v23 }
  0x9a   : > { %1013 = vrot.lane.b32.xlu1 %v994_v25, %s5596_s15  ;;  %1011 = vrot.lane.b32.xlu0 %v993_v11, %s5596_s15  ;;  %v6358_v29 = vsel %vm336_vm0, %v959_v62, %v960_v35  ;;  %v6361_v25 = vsel %vm336_vm0, %v962_v36, %v963_v19  ;;  %v932_v11 = vmul.f32 %v6265_v1, %v6302_v60  ;;  %v1090_v19 = vrot.slane %v1054_v43, 1 }
  0x9b   : > { %10954 = vst [vmem:[#allocation30_spill] sm:$0xff] %v6358_v29  ;;  %10955 = vst [vmem:[#allocation31_spill] sm:$0xff] %v6361_v25  ;;  %v1000_v35 = vmul.f32 %v6376_v18, %v6293_v49  ;;  %v999_v36 = vmul.f32 %v6245_v45, %v6293_v49  ;;  %v1001_v43 = vmul.f32 %v6271_v3, %v6293_v49  ;;  %v1097_v49 = vrot.slane %v1065_v63, 1 }
  0x9c   : > { %v969_v0 = vrot.slane %v932_v11, 1  ;;  %v1055_v11 = vmul.f32 %v6206_v54, %v6355_v23  ;;  %v1100_v63 = vrot.slane %v1066_v28, 1 }
  0x9e   : > { %1017 = vrot.lane.b32.xlu1 %v996_v20, %s5596_s15  ;;  %1015 = vrot.lane.b32.xlu0 %v995_v21, %s5596_s15  ;;  %v6383_v62 = vsel %vm336_vm0, %v968_v30, %v969_v0  ;;  %v1091_v20 = vrot.slane %v1063_v42, 1  ;;  %v1056_v21 = vmul.f32 %v6195_v38, %v6355_v23  ;;  %v1064_v30 = vmul.f32 %v6212_v22, %v6355_v23 }
  0x9f   : > { %10956 = vst [vmem:[#allocation32_spill] sm:$0xff] %v6383_v62  ;;  %v1058_v42 = vmul.f32 %v6209_v37, %v6355_v23  ;;  %v1067_v0 = vmul.f32 %v6221_v32, %v6355_v23  ;;  %v1093_v14 = vrot.slane %v1055_v11, 1  ;;  %v1069_v11 = vmul.f32 %v6265_v1, %v6355_v23 }
  0xa0   : > { %v6378_v40 = vpop.permute.xlu1 %402  ;;  %v6380_v52 = vpop.permute.xlu0 %398  ;;  %v1092_v50 = vsel %vm336_vm0, %v1090_v19, %v1091_v20  ;;  %v1096_v47 = vrot.slane %v1056_v21, 1  ;;  %v1094_v7 = vrot.slane %v1064_v30, 1  ;;  %v1060_v20 = vmul.f32 %v6245_v45, %v6355_v23 }
  0xa1   : > { %v1103_v19 = vrot.slane %v1067_v0, 1  ;;  %v1099_v21 = vrot.slane %v1057_v55, 1  ;;  %v1059_v30 = vmul.f32 %v6350_v27, %v6355_v23 }
  0xa2   : > { %1021 = vrot.lane.b32.xlu1 %v998_v31, %s5596_s15  ;;  %1019 = vrot.lane.b32.xlu0 %v997_v34, %s5596_s15  ;;  %v1098_v12 = vsel %vm336_vm0, %v1096_v47, %v1097_v49  ;;  %v1108_v28 = vrot.slane %v1060_v20, 1  ;;  %v1062_v49 = vmul.f32 %v6271_v3, %v6355_v23 }
  0xa3   : > { %v1101_v47 = vsel %vm336_vm0, %v1099_v21, %v1100_v63 }
  0xa4   : > { %v6399_v31 = vpop.permute.xlu1 %404  ;;  %v6401_v34 = vpop.permute.xlu0 %400  ;;  %v1114_v63 = vrot.slane %v1062_v49, 1 }
  0xa6   : > { %1025 = vrot.lane.b32.xlu1 %v1000_v35, %s5596_s15  ;;  %1023 = vrot.lane.b32.xlu0 %v999_v36, %s5596_s15  ;;  %v6421_v35 = vld [vmem:[%s5699_s13 + $0x190] sm:$0x1]  ;;  %v1102_v36 = vrot.slane %v1058_v42, 1  ;;  %v1095_v42 = vsel %vm336_vm0, %v1093_v14, %v1094_v7  ;;  %v1109_v7 = vrot.slane %v1069_v11, 1  ;;  %v1105_v14 = vrot.slane %v1059_v30, 1 }
  0xa7   : > { %v1068_v0 = vmul.f32 %v6421_v35, %v6355_v23  ;;  %v1115_v30 = vrot.slane %v1071_v39, 1 }
  0xa8   : > { %v6416_v62 = vpop.permute.xlu1 %408  ;;  %v6418_v25 = vpop.permute.xlu0 %406  ;;  %v1104_v55 = vsel %vm336_vm0, %v1102_v36, %v1103_v19  ;;  %v1061_v36 = vmul.f32 %v6376_v18, %v6355_v23  ;;  %v1110_v21 = vsel %vm336_vm0, %v1108_v28, %v1109_v7  ;;  %v6472_v28 = vstv %s257_s25 }
  0xa9   : > { %v1106_v44 = vrot.slane %v1068_v0, 1  ;;  %10958 = vst [vmem:[#allocation34_spill] sm:$0xff] %v6472_v28 }
  0xaa   : > { %1117 = vrot.lane.b32.xlu1 %v1092_v50, %s5596_s15  ;;  %1027 = vrot.lane.b32.xlu0 %v1001_v43, %s5596_s15  ;;  %v6440_v43 = vld [vmem:[%s5699_s13 + $0x1a0] sm:$0x1] }
  0xab   : > { %10957 = vst [vmem:[#allocation33_spill] sm:$0xff] %v6440_v43  ;;  %v1107_v11 = vsel %vm336_vm0, %v1105_v14, %v1106_v44  ;;  %v1161_v44 = vmul.f32 %v6206_v54, %v6472_v28  ;;  %v1160_v14 = vmul.f32 %v6190_v10, %v6472_v28 }
  0xac   : > { %v6435_v29 = vpop.permute.xlu1 %412  ;;  %v6437_v50 = vpop.permute.xlu0 %410 }
  0xae   : > { %1121 = vrot.lane.b32.xlu1 %v1098_v12, %s5596_s15  ;;  %1119 = vrot.lane.b32.xlu0 %v1095_v42, %s5596_s15  ;;  %v1070_v12 = vmul.f32 %v6440_v43, %v6355_v23  ;;  %v1111_v42 = vrot.slane %v1061_v36, 1 }
  0xb0   : > { %v6455_v19 = vpop.permute.xlu1 %505  ;;  %v6457_v20 = vpop.permute.xlu0 %414  ;;  %v1112_v0 = vrot.slane %v1070_v12, 1  ;;  %v1163_v12 = vmul.f32 %v6234_v16, %v6472_v28 }
  0xb2   : > { %1125 = vrot.lane.b32.xlu1 %v1104_v55, %s5596_s15  ;;  %1123 = vrot.lane.b32.xlu0 %v1101_v47, %s5596_s15  ;;  %v1116_v55 = vsel %vm336_vm0, %v1114_v63, %v1115_v30  ;;  %v1113_v47 = vsel %vm336_vm0, %v1111_v42, %v1112_v0  ;;  %v6498_v30 = vstv %s265_s27  ;;  %v1165_v42 = vmul.f32 %v6350_v27, %v6472_v28 }
  0xb3   : > { %10959 = vst [vmem:[#allocation35_spill] sm:$0xff] %v6498_v30  ;;  %v1164_v0 = vmul.f32 %v6209_v37, %v6472_v28  ;;  %v1223_v56 = vmul.f32 %v6195_v38, %v6498_v30  ;;  %v1222_v4 = vmul.f32 %v6206_v54, %v6498_v30  ;;  %v1231_v46 = vmul.f32 %v6212_v22, %v6498_v30 }
  0xb4   : > { %v6463_v9 = vpop.permute.xlu1 %509  ;;  %v6465_v23 = vpop.permute.xlu0 %507  ;;  %v1225_v41 = vmul.f32 %v6209_v37, %v6498_v30  ;;  %v1224_v22 = vmul.f32 %v6234_v16, %v6498_v30 }
  0xb5   : > { %v1261_v51 = vrot.slane %v1231_v46, 1  ;;  %v1226_v46 = vmul.f32 %v6350_v27, %v6498_v30 }
  0xb6   : > { %1129 = vrot.lane.b32.xlu1 %v1110_v21, %s5596_s15  ;;  %1127 = vrot.lane.b32.xlu0 %v1107_v11, %s5596_s15  ;;  %v1162_v21 = vmul.f32 %v6195_v38, %v6472_v28 }
  0xb8   : > { %v6474_v7 = vpop.permute.xlu1 %513  ;;  %v6476_v39 = vpop.permute.xlu0 %511 }
  0xba   : > { %1133 = vrot.lane.b32.xlu1 %v1116_v55, %s5596_s15  ;;  %1131 = vrot.lane.b32.xlu0 %v1113_v47, %s5596_s15  ;;  %v1221_v55 = vmul.f32 %v6190_v10, %v6498_v30  ;;  %v1230_v47 = vmul.f32 %v6198_v48, %v6498_v30  ;;  %v1232_v48 = vmul.f32 %v6201_v17, %v6498_v30 }
  0xbb   : > { %v1168_v17 = vmul.f32 %v6271_v3, %v6472_v28 }
  0xbc   : > { %v6484_v49 = vpop.permute.xlu1 %517  ;;  %v6486_v36 = vpop.permute.xlu0 %515  ;;  %v1257_v15 = vrot.slane %v1221_v55, 1  ;;  %v1258_v24 = vrot.slane %v1230_v47, 1  ;;  %v1263_v55 = vrot.slane %v1223_v56, 1  ;;  %v1233_v47 = vmul.f32 %v6239_v26, %v6498_v30 }
  0xbd   : > { %v1227_v56 = vmul.f32 %v6245_v45, %v6498_v30  ;;  %v1266_v26 = vrot.slane %v1224_v22, 1  ;;  %v1238_v22 = vmul.f32 %v6276_v8, %v6498_v30 }
  0xbe   : > { %1180 = vrot.lane.b32.xlu1 %v1161_v44, %s5597_s30  ;;  %1178 = vrot.lane.b32.xlu0 %v1160_v14, %s5597_s30 }
  0xc0   : > { %v6494_v63 = vpop.permute.xlu1 %521  ;;  %v6496_v11 = vpop.permute.xlu0 %519 }
  0xc2   : > { %1184 = vrot.lane.b32.xlu1 %v1163_v12, %s5597_s30  ;;  %1182 = vrot.lane.b32.xlu0 %v1162_v21, %s5597_s30  ;;  %v1167_v12 = vmul.f32 %v6376_v18, %v6472_v28  ;;  %v1166_v21 = vmul.f32 %v6245_v45, %v6472_v28  ;;  %v1267_v28 = vrot.slane %v1233_v47, 1  ;;  %v1237_v47 = vmul.f32 %v6440_v43, %v6498_v30 }
  0xc4   : > { %v6510_v44 = vpop.permute.xlu1 %568  ;;  %v6512_v14 = vpop.permute.xlu0 %566 }
  0xc5   : > { %10960 = vst [vmem:[#allocation36_spill] sm:$0xff] %v6510_v44  ;;  %10961 = vst [vmem:[#allocation37_spill] sm:$0xff] %v6512_v14  ;;  %v1234_v14 = vmul.f32 %v6221_v32, %v6498_v30  ;;  %v1260_v44 = vrot.slane %v1222_v4, 1  ;;  %v1236_v4 = vmul.f32 %v6265_v1, %v6498_v30  ;;  %v1268_v1 = vsel %vm336_vm0, %v1266_v26, %v1267_v28 }
  0xc6   : > { %1188 = vrot.lane.b32.xlu1 %v1165_v42, %s5597_s30  ;;  %1186 = vrot.lane.b32.xlu0 %v1164_v0, %s5597_s30 }
  0xc7   : > { %v1270_v53 = vrot.slane %v1234_v14, 1 }
  0xc8   : > { %v6528_v42 = vpop.permute.xlu1 %572  ;;  %v6530_v0 = vpop.permute.xlu0 %570 }
  0xc9   : > { %10962 = vst [vmem:[#allocation38_spill] sm:$0xff] %v6528_v42  ;;  %10963 = vst [vmem:[#allocation39_spill] sm:$0xff] %v6530_v0  ;;  %v1259_v42 = vsel %vm336_vm0, %v1257_v15, %v1258_v24  ;;  %v1264_v0 = vrot.slane %v1232_v48, 1  ;;  %v1235_v15 = vmul.f32 %v6421_v35, %v6498_v30 }
  0xca   : > { %1192 = vrot.lane.b32.xlu1 %v1167_v12, %s5597_s30  ;;  %1190 = vrot.lane.b32.xlu0 %v1166_v21, %s5597_s30  ;;  %v1269_v21 = vrot.slane %v1225_v41, 1  ;;  %v1262_v41 = vsel %vm336_vm0, %v1260_v44, %v1261_v51  ;;  %v1229_v51 = vmul.f32 %v6271_v3, %v6498_v30 }
  0xcb   : > { %v1265_v24 = vsel %vm336_vm0, %v1263_v55, %v1264_v0  ;;  %v1276_v0 = vrot.slane %v1236_v4, 1  ;;  %v1272_v55 = vrot.slane %v1226_v46, 1  ;;  %v1273_v44 = vrot.slane %v1235_v15, 1 }
  0xcc   : > { %v6545_v32 = vpop.permute.xlu1 %576  ;;  %v6547_v12 = vpop.permute.xlu0 %574  ;;  %v1281_v26 = vrot.slane %v1229_v51, 1  ;;  %v1282_v4 = vrot.slane %v1238_v22, 1 }
  0xcd   : > { %v1274_v8 = vsel %vm336_vm0, %v1272_v55, %v1273_v44 }
  0xce   : > { %1284 = vrot.lane.b32.xlu1 %v1259_v42, %s5597_s30  ;;  %1194 = vrot.lane.b32.xlu0 %v1168_v17, %s5597_s30  ;;  %v1271_v42 = vsel %vm336_vm0, %v1269_v21, %v1270_v53  ;;  %v1275_v17 = vrot.slane %v1227_v56, 1  ;;  %v1228_v53 = vmul.f32 %v6376_v18, %v6498_v30 }
  0xd0   : > { %v6561_v14 = vpop.permute.xlu1 %580  ;;  %v6563_v48 = vpop.permute.xlu0 %578  ;;  %v1277_v56 = vsel %vm336_vm0, %v1275_v17, %v1276_v0  ;;  %v1278_v46 = vrot.slane %v1228_v53, 1  ;;  %v6595_v17 = vstv %s259_s29 }
  0xd1   : > { %10965 = vst [vmem:[#allocation41_spill] sm:$0xff] %v6595_v17  ;;  %v1328_v51 = vmul.f32 %v6206_v54, %v6595_v17  ;;  %v1327_v44 = vmul.f32 %v6190_v10, %v6595_v17 }
  0xd2   : > { %1288 = vrot.lane.b32.xlu1 %v1265_v24, %s5597_s30  ;;  %1286 = vrot.lane.b32.xlu0 %v1262_v41, %s5597_s30  ;;  %v1279_v24 = vrot.slane %v1237_v47, 1  ;;  %v1393_v47 = vmul.f32 %v6350_v27, %v6192_v33 }
  0xd4   : > { %v6578_v21 = vpop.permute.xlu1 %673  ;;  %v6580_v28 = vpop.permute.xlu0 %582 }
  0xd5   : > { %10964 = vst [vmem:[#allocation40_spill] sm:$0xff] %v6580_v28 }
  0xd6   : > { %1292 = vrot.lane.b32.xlu1 %v1271_v42, %s5597_s30  ;;  %1290 = vrot.lane.b32.xlu0 %v1268_v1, %s5597_s30  ;;  %v1283_v42 = vsel %vm336_vm0, %v1281_v26, %v1282_v4  ;;  %v1280_v1 = vsel %vm336_vm0, %v1278_v46, %v1279_v24  ;;  %v1330_v26 = vmul.f32 %v6234_v16, %v6595_v17 }
  0xd7   : > { %v1395_v4 = vmul.f32 %v6376_v18, %v6192_v33  ;;  %v1404_v46 = vmul.f32 %v6440_v43, %v6192_v33  ;;  %v1334_v43 = vmul.f32 %v6376_v18, %v6595_v17 }
  0xd8   : > { %v6586_v41 = vpop.permute.xlu1 %677  ;;  %v6588_v15 = vpop.permute.xlu0 %675 }
  0xda   : > { %1296 = vrot.lane.b32.xlu1 %v1277_v56, %s5597_s30  ;;  %1294 = vrot.lane.b32.xlu0 %v1274_v8, %s5597_s30  ;;  %v1402_v56 = vmul.f32 %v6421_v35, %v6192_v33  ;;  %v1329_v8 = vmul.f32 %v6195_v38, %v6595_v17  ;;  %v1331_v33 = vmul.f32 %v6209_v37, %v6595_v17 }
  0xdc   : > { %v6597_v0 = vpop.permute.xlu1 %681  ;;  %v6599_v55 = vpop.permute.xlu0 %679  ;;  %v1440_v30 = vrot.slane %v1402_v56, 1  ;;  %v1335_v56 = vmul.f32 %v6271_v3, %v6595_v17 }
  0xdd   : > { %10966 = vst [vmem:[#allocation42_spill] sm:$0xff] %v6597_v0  ;;  %10967 = vst [vmem:[#allocation43_spill] sm:$0xff] %v6599_v55 }
  0xde   : > { %1300 = vrot.lane.b32.xlu1 %v1283_v42, %s5597_s30  ;;  %1298 = vrot.lane.b32.xlu0 %v1280_v1, %s5597_s30  ;;  %v6629_v1 = vstv %s253_s7 }
  0xdf   : > { %10972 = vst [vmem:[#allocation48_spill] sm:$0xff] %v6629_v1  ;;  %v6662_v28 = vmul.f32 %v6206_v54, %v6629_v1  ;;  %v6666_v3 = vmul.f32 %v6195_v38, %v6629_v1  ;;  %v6687_v54 = vmul.f32 %v6350_v27, %v6629_v1 }
  0xe0   : > { %v6607_v22 = vpop.permute.xlu1 %685  ;;  %v6609_v53 = vpop.permute.xlu0 %683 }
  0xe1   : > { %10968 = vst [vmem:[#allocation44_spill] sm:$0xff] %v6607_v22  ;;  %10969 = vst [vmem:[#allocation45_spill] sm:$0xff] %v6609_v53  ;;  %v1446_v22 = vrot.slane %v1404_v46, 1  ;;  %v6654_v53 = vld [vmem:[%s5699_s13 + $0x60] sm:$0xff]  ;;  %v6677_v46 = vld [vmem:[%s5699_s13 + $0x58] sm:$0xff] }
  0xe2   : > { %1347 = vrot.lane.b32.xlu1 %v1328_v51, %s5598_s8  ;;  %1345 = vrot.lane.b32.xlu0 %v1327_v44, %s5598_s8  ;;  %v1332_v51 = vmul.f32 %v6350_v27, %v6595_v17  ;;  %v1439_v44 = vrot.slane %v1393_v47, 1  ;;  %v6645_v47 = vld [vmem:[%s5699_s13 + $0x48] sm:$0xff]  ;;  %10975 = vst [vmem:[#allocation51_spill] sm:$0xff] %v6654_v53  ;;  %10976 = vst [vmem:[#allocation52_spill] sm:$0xff] %v6677_v46 }
  0xe4   : > { %v6625_v24 = vpop.permute.xlu1 %689  ;;  %v6627_v42 = vpop.permute.xlu0 %687 }
  0xe5   : > { %10970 = vst [vmem:[#allocation46_spill] sm:$0xff] %v6625_v24  ;;  %10971 = vst [vmem:[#allocation47_spill] sm:$0xff] %v6627_v42  ;;  %v1333_v24 = vmul.f32 %v6245_v45, %v6595_v17  ;;  %v6642_v42 = vld [vmem:[%s5699_s13 + $0x50] sm:$0xff] }
  0xe6   : > { %1351 = vrot.lane.b32.xlu1 %v1330_v26, %s5598_s8  ;;  %1349 = vrot.lane.b32.xlu0 %v1329_v8, %s5598_s8  ;;  %10973 = vst [vmem:[#allocation49_spill] sm:$0xff] %v6642_v42  ;;  %v6651_v26 = vmul.f32 %v6190_v10, %v6629_v1  ;;  %v1445_v8 = vrot.slane %v1395_v4, 1  ;;  %v6670_v10 = vmul.f32 %v6234_v16, %v6629_v1  ;;  %v6680_v17 = vld [vmem:[%s5699_s13 + $0x70] sm:$0xff] }
  0xe7   : > { %v6674_v4 = vmul.f32 %v6209_v37, %v6629_v1  ;;  %10977 = vst [vmem:[#allocation53_spill] sm:$0xff] %v6680_v17  ;;  %v6691_v38 = vmul.f32 %v6642_v42, %v5707_v2  ;;  %v6695_v16 = vmul.f32 %v6645_v47, %v5707_v2  ;;  %v6701_v37 = vmul.f32 %v6245_v45, %v6629_v1  ;;  %v6712_v42 = vld [vmem:[%s5699_s13 + $0x68] sm:$0xff] }
  0xe8   : > { %10974 = vst [vmem:[#allocation50_spill] sm:$0xff] %v6651_v26  ;;  %v6656_v0 = vpop.permute.xlu1 %736  ;;  %v6658_v55 = vpop.permute.xlu0 %734  ;;  %v6683_v26 = vsel %vm336_vm0, %v1439_v44, %v1440_v30  ;;  %v6705_v30 = vmul.f32 %v6376_v18, %v6629_v1  ;;  %v6709_v44 = vmul.f32 %v6654_v53, %v5707_v2  ;;  %10979 = vst [vmem:[#allocation55_spill] sm:$0xff] %v6712_v42 }
  0xe9   : > { %v6722_v45 = vmul.f32 %v6677_v46, %v5707_v2  ;;  %v6726_v1 = vmul.f32 %v6680_v17, %v5707_v2  ;;  %v417_v53 = vsel %vm416_vm1, %v6380_v52, %v6401_v34  ;;  %v422_v52 = vsel %vm416_vm1, %v6416_v62, %v6437_v50 }
  0xea   : > { %1355 = vrot.lane.b32.xlu1 %v1332_v51, %s5598_s8  ;;  %1353 = vrot.lane.b32.xlu0 %v1331_v33, %s5598_s8  ;;  %10978 = vst [vmem:[#allocation54_spill] sm:$0xff] %v6705_v30  ;;  %v419_v51 = vsel %vm416_vm1, %v6378_v40, %v6399_v31  ;;  %v6718_v33 = vsel %vm336_vm0, %v1445_v8, %v1446_v22 }
  0xeb   : > { %10980 = vst [vmem:[#allocation56_spill] sm:$0xff] %v6726_v1  ;;  %v418_v30 = vsel %vm416_vm1, %v6401_v34, %v6378_v40  ;;  %v420_v22 = vsel %vm416_vm1, %v6399_v31, %v6418_v25  ;;  %v421_v8 = vsel %vm416_vm1, %v6418_v25, %v6416_v62  ;;  %v6749_v1 = vmul.f32 %v6712_v42, %v5707_v2 }
  0xec   : > { %v6740_v46 = vpop.permute.xlu1 %740  ;;  %v6742_v17 = vpop.permute.xlu0 %738  ;;  %v6753_v40 = vmul.f32 %v6350_v27, %v6302_v60  ;;  %v6757_v31 = vmul.f32 %v6421_v35, %v6302_v60  ;;  %v435_v25 = vadd.f32 %v419_v51, %v6079_v61  ;;  %v423_v34 = vsel %vm416_vm1, %v6437_v50, %v6435_v29 }
  0xed   : > { %v6767_v62 = vmul.f32 %v6376_v18, %v6302_v60  ;;  %v433_v27 = vadd.f32 %v417_v53, %v6085_v6  ;;  %v434_v35 = vadd.f32 %v418_v30, %v6083_v5  ;;  %v436_v42 = vadd.f32 %v420_v22, %v6116_v57  ;;  %v10984_v30 = vld [vmem:[#allocation37_spill] sm:$0xff] }
  0xee   : > { %1359 = vrot.lane.b32.xlu1 %v1334_v43, %s5598_s8  ;;  %1357 = vrot.lane.b32.xlu0 %v1333_v24, %s5598_s8  ;;  %v437_v61 = vadd.f32 %v421_v8, %v6122_v59  ;;  %v438_v51 = vadd.f32 %v422_v52, %v6139_v13  ;;  %v424_v50 = vsel %vm416_vm1, %v6435_v29, %v6457_v20  ;;  %v10982_v20 = vld [vmem:[#allocation14_spill] sm:$0xff]  ;;  %v10983_v24 = vld [vmem:[#allocation36_spill] sm:$0xff]  ;;  %v10985_v52 = vld [vmem:[#allocation39_spill] sm:$0xff] }
  0xef   : > { %v523_v43 = vsel %vm416_vm1, %v6455_v19, %v6465_v23  ;;  %v524_v6 = vsel %vm416_vm1, %v6465_v23, %v6463_v9  ;;  %v439_v57 = vadd.f32 %v423_v34, %v6142_v58  ;;  %v525_v59 = vsel %vm416_vm1, %v6463_v9, %v6476_v39  ;;  %v10981_v19 = vld [vmem:[#allocation17_spill] sm:$0xff] }
  0xf0   : > { %v6783_v18 = vpop.permute.xlu1 %744  ;;  %v6785_v5 = vpop.permute.xlu0 %742  ;;  %v526_v13 = vsel %vm416_vm1, %v6476_v39, %v6474_v7  ;;  %v527_v29 = vsel %vm416_vm1, %v6474_v7, %v6486_v36  ;;  %v528_v23 = vsel %vm416_vm1, %v6486_v36, %v6484_v49  ;;  %v529_v58 = vsel %vm416_vm1, %v6484_v49, %v6496_v11 }
  0xf1   : > { %v530_v9 = vsel %vm416_vm1, %v6496_v11, %v6494_v63  ;;  %v440_v39 = vadd.f32 %v424_v50, %v10982_v20  ;;  %v539_v7 = vadd.f32 %v523_v43, %v433_v27  ;;  %v540_v53 = vadd.f32 %v524_v6, %v434_v35  ;;  %v10986_v27 = vld [vmem:[#allocation38_spill] sm:$0xff] }
  0xf2   : > { %1451 = vrot.lane.b32.xlu1 %v10981_v19, %s5598_s8  ;;  %1361 = vrot.lane.b32.xlu0 %v1335_v56, %s5598_s8  ;;  %v585_v36 = vsel %vm584_vm2, %v10984_v30, %v10983_v24  ;;  %v541_v22 = vadd.f32 %v525_v59, %v435_v25  ;;  %v542_v8 = vadd.f32 %v526_v13, %v436_v42 }
  0xf3   : > { %v543_v49 = vadd.f32 %v527_v29, %v437_v61  ;;  %v586_v63 = vsel %vm584_vm2, %v10983_v24, %v10985_v52  ;;  %v544_v56 = vadd.f32 %v528_v23, %v438_v51  ;;  %v545_v19 = vadd.f32 %v529_v58, %v439_v57  ;;  %v10987_v61 = vld [vmem:[#allocation18_spill] sm:$0xff]  ;;  %v10988_v51 = vld [vmem:[#allocation19_spill] sm:$0xff]  ;;  %v10989_v23 = vld [vmem:[#allocation40_spill] sm:$0xff] }
  0xf4   : > { %v6816_v11 = vpop.permute.xlu1 %748  ;;  %v6818_v34 = vpop.permute.xlu0 %746  ;;  %v546_v50 = vadd.f32 %v530_v9, %v440_v39  ;;  %v587_v35 = vsel %vm584_vm2, %v10985_v52, %v10986_v27  ;;  %v601_v43 = vadd.f32 %v585_v36, %v539_v7  ;;  %v588_v42 = vsel %vm584_vm2, %v10986_v27, %v6547_v12  ;;  %v10990_v9 = vld [vmem:[#allocation43_spill] sm:$0xff]  ;;  %v10994_v52 = vld [vmem:[#allocation45_spill] sm:$0xff] }
  0xf5   : > { %v589_v25 = vsel %vm584_vm2, %v6547_v12, %v6545_v32  ;;  %v602_v6 = vadd.f32 %v586_v63, %v540_v53  ;;  %v590_v57 = vsel %vm584_vm2, %v6545_v32, %v6563_v48  ;;  %v691_v59 = vsel %vm584_vm2, %v6578_v21, %v6588_v15  ;;  %v10995_v63 = vld [vmem:[#allocation44_spill] sm:$0xff] }
  0xf6   : > { %1455 = vrot.lane.b32.xlu1 %v10987_v61, %s5598_s8  ;;  %1453 = vrot.lane.b32.xlu0 %v10988_v51, %s5598_s8  ;;  %v692_v12 = vsel %vm584_vm2, %v6588_v15, %v6586_v41  ;;  %v603_v13 = vadd.f32 %v587_v35, %v541_v22  ;;  %v591_v29 = vsel %vm584_vm2, %v6563_v48, %v6561_v14 }
  0xf7   : > { %v592_v58 = vsel %vm584_vm2, %v6561_v14, %v10989_v23  ;;  %v693_v32 = vsel %vm584_vm2, %v6586_v41, %v10990_v9  ;;  %v604_v21 = vadd.f32 %v588_v42, %v542_v8  ;;  %v605_v7 = vadd.f32 %v589_v25, %v543_v49  ;;  %v10991_v14 = vld [vmem:[#allocation20_spill] sm:$0xff]  ;;  %v10992_v41 = vld [vmem:[#allocation21_spill] sm:$0xff]  ;;  %v10993_v8 = vld [vmem:[#allocation42_spill] sm:$0xff] }
  0xf8   : > { %v842_v20 = vpop.permute.xlu1 %841  ;;  %v751_v39 = vpop.permute.xlu0 %750  ;;  %v753_v15 = vsel %vm752_vm3, %v6658_v55, %v6656_v0  ;;  %v754_v48 = vsel %vm752_vm3, %v6656_v0, %v6742_v17  ;;  %v606_v53 = vadd.f32 %v590_v57, %v544_v56  ;;  %v707_v24 = vadd.f32 %v691_v59, %v601_v43  ;;  %v10996_v59 = vld [vmem:[#allocation22_spill] sm:$0xff] }
  0xf9   : > { %v708_v30 = vadd.f32 %v692_v12, %v602_v6  ;;  %v607_v36 = vadd.f32 %v591_v29, %v545_v19  ;;  %v608_v22 = vadd.f32 %v592_v58, %v546_v50  ;;  %v694_v49 = vsel %vm584_vm2, %v10990_v9, %v10993_v8  ;;  %v10997_v29 = vld [vmem:[#allocation47_spill] sm:$0xff]  ;;  %v10998_v23 = vld [vmem:[#allocation46_spill] sm:$0xff] }
  0xfa   : > { %1459 = vrot.lane.b32.xlu1 %v10991_v14, %s5598_s8  ;;  %1457 = vrot.lane.b32.xlu0 %v10992_v41, %s5598_s8  ;;  %v709_v55 = vadd.f32 %v693_v32, %v603_v13  ;;  %v695_v0 = vsel %vm584_vm2, %v10993_v8, %v10994_v52  ;;  %v696_v56 = vsel %vm584_vm2, %v10994_v52, %v10995_v63  ;;  %v965_v12 = vrot.slane %v6753_v40, 1  ;;  %v11000_v41 = vld [vmem:[#allocation24_spill] sm:$0xff] }
  0xfb   : > { %v769_v27 = vadd.f32 %v753_v15, %v707_v24  ;;  %v770_v35 = vadd.f32 %v754_v48, %v708_v30  ;;  %v755_v19 = vsel %vm752_vm3, %v6742_v17, %v6740_v46  ;;  %v756_v50 = vsel %vm752_vm3, %v6740_v46, %v6785_v5 }
  0xfc   : > { %v846_v43 = vpop.permute.xlu1 %845  ;;  %v844_v42 = vpop.permute.xlu0 %843  ;;  %v710_v51 = vadd.f32 %v694_v49, %v604_v21  ;;  %v711_v17 = vadd.f32 %v695_v0, %v605_v7  ;;  %v712_v13 = vadd.f32 %v696_v56, %v606_v53  ;;  %v697_v46 = vsel %vm584_vm2, %v10995_v63, %v10997_v29  ;;  %v11003_v0 = vld [vmem:[#allocation33_spill] sm:$0xff] }
  0xfd   : > { %v859_v25 = vsel %vm752_vm3, %v842_v20, %v844_v42  ;;  %v860_v61 = vsel %vm752_vm3, %v844_v42, %v846_v43  ;;  %v698_v58 = vsel %vm584_vm2, %v10997_v29, %v10998_v23  ;;  %v771_v9 = vadd.f32 %v755_v19, %v709_v55  ;;  %v10999_v20 = vld [vmem:[#allocation50_spill] sm:$0xff]  ;;  %v11006_v23 = vld [vmem:[#allocation8_spill] sm:$0xff] }
  0xfe   : > { %v875_v6 = vadd.f32 %v859_v25, %v769_v27  ;;  %v876_v57 = vadd.f32 %v860_v61, %v770_v35  ;;  %1463 = vrot.lane.b32.xlu1 %v10996_v59, %s5598_s8  ;;  %1461 = vrot.lane.b32.xlu0 %v6683_v26, %s5598_s8  ;;  %v772_v32 = vadd.f32 %v756_v50, %v710_v51  ;;  %v6929_v61 = vld [vmem:[%s5699_s13 + $0x90] sm:$0x1] }
  0xff   : > { %v757_v40 = vsel %vm752_vm3, %v6785_v5, %v6783_v18  ;;  %v758_v7 = vsel %vm752_vm3, %v6783_v18, %v6818_v34  ;;  %v966_v5 = vrot.slane %v6757_v31, 1  ;;  %v713_v49 = vadd.f32 %v697_v46, %v607_v36  ;;  %v11002_v18 = vld [vmem:[#allocation27_spill] sm:$0xff] }
 0x100   : > { %v909_v21 = vadd.f32 %v10999_v20, %v875_v6  ;;  %v910_v15 = vadd.f32 %v6662_v28, %v876_v57  ;;  %v850_v48 = vpop.permute.xlu1 %849  ;;  %v848_v26 = vpop.permute.xlu0 %847  ;;  %v11001_v28 = vld [vmem:[#allocation26_spill] sm:$0xff]  ;;  %v714_v55 = vadd.f32 %v698_v58, %v608_v22  ;;  %v933_v63 = vmul.f32 %v11003_v0, %v6302_v60  ;;  %v11012_v0 = vld [vmem:[#allocation52_spill] sm:$0xff] }
 0x101   : > { %v861_v53 = vsel %vm752_vm3, %v846_v43, %v848_v26  ;;  %v862_v24 = vsel %vm752_vm3, %v848_v26, %v850_v48  ;;  %v773_v56 = vadd.f32 %v757_v40, %v711_v17  ;;  %v774_v27 = vadd.f32 %v758_v7, %v712_v13  ;;  %v11008_v26 = vld [vmem:[#allocation54_spill] sm:$0xff]  ;;  %v6967_v7 = vld [vmem:[%s5699_s13 + $0xa0] sm:$0x1] }
 0x102   : > { %v877_v30 = vadd.f32 %v861_v53, %v771_v9  ;;  %v878_v14 = vadd.f32 %v862_v24, %v772_v32  ;;  %1467 = vrot.lane.b32.xlu1 %v11000_v41, %s5598_s8  ;;  %1465 = vrot.lane.b32.xlu0 %v6718_v33, %s5598_s8  ;;  %v6904_v8 = vadd.f32 %v11001_v28, %v909_v21  ;;  %v972_v6 = vrot.slane %v933_v63, 1  ;;  %v11007_v32 = vld [vmem:[#allocation31_spill] sm:$0xff]  ;;  %v6970_v53 = vld [vmem:[%s5699_s13 + $0x98] sm:$0x1]  ;;  %v11010_v28 = vld [vmem:[#allocation32_spill] sm:$0xff] }
 0x103   : > { %v6908_v52 = vadd.f32 %v11002_v18, %v910_v15  ;;  %v759_v31 = vsel %vm752_vm3, %v6818_v34, %v6816_v11  ;;  %v760_v36 = vsel %vm752_vm3, %v6816_v11, %v751_v39  ;;  %v11005_v34 = vld [vmem:[#allocation30_spill] sm:$0xff]  ;;  %v967_v11 = vsel %vm336_vm0, %v965_v12, %v966_v5  ;;  %v6989_v18 = vld [vmem:[%s5699_s13 + $0x88] sm:$0xff] }
 0x104   : > { %v911_v35 = vadd.f32 %v6666_v3, %v877_v30  ;;  %v912_v33 = vadd.f32 %v6670_v10, %v878_v14  ;;  %v854_v43 = vpop.permute.xlu1 %853  ;;  %v852_v42 = vpop.permute.xlu0 %851  ;;  %v11004_v3 = vld [vmem:[#allocation28_spill] sm:$0xff]  ;;  %v971_v39 = vrot.slane %v6767_v62, 1  ;;  %v775_v57 = vadd.f32 %v759_v31, %v713_v49  ;;  %v11014_v31 = vld [vmem:[#allocation55_spill] sm:$0xff] }
 0x105   : > { %v863_v22 = vsel %vm752_vm3, %v850_v48, %v852_v42  ;;  %v864_v19 = vsel %vm752_vm3, %v852_v42, %v854_v43  ;;  %v1733_v12 = vmul.f32 %v6645_v47, %v11006_v23  ;;  %v1742_v62 = vmul.f32 %v6929_v61, %v11006_v23  ;;  %v11009_v14 = vld [vmem:[#allocation56_spill] sm:$0xff] }
 0x106   : > { %v879_v50 = vadd.f32 %v863_v22, %v773_v56  ;;  %v880_v25 = vadd.f32 %v864_v19, %v774_v27  ;;  %1693 = vrot.lane.b32.xlu1 %v6691_v38, %s5596_s15  ;;  %1691 = vrot.lane.b32.xlu0 %v6695_v16, %s5596_s15  ;;  %v6926_v10 = vadd.f32 %v11004_v3, %v911_v35  ;;  %v11015_v19 = vld [vmem:[#allocation51_spill] sm:$0xff] }
 0x107   : > { %v6932_v51 = vadd.f32 %v11005_v34, %v912_v33  ;;  %v776_v38 = vadd.f32 %v760_v36, %v714_v55  ;;  %v973_v15 = vsel %vm336_vm0, %v971_v39, %v972_v6  ;;  %v1770_v41 = vrot.slane %v1742_v62, 1  ;;  %v6986_v55 = vld [vmem:[%s5699_s13 + $0xb0] sm:$0x1]  ;;  %v7000_v33 = vld [vmem:[%s5699_s13 + $0xa8] sm:$0x1] }
 0x108   : > { %v913_v59 = vadd.f32 %v6674_v4, %v879_v50  ;;  %v914_v16 = vadd.f32 %v6687_v54, %v880_v25  ;;  %v858_v17 = vpop.permute.xlu1 %857  ;;  %v856_v13 = vpop.permute.xlu0 %855  ;;  %v6949_v4 = vld [vmem:[%s5699_s13 + $0x80] sm:$0xff]  ;;  %v6952_v54 = vld [vmem:[%s5699_s13 + $0x78] sm:$0xff]  ;;  %v1735_v63 = vmul.f32 %v11012_v0, %v11006_v23  ;;  %v1744_v56 = vmul.f32 %v6967_v7, %v11006_v23 }
 0x109   : > { %v865_v29 = vsel %vm752_vm3, %v854_v43, %v856_v13  ;;  %v866_v46 = vsel %vm752_vm3, %v856_v13, %v858_v17  ;;  %v1680_v24 = vmul.f32 %v6949_v4, %v5707_v2  ;;  %v1679_v30 = vmul.f32 %v6952_v54, %v5707_v2 }
 0x10a   : > { %v881_v58 = vadd.f32 %v865_v29, %v775_v57  ;;  %v882_v9 = vadd.f32 %v866_v46, %v776_v38  ;;  %1697 = vrot.lane.b32.xlu1 %v6709_v44, %s5596_s15  ;;  %1695 = vrot.lane.b32.xlu0 %v6722_v45, %s5596_s15  ;;  %v6955_v20 = vadd.f32 %v11007_v32, %v913_v59  ;;  %v1775_v39 = vrot.slane %v1735_v63, 1  ;;  %v7023_v59 = vld [vmem:[%s5699_s13 + $0xb8] sm:$0x1] }
 0x10b   : > { %v6957_v21 = vadd.f32 %v967_v11, %v914_v16  ;;  %v1743_v35 = vmul.f32 %v6970_v53, %v11006_v23  ;;  %v1737_v36 = vmul.f32 %v11014_v31, %v11006_v23  ;;  %v1746_v22 = vmul.f32 %v6986_v55, %v11006_v23  ;;  %v7020_v11 = vld [vmem:[%s5699_s13 + $0xc0] sm:$0x1] }
 0x10c   : > { %v915_v48 = vadd.f32 %v6701_v37, %v881_v58  ;;  %v916_v44 = vadd.f32 %v11008_v26, %v882_v9  ;;  %v6962_v40 = vpop.permute.xlu1 %1013  ;;  %v6964_v45 = vpop.permute.xlu0 %1011  ;;  %v1769_v37 = vrot.slane %v1733_v12, 1  ;;  %v1736_v50 = vmul.f32 %v11015_v19, %v11006_v23  ;;  %v11016_v9 = vld [vmem:[#allocation53_spill] sm:$0xff] }
 0x10d   : > { %v1681_v3 = vmul.f32 %v6989_v18, %v5707_v2  ;;  %v1745_v34 = vmul.f32 %v7000_v33, %v11006_v23  ;;  %v1776_v6 = vrot.slane %v1744_v56, 1  ;;  %v1773_v38 = vrot.slane %v1743_v35, 1 }
 0x10e   : > { %1701 = vrot.lane.b32.xlu1 %v11009_v14, %s5596_s15  ;;  %1699 = vrot.lane.b32.xlu0 %v6749_v1, %s5596_s15  ;;  %v6981_v5 = vadd.f32 %v11010_v28, %v915_v48  ;;  %v6983_v49 = vadd.f32 %v973_v15, %v916_v44  ;;  %v11013_v1 = vld [vmem:[#allocation49_spill] sm:$0xff]  ;;  %v1771_v25 = vsel %vm336_vm0, %v1769_v37, %v1770_v41  ;;  %v1781_v13 = vrot.slane %v1737_v36, 1  ;;  %v7049_v14 = vld [vmem:[%s5699_s13 + $0xc8] sm:$0x1] }
 0x10f   : > { %v1734_v27 = vmul.f32 %v11013_v1, %v11006_v23  ;;  %v1782_v29 = vrot.slane %v1746_v22, 1  ;;  %v1778_v46 = vrot.slane %v1736_v50, 1  ;;  %v1739_v12 = vmul.f32 %v6952_v54, %v11006_v23 }
 0x110   : > { %11011 = vst [vmem:[#allocation17_spill] sm:$0xff] %v6983_v49  ;;  %v7002_v43 = vpop.permute.xlu1 %1017  ;;  %v7004_v42 = vpop.permute.xlu0 %1015  ;;  %v1779_v62 = vrot.slane %v1745_v34, 1  ;;  %v1748_v58 = vmul.f32 %v7020_v11, %v11006_v23  ;;  %v1738_v32 = vmul.f32 %v11016_v9, %v11006_v23  ;;  %v1747_v15 = vmul.f32 %v7023_v59, %v11006_v23 }
 0x111   : > { %v1772_v57 = vrot.slane %v1734_v27, 1  ;;  %v1777_v48 = vsel %vm336_vm0, %v1775_v39, %v1776_v6  ;;  %v1783_v37 = vsel %vm336_vm0, %v1781_v13, %v1782_v29  ;;  %v1787_v41 = vrot.slane %v1739_v12, 1 }
 0x112   : > { %1705 = vrot.lane.b32.xlu1 %v1680_v24, %s5596_s15  ;;  %1703 = vrot.lane.b32.xlu0 %v1679_v30, %s5596_s15  ;;  %v7046_v30 = vld [vmem:[%s5699_s13 + $0xd0] sm:$0x1]  ;;  %v1780_v28 = vsel %vm336_vm0, %v1778_v46, %v1779_v62  ;;  %v1788_v63 = vrot.slane %v1748_v58, 1  ;;  %v1784_v56 = vrot.slane %v1738_v32, 1  ;;  %v1785_v27 = vrot.slane %v1747_v15, 1 }
 0x113   : > { %v1774_v26 = vsel %vm336_vm0, %v1772_v57, %v1773_v38  ;;  %v1741_v35 = vmul.f32 %v6989_v18, %v11006_v23  ;;  %v1750_v36 = vmul.f32 %v7046_v30, %v11006_v23  ;;  %v1740_v22 = vmul.f32 %v6949_v4, %v11006_v23  ;;  %v11018_v15 = vld [vmem:[#allocation9_spill] sm:$0xff] }
 0x114   : > { %v7025_v16 = vpop.permute.xlu1 %1021  ;;  %v7027_v17 = vpop.permute.xlu0 %1019  ;;  %v1749_v50 = vmul.f32 %v7049_v14, %v11006_v23  ;;  %v1789_v34 = vsel %vm336_vm0, %v1787_v41, %v1788_v63  ;;  %v1786_v39 = vsel %vm336_vm0, %v1784_v56, %v1785_v27  ;;  %v1840_v63 = vmul.f32 %v11012_v0, %v11018_v15 }
 0x115   : > { %v1793_v6 = vrot.slane %v1741_v35, 1  ;;  %v1794_v57 = vrot.slane %v1750_v36, 1  ;;  %v1790_v38 = vrot.slane %v1740_v22, 1  ;;  %v1843_v35 = vmul.f32 %v11016_v9, %v11018_v15  ;;  %v11023_v22 = vld [vmem:[#allocation10_spill] sm:$0xff] }
 0x116   : > { %1796 = vrot.lane.b32.xlu1 %v1771_v25, %s5596_s15  ;;  %1707 = vrot.lane.b32.xlu0 %v1681_v3, %s5596_s15  ;;  %v1791_v13 = vrot.slane %v1749_v50, 1  ;;  %v1842_v36 = vmul.f32 %v11014_v31, %v11018_v15  ;;  %v1898_v50 = vmul.f32 %v6645_v47, %v11023_v22  ;;  %v1910_v23 = vmul.f32 %v7000_v33, %v11023_v22 }
 0x117   : > { %v1795_v12 = vsel %vm336_vm0, %v1793_v6, %v1794_v57  ;;  %v1845_v57 = vmul.f32 %v6949_v4, %v11018_v15  ;;  %v1846_v2 = vmul.f32 %v6989_v18, %v11018_v15 }
 0x118   : > { %v7041_v44 = vpop.permute.xlu1 %1025  ;;  %v7043_v24 = vpop.permute.xlu0 %1023  ;;  %v1792_v62 = vsel %vm336_vm0, %v1790_v38, %v1791_v13  ;;  %v1844_v38 = vmul.f32 %v6952_v54, %v11018_v15  ;;  %v1934_v13 = vrot.slane %v1898_v50, 1  ;;  %v1911_v50 = vmul.f32 %v6986_v55, %v11023_v22 }
 0x11a   : > { %1800 = vrot.lane.b32.xlu1 %v1777_v48, %s5596_s15  ;;  %1798 = vrot.lane.b32.xlu0 %v1774_v26, %s5596_s15  ;;  %v1839_v48 = vmul.f32 %v11013_v1, %v11018_v15  ;;  %v1838_v26 = vmul.f32 %v6645_v47, %v11018_v15 }
 0x11c   : > { %v7063_v25 = vpop.permute.xlu1 %1117  ;;  %v7065_v3 = vpop.permute.xlu0 %1027 }
 0x11e   : > { %1804 = vrot.lane.b32.xlu1 %v1783_v37, %s5596_s15  ;;  %1802 = vrot.lane.b32.xlu0 %v1780_v28, %s5596_s15  ;;  %v1841_v28 = vmul.f32 %v11015_v19, %v11018_v15  ;;  %v11032_v15 = vld [vmem:[#allocation11_spill] sm:$0xff] }
 0x120   : > { %v7071_v29 = vpop.permute.xlu1 %1121  ;;  %v7073_v46 = vpop.permute.xlu0 %1119 }
 0x122   : > { %1808 = vrot.lane.b32.xlu1 %v1789_v34, %s5596_s15  ;;  %1806 = vrot.lane.b32.xlu0 %v1786_v39, %s5596_s15  ;;  %v1907_v34 = vmul.f32 %v6929_v61, %v11023_v22 }
 0x124   : > { %v7079_v58 = vpop.permute.xlu1 %1125  ;;  %v7081_v32 = vpop.permute.xlu0 %1123 }
 0x125   : > { %11017 = vst [vmem:[#allocation14_spill] sm:$0xff] %v7079_v58  ;;  %v1944_v58 = vrot.slane %v1910_v23, 1 }
 0x126   : > { %1812 = vrot.lane.b32.xlu1 %v1795_v12, %s5596_s15  ;;  %1810 = vrot.lane.b32.xlu0 %v1792_v62, %s5596_s15  ;;  %v1935_v12 = vrot.slane %v1907_v34, 1  ;;  %v1900_v62 = vmul.f32 %v11012_v0, %v11023_v22  ;;  %v1901_v34 = vmul.f32 %v11015_v19, %v11023_v22 }
 0x128   : > { %v7089_v37 = vpop.permute.xlu1 %1129  ;;  %v7091_v41 = vpop.permute.xlu0 %1127  ;;  %v1936_v60 = vsel %vm336_vm0, %v1934_v13, %v1935_v12  ;;  %v1903_v13 = vmul.f32 %v11016_v9, %v11023_v22  ;;  %v1912_v12 = vmul.f32 %v7023_v59, %v11023_v22 }
 0x129   : > { %11019 = vst [vmem:[#allocation36_spill] sm:$0xff] %v7089_v37  ;;  %11020 = vst [vmem:[#allocation37_spill] sm:$0xff] %v7091_v41  ;;  %v1947_v37 = vrot.slane %v1911_v50, 1  ;;  %v1943_v41 = vrot.slane %v1901_v34, 1 }
 0x12a   : > { %1858 = vrot.lane.b32.xlu1 %v1839_v48, %s5597_s30  ;;  %1856 = vrot.lane.b32.xlu0 %v1838_v26, %s5597_s30  ;;  %v1909_v48 = vmul.f32 %v6967_v7, %v11023_v22  ;;  %v1899_v26 = vmul.f32 %v11013_v1, %v11023_v22  ;;  %v1949_v50 = vrot.slane %v1903_v13, 1  ;;  %v1950_v34 = vrot.slane %v1912_v12, 1 }
 0x12c   : > { %v7099_v56 = vpop.permute.xlu1 %1133  ;;  %v7101_v27 = vpop.permute.xlu0 %1131 }
 0x12d   : > { %11021 = vst [vmem:[#allocation39_spill] sm:$0xff] %v7099_v56  ;;  %11022 = vst [vmem:[#allocation38_spill] sm:$0xff] %v7101_v27 }
 0x12e   : > { %1862 = vrot.lane.b32.xlu1 %v1841_v28, %s5597_s30  ;;  %1860 = vrot.lane.b32.xlu0 %v1840_v63, %s5597_s30  ;;  %v1908_v28 = vmul.f32 %v6970_v53, %v11023_v22 }
 0x130   : > { %v7113_v39 = vpop.permute.xlu1 %1180  ;;  %v7115_v6 = vpop.permute.xlu0 %1178 }
 0x131   : > { %11024 = vst [vmem:[#allocation18_spill] sm:$0xff] %v7113_v39  ;;  %11025 = vst [vmem:[#allocation19_spill] sm:$0xff] %v7115_v6  ;;  %v1937_v6 = vrot.slane %v1899_v26, 1  ;;  %v1938_v39 = vrot.slane %v1908_v28, 1 }
 0x132   : > { %1866 = vrot.lane.b32.xlu1 %v1843_v35, %s5597_s30  ;;  %1864 = vrot.lane.b32.xlu0 %v1842_v36, %s5597_s30  ;;  %v1902_v36 = vmul.f32 %v11014_v31, %v11023_v22 }
 0x133   : > { %v1939_v23 = vsel %vm336_vm0, %v1937_v6, %v1938_v39  ;;  %v1915_v39 = vmul.f32 %v7046_v30, %v11023_v22  ;;  %v1905_v6 = vmul.f32 %v6949_v4, %v11023_v22 }
 0x134   : > { %v7131_v63 = vpop.permute.xlu1 %1184  ;;  %v7133_v35 = vpop.permute.xlu0 %1182  ;;  %v1946_v27 = vrot.slane %v1902_v36, 1 }
 0x135   : > { %11026 = vst [vmem:[#allocation40_spill] sm:$0xff] %v7131_v63  ;;  %11027 = vst [vmem:[#allocation43_spill] sm:$0xff] %v7133_v35  ;;  %v1940_v63 = vrot.slane %v1900_v62, 1  ;;  %v1941_v35 = vrot.slane %v1909_v48, 1  ;;  %v1955_v13 = vrot.slane %v1905_v6, 1 }
 0x136   : > { %1870 = vrot.lane.b32.xlu1 %v1845_v57, %s5597_s30  ;;  %1868 = vrot.lane.b32.xlu0 %v1844_v38, %s5597_s30  ;;  %v1904_v57 = vmul.f32 %v6952_v54, %v11023_v22  ;;  %v1913_v38 = vmul.f32 %v7020_v11, %v11023_v22 }
 0x137   : > { %v1942_v62 = vsel %vm336_vm0, %v1940_v63, %v1941_v35  ;;  %v1906_v63 = vmul.f32 %v6989_v18, %v11023_v22  ;;  %v1951_v35 = vsel %vm336_vm0, %v1949_v50, %v1950_v34  ;;  %v11035_v34 = vld [vmem:[#allocation15_spill] sm:$0xff] }
 0x138   : > { %v7148_v49 = vpop.permute.xlu1 %1188  ;;  %v7150_v56 = vpop.permute.xlu0 %1186  ;;  %v1952_v28 = vrot.slane %v1904_v57, 1  ;;  %v1953_v36 = vrot.slane %v1913_v38, 1  ;;  %v1959_v38 = vrot.slane %v1915_v39, 1  ;;  %v2003_v39 = vmul.f32 %v6645_v47, %v11035_v34 }
 0x139   : > { %v1958_v57 = vrot.slane %v1906_v63, 1  ;;  %v2004_v63 = vmul.f32 %v11013_v1, %v11035_v34  ;;  %v2006_v6 = vmul.f32 %v11015_v19, %v11035_v34 }
 0x13a   : > { %1961 = vrot.lane.b32.xlu1 %v1936_v60, %s5597_s30  ;;  %1872 = vrot.lane.b32.xlu0 %v1846_v2, %s5597_s30  ;;  %v1948_v60 = vsel %vm336_vm0, %v1946_v27, %v1947_v37  ;;  %v1945_v2 = vsel %vm336_vm0, %v1943_v41, %v1944_v58  ;;  %v1914_v58 = vmul.f32 %v7049_v14, %v11023_v22 }
 0x13b   : > { %v1954_v27 = vsel %vm336_vm0, %v1952_v28, %v1953_v36  ;;  %v2063_v28 = vmul.f32 %v6645_v47, %v11032_v15  ;;  %v2067_v22 = vmul.f32 %v11014_v31, %v11032_v15 }
 0x13c   : > { %v7164_v48 = vpop.permute.xlu1 %1192  ;;  %v7166_v26 = vpop.permute.xlu0 %1190  ;;  %v1956_v12 = vrot.slane %v1914_v58, 1  ;;  %v2005_v58 = vmul.f32 %v11012_v0, %v11035_v34 }
 0x13d   : > { %11028 = vst [vmem:[#allocation20_spill] sm:$0xff] %v7164_v48  ;;  %11029 = vst [vmem:[#allocation21_spill] sm:$0xff] %v7166_v26  ;;  %v2099_v47 = vrot.slane %v2063_v28, 1  ;;  %v2076_v28 = vmul.f32 %v6986_v55, %v11032_v15  ;;  %v2068_v55 = vmul.f32 %v11016_v9, %v11032_v15 }
 0x13e   : > { %1965 = vrot.lane.b32.xlu1 %v1942_v62, %s5597_s30  ;;  %1963 = vrot.lane.b32.xlu0 %v1939_v23, %s5597_s30 }
 0x140   : > { %v7180_v37 = vpop.permute.xlu1 %1284  ;;  %v7182_v41 = vpop.permute.xlu0 %1194 }
 0x141   : > { %11030 = vst [vmem:[#allocation42_spill] sm:$0xff] %v7182_v41  ;;  %v2112_v41 = vrot.slane %v2076_v28, 1 }
 0x142   : > { %1969 = vrot.lane.b32.xlu1 %v1948_v60, %s5597_s30  ;;  %1967 = vrot.lane.b32.xlu0 %v1945_v2, %s5597_s30  ;;  %v1960_v60 = vsel %vm336_vm0, %v1958_v57, %v1959_v38  ;;  %v1957_v2 = vsel %vm336_vm0, %v1955_v13, %v1956_v12  ;;  %v2007_v57 = vmul.f32 %v11014_v31, %v11035_v34 }
 0x143   : > { %v2065_v38 = vmul.f32 %v11012_v0, %v11032_v15  ;;  %v2066_v0 = vmul.f32 %v11015_v19, %v11032_v15  ;;  %v2077_v31 = vmul.f32 %v7023_v59, %v11032_v15  ;;  %v2080_v19 = vmul.f32 %v7046_v30, %v11032_v15 }
 0x144   : > { %v7188_v62 = vpop.permute.xlu1 %1288  ;;  %v7190_v23 = vpop.permute.xlu0 %1286 }
 0x145   : > { %11031 = vst [vmem:[#allocation45_spill] sm:$0xff] %v7188_v62  ;;  %v2108_v48 = vrot.slane %v2066_v0, 1 }
 0x146   : > { %1973 = vrot.lane.b32.xlu1 %v1954_v27, %s5597_s30  ;;  %1971 = vrot.lane.b32.xlu0 %v1951_v35, %s5597_s30  ;;  %v2072_v27 = vmul.f32 %v6929_v61, %v11032_v15  ;;  %v2008_v35 = vmul.f32 %v11016_v9, %v11035_v34  ;;  %v2064_v61 = vmul.f32 %v11013_v1, %v11032_v15  ;;  %v2105_v9 = vrot.slane %v2065_v38, 1 }
 0x147   : > { %v2078_v1 = vmul.f32 %v7020_v11, %v11032_v15 }
 0x148   : > { %v7198_v36 = vpop.permute.xlu1 %1292  ;;  %v7200_v50 = vpop.permute.xlu0 %1290 }
 0x149   : > { %11033 = vst [vmem:[#allocation44_spill] sm:$0xff] %v7198_v36  ;;  %11034 = vst [vmem:[#allocation22_spill] sm:$0xff] %v7200_v50  ;;  %v2102_v36 = vrot.slane %v2064_v61, 1  ;;  %v2111_v50 = vrot.slane %v2067_v22, 1  ;;  %v2118_v62 = vrot.slane %v2078_v1, 1 }
 0x14a   : > { %1977 = vrot.lane.b32.xlu1 %v1960_v60, %s5597_s30  ;;  %1975 = vrot.lane.b32.xlu0 %v1957_v2, %s5597_s30  ;;  %v2074_v60 = vmul.f32 %v6967_v7, %v11032_v15  ;;  %v2073_v2 = vmul.f32 %v6970_v53, %v11032_v15  ;;  %v2069_v7 = vmul.f32 %v6952_v54, %v11032_v15  ;;  %v2100_v53 = vrot.slane %v2072_v27, 1 }
 0x14b   : > { %v7283_v1 = vsel %vm336_vm0, %v2111_v50, %v2112_v41  ;;  %v1029_v41 = vsel %vm416_vm1, %v6964_v45, %v6962_v40  ;;  %v1032_v45 = vsel %vm416_vm1, %v7002_v43, %v7027_v17 }
 0x14c   : > { %v7220_v13 = vpop.permute.xlu1 %1296  ;;  %v7222_v12 = vpop.permute.xlu0 %1294  ;;  %v2103_v59 = vrot.slane %v2073_v2, 1  ;;  %v2117_v30 = vrot.slane %v2069_v7, 1  ;;  %v7273_v2 = vld [vmem:[%s5699_s13 + $0x170] sm:$0xff]  ;;  %v2101_v28 = vsel %vm336_vm0, %v2099_v47, %v2100_v53 }
 0x14d   : > { %11036 = vst [vmem:[#allocation47_spill] sm:$0xff] %v7220_v13  ;;  %11037 = vst [vmem:[#allocation46_spill] sm:$0xff] %v7222_v12  ;;  %v2075_v13 = vmul.f32 %v7000_v33, %v11032_v15  ;;  %v2071_v33 = vmul.f32 %v6989_v18, %v11032_v15  ;;  %v2106_v12 = vrot.slane %v2074_v60, 1 }
 0x14e   : > { %2023 = vrot.lane.b32.xlu1 %v2004_v63, %s5598_s8  ;;  %2021 = vrot.lane.b32.xlu0 %v2003_v39, %s5598_s8  ;;  %v2070_v63 = vmul.f32 %v6949_v4, %v11032_v15  ;;  %v2079_v39 = vmul.f32 %v7049_v14, %v11032_v15  ;;  %v2114_v14 = vrot.slane %v2068_v55, 1  ;;  %v2115_v15 = vrot.slane %v2077_v31, 1 }
 0x14f   : > { %v2109_v26 = vrot.slane %v2075_v13, 1  ;;  %v2011_v13 = vmul.f32 %v6989_v18, %v11035_v34  ;;  %v7277_v0 = vsel %vm336_vm0, %v2105_v9, %v2106_v12  ;;  %v7280_v7 = vsel %vm336_vm0, %v2102_v36, %v2103_v59  ;;  %v7300_v36 = vld [vmem:[%s5699_s13 + $0x180] sm:$0xff]  ;;  %v7303_v12 = vld [vmem:[%s5699_s13 + $0x178] sm:$0xff] }
 0x150   : > { %v7256_v27 = vpop.permute.xlu1 %1300  ;;  %v7258_v11 = vpop.permute.xlu0 %1298  ;;  %v2120_v38 = vrot.slane %v2070_v63, 1  ;;  %v2121_v60 = vrot.slane %v2079_v39, 1  ;;  %v7294_v18 = vsel %vm336_vm0, %v2117_v30, %v2118_v62  ;;  %v7297_v47 = vsel %vm336_vm0, %v2114_v14, %v2115_v15  ;;  %v11044_v30 = vld [vmem:[#allocation36_spill] sm:$0xff]  ;;  %v11045_v14 = vld [vmem:[#allocation38_spill] sm:$0xff] }
 0x151   : > { %11038 = vst [vmem:[#allocation50_spill] sm:$0xff] %v7256_v27  ;;  %11039 = vst [vmem:[#allocation24_spill] sm:$0xff] %v7258_v11  ;;  %v2123_v27 = vrot.slane %v2071_v33, 1  ;;  %v2124_v11 = vrot.slane %v2080_v19, 1  ;;  %v1030_v15 = vsel %vm416_vm1, %v6962_v40, %v7004_v42  ;;  %v1034_v40 = vsel %vm416_vm1, %v7025_v16, %v7043_v24 }
 0x152   : > { %2027 = vrot.lane.b32.xlu1 %v2006_v6, %s5598_s8  ;;  %2025 = vrot.lane.b32.xlu0 %v2005_v58, %s5598_s8  ;;  %v2010_v6 = vmul.f32 %v6949_v4, %v11035_v34  ;;  %v2009_v58 = vmul.f32 %v6952_v54, %v11035_v34  ;;  %v7286_v4 = vld [vmem:[%s5699_s13 + $0x168] sm:$0xff]  ;;  %v7291_v54 = vsel %vm336_vm0, %v2108_v48, %v2109_v26  ;;  %v11040_v26 = vld [vmem:[#allocation23_spill] sm:$0xff] }
 0x153   : > { %v7309_v50 = vsel %vm336_vm0, %v2123_v27, %v2124_v11  ;;  %v7312_v48 = vsel %vm336_vm0, %v2120_v38, %v2121_v60  ;;  %v7316_v62 = vmul.f32 %v7273_v2, %v11040_v26  ;;  %v7339_v31 = vmul.f32 %v7286_v4, %v11040_v26  ;;  %v11046_v38 = vld [vmem:[#allocation39_spill] sm:$0xff] }
 0x154   : > { %v7262_v61 = vpop.permute.xlu1 %1347  ;;  %v7264_v22 = vpop.permute.xlu0 %1345  ;;  %v1035_v33 = vsel %vm416_vm1, %v7043_v24, %v7041_v44  ;;  %v1046_v63 = vadd.f32 %v1030_v15, %v6908_v52  ;;  %v1048_v27 = vadd.f32 %v1032_v45, %v6932_v51  ;;  %v1050_v11 = vadd.f32 %v1034_v40, %v6957_v21  ;;  %v11042_v21 = vld [vmem:[#allocation14_spill] sm:$0xff]  ;;  %v11049_v15 = vld [vmem:[#allocation19_spill] sm:$0xff] }
 0x155   : > { %v1036_v24 = vsel %vm416_vm1, %v7041_v44, %v7065_v3  ;;  %v1135_v9 = vsel %vm416_vm1, %v7063_v25, %v7073_v46  ;;  %v1136_v52 = vsel %vm416_vm1, %v7073_v46, %v7071_v29  ;;  %v1051_v51 = vadd.f32 %v1035_v33, %v6981_v5  ;;  %v11043_v3 = vld [vmem:[#allocation37_spill] sm:$0xff]  ;;  %v11050_v40 = vld [vmem:[#allocation43_spill] sm:$0xff] }
 0x156   : > { %2031 = vrot.lane.b32.xlu1 %v2008_v35, %s5598_s8  ;;  %2029 = vrot.lane.b32.xlu0 %v2007_v57, %s5598_s8  ;;  %v1031_v35 = vsel %vm416_vm1, %v7004_v42, %v7002_v43  ;;  %v1033_v57 = vsel %vm416_vm1, %v7027_v17, %v7025_v16  ;;  %v7343_v42 = vmul.f32 %v7300_v36, %v11040_v26  ;;  %v11041_v16 = vld [vmem:[#allocation29_spill] sm:$0xff] }
 0x157   : > { %v7347_v43 = vmul.f32 %v7303_v12, %v11040_v26  ;;  %v1045_v17 = vadd.f32 %v1029_v41, %v6904_v8  ;;  %v7357_v19 = vmul.f32 %v7286_v4, %v11041_v16  ;;  %v1047_v39 = vadd.f32 %v1031_v35, %v6926_v10  ;;  %v11048_v41 = vld [vmem:[#allocation18_spill] sm:$0xff] }
 0x158   : > { %v7330_v53 = vpop.permute.xlu1 %1351  ;;  %v7332_v55 = vpop.permute.xlu0 %1349  ;;  %v1049_v8 = vadd.f32 %v1033_v57, %v6955_v20  ;;  %v1137_v20 = vsel %vm416_vm1, %v7071_v29, %v7081_v32  ;;  %v1138_v44 = vsel %vm416_vm1, %v7081_v32, %v11042_v21  ;;  %v1139_v25 = vsel %vm416_vm1, %v11042_v21, %v11043_v3  ;;  %v11047_v32 = vld [vmem:[#allocation17_spill] sm:$0xff]  ;;  %v11051_v21 = vld [vmem:[#allocation40_spill] sm:$0xff] }
 0x159   : > { %v1140_v46 = vsel %vm416_vm1, %v11043_v3, %v11044_v30  ;;  %v1141_v5 = vsel %vm416_vm1, %v11044_v30, %v11045_v14  ;;  %v1142_v29 = vsel %vm416_vm1, %v11045_v14, %v11046_v38  ;;  %v1052_v60 = vadd.f32 %v1036_v24, %v11047_v32  ;;  %v11055_v30 = vld [vmem:[#allocation42_spill] sm:$0xff] }
 0x15a   : > { %2035 = vrot.lane.b32.xlu1 %v2010_v6, %s5598_s8  ;;  %2033 = vrot.lane.b32.xlu0 %v2009_v58, %s5598_s8  ;;  %v1151_v6 = vadd.f32 %v1135_v9, %v1045_v17  ;;  %v1152_v58 = vadd.f32 %v1136_v52, %v1046_v63  ;;  %v1196_v35 = vsel %vm584_vm2, %v11049_v15, %v11048_v41  ;;  %v11056_v14 = vld [vmem:[#allocation22_spill] sm:$0xff]  ;;  %v7460_v15 = vstv %s7398_s6 }
 0x15b   : > { %v1153_v45 = vadd.f32 %v1137_v20, %v1047_v39  ;;  %v1154_v57 = vadd.f32 %v1138_v44, %v1048_v27  ;;  %v1197_v33 = vsel %vm584_vm2, %v11048_v41, %v11050_v40  ;;  %v1155_v17 = vadd.f32 %v1139_v25, %v1049_v8  ;;  %v11052_v20 = vld [vmem:[#allocation45_spill] sm:$0xff]  ;;  %11058 = vst [vmem:[#allocation26_spill] sm:$0xff] %v7460_v15 }
 0x15c   : > { %v7373_v59 = vpop.permute.xlu1 %1355  ;;  %v7375_v10 = vpop.permute.xlu0 %1353  ;;  %v1156_v63 = vadd.f32 %v1140_v46, %v1050_v11  ;;  %v1157_v24 = vadd.f32 %v1141_v5, %v1051_v51  ;;  %v1158_v9 = vadd.f32 %v1142_v29, %v1052_v60  ;;  %v1212_v52 = vadd.f32 %v1196_v35, %v1151_v6  ;;  %v11053_v25 = vld [vmem:[#allocation21_spill] sm:$0xff] }
 0x15d   : > { %v1199_v39 = vsel %vm584_vm2, %v11051_v21, %v7150_v56  ;;  %v1200_v27 = vsel %vm584_vm2, %v7150_v56, %v7148_v49  ;;  %v1213_v8 = vadd.f32 %v1197_v33, %v1152_v58  ;;  %v1302_v51 = vsel %vm584_vm2, %v7180_v37, %v7190_v23  ;;  %v11057_v58 = vld [vmem:[#allocation44_spill] sm:$0xff] }
 0x15e   : > { %2126 = vrot.lane.b32.xlu1 %v2101_v28, %s5598_s8  ;;  %2037 = vrot.lane.b32.xlu0 %v2011_v13, %s5598_s8  ;;  %v1198_v13 = vsel %vm584_vm2, %v11050_v40, %v11051_v21  ;;  %v1303_v44 = vsel %vm584_vm2, %v7190_v23, %v11052_v20  ;;  %v1201_v56 = vsel %vm584_vm2, %v7148_v49, %v11053_v25 }
 0x15f   : > { %v1214_v11 = vadd.f32 %v1198_v13, %v1153_v45  ;;  %v1304_v37 = vsel %vm584_vm2, %v11052_v20, %v11056_v14  ;;  %v1215_v23 = vadd.f32 %v1199_v39, %v1154_v57  ;;  %v1216_v29 = vadd.f32 %v1200_v27, %v1155_v17  ;;  %v11063_v20 = vld [vmem:[#allocation50_spill] sm:$0xff] }
 0x160   : > { %v7410_v28 = vpop.permute.xlu1 %1359  ;;  %v7412_v3 = vpop.permute.xlu0 %1357  ;;  %v1363_v49 = vsel %vm752_vm3, %v7264_v22, %v7262_v61  ;;  %v1364_v32 = vsel %vm752_vm3, %v7262_v61, %v7332_v55  ;;  %v1318_v60 = vadd.f32 %v1302_v51, %v1212_v52  ;;  %v1319_v6 = vadd.f32 %v1303_v44, %v1213_v8  ;;  %v11059_v61 = vld [vmem:[#allocation46_spill] sm:$0xff]  ;;  %v11060_v52 = vld [vmem:[#allocation47_spill] sm:$0xff] }
 0x161   : > { %v1305_v41 = vsel %vm584_vm2, %v11056_v14, %v11057_v58  ;;  %v1217_v22 = vadd.f32 %v1201_v56, %v1156_v63  ;;  %v1320_v57 = vadd.f32 %v1304_v37, %v1214_v11  ;;  %v1306_v40 = vsel %vm584_vm2, %v11057_v58, %v11059_v61 }
 0x162   : > { %2130 = vrot.lane.b32.xlu1 %v7277_v0, %s5598_s8  ;;  %2128 = vrot.lane.b32.xlu0 %v7280_v7, %s5598_s8  ;;  %v11054_v0 = vld [vmem:[#allocation20_spill] sm:$0xff]  ;;  %v1379_v33 = vadd.f32 %v1363_v49, %v1318_v60  ;;  %v1365_v21 = vsel %vm752_vm3, %v7332_v55, %v7330_v53  ;;  %v1366_v63 = vsel %vm752_vm3, %v7330_v53, %v7375_v10  ;;  %v7477_v27 = vstv %s7424_s9 }
 0x163   : > { %v1202_v7 = vsel %vm584_vm2, %v11053_v25, %v11054_v0  ;;  %v1203_v46 = vsel %vm584_vm2, %v11054_v0, %v11055_v30  ;;  %v1307_v39 = vsel %vm584_vm2, %v11059_v61, %v11060_v52  ;;  %11061 = vst [vmem:[#allocation27_spill] sm:$0xff] %v7477_v27  ;;  %v1322_v11 = vadd.f32 %v1306_v40, %v1216_v29  ;;  %v11062_v53 = vld [vmem:[#allocation24_spill] sm:$0xff] }
 0x164   : > { %v1452_v5 = vpop.permute.xlu1 %1451  ;;  %v7444_v38 = vpop.permute.xlu0 %1361  ;;  %v1218_v35 = vadd.f32 %v1202_v7, %v1157_v24  ;;  %v1219_v45 = vadd.f32 %v1203_v46, %v1158_v9  ;;  %v1308_v51 = vsel %vm584_vm2, %v11060_v52, %v11062_v53  ;;  %v1309_v44 = vsel %vm584_vm2, %v11062_v53, %v11063_v20 }
 0x165   : > { %v1381_v25 = vadd.f32 %v1365_v21, %v1320_v57  ;;  %v1367_v56 = vsel %vm752_vm3, %v7375_v10, %v7373_v59  ;;  %v1323_v46 = vadd.f32 %v1307_v39, %v1217_v22  ;;  %v1368_v14 = vsel %vm752_vm3, %v7373_v59, %v7412_v3  ;;  %v7531_v39 = vld [vmem:[%s5699_s13 + $0x188] sm:$0xff] }
 0x166   : > { %2134 = vrot.lane.b32.xlu1 %v7283_v1, %s5598_s8  ;;  %2132 = vrot.lane.b32.xlu0 %v7291_v54, %s5598_s8  ;;  %v1380_v1 = vadd.f32 %v1364_v32, %v1319_v6  ;;  %v1321_v54 = vadd.f32 %v1305_v41, %v1215_v23  ;;  %v1324_v32 = vadd.f32 %v1308_v51, %v1218_v35 }
 0x167   : > { %v1325_v60 = vadd.f32 %v1309_v44, %v1219_v45  ;;  %v1383_v6 = vadd.f32 %v1367_v56, %v1322_v11  ;;  %v1369_v59 = vsel %vm752_vm3, %v7412_v3, %v7410_v28  ;;  %v1384_v35 = vadd.f32 %v1368_v14, %v1323_v46  ;;  %v7543_v44 = vld [vmem:[%s5699_s13 + $0x1a0] sm:$0xff]  ;;  %v7558_v46 = vld [vmem:[%s5699_s13 + $0x198] sm:$0xff] }
 0x168   : > { %v1456_v13 = vpop.permute.xlu1 %1455  ;;  %v1454_v17 = vpop.permute.xlu0 %1453  ;;  %v1382_v0 = vadd.f32 %v1366_v63, %v1321_v54  ;;  %v1370_v45 = vsel %vm752_vm3, %v7410_v28, %v7444_v38  ;;  %v2278_v56 = vmul.f32 %v7531_v39, %v11040_v26 }
 0x169   : > { %v1469_v24 = vsel %vm752_vm3, %v1452_v5, %v1454_v17  ;;  %v1470_v9 = vsel %vm752_vm3, %v1454_v17, %v1456_v13  ;;  %v1385_v17 = vadd.f32 %v1369_v59, %v1324_v32  ;;  %v1386_v54 = vadd.f32 %v1370_v45, %v1325_v60  ;;  %v7585_v60 = vld [vmem:[%s5699_s13 + $0x1a8] sm:$0xff] }
 0x16a   : > { %v1485_v8 = vadd.f32 %v1469_v24, %v1379_v33  ;;  %v1486_v55 = vadd.f32 %v1470_v9, %v1380_v1  ;;  %2138 = vrot.lane.b32.xlu1 %v7294_v18, %s5598_s8  ;;  %2136 = vrot.lane.b32.xlu0 %v7297_v47, %s5598_s8  ;;  %v2280_v32 = vmul.f32 %v7558_v46, %v11040_v26 }
 0x16c   : > { %v1494_v18 = vmul.f32 %v7460_v15, %v1485_v8  ;;  %v1495_v7 = vmul.f32 %v7460_v15, %v1486_v55  ;;  %v1460_v47 = vpop.permute.xlu1 %1459  ;;  %v1458_v30 = vpop.permute.xlu0 %1457 }
 0x16d   : > { %v1471_v37 = vsel %vm752_vm3, %v1456_v13, %v1458_v30  ;;  %v1472_v5 = vsel %vm752_vm3, %v1458_v30, %v1460_v47  ;;  %v7523_v13 = vld [vmem:[%s5699_s13 + $0x190] sm:$0xff] }
 0x16e   : > { %v1503_v23 = vadd.f32 %v7477_v27, %v1494_v18  ;;  %v1504_v10 = vadd.f32 %v7477_v27, %v1495_v7  ;;  %v1487_v29 = vadd.f32 %v1471_v37, %v1381_v25  ;;  %v1488_v49 = vadd.f32 %v1472_v5, %v1382_v0  ;;  %2142 = vrot.lane.b32.xlu1 %v7309_v50, %s5598_s8  ;;  %v7511_v50 = vld [vmem:[%s5699_s13 + $0x1b0] sm:$0x1]  ;;  %v7566_v5 = vld [vmem:[%s5699_s13 + $0x1b8] sm:$0x1] }
 0x16f   : > { %2140 = vrot.lane.b32.xlu0 %v7312_v48, %s5598_s8  ;;  %v2343_v38 = vmul.f32 %v7511_v50, %v11041_v16  ;;  %v2370_v0 = vrot.slane %v7357_v19, 1  ;;  %v2281_v19 = vmul.f32 %v7543_v44, %v11040_v26 }
 0x170   : > { %v5220_v58 = vmul.f32 -1.442695, %v1503_v23  ;;  %v5221_v41 = vmul.f32 -1.442695, %v1504_v10  ;;  %v1496_v22 = vmul.f32 %v7460_v15, %v1487_v29  ;;  %v1497_v57 = vmul.f32 %v7460_v15, %v1488_v49  ;;  %v1464_v61 = vpop.permute.xlu1 %1463  ;;  %v1462_v40 = vpop.permute.xlu0 %1461  ;;  %v7579_v49 = vld [vmem:[%s5699_s13 + $0x1d0] sm:$0x1] }
 0x171   : > { %v1473_v3 = vsel %vm752_vm3, %v1460_v47, %v1462_v40  ;;  %v1474_v48 = vsel %vm752_vm3, %v1462_v40, %v1464_v61  ;;  %v2371_v14 = vrot.slane %v2343_v38, 1  ;;  %v2336_v29 = vmul.f32 %v7303_v12, %v11041_v16 }
 0x172   : > { %5354 = vpow2.f32 %v5220_v58  ;;  %v1505_v33 = vadd.f32 %v7477_v27, %v1496_v22  ;;  %v1506_v21 = vadd.f32 %v7477_v27, %v1497_v57  ;;  %v1489_v1 = vadd.f32 %v1473_v3, %v1383_v6  ;;  %2294 = vrot.lane.b32.xlu1 %v7316_v62, %s5596_s15 }
 0x173   : > { %5356 = vpow2.f32 %v5221_v41  ;;  %v1490_v28 = vadd.f32 %v1474_v48, %v1384_v35  ;;  %2292 = vrot.lane.b32.xlu0 %v7339_v31, %s5596_s15  ;;  %v2279_v31 = vmul.f32 %v7523_v13, %v11040_v26  ;;  %v2372_v57 = vsel %vm336_vm0, %v2370_v0, %v2371_v14  ;;  %v7599_v35 = vld [vmem:[%s5699_s13 + $0x1c8] sm:$0x1] }
 0x174   : > { %v5222_v63 = vmul.f32 -1.442695, %v1505_v33  ;;  %v5223_v24 = vmul.f32 -1.442695, %v1506_v21  ;;  %v1498_v9 = vmul.f32 %v7460_v15, %v1489_v1  ;;  %v1468_v52 = vpop.permute.xlu1 %1467  ;;  %v1466_v62 = vpop.permute.xlu0 %1465  ;;  %v2344_v40 = vmul.f32 %v7566_v5, %v11041_v16 }
 0x175   : > { %v1499_v8 = vmul.f32 %v7460_v15, %v1490_v28  ;;  %v1475_v55 = vsel %vm752_vm3, %v1464_v61, %v1466_v62  ;;  %v1476_v11 = vsel %vm752_vm3, %v1466_v62, %v1468_v52  ;;  %v2335_v61 = vmul.f32 %v7273_v2, %v11041_v16 }
 0x176   : > { %5358 = vpow2.f32 %v5222_v63  ;;  %v1507_v53 = vadd.f32 %v7477_v27, %v1498_v9  ;;  %v1491_v51 = vadd.f32 %v1475_v55, %v1385_v17  ;;  %v1492_v20 = vadd.f32 %v1476_v11, %v1386_v54  ;;  %2298 = vrot.lane.b32.xlu1 %v7343_v42, %s5596_s15 }
 0x177   : > { %5360 = vpow2.f32 %v5223_v24  ;;  %v1508_v25 = vadd.f32 %v7477_v27, %v1499_v8  ;;  %2296 = vrot.lane.b32.xlu0 %v7347_v43, %s5596_s15  ;;  %v7561_v43 = vld [vmem:[%s5699_s13 + $0x1c0] sm:$0x1]  ;;  %v2338_v33 = vmul.f32 %v7531_v39, %v11041_v16  ;;  %v2347_v21 = vmul.f32 %v7579_v49, %v11041_v16 }
 0x178   : > { %v5224_v18 = vmul.f32 -1.442695, %v1507_v53  ;;  %v1500_v7 = vmul.f32 %v7460_v15, %v1491_v51  ;;  %v1501_v42 = vmul.f32 %v7460_v15, %v1492_v20  ;;  %v7553_v47 = vpop.permute.xlu1 %1693  ;;  %v7555_v30 = vpop.permute.xlu0 %1691  ;;  %v2345_v6 = vmul.f32 %v7561_v43, %v11041_v16  ;;  %v7616_v24 = vld [vmem:[%s5699_s13 + $0x1e0] sm:$0x1]  ;;  %v7625_v20 = vld [vmem:[%s5699_s13 + $0x1d8] sm:$0x1] }
 0x179   : > { %v5225_v37 = vmul.f32 -1.442695, %v1508_v25  ;;  %v2282_v17 = vmul.f32 %v7585_v60, %v11040_v26  ;;  %v2376_v28 = vrot.slane %v2336_v29, 1  ;;  %v2337_v54 = vmul.f32 %v7300_v36, %v11041_v16 }
 0x17a   : > { %5362 = vpow2.f32 %v5224_v18  ;;  %v1509_v23 = vadd.f32 %v7477_v27, %v1500_v7  ;;  %v1510_v10 = vadd.f32 %v7477_v27, %v1501_v42  ;;  %2302 = vrot.lane.b32.xlu1 %v2279_v31, %s5596_s15  ;;  %v2377_v38 = vrot.slane %v2345_v6, 1 }
 0x17b   : > { %5364 = vpow2.f32 %v5225_v37  ;;  %2300 = vrot.lane.b32.xlu0 %v2278_v56, %s5596_s15  ;;  %v2346_v63 = vmul.f32 %v7599_v35, %v11041_v16  ;;  %v2373_v8 = vrot.slane %v2335_v61, 1  ;;  %v2374_v55 = vrot.slane %v2344_v40, 1 }
 0x17c   : > { %v5355_v59 = vpop.eup %5354  ;;  %v5226_v58 = vmul.f32 -1.442695, %v1509_v23  ;;  %v7589_v41 = vpop.permute.xlu1 %1697  ;;  %v5227_v48 = vmul.f32 -1.442695, %v1510_v10  ;;  %v2382_v53 = vrot.slane %v2338_v33, 1  ;;  %v2383_v51 = vrot.slane %v2347_v21, 1 }
 0x17d   : > { %v7591_v22 = vpop.permute.xlu0 %1695  ;;  %v5357_v45 = vpop.eup %5356  ;;  %v1535_v3 = vadd.f32 1.0, %v5355_v59  ;;  %v2340_v56 = vmul.f32 %v7558_v46, %v11041_v16  ;;  %v2349_v0 = vmul.f32 %v7616_v24, %v11041_v16  ;;  %v2339_v18 = vmul.f32 %v7523_v13, %v11041_v16 }
 0x17e   : > { %v1536_v1 = vadd.f32 1.0, %v5357_v45  ;;  %5366 = vpow2.f32 %v5226_v58  ;;  %2306 = vrot.lane.b32.xlu1 %v2281_v19, %s5596_s15  ;;  %v2378_v7 = vsel %vm336_vm0, %v2376_v28, %v2377_v38  ;;  %v2379_v42 = vrot.slane %v2337_v54, 1 }
 0x17f   : > { %5368 = vrcp.f32 %v1535_v3  ;;  %2304 = vrot.lane.b32.xlu0 %v2280_v32, %s5596_s15  ;;  %v2380_v14 = vrot.slane %v2346_v63, 1  ;;  %v2375_v10 = vsel %vm336_vm0, %v2373_v8, %v2374_v55  ;;  %v2348_v29 = vmul.f32 %v7625_v20, %v11041_v16  ;;  %v7645_v32 = vld [vmem:[%s5699_s13 + $0x1f0] sm:$0x1] }
 0x180   : > { %v5359_v9 = vpop.eup %5358  ;;  %5370 = vrcp.f32 %v1536_v1  ;;  %v7618_v52 = vpop.permute.xlu1 %1701  ;;  %v2384_v58 = vsel %vm336_vm0, %v2382_v53, %v2383_v51  ;;  %v2388_v40 = vrot.slane %v2340_v56, 1  ;;  %v2389_v45 = vrot.slane %v2349_v0, 1 }
 0x181   : > { %v7620_v62 = vpop.permute.xlu0 %1699  ;;  %v5361_v11 = vpop.eup %5360  ;;  %v1537_v31 = vadd.f32 1.0, %v5359_v9  ;;  %5372 = vpow2.f32 %v5227_v48  ;;  %v2385_v3 = vrot.slane %v2339_v18, 1  ;;  %v2381_v48 = vsel %vm336_vm0, %v2379_v42, %v2380_v14 }
 0x182   : > { %v1538_v25 = vadd.f32 1.0, %v5361_v11  ;;  %2397 = vrot.lane.b32.xlu1 %v2372_v57, %s5596_s15  ;;  %v7649_v57 = vld [vmem:[%s5699_s13 + $0x1e8] sm:$0x1]  ;;  %v2342_v33 = vmul.f32 %v7585_v60, %v11041_v16  ;;  %v2351_v21 = vmul.f32 %v7645_v32, %v11041_v16  ;;  %v2386_v38 = vrot.slane %v2348_v29, 1 }
 0x183   : > { %5374 = vrcp.f32 %v1537_v31  ;;  %2308 = vrot.lane.b32.xlu0 %v2282_v17, %s5596_s15  ;;  %v2341_v54 = vmul.f32 %v7543_v44, %v11041_v16  ;;  %v2350_v63 = vmul.f32 %v7649_v57, %v11041_v16  ;;  %v2390_v31 = vsel %vm336_vm0, %v2388_v40, %v2389_v45  ;;  %v11069_v40 = vld [vmem:[#allocation34_spill] sm:$0xff] }
 0x184   : > { %v5363_v37 = vpop.eup %5362  ;;  %5376 = vrcp.f32 %v1538_v25  ;;  %v7637_v19 = vpop.permute.xlu1 %1705  ;;  %v2394_v53 = vrot.slane %v2342_v33, 1  ;;  %v2395_v51 = vrot.slane %v2351_v21, 1  ;;  %v2387_v18 = vsel %vm336_vm0, %v2385_v3, %v2386_v38 }
 0x185   : > { %v7639_v23 = vpop.permute.xlu0 %1703  ;;  %v5365_v6 = vpop.eup %5364  ;;  %v1539_v59 = vadd.f32 1.0, %v5363_v37  ;;  %v2392_v42 = vrot.slane %v2350_v63, 1  ;;  %v2440_v45 = vmul.f32 %v7273_v2, %v11069_v40  ;;  %v2439_v3 = vmul.f32 %v7286_v4, %v11069_v40 }
 0x186   : > { %v1540_v61 = vadd.f32 1.0, %v5365_v6  ;;  %2401 = vrot.lane.b32.xlu1 %v2378_v7, %s5596_s15  ;;  %v2391_v7 = vrot.slane %v2341_v54, 1  ;;  %v2441_v38 = vmul.f32 %v7303_v12, %v11069_v40 }
 0x187   : > { %5378 = vrcp.f32 %v1539_v59  ;;  %2399 = vrot.lane.b32.xlu0 %v2375_v10, %s5596_s15  ;;  %v2396_v10 = vsel %vm336_vm0, %v2394_v53, %v2395_v51 }
 0x188   : > { %v5367_v1 = vpop.eup %5366  ;;  %5380 = vrcp.f32 %v1540_v61  ;;  %v7663_v17 = vpop.permute.xlu1 %1796  ;;  %v2393_v59 = vsel %vm336_vm0, %v2391_v7, %v2392_v42  ;;  %v2445_v7 = vmul.f32 %v7558_v46, %v11069_v40 }
 0x189   : > { %11064 = vst [vmem:[#allocation33_spill] sm:$0xff] %v7663_v17  ;;  %v7665_v28 = vpop.permute.xlu0 %1707  ;;  %v5369_v9 = vpop.eup %5368  ;;  %v1541_v8 = vadd.f32 1.0, %v5367_v1  ;;  %v2442_v1 = vmul.f32 %v7300_v36, %v11069_v40 }
 0x18a   : > { %v5371_v55 = vpop.eup %5370  ;;  %1559 = vst [vmem:[%s7655_s16] sm:$0xff] %v5369_v9  ;;  %2405 = vrot.lane.b32.xlu1 %v2384_v58, %s5596_s15 }
 0x18b   : > { %v5373_v11 = vpop.eup %5372  ;;  %1560 = vst [vmem:[%s7655_s16 + $0x8] sm:$0xff] %v5371_v55  ;;  %5382 = vrcp.f32 %v1541_v8  ;;  %2403 = vrot.lane.b32.xlu0 %v2381_v48, %s5596_s15  ;;  %v2444_v8 = vmul.f32 %v7523_v13, %v11069_v40  ;;  %v2443_v55 = vmul.f32 %v7531_v39, %v11069_v40 }
 0x18c   : > { %v1542_v25 = vadd.f32 1.0, %v5373_v11  ;;  %v7676_v56 = vpop.permute.xlu1 %1800  ;;  %v11074_v11 = vld [vmem:[#allocation35_spill] sm:$0xff] }
 0x18d   : > { %11065 = vst [vmem:[#allocation28_spill] sm:$0xff] %v7676_v56  ;;  %v7678_v0 = vpop.permute.xlu0 %1798  ;;  %v5375_v14 = vpop.eup %5374  ;;  %v2508_v53 = vmul.f32 %v7511_v50, %v11074_v11 }
 0x18e   : > { %11066 = vst [vmem:[#allocation30_spill] sm:$0xff] %v7678_v0  ;;  %v5377_v37 = vpop.eup %5376  ;;  %1561 = vst [vmem:[%s7655_s16 + $0x10] sm:$0xff] %v5375_v14  ;;  %5384 = vrcp.f32 %v1542_v25  ;;  %2409 = vrot.lane.b32.xlu1 %v2390_v31, %s5596_s15  ;;  %v2499_v31 = vmul.f32 %v7286_v4, %v11074_v11 }
 0x18f   : > { %1562 = vst [vmem:[%s7655_s16 + $0x18] sm:$0xff] %v5377_v37  ;;  %2407 = vrot.lane.b32.xlu0 %v2387_v18, %s5596_s15  ;;  %v2446_v18 = vmul.f32 %v7543_v44, %v11069_v40  ;;  %v2536_v14 = vrot.slane %v2508_v53, 1  ;;  %v2501_v37 = vmul.f32 %v7303_v12, %v11074_v11 }
 0x190   : > { %v7686_v29 = vpop.permute.xlu1 %1804  ;;  %v2535_v42 = vrot.slane %v2499_v31, 1 }
 0x191   : > { %11067 = vst [vmem:[#allocation31_spill] sm:$0xff] %v7686_v29  ;;  %v7688_v6 = vpop.permute.xlu0 %1802  ;;  %v5379_v58 = vpop.eup %5378 }
 0x192   : > { %11068 = vst [vmem:[#allocation54_spill] sm:$0xff] %v7688_v6  ;;  %v5381_v61 = vpop.eup %5380  ;;  %1563 = vst [vmem:[%s7655_s16 + $0x20] sm:$0xff] %v5379_v58  ;;  %2413 = vrot.lane.b32.xlu1 %v2396_v10, %s5596_s15  ;;  %v2510_v10 = vmul.f32 %v7561_v43, %v11074_v11 }
 0x193   : > { %1564 = vst [vmem:[%s7655_s16 + $0x28] sm:$0xff] %v5381_v61  ;;  %2411 = vrot.lane.b32.xlu0 %v2393_v59, %s5596_s15  ;;  %v2500_v61 = vmul.f32 %v7273_v2, %v11074_v11 }
 0x194   : > { %v7699_v48 = vpop.permute.xlu1 %1808  ;;  %v2542_v31 = vrot.slane %v2510_v10, 1 }
 0x195   : > { %11070 = vst [vmem:[#allocation56_spill] sm:$0xff] %v7699_v48  ;;  %v7701_v33 = vpop.permute.xlu0 %1806  ;;  %v5383_v21 = vpop.eup %5382  ;;  %v2538_v16 = vrot.slane %v2500_v61, 1 }
 0x196   : > { %11071 = vst [vmem:[#allocation32_spill] sm:$0xff] %v7701_v33  ;;  %1565 = vst [vmem:[%s7655_s16 + $0x30] sm:$0xff] %v5383_v21  ;;  %2459 = vrot.lane.b32.xlu1 %v2440_v45, %s5597_s30  ;;  %v2509_v45 = vmul.f32 %v7566_v5, %v11074_v11  ;;  %v2512_v21 = vmul.f32 %v7579_v49, %v11074_v11 }
 0x197   : > { %2457 = vrot.lane.b32.xlu0 %v2439_v3, %s5597_s30  ;;  %v2503_v3 = vmul.f32 %v7531_v39, %v11074_v11 }
 0x198   : > { %v5385_v54 = vpop.eup %5384  ;;  %v7710_v63 = vpop.permute.xlu1 %1812  ;;  %v2539_v27 = vrot.slane %v2509_v45, 1  ;;  %v2548_v26 = vrot.slane %v2512_v21, 1  ;;  %v2504_v45 = vmul.f32 %v7523_v13, %v11074_v11 }
 0x199   : > { %11072 = vst [vmem:[#allocation52_spill] sm:$0xff] %v7710_v63  ;;  %v7712_v9 = vpop.permute.xlu0 %1810  ;;  %1566 = vst [vmem:[%s7655_s16 + $0x38] sm:$0xff] %v5385_v54  ;;  %v2537_v54 = vsel %vm336_vm0, %v2535_v42, %v2536_v14  ;;  %v2547_v15 = vrot.slane %v2503_v3, 1  ;;  %v2505_v42 = vmul.f32 %v7558_v46, %v11074_v11  ;;  %v2514_v14 = vmul.f32 %v7616_v24, %v11074_v11  ;;  %v5496_v63 = vld [vmem:[%s5699_s13 + $0x80] sm:$0xff] }
 0x19a   : > { %11073 = vst [vmem:[#allocation49_spill] sm:$0xff] %v7712_v9  ;;  %2463 = vrot.lane.b32.xlu1 %v2442_v1, %s5597_s30  ;;  %v2502_v1 = vmul.f32 %v7300_v36, %v11074_v11  ;;  %v2540_v61 = vsel %vm336_vm0, %v2538_v16, %v2539_v27  ;;  %v2513_v3 = vmul.f32 %v7625_v20, %v11074_v11 }
 0x19b   : > { %2461 = vrot.lane.b32.xlu0 %v2441_v38, %s5597_s30  ;;  %v2511_v38 = vmul.f32 %v7599_v35, %v11074_v11  ;;  %v2549_v21 = vsel %vm336_vm0, %v2547_v15, %v2548_v26  ;;  %v2516_v16 = vmul.f32 %v7645_v32, %v11074_v11  ;;  %v2506_v26 = vmul.f32 %v7543_v44, %v11074_v11 }
 0x19c   : > { %v7725_v51 = vpop.permute.xlu1 %1858  ;;  %v2544_v34 = vrot.slane %v2502_v1, 1 }
 0x19d   : > { %11075 = vst [vmem:[#allocation55_spill] sm:$0xff] %v7725_v51  ;;  %v7727_v25 = vpop.permute.xlu0 %1856 }
 0x19e   : > { %11076 = vst [vmem:[#allocation51_spill] sm:$0xff] %v7727_v25  ;;  %2467 = vrot.lane.b32.xlu1 %v2444_v8, %s5597_s30  ;;  %v2447_v8 = vmul.f32 %v7585_v60, %v11069_v40  ;;  %v7966_v25 = vld [vmem:[%s5699_s13 + $0x98] sm:$0xff] }
 0x19f   : > { %2465 = vrot.lane.b32.xlu0 %v2443_v55, %s5597_s30  ;;  %v2541_v55 = vrot.slane %v2501_v37, 1 }
 0x1a0   : > { %v7739_v59 = vpop.permute.xlu1 %1862 }
 0x1a1   : > { %11077 = vst [vmem:[#allocation53_spill] sm:$0xff] %v7739_v59  ;;  %v7741_v58 = vpop.permute.xlu0 %1860  ;;  %v2545_v59 = vrot.slane %v2511_v38, 1  ;;  %v2553_v38 = vrot.slane %v2505_v42, 1  ;;  %v2560_v42 = vrot.slane %v2516_v16, 1 }
 0x1a2   : > { %11078 = vst [vmem:[#allocation14_spill] sm:$0xff] %v7741_v58  ;;  %2471 = vrot.lane.b32.xlu1 %v2446_v18, %s5597_s30 }
 0x1a3   : > { %2469 = vrot.lane.b32.xlu0 %v2445_v7, %s5597_s30  ;;  %v2543_v7 = vsel %vm336_vm0, %v2541_v55, %v2542_v31  ;;  %v2546_v1 = vsel %vm336_vm0, %v2544_v34, %v2545_v59  ;;  %v2550_v31 = vrot.slane %v2504_v45, 1  ;;  %v2515_v34 = vmul.f32 %v7649_v57, %v11074_v11 }
 0x1a4   : > { %v7760_v53 = vpop.permute.xlu1 %1866 }
 0x1a5   : > { %11079 = vst [vmem:[#allocation37_spill] sm:$0xff] %v7760_v53  ;;  %v7762_v18 = vpop.permute.xlu0 %1864  ;;  %v2557_v40 = vrot.slane %v2515_v34, 1 }
 0x1a6   : > { %11080 = vst [vmem:[#allocation36_spill] sm:$0xff] %v7762_v18  ;;  %2562 = vrot.lane.b32.xlu1 %v2537_v54, %s5597_s30  ;;  %v2554_v54 = vrot.slane %v2514_v14, 1 }
 0x1a7   : > { %2473 = vrot.lane.b32.xlu0 %v2447_v8, %s5597_s30  ;;  %v2507_v8 = vmul.f32 %v7585_v60, %v11074_v11 }
 0x1a8   : > { %v7771_v37 = vpop.permute.xlu1 %1870  ;;  %v2555_v15 = vsel %vm336_vm0, %v2553_v38, %v2554_v54  ;;  %v11089_v54 = vld [vmem:[#allocation41_spill] sm:$0xff] }
 0x1a9   : > { %11081 = vst [vmem:[#allocation38_spill] sm:$0xff] %v7771_v37  ;;  %v7773_v10 = vpop.permute.xlu0 %1868  ;;  %v2559_v59 = vrot.slane %v2507_v8, 1  ;;  %v2605_v8 = vmul.f32 %v7273_v2, %v11089_v54  ;;  %v2604_v16 = vmul.f32 %v7286_v4, %v11089_v54 }
 0x1aa   : > { %11082 = vst [vmem:[#allocation39_spill] sm:$0xff] %v7773_v10  ;;  %2566 = vrot.lane.b32.xlu1 %v2543_v7, %s5597_s30  ;;  %v2551_v7 = vrot.slane %v2513_v3, 1  ;;  %v2556_v3 = vrot.slane %v2506_v26, 1  ;;  %v2607_v26 = vmul.f32 %v7300_v36, %v11089_v54  ;;  %v5491_v10 = vld [vmem:[%s5699_s13 + $0xb0] sm:$0x1] }
 0x1ab   : > { %2564 = vrot.lane.b32.xlu0 %v2540_v61, %s5597_s30 }
 0x1ac   : > { %v7788_v27 = vpop.permute.xlu1 %1961  ;;  %v2552_v45 = vsel %vm336_vm0, %v2550_v31, %v2551_v7  ;;  %v2558_v38 = vsel %vm336_vm0, %v2556_v3, %v2557_v40  ;;  %v2606_v40 = vmul.f32 %v7303_v12, %v11089_v54 }
 0x1ad   : > { %11083 = vst [vmem:[#allocation17_spill] sm:$0xff] %v7788_v27  ;;  %v7790_v55 = vpop.permute.xlu0 %1872  ;;  %v5482_v27 = vld [vmem:[%s5699_s13 + $0x48] sm:$0xff] }
 0x1ae   : > { %11084 = vst [vmem:[#allocation18_spill] sm:$0xff] %v7790_v55  ;;  %2570 = vrot.lane.b32.xlu1 %v2549_v21, %s5597_s30  ;;  %v2561_v21 = vsel %vm336_vm0, %v2559_v59, %v2560_v42  ;;  %v2609_v59 = vmul.f32 %v7523_v13, %v11089_v54  ;;  %v2608_v42 = vmul.f32 %v7531_v39, %v11089_v54  ;;  %v5483_v55 = vld [vmem:[%s5699_s13 + $0x90] sm:$0x1] }
 0x1af   : > { %2568 = vrot.lane.b32.xlu0 %v2546_v1, %s5597_s30 }
 0x1b0   : > { %v7799_v14 = vpop.permute.xlu1 %1965 }
 0x1b1   : > { %11085 = vst [vmem:[#allocation19_spill] sm:$0xff] %v7799_v14  ;;  %v7801_v61 = vpop.permute.xlu0 %1963 }
 0x1b2   : > { %11086 = vst [vmem:[#allocation43_spill] sm:$0xff] %v7801_v61  ;;  %2574 = vrot.lane.b32.xlu1 %v2555_v15, %s5597_s30 }
 0x1b3   : > { %2572 = vrot.lane.b32.xlu0 %v2552_v45, %s5597_s30  ;;  %v11094_v45 = vld [vmem:[#allocation16_spill] sm:$0xff] }
 0x1b4   : > { %v7807_v11 = vpop.permute.xlu1 %1969  ;;  %v2664_v3 = vmul.f32 %v7286_v4, %v11094_v45  ;;  %v2666_v4 = vmul.f32 %v7303_v12, %v11094_v45  ;;  %v2668_v12 = vmul.f32 %v7531_v39, %v11094_v45 }
 0x1b5   : > { %11087 = vst [vmem:[#allocation40_spill] sm:$0xff] %v7807_v11  ;;  %v7809_v1 = vpop.permute.xlu0 %1967 }
 0x1b6   : > { %11088 = vst [vmem:[#allocation45_spill] sm:$0xff] %v7809_v1  ;;  %2578 = vrot.lane.b32.xlu1 %v2561_v21, %s5597_s30  ;;  %v2673_v21 = vmul.f32 %v7511_v50, %v11094_v45 }
 0x1b7   : > { %2576 = vrot.lane.b32.xlu0 %v2558_v38, %s5597_s30 }
 0x1b8   : > { %v7818_v31 = vpop.permute.xlu1 %1973 }
 0x1b9   : > { %11090 = vst [vmem:[#allocation21_spill] sm:$0xff] %v7818_v31  ;;  %v7820_v7 = vpop.permute.xlu0 %1971  ;;  %v2674_v31 = vmul.f32 %v7566_v5, %v11094_v45 }
 0x1ba   : > { %11091 = vst [vmem:[#allocation20_spill] sm:$0xff] %v7820_v7  ;;  %2624 = vrot.lane.b32.xlu1 %v2605_v8, %s5598_s8 }
 0x1bb   : > { %2622 = vrot.lane.b32.xlu0 %v2604_v16, %s5598_s8  ;;  %v2611_v16 = vmul.f32 %v7543_v44, %v11089_v54  ;;  %v2704_v14 = vrot.slane %v2674_v31, 1  ;;  %v2679_v31 = vmul.f32 %v7616_v24, %v11094_v45 }
 0x1bc   : > { %v7828_v34 = vpop.permute.xlu1 %1977 }
 0x1bd   : > { %11092 = vst [vmem:[#allocation42_spill] sm:$0xff] %v7828_v34  ;;  %v7830_v15 = vpop.permute.xlu0 %1975  ;;  %v2701_v34 = vrot.slane %v2673_v21, 1  ;;  %v2676_v21 = vmul.f32 %v7599_v35, %v11094_v45 }
 0x1be   : > { %11093 = vst [vmem:[#allocation22_spill] sm:$0xff] %v7830_v15  ;;  %2628 = vrot.lane.b32.xlu1 %v2607_v26, %s5598_s8  ;;  %v2610_v26 = vmul.f32 %v7558_v46, %v11089_v54 }
 0x1bf   : > { %2626 = vrot.lane.b32.xlu0 %v2606_v40, %s5598_s8  ;;  %v2700_v40 = vrot.slane %v2664_v3, 1  ;;  %v2667_v3 = vmul.f32 %v7300_v36, %v11094_v45  ;;  %v11101_v36 = vld [vmem:[#allocation13_spill] sm:$0xff] }
 0x1c0   : > { %v7842_v38 = vpop.permute.xlu1 %2023  ;;  %v1599_v61 = vmul.f32 %v5482_v27, %v11101_v36  ;;  %v1607_v37 = vmul.f32 %v5483_v55, %v11101_v36 }
 0x1c1   : > { %11095 = vst [vmem:[#allocation44_spill] sm:$0xff] %v7842_v38  ;;  %v7844_v8 = vpop.permute.xlu0 %2021  ;;  %v2675_v38 = vmul.f32 %v7561_v43, %v11094_v45 }
 0x1c2   : > { %11096 = vst [vmem:[#allocation46_spill] sm:$0xff] %v7844_v8  ;;  %2632 = vrot.lane.b32.xlu1 %v2609_v59, %s5598_s8  ;;  %v2665_v59 = vmul.f32 %v7273_v2, %v11094_v45  ;;  %v2702_v2 = vsel %vm336_vm0, %v2700_v40, %v2701_v34  ;;  %v2712_v34 = vrot.slane %v2668_v12, 1  ;;  %v2709_v40 = vrot.slane %v2667_v3, 1 }
 0x1c3   : > { %2630 = vrot.lane.b32.xlu0 %v2608_v42, %s5598_s8  ;;  %v2677_v42 = vmul.f32 %v7579_v49, %v11094_v45  ;;  %v2669_v12 = vmul.f32 %v7523_v13, %v11094_v45  ;;  %v1631_v3 = vrot.slane %v1599_v61, 1  ;;  %v2681_v61 = vmul.f32 %v7645_v32, %v11094_v45 }
 0x1c4   : > { %v7856_v15 = vpop.permute.xlu1 %2027  ;;  %v2703_v1 = vrot.slane %v2665_v59, 1 }
 0x1c5   : > { %11097 = vst [vmem:[#allocation47_spill] sm:$0xff] %v7856_v15  ;;  %v7858_v8 = vpop.permute.xlu0 %2025  ;;  %v2706_v15 = vrot.slane %v2666_v4, 1  ;;  %v2670_v4 = vmul.f32 %v7558_v46, %v11094_v45 }
 0x1c6   : > { %11098 = vst [vmem:[#allocation24_spill] sm:$0xff] %v7858_v8  ;;  %2636 = vrot.lane.b32.xlu1 %v2611_v16, %s5598_s8  ;;  %v2612_v16 = vmul.f32 %v7585_v60, %v11089_v54  ;;  %v2707_v8 = vrot.slane %v2675_v38, 1  ;;  %v2710_v54 = vrot.slane %v2676_v21, 1  ;;  %v2705_v55 = vsel %vm336_vm0, %v2703_v1, %v2704_v14 }
 0x1c7   : > { %2634 = vrot.lane.b32.xlu0 %v2610_v26, %s5598_s8  ;;  %v2713_v26 = vrot.slane %v2677_v42, 1  ;;  %v2678_v42 = vmul.f32 %v7625_v20, %v11094_v45  ;;  %v2719_v14 = vrot.slane %v2679_v31, 1  ;;  %v2672_v1 = vmul.f32 %v7585_v60, %v11094_v45  ;;  %v11106_v60 = vld [vmem:[#allocation12_spill] sm:$0xff] }
 0x1c8   : > { %v7877_v7 = vpop.permute.xlu1 %2031  ;;  %v2708_v38 = vsel %vm336_vm0, %v2706_v15, %v2707_v8  ;;  %v1632_v15 = vrot.slane %v1607_v37, 1  ;;  %v2711_v21 = vsel %vm336_vm0, %v2709_v40, %v2710_v54  ;;  %v2671_v54 = vmul.f32 %v7543_v44, %v11094_v45  ;;  %v5484_v40 = vld [vmem:[%s5699_s13 + $0x50] sm:$0xff] }
 0x1c9   : > { %11099 = vst [vmem:[#allocation50_spill] sm:$0xff] %v7877_v7  ;;  %v7879_v11 = vpop.permute.xlu0 %2029  ;;  %v2714_v8 = vsel %vm336_vm0, %v2712_v34, %v2713_v26  ;;  %v2716_v34 = vrot.slane %v2678_v42, 1  ;;  %v2680_v26 = vmul.f32 %v7649_v57, %v11094_v45  ;;  %v7922_v31 = vmul.f32 %v5482_v27, %v11106_v60  ;;  %v5486_v42 = vld [vmem:[%s5699_s13 + $0x98] sm:$0x1] }
 0x1ca   : > { %11100 = vst [vmem:[#allocation57_spill] sm:$0xff] %v7879_v11  ;;  %2727 = vrot.lane.b32.xlu1 %v2702_v2, %s5598_s8  ;;  %v2718_v2 = vrot.slane %v2670_v4, 1  ;;  %v7919_v4 = vmul.f32 %v5484_v40, %v11101_v36  ;;  %v7925_v32 = vsel %vm336_vm0, %v1631_v3, %v1632_v15  ;;  %v1608_v45 = vmul.f32 %v5486_v42, %v11101_v36  ;;  %v5487_v3 = vld [vmem:[%s5699_s13 + $0xa0] sm:$0x1] }
 0x1cb   : > { %2638 = vrot.lane.b32.xlu0 %v2612_v16, %s5598_s8  ;;  %v1609_v15 = vmul.f32 %v5487_v3, %v11101_v36  ;;  %v2721_v42 = vrot.slane %v2671_v54, 1  ;;  %v2722_v11 = vrot.slane %v2680_v26, 1  ;;  %v5490_v3 = vld [vmem:[%s5699_s13 + $0xa8] sm:$0x1]  ;;  %v5493_v26 = vld [vmem:[%s5699_s13 + $0xb8] sm:$0x1]  ;;  %v1584_v53 = vmul.f32 %v5484_v40, %v11106_v60 }
 0x1cc   : > { %v7892_v59 = vpop.permute.xlu1 %2035  ;;  %v2720_v27 = vsel %vm336_vm0, %v2718_v2, %v2719_v14  ;;  %v5488_v2 = vld [vmem:[%s5699_s13 + $0x60] sm:$0xff]  ;;  %v1635_v51 = vrot.slane %v1608_v45, 1 }
 0x1cd   : > { %11102 = vst [vmem:[#allocation58_spill] sm:$0xff] %v7892_v59  ;;  %v7894_v7 = vpop.permute.xlu0 %2033  ;;  %v2725_v59 = vrot.slane %v2681_v61, 1  ;;  %v1602_v14 = vmul.f32 %v5488_v2, %v11101_v36  ;;  %v2723_v33 = vsel %vm336_vm0, %v2721_v42, %v2722_v11 }
 0x1ce   : > { %11103 = vst [vmem:[#allocation59_spill] sm:$0xff] %v7894_v7  ;;  %2731 = vrot.lane.b32.xlu1 %v2708_v38, %s5598_s8  ;;  %v2715_v38 = vrot.slane %v2669_v12, 1 }
 0x1cf   : > { %2729 = vrot.lane.b32.xlu0 %v2705_v55, %s5598_s8  ;;  %v5485_v55 = vld [vmem:[%s5699_s13 + $0x58] sm:$0xff] }
 0x1d0   : > { %v7909_v16 = vpop.permute.xlu1 %2126  ;;  %v7929_v12 = vmul.f32 %v5485_v55, %v11101_v36 }
 0x1d1   : > { %11104 = vst [vmem:[#allocation60_spill] sm:$0xff] %v7909_v16  ;;  %v7911_v37 = vpop.permute.xlu0 %2037 }
 0x1d2   : > { %11105 = vst [vmem:[#allocation61_spill] sm:$0xff] %v7911_v37  ;;  %2735 = vrot.lane.b32.xlu1 %v2714_v8, %s5598_s8  ;;  %v2724_v37 = vrot.slane %v2672_v1, 1  ;;  %v2717_v8 = vsel %vm336_vm0, %v2715_v38, %v2716_v34  ;;  %v5489_v1 = vld [vmem:[%s5699_s13 + $0x68] sm:$0xff]  ;;  %v1611_v38 = vmul.f32 %v5491_v10, %v11101_v36  ;;  %v5492_v34 = vld [vmem:[%s5699_s13 + $0x70] sm:$0xff] }
 0x1d3   : > { %2733 = vrot.lane.b32.xlu0 %v2711_v21, %s5598_s8  ;;  %v1634_v21 = vrot.slane %v7919_v4, 1  ;;  %v1603_v61 = vmul.f32 %v5489_v1, %v11101_v36  ;;  %v1604_v54 = vmul.f32 %v5492_v34, %v11101_v36  ;;  %v1612_v4 = vmul.f32 %v5493_v26, %v11101_v36 }
 0x1d4   : > { %v7938_v16 = vpop.permute.xlu1 %2130  ;;  %v2726_v10 = vsel %vm336_vm0, %v2724_v37, %v2725_v59  ;;  %v1606_v26 = vmul.f32 %v5496_v63, %v11101_v36  ;;  %v1640_v59 = vrot.slane %v1602_v14, 1  ;;  %v1644_v45 = vrot.slane %v1611_v38, 1 }
 0x1d5   : > { %11107 = vst [vmem:[#allocation62_spill] sm:$0xff] %v7938_v16  ;;  %v7940_v7 = vpop.permute.xlu0 %2128  ;;  %v1610_v16 = vmul.f32 %v5490_v3, %v11101_v36  ;;  %v5494_v3 = vld [vmem:[%s5699_s13 + $0x78] sm:$0xff]  ;;  %v1643_v29 = vrot.slane %v1603_v61, 1  ;;  %v1646_v6 = vrot.slane %v1604_v54, 1  ;;  %v1647_v56 = vrot.slane %v1612_v4, 1 }
 0x1d6   : > { %11108 = vst [vmem:[#allocation63_spill] sm:$0xff] %v7940_v7  ;;  %v1637_v7 = vrot.slane %v7929_v12, 1  ;;  %2739 = vrot.lane.b32.xlu1 %v2720_v27, %s5598_s8  ;;  %v1605_v18 = vmul.f32 %v5494_v3, %v11101_v36  ;;  %v5495_v12 = vld [vmem:[%s5699_s13 + $0xc0] sm:$0x1]  ;;  %v5497_v27 = vld [vmem:[%s5699_s13 + $0xc8] sm:$0x1]  ;;  %v1636_v42 = vsel %vm336_vm0, %v1634_v21, %v1635_v51  ;;  %v1586_v14 = vmul.f32 %v5488_v2, %v11106_v60 }
 0x1d7   : > { %v1613_v58 = vmul.f32 %v5495_v12, %v11101_v36  ;;  %2737 = vrot.lane.b32.xlu0 %v2717_v8, %s5598_s8  ;;  %v1614_v40 = vmul.f32 %v5497_v27, %v11101_v36  ;;  %v7978_v12 = vld [vmem:[%s5699_s13 + $0x90] sm:$0xff]  ;;  %v1638_v8 = vrot.slane %v1609_v15, 1  ;;  %v1641_v37 = vrot.slane %v1610_v16, 1  ;;  %v11111_v27 = vld [vmem:[#allocation7_spill] sm:$0xff]  ;;  %v7988_v16 = vld [vmem:[%s5699_s13 + $0xa8] sm:$0xff] }
 0x1d8   : > { %v7972_v9 = vpop.permute.xlu1 %2134  ;;  %v2948_v36 = vmul.f32 %v7966_v25, %v11111_v27  ;;  %v2947_v15 = vmul.f32 %v7978_v12, %v11111_v27  ;;  %v1652_v61 = vrot.slane %v1606_v26, 1  ;;  %v1588_v51 = vmul.f32 %v5492_v34, %v11106_v60 }
 0x1d9   : > { %11109 = vst [vmem:[#allocation64_spill] sm:$0xff] %v7972_v9  ;;  %v7974_v48 = vpop.permute.xlu0 %2132  ;;  %v1585_v9 = vmul.f32 %v5485_v55, %v11106_v60  ;;  %v1650_v11 = vrot.slane %v1613_v58, 1  ;;  %v1653_v38 = vrot.slane %v1614_v40, 1  ;;  %v1587_v58 = vmul.f32 %v5489_v1, %v11106_v60 }
 0x1da   : > { %11110 = vst [vmem:[#allocation65_spill] sm:$0xff] %v7974_v48  ;;  %2743 = vrot.lane.b32.xlu1 %v2726_v10, %s5598_s8  ;;  %v1649_v48 = vrot.slane %v1605_v18, 1  ;;  %v7997_v18 = vld [vmem:[%s5699_s13 + $0xa0] sm:$0xff]  ;;  %v1642_v55 = vsel %vm336_vm0, %v1640_v59, %v1641_v37  ;;  %v1645_v21 = vsel %vm336_vm0, %v1643_v29, %v1644_v45  ;;  %v1589_v2 = vmul.f32 %v5494_v3, %v11106_v60 }
 0x1db   : > { %2741 = vrot.lane.b32.xlu0 %v2723_v33, %s5598_s8  ;;  %v1639_v33 = vsel %vm336_vm0, %v1637_v7, %v1638_v8  ;;  %v1648_v10 = vsel %vm336_vm0, %v1646_v6, %v1647_v56  ;;  %v2950_v26 = vmul.f32 %v7988_v16, %v11111_v27  ;;  %v8011_v7 = vadd.f32 %v7925_v32, %v7922_v31  ;;  %v8019_v56 = vld [vmem:[%s5699_s13 + $0xb8] sm:$0xff] }
 0x1dc   : > { %v7992_v54 = vpop.permute.xlu1 %2138  ;;  %v1651_v1 = vsel %vm336_vm0, %v1649_v48, %v1650_v11  ;;  %v1590_v34 = vmul.f32 %v5496_v63, %v11106_v60  ;;  %v2949_v29 = vmul.f32 %v7997_v18, %v11111_v27  ;;  %v8022_v6 = vld [vmem:[%s5699_s13 + $0xd8] sm:$0x1]  ;;  %v8026_v3 = vadd.f32 %v1639_v33, %v1585_v9  ;;  %v8034_v63 = vld [vmem:[%s5699_s13 + $0xb0] sm:$0xff]  ;;  %v11118_v33 = vld [vmem:[#allocation48_spill] sm:$0xff] }
 0x1dd   : > { %11112 = vst [vmem:[#allocation66_spill] sm:$0xff] %v7992_v54  ;;  %v7994_v4 = vpop.permute.xlu0 %2136  ;;  %v8028_v31 = vadd.f32 %v1642_v55, %v1586_v14  ;;  %v1654_v32 = vsel %vm336_vm0, %v1652_v61, %v1653_v38  ;;  %v8036_v40 = vadd.f32 %v1645_v21, %v1587_v58  ;;  %v8038_v8 = vadd.f32 %v1648_v10, %v1588_v51  ;;  %v11116_v9 = vld [vmem:[#allocation25_spill] sm:$0xff]  ;;  %v8068_v21 = vld [vmem:[%s5699_s13 + $0xc8] sm:$0xff] }
 0x1de   : > { %11113 = vst [vmem:[#allocation67_spill] sm:$0xff] %v7994_v4  ;;  %2967 = vrot.lane.b32.xlu1 %v2948_v36, %s5596_s15  ;;  %v8024_v36 = vadd.f32 %v1636_v42, %v1584_v53  ;;  %v5498_v53 = vld [vmem:[%s5699_s13 + $0x168] sm:$0xff]  ;;  %v2208_v45 = vmul.f32 %v7511_v50, %v11116_v9  ;;  %v8046_v11 = vadd.f32 %v1651_v1, %v1589_v2  ;;  %v5499_v50 = vld [vmem:[%s5699_s13 + $0x170] sm:$0xff]  ;;  %v5500_v2 = vld [vmem:[%s5699_s13 + $0x178] sm:$0xff] }
 0x1df   : > { %2965 = vrot.lane.b32.xlu0 %v2947_v15, %s5596_s15  ;;  %v2200_v37 = vmul.f32 %v5498_v53, %v11116_v9  ;;  %v2952_v15 = vmul.f32 %v8019_v56, %v11111_v27  ;;  %v11117_v42 = vld [vmem:[#allocation8_spill] sm:$0xff]  ;;  %v8055_v38 = vadd.f32 %v1654_v32, %v1590_v34  ;;  %v8058_v58 = vmul.f32 %v5498_v53, %v11118_v33  ;;  %v8086_v53 = vld [vmem:[%s5699_s13 + $0xc0] sm:$0xff]  ;;  %v8140_v4 = vld [vmem:[%s5699_s13 + $0xf0] sm:$0x1] }
 0x1e0   : > { %v8031_v48 = vpop.permute.xlu1 %2142  ;;  %v3007_v14 = vmul.f32 %v7978_v12, %v11117_v42  ;;  %v3016_v61 = vmul.f32 %v8022_v6, %v11117_v42  ;;  %v8062_v55 = vmul.f32 %v5499_v50, %v11118_v33  ;;  %v2951_v51 = vmul.f32 %v8034_v63, %v11111_v27  ;;  %v8089_v60 = vld [vmem:[%s5699_s13 + $0xe8] sm:$0x1] }
 0x1e1   : > { %11114 = vst [vmem:[#allocation68_spill] sm:$0xff] %v8031_v48  ;;  %v8040_v59 = vpop.permute.xlu0 %2140  ;;  %11119 = vst [vmem:[#allocation70_spill] sm:$0xff] %v8058_v58  ;;  %v8072_v10 = vmul.f32 %v5500_v2, %v11118_v33  ;;  %v8080_v34 = vmul.f32 %v7531_v39, %v11118_v33  ;;  %v2233_v58 = vrot.slane %v2208_v45, 1  ;;  %v8099_v48 = vld [vmem:[%s5699_s13 + $0xe0] sm:$0x1] }
 0x1e2   : > { %11115 = vst [vmem:[#allocation69_spill] sm:$0xff] %v8040_v59  ;;  %2971 = vrot.lane.b32.xlu1 %v2950_v26, %s5596_s15  ;;  %11120 = vst [vmem:[#allocation71_spill] sm:$0xff] %v8062_v55  ;;  %v5501_v26 = vld [vmem:[%s5699_s13 + $0x180] sm:$0xff]  ;;  %v2232_v55 = vrot.slane %v2200_v37, 1  ;;  %v2954_v37 = vmul.f32 %v8068_v21, %v11111_v27  ;;  %v3043_v45 = vrot.slane %v3007_v14, 1  ;;  %v8127_v14 = vmul.f32 %v7543_v44, %v11118_v33 }
 0x1e3   : > { %2969 = vrot.lane.b32.xlu0 %v2949_v29, %s5596_s15  ;;  %11121 = vst [vmem:[#allocation72_spill] sm:$0xff] %v8072_v10  ;;  %v8076_v1 = vmul.f32 %v5501_v26, %v11118_v33  ;;  %11123 = vst [vmem:[#allocation74_spill] sm:$0xff] %v8080_v34  ;;  %v2201_v29 = vmul.f32 %v5499_v50, %v11116_v9  ;;  %v2209_v34 = vmul.f32 %v7566_v5, %v11116_v9  ;;  %v8123_v59 = vld [vmem:[%s5699_s13 + $0xf8] sm:$0x1] }
 0x1e4   : > { %v8082_v32 = vpop.permute.xlu1 %2294  ;;  %11125 = vst [vmem:[#allocation76_spill] sm:$0xff] %v8089_v60  ;;  %11127 = vst [vmem:[#allocation78_spill] sm:$0xff] %v8099_v48  ;;  %v8103_v50 = vmul.f32 %v7523_v13, %v11118_v33  ;;  %v2953_v5 = vmul.f32 %v8086_v53, %v11111_v27  ;;  %v3017_v54 = vmul.f32 %v8099_v48, %v11117_v42 }
 0x1e5   : > { %11122 = vst [vmem:[#allocation73_spill] sm:$0xff] %v8076_v1  ;;  %11124 = vst [vmem:[#allocation75_spill] sm:$0xff] %v8082_v32  ;;  %v8091_v10 = vpop.permute.xlu0 %2292  ;;  %v8094_v1 = vmul.f32 %v5500_v2, %v11116_v9  ;;  %v8110_v2 = vmul.f32 %v7558_v46, %v11118_v33  ;;  %v8116_v32 = vld [vmem:[%s5699_s13 + $0xd0] sm:$0xff]  ;;  %v8143_v17 = vsel %vm336_vm0, %v2232_v55, %v2233_v58  ;;  %v2235_v0 = vrot.slane %v2201_v29, 1 }
 0x1e6   : > { %11126 = vst [vmem:[#allocation77_spill] sm:$0xff] %v8091_v10  ;;  %11128 = vst [vmem:[#allocation79_spill] sm:$0xff] %v8103_v50  ;;  %2975 = vrot.lane.b32.xlu1 %v2952_v15, %s5596_s15  ;;  %v3044_v10 = vrot.slane %v3016_v61, 1  ;;  %v3009_v15 = vmul.f32 %v7997_v18, %v11117_v42  ;;  %v3018_v50 = vmul.f32 %v8089_v60, %v11117_v42  ;;  %v2236_v33 = vrot.slane %v2209_v34, 1 }
 0x1e7   : > { %11129 = vst [vmem:[#allocation80_spill] sm:$0xff] %v8110_v2  ;;  %2973 = vrot.lane.b32.xlu0 %v2951_v51, %s5596_s15  ;;  %11130 = vst [vmem:[#allocation81_spill] sm:$0xff] %v8127_v14  ;;  %v8133_v51 = vmul.f32 %v7561_v43, %v11116_v9  ;;  %v3008_v2 = vmul.f32 %v7966_v25, %v11117_v42  ;;  %v2955_v60 = vmul.f32 %v8116_v32, %v11111_v27 }
 0x1e8   : > { %v8129_v61 = vpop.permute.xlu1 %2298  ;;  %11132 = vst [vmem:[#allocation83_spill] sm:$0xff] %v8143_v17  ;;  %v3045_v43 = vsel %vm336_vm0, %v3043_v45, %v3044_v10  ;;  %v3011_v48 = vmul.f32 %v8034_v63, %v11117_v42  ;;  %v3020_v58 = vmul.f32 %v8123_v59, %v11117_v42  ;;  %v3049_v55 = vrot.slane %v3009_v15, 1  ;;  %v8168_v17 = vld [vmem:[%s5699_s13 + $0x108] sm:$0x1] }
 0x1e9   : > { %11131 = vst [vmem:[#allocation82_spill] sm:$0xff] %v8129_v61  ;;  %v8146_v61 = vpop.permute.xlu0 %2296  ;;  %v3050_v34 = vrot.slane %v3018_v50, 1  ;;  %v3010_v29 = vmul.f32 %v7988_v16, %v11117_v42  ;;  %v3019_v10 = vmul.f32 %v8140_v4, %v11117_v42  ;;  %v8165_v14 = vmul.f32 %v5501_v26, %v11116_v9  ;;  %11135 = vst [vmem:[#allocation86_spill] sm:$0xff] %v8168_v17 }
 0x1ea   : > { %11133 = vst [vmem:[#allocation84_spill] sm:$0xff] %v8146_v61  ;;  %2979 = vrot.lane.b32.xlu1 %v2954_v37, %s5596_s15  ;;  %v2239_v37 = vrot.slane %v8133_v51, 1  ;;  %v3046_v27 = vrot.slane %v3008_v2, 1  ;;  %v3047_v61 = vrot.slane %v3017_v54, 1  ;;  %v8175_v50 = vmul.f32 %v7531_v39, %v11116_v9  ;;  %v8188_v54 = vld [vmem:[%s5699_s13 + $0x100] sm:$0x1] }
 0x1eb   : > { %2977 = vrot.lane.b32.xlu0 %v2953_v5, %s5596_s15  ;;  %v8171_v5 = vsel %vm336_vm0, %v2235_v0, %v2236_v33  ;;  %v8179_v15 = vmul.f32 %v7599_v35, %v11116_v9  ;;  %v8183_v51 = vmul.f32 %v7579_v49, %v11116_v9  ;;  %11138 = vst [vmem:[#allocation89_spill] sm:$0xff] %v8188_v54  ;;  %v3055_v39 = vrot.slane %v3011_v48, 1 }
 0x1ec   : > { %v8162_v45 = vpop.permute.xlu1 %2302  ;;  %11136 = vst [vmem:[#allocation87_spill] sm:$0xff] %v8171_v5  ;;  %v2205_v0 = vmul.f32 %v7523_v13, %v11116_v9  ;;  %v3056_v33 = vrot.slane %v3020_v58, 1  ;;  %v3013_v35 = vmul.f32 %v8086_v53, %v11117_v42  ;;  %v3051_v49 = vsel %vm336_vm0, %v3049_v55, %v3050_v34  ;;  %v8208_v58 = vld [vmem:[%s5699_s13 + $0x118] sm:$0x1] }
 0x1ed   : > { %11134 = vst [vmem:[#allocation85_spill] sm:$0xff] %v8162_v45  ;;  %v8185_v26 = vpop.permute.xlu0 %2300  ;;  %v3052_v2 = vrot.slane %v3010_v29, 1  ;;  %v3053_v45 = vrot.slane %v3019_v10, 1  ;;  %v3048_v13 = vsel %vm336_vm0, %v3046_v27, %v3047_v61  ;;  %v3012_v48 = vmul.f32 %v8019_v56, %v11117_v42  ;;  %v8220_v61 = vld [vmem:[%s5699_s13 + $0x110] sm:$0x1] }
 0x1ee   : > { %11137 = vst [vmem:[#allocation88_spill] sm:$0xff] %v8185_v26  ;;  %3070 = vrot.lane.b32.xlu1 %v3045_v43, %s5596_s15  ;;  %v3022_v26 = vmul.f32 %v8168_v17, %v11117_v42  ;;  %v2241_v43 = vrot.slane %v8165_v14, 1  ;;  %v2242_v55 = vrot.slane %v8179_v15, 1  ;;  %v2206_v34 = vmul.f32 %v7558_v46, %v11116_v9  ;;  %11141 = vst [vmem:[#allocation92_spill] sm:$0xff] %v8220_v61 }
 0x1ef   : > { %2981 = vrot.lane.b32.xlu0 %v2955_v60, %s5596_s15  ;;  %v3021_v60 = vmul.f32 %v8188_v54, %v11117_v42  ;;  %v2213_v14 = vmul.f32 %v7625_v20, %v11116_v9  ;;  %v2214_v29 = vmul.f32 %v7616_v24, %v11116_v9  ;;  %v2207_v10 = vmul.f32 %v7543_v44, %v11116_v9 }
 0x1f0   : > { %v8200_v5 = vpop.permute.xlu1 %2306  ;;  %v2215_v15 = vmul.f32 %v7649_v57, %v11116_v9  ;;  %v3057_v46 = vsel %vm336_vm0, %v3055_v39, %v3056_v33  ;;  %v3054_v20 = vsel %vm336_vm0, %v3052_v2, %v3053_v45  ;;  %v3062_v24 = vrot.slane %v3022_v26, 1 }
 0x1f1   : > { %11139 = vst [vmem:[#allocation90_spill] sm:$0xff] %v8200_v5  ;;  %v8217_v27 = vpop.permute.xlu0 %2304  ;;  %v3061_v5 = vrot.slane %v3013_v35, 1  ;;  %v3058_v44 = vrot.slane %v3012_v48, 1  ;;  %v3059_v17 = vrot.slane %v3021_v60, 1  ;;  %v3014_v57 = vmul.f32 %v8068_v21, %v11117_v42 }
 0x1f2   : > { %11140 = vst [vmem:[#allocation91_spill] sm:$0xff] %v8217_v27  ;;  %3074 = vrot.lane.b32.xlu1 %v3051_v49, %s5596_s15  ;;  %v3015_v27 = vmul.f32 %v8116_v32, %v11117_v42  ;;  %v3024_v49 = vmul.f32 %v8208_v58, %v11117_v42  ;;  %v3023_v39 = vmul.f32 %v8220_v61, %v11117_v42  ;;  %v2244_v33 = vrot.slane %v8175_v50, 1 }
 0x1f3   : > { %3072 = vrot.lane.b32.xlu0 %v3048_v13, %s5596_s15  ;;  %v2245_v45 = vrot.slane %v8183_v51, 1  ;;  %v2247_v26 = vrot.slane %v2205_v0, 1  ;;  %v2248_v35 = vrot.slane %v2213_v14, 1  ;;  %v1709_v13 = vsel %vm416_vm1, %v7555_v30, %v7553_v47 }
 0x1f4   : > { %v8234_v54 = vpop.permute.xlu1 %2397  ;;  %v11144_v48 = vrot.slane %v8094_v1, 1  ;;  %v2250_v9 = vrot.slane %v2206_v34, 1  ;;  %v2253_v50 = vrot.slane %v2207_v10, 1  ;;  %v3063_v51 = vsel %vm336_vm0, %v3061_v5, %v3062_v24  ;;  %v11153_v24 = vld [vmem:[#allocation10_spill] sm:$0xff] }
 0x1f5   : > { %11142 = vst [vmem:[#allocation93_spill] sm:$0xff] %v8234_v54  ;;  %v8242_v2 = vpop.permute.xlu0 %2308  ;;  %v2251_v54 = vrot.slane %v2214_v29, 1  ;;  %v3067_v0 = vrot.slane %v3015_v27, 1  ;;  %v3068_v14 = vrot.slane %v3024_v49, 1  ;;  %v2254_v42 = vrot.slane %v2215_v15, 1 }
 0x1f6   : > { %11143 = vst [vmem:[#allocation94_spill] sm:$0xff] %v8242_v2  ;;  %v8250_v60 = vsel %vm336_vm0, %v11144_v48, %v2239_v37  ;;  %3078 = vrot.lane.b32.xlu1 %v3057_v46, %s5596_s15  ;;  %v3060_v30 = vsel %vm336_vm0, %v3058_v44, %v3059_v17  ;;  %v3064_v1 = vrot.slane %v3014_v57, 1  ;;  %v3065_v61 = vrot.slane %v3023_v39, 1  ;;  %v11156_v57 = vld [vmem:[#allocation30_spill] sm:$0xff]  ;;  %v11157_v39 = vld [vmem:[#allocation33_spill] sm:$0xff] }
 0x1f7   : > { %3076 = vrot.lane.b32.xlu0 %v3054_v20, %s5596_s15  ;;  %v1710_v37 = vsel %vm416_vm1, %v7553_v47, %v7591_v22  ;;  %v8262_v34 = vsel %vm336_vm0, %v2241_v43, %v2242_v55  ;;  %v8265_v29 = vsel %vm336_vm0, %v2244_v33, %v2245_v45  ;;  %v8268_v5 = vsel %vm336_vm0, %v2247_v26, %v2248_v35 }
 0x1f8   : > { %v8255_v2 = vpop.permute.xlu1 %2401  ;;  %11146 = vst [vmem:[#allocation96_spill] sm:$0xff] %v8265_v29  ;;  %11147 = vst [vmem:[#allocation97_spill] sm:$0xff] %v8268_v5  ;;  %v1725_v10 = vadd.f32 %v1709_v13, %v8011_v7  ;;  %v1711_v17 = vsel %vm416_vm1, %v7591_v22, %v7589_v41  ;;  %v1712_v47 = vsel %vm416_vm1, %v7589_v41, %v7620_v62  ;;  %v11159_v13 = vld [vmem:[#allocation28_spill] sm:$0xff] }
 0x1f9   : > { %11145 = vst [vmem:[#allocation95_spill] sm:$0xff] %v8255_v2  ;;  %v8270_v27 = vpop.permute.xlu0 %2399  ;;  %v8280_v43 = vsel %vm336_vm0, %v2250_v9, %v2251_v54  ;;  %v1713_v55 = vsel %vm416_vm1, %v7620_v62, %v7618_v52  ;;  %v1714_v7 = vsel %vm416_vm1, %v7618_v52, %v7639_v23  ;;  %v1715_v22 = vsel %vm416_vm1, %v7639_v23, %v7637_v19 }
 0x1fa   : > { %11148 = vst [vmem:[#allocation98_spill] sm:$0xff] %v8270_v27  ;;  %11149 = vst [vmem:[#allocation99_spill] sm:$0xff] %v8280_v43  ;;  %3082 = vrot.lane.b32.xlu1 %v3063_v51, %s5596_s15  ;;  %v3069_v41 = vsel %vm336_vm0, %v3067_v0, %v3068_v14  ;;  %v1726_v9 = vadd.f32 %v1710_v37, %v8024_v36  ;;  %v1716_v54 = vsel %vm416_vm1, %v7637_v19, %v7665_v28  ;;  %v11162_v37 = vld [vmem:[#allocation31_spill] sm:$0xff] }
 0x1fb   : > { %3080 = vrot.lane.b32.xlu0 %v3060_v30, %s5596_s15  ;;  %v8299_v62 = vsel %vm336_vm0, %v2253_v50, %v2254_v42  ;;  %v3066_v52 = vsel %vm336_vm0, %v3064_v1, %v3065_v61  ;;  %v1727_v46 = vadd.f32 %v1711_v17, %v8026_v3  ;;  %v1728_v23 = vadd.f32 %v1712_v47, %v8028_v31  ;;  %v11154_v3 = vld [vmem:[#allocation9_spill] sm:$0xff]  ;;  %v11161_v30 = vld [vmem:[#allocation54_spill] sm:$0xff]  ;;  %v11175_v27 = vld [vmem:[#allocation55_spill] sm:$0xff] }
 0x1fc   : > { %11150 = vst [vmem:[#allocation100_spill] sm:$0xff] %v8299_v62  ;;  %v8301_v15 = vpop.permute.xlu1 %2405  ;;  %v3172_v36 = vmul.f32 %v7978_v12, %v11153_v24  ;;  %v3181_v49 = vmul.f32 %v8022_v6, %v11153_v24  ;;  %v1729_v19 = vadd.f32 %v1713_v55, %v8036_v40  ;;  %v1730_v28 = vadd.f32 %v1714_v7, %v8038_v8  ;;  %v11155_v8 = vld [vmem:[#allocation76_spill] sm:$0xff]  ;;  %v11163_v55 = vld [vmem:[#allocation78_spill] sm:$0xff] }
 0x1fd   : > { %11151 = vst [vmem:[#allocation101_spill] sm:$0xff] %v8301_v15  ;;  %v8306_v20 = vpop.permute.xlu0 %2403  ;;  %v8315_v42 = vadd.f32 %v1715_v22, %v8046_v11  ;;  %v3113_v31 = vmul.f32 %v7966_v25, %v11154_v3  ;;  %v8321_v61 = vadd.f32 %v1716_v54, %v8055_v38  ;;  %v3112_v44 = vmul.f32 %v7978_v12, %v11154_v3  ;;  %v11164_v22 = vld [vmem:[#allocation32_spill] sm:$0xff] }
 0x1fe   : > { %11152 = vst [vmem:[#allocation102_spill] sm:$0xff] %v8306_v20  ;;  %3086 = vrot.lane.b32.xlu1 %v3069_v41, %s5596_s15  ;;  %v3174_v40 = vmul.f32 %v7997_v18, %v11153_v24  ;;  %v3183_v11 = vmul.f32 %v11155_v8, %v11153_v24  ;;  %v1814_v33 = vsel %vm416_vm1, %v11157_v39, %v11156_v57  ;;  %v3208_v0 = vrot.slane %v3172_v36, 1  ;;  %v11165_v54 = vld [vmem:[#allocation56_spill] sm:$0xff] }
 0x1ff   : > { %3084 = vrot.lane.b32.xlu0 %v3066_v52, %s5596_s15  ;;  %v3115_v38 = vmul.f32 %v7988_v16, %v11154_v3  ;;  %v3114_v26 = vmul.f32 %v7997_v18, %v11154_v3  ;;  %v3117_v35 = vmul.f32 %v8019_v56, %v11154_v3  ;;  %v1815_v48 = vsel %vm416_vm1, %v11156_v57, %v11159_v13 }
 0x200   : > { %v8333_v45 = vpop.permute.xlu1 %2409  ;;  %v3116_v51 = vmul.f32 %v8034_v63, %v11154_v3  ;;  %v3209_v14 = vrot.slane %v3181_v49, 1  ;;  %v1816_v1 = vsel %vm416_vm1, %v11159_v13, %v11161_v30  ;;  %v1817_v17 = vsel %vm416_vm1, %v11161_v30, %v11162_v37 }
 0x201   : > { %11158 = vst [vmem:[#allocation76_spill] sm:$0xff] %v8333_v45  ;;  %v8344_v50 = vpop.permute.xlu0 %2407  ;;  %v3173_v47 = vmul.f32 %v7966_v25, %v11153_v24  ;;  %v3182_v7 = vmul.f32 %v11163_v55, %v11153_v24  ;;  %v1818_v41 = vsel %vm416_vm1, %v11162_v37, %v11164_v22  ;;  %v1819_v52 = vsel %vm416_vm1, %v11164_v22, %v11165_v54  ;;  %v11172_v22 = vld [vmem:[#allocation89_spill] sm:$0xff] }
 0x202   : > { %11160 = vst [vmem:[#allocation30_spill] sm:$0xff] %v8344_v50  ;;  %3132 = vrot.lane.b32.xlu1 %v3113_v31, %s5597_s30  ;;  %v3214_v36 = vrot.slane %v3174_v40, 1  ;;  %v3215_v49 = vrot.slane %v3183_v11, 1  ;;  %v1830_v57 = vadd.f32 %v1814_v33, %v1725_v10  ;;  %v8366_v31 = vadd.f32 %v1815_v48, %v1726_v9 }
 0x203   : > { %3130 = vrot.lane.b32.xlu0 %v3112_v44, %s5597_s30  ;;  %v3119_v13 = vmul.f32 %v8068_v21, %v11154_v3  ;;  %v3118_v30 = vmul.f32 %v8086_v53, %v11154_v3  ;;  %v1832_v37 = vadd.f32 %v1816_v1, %v1727_v46  ;;  %v8374_v45 = vadd.f32 %v1817_v17, %v1728_v23  ;;  %v11170_v1 = vld [vmem:[#allocation86_spill] sm:$0xff] }
 0x204   : > { %v8368_v39 = vpop.permute.xlu1 %2413  ;;  %v8379_v44 = vsel %vm336_vm0, %v3208_v0, %v3209_v14  ;;  %v8383_v10 = vmul.f32 %v8116_v32, %v11154_v3  ;;  %v1834_v9 = vadd.f32 %v1818_v41, %v1729_v19  ;;  %v8385_v40 = vadd.f32 %v1819_v52, %v1730_v28  ;;  %v11168_v28 = vld [vmem:[#allocation49_spill] sm:$0xff] }
 0x205   : > { %11166 = vst [vmem:[#allocation33_spill] sm:$0xff] %v8368_v39  ;;  %v8376_v50 = vpop.permute.xlu0 %2411  ;;  %v3211_v11 = vrot.slane %v3173_v47, 1  ;;  %v3212_v33 = vrot.slane %v3182_v7, 1  ;;  %v8390_v46 = vsel %vm336_vm0, %v3214_v36, %v3215_v49  ;;  %v3176_v23 = vmul.f32 %v8034_v63, %v11153_v24  ;;  %v11173_v36 = vld [vmem:[#allocation52_spill] sm:$0xff] }
 0x206   : > { %11167 = vst [vmem:[#allocation28_spill] sm:$0xff] %v8376_v50  ;;  %3136 = vrot.lane.b32.xlu1 %v3115_v38, %s5597_s30  ;;  %v3185_v48 = vmul.f32 %v8123_v59, %v11153_v24  ;;  %v3175_v19 = vmul.f32 %v7988_v16, %v11153_v24  ;;  %v1820_v38 = vsel %vm416_vm1, %v11165_v54, %v11168_v28 }
 0x207   : > { %3134 = vrot.lane.b32.xlu0 %v3114_v26, %s5597_s30  ;;  %v3184_v26 = vmul.f32 %v8140_v4, %v11153_v24  ;;  %v3178_v14 = vmul.f32 %v8086_v53, %v11153_v24  ;;  %v3187_v17 = vmul.f32 %v11170_v1, %v11153_v24  ;;  %v3177_v7 = vmul.f32 %v8019_v56, %v11153_v24 }
 0x208   : > { %v8401_v0 = vpop.permute.xlu1 %2459  ;;  %v3186_v41 = vmul.f32 %v11172_v22, %v11153_v24  ;;  %v3180_v54 = vmul.f32 %v8116_v32, %v11153_v24  ;;  %v3189_v52 = vmul.f32 %v8208_v58, %v11153_v24  ;;  %v1821_v49 = vsel %vm416_vm1, %v11168_v28, %v11173_v36  ;;  %v11176_v28 = vld [vmem:[#allocation51_spill] sm:$0xff] }
 0x209   : > { %11169 = vst [vmem:[#allocation54_spill] sm:$0xff] %v8401_v0  ;;  %v8409_v47 = vpop.permute.xlu0 %2457  ;;  %v8424_v3 = vsel %vm336_vm0, %v3211_v11, %v3212_v33  ;;  %v11174_v0 = vld [vmem:[#allocation92_spill] sm:$0xff]  ;;  %v1836_v50 = vadd.f32 %v1820_v38, %v8315_v42  ;;  %v3220_v15 = vrot.slane %v3176_v23, 1  ;;  %v3221_v20 = vrot.slane %v3185_v48, 1  ;;  %v11177_v38 = vld [vmem:[#allocation14_spill] sm:$0xff]  ;;  %v11178_v23 = vld [vmem:[#allocation53_spill] sm:$0xff] }
 0x20a   : > { %11171 = vst [vmem:[#allocation31_spill] sm:$0xff] %v8409_v47  ;;  %3140 = vrot.lane.b32.xlu1 %v3117_v35, %s5597_s30  ;;  %v3179_v47 = vmul.f32 %v8068_v21, %v11153_v24  ;;  %v3188_v39 = vmul.f32 %v11174_v0, %v11153_v24  ;;  %v3217_v2 = vrot.slane %v3175_v19, 1  ;;  %v1874_v35 = vsel %vm584_vm2, %v11176_v28, %v11175_v27  ;;  %v11181_v28 = vld [vmem:[#allocation39_spill] sm:$0xff] }
 0x20b   : > { %3138 = vrot.lane.b32.xlu0 %v3116_v51, %s5597_s30  ;;  %v3218_v11 = vrot.slane %v3184_v26, 1  ;;  %v3226_v33 = vrot.slane %v3178_v14, 1  ;;  %v3227_v62 = vrot.slane %v3187_v17, 1  ;;  %v3223_v5 = vrot.slane %v3177_v7, 1  ;;  %v11179_v17 = vld [vmem:[#allocation36_spill] sm:$0xff] }
 0x20c   : > { %v8435_v36 = vpop.permute.xlu1 %2463  ;;  %v3224_v24 = vrot.slane %v3186_v41, 1  ;;  %v3232_v29 = vrot.slane %v3180_v54, 1  ;;  %v3233_v42 = vrot.slane %v3189_v52, 1  ;;  %v1875_v51 = vsel %vm584_vm2, %v11175_v27, %v11177_v38  ;;  %v11180_v41 = vld [vmem:[#allocation37_spill] sm:$0xff] }
 0x20d   : > { %v8437_v43 = vpop.permute.xlu0 %2461  ;;  %v1876_v48 = vsel %vm584_vm2, %v11177_v38, %v11178_v23  ;;  %v3229_v19 = vrot.slane %v3179_v47, 1  ;;  %v3230_v26 = vrot.slane %v3188_v39, 1  ;;  %v1837_v14 = vadd.f32 %v1821_v49, %v8321_v61 }
 0x20e   : > { %3144 = vrot.lane.b32.xlu1 %v3119_v13, %s5597_s30  ;;  %v1877_v7 = vsel %vm584_vm2, %v11178_v23, %v11179_v17  ;;  %v1878_v54 = vsel %vm584_vm2, %v11179_v17, %v11180_v41  ;;  %v3222_v27 = vsel %vm336_vm0, %v3220_v15, %v3221_v20  ;;  %v1890_v52 = vadd.f32 %v1874_v35, %v1830_v57  ;;  %v11182_v35 = vld [vmem:[#allocation38_spill] sm:$0xff] }
 0x20f   : > { %3142 = vrot.lane.b32.xlu0 %v3118_v30, %s5597_s30  ;;  %v1879_v13 = vsel %vm584_vm2, %v11180_v41, %v11181_v28  ;;  %v3219_v61 = vsel %vm336_vm0, %v3217_v2, %v3218_v11  ;;  %v8462_v47 = vsel %vm336_vm0, %v3226_v33, %v3227_v62  ;;  %v1891_v49 = vadd.f32 %v1875_v51, %v8366_v31  ;;  %v11189_v51 = vld [vmem:[#allocation11_spill] sm:$0xff] }
 0x210   : > { %v8458_v39 = vpop.permute.xlu1 %2467  ;;  %v1892_v38 = vadd.f32 %v1876_v48, %v1832_v37  ;;  %v8468_v30 = vsel %vm336_vm0, %v3223_v5, %v3224_v24  ;;  %v8471_v15 = vsel %vm336_vm0, %v3232_v29, %v3233_v42  ;;  %v1893_v20 = vadd.f32 %v1877_v7, %v8374_v45  ;;  %v11183_v5 = vld [vmem:[#allocation18_spill] sm:$0xff]  ;;  %v11184_v24 = vld [vmem:[#allocation15_spill] sm:$0xff] }
 0x211   : > { %v8465_v23 = vpop.permute.xlu0 %2465  ;;  %v1894_v57 = vadd.f32 %v1878_v54, %v1834_v9  ;;  %v1880_v2 = vsel %vm584_vm2, %v11181_v28, %v11182_v35  ;;  %v8480_v62 = vsel %vm336_vm0, %v3229_v19, %v3230_v26  ;;  %v1895_v31 = vadd.f32 %v1879_v13, %v8385_v40  ;;  %v11186_v9 = vld [vmem:[#allocation17_spill] sm:$0xff]  ;;  %v11187_v40 = vld [vmem:[#allocation19_spill] sm:$0xff] }
 0x212   : > { %3235 = vrot.lane.b32.xlu1 %v8379_v44, %s5597_s30  ;;  %v1881_v29 = vsel %vm584_vm2, %v11182_v35, %v11183_v5  ;;  %v8490_v45 = vmul.f32 %v7966_v25, %v11184_v24  ;;  %v8494_v37 = vmul.f32 %v7978_v12, %v11184_v24  ;;  %v11185_v44 = vld [vmem:[#allocation43_spill] sm:$0xff]  ;;  %v3346_v48 = vmul.f32 %v8022_v6, %v11189_v51 }
 0x213   : > { %3146 = vrot.lane.b32.xlu0 %v8383_v10, %s5597_s30  ;;  %v1979_v11 = vsel %vm584_vm2, %v11186_v9, %v11185_v44  ;;  %v1980_v33 = vsel %vm584_vm2, %v11185_v44, %v11187_v40  ;;  %v3337_v10 = vmul.f32 %v7978_v12, %v11189_v51  ;;  %v1896_v19 = vadd.f32 %v1880_v2, %v1836_v50  ;;  %v11194_v9 = vld [vmem:[#allocation20_spill] sm:$0xff] }
 0x214   : > { %v8502_v42 = vpop.permute.xlu1 %2471  ;;  %v8512_v17 = vmul.f32 %v7988_v16, %v11184_v24  ;;  %v3339_v7 = vmul.f32 %v7997_v18, %v11189_v51  ;;  %v3348_v41 = vmul.f32 %v11155_v8, %v11189_v51  ;;  %v1897_v54 = vadd.f32 %v1881_v29, %v1837_v14  ;;  %v11192_v14 = vld [vmem:[#allocation40_spill] sm:$0xff] }
 0x215   : > { %11188 = vst [vmem:[#allocation78_spill] sm:$0xff] %v8502_v42  ;;  %v8508_v26 = vpop.permute.xlu0 %2469  ;;  %v8522_v12 = vmul.f32 %v7997_v18, %v11184_v24  ;;  %v3338_v6 = vmul.f32 %v7966_v25, %v11189_v51  ;;  %v3347_v50 = vmul.f32 %v11163_v55, %v11189_v51  ;;  %v1995_v28 = vadd.f32 %v1979_v11, %v1890_v52  ;;  %v11196_v42 = vld [vmem:[#allocation22_spill] sm:$0xff] }
 0x216   : > { %11190 = vst [vmem:[#allocation32_spill] sm:$0xff] %v8508_v26  ;;  %3239 = vrot.lane.b32.xlu1 %v8390_v46, %s5597_s30  ;;  %v8528_v13 = vadd.f32 %v1980_v33, %v1891_v49  ;;  %v8534_v8 = vmul.f32 %v8019_v56, %v11184_v24  ;;  %v8538_v18 = vmul.f32 %v8034_v63, %v11184_v24  ;;  %v11191_v46 = vld [vmem:[#allocation45_spill] sm:$0xff]  ;;  %v3373_v49 = vrot.slane %v3337_v10, 1 }
 0x217   : > { %3237 = vrot.lane.b32.xlu0 %v8424_v3, %s5597_s30  ;;  %v1981_v25 = vsel %vm584_vm2, %v11187_v40, %v11191_v46  ;;  %v1982_v55 = vsel %vm584_vm2, %v11191_v46, %v11192_v14  ;;  %v3374_v3 = vrot.slane %v3346_v48, 1  ;;  %v8552_v2 = vmul.f32 %v8068_v21, %v11184_v24  ;;  %v11195_v40 = vld [vmem:[#allocation21_spill] sm:$0xff] }
 0x218   : > { %v8546_v52 = vpop.permute.xlu1 %2562  ;;  %v8556_v5 = vmul.f32 %v8086_v53, %v11184_v24  ;;  %v3379_v29 = vrot.slane %v3339_v7, 1  ;;  %v3380_v44 = vrot.slane %v3348_v41, 1  ;;  %v1983_v11 = vsel %vm584_vm2, %v11192_v14, %v11194_v9  ;;  %v11197_v7 = vld [vmem:[#allocation42_spill] sm:$0xff] }
 0x219   : > { %v8548_v35 = vpop.permute.xlu0 %2473  ;;  %v1984_v33 = vsel %vm584_vm2, %v11194_v9, %v11195_v40  ;;  %v3376_v10 = vrot.slane %v3338_v6, 1  ;;  %v3377_v48 = vrot.slane %v3347_v50, 1  ;;  %v1997_v46 = vadd.f32 %v1981_v25, %v1892_v38 }
 0x21a   : > { %11193 = vst [vmem:[#allocation56_spill] sm:$0xff] %v8548_v35  ;;  %3243 = vrot.lane.b32.xlu1 %v3222_v27, %s5597_s30  ;;  %v1998_v35 = vadd.f32 %v1982_v55, %v1893_v20  ;;  %v1985_v26 = vsel %vm584_vm2, %v11195_v40, %v11196_v42  ;;  %v1986_v41 = vsel %vm584_vm2, %v11196_v42, %v11197_v7  ;;  %v11202_v7 = vld [vmem:[#allocation57_spill] sm:$0xff] }
 0x21b   : > { %3241 = vrot.lane.b32.xlu0 %v3219_v61, %s5597_s30  ;;  %v8575_v9 = vsel %vm336_vm0, %v3373_v49, %v3374_v3  ;;  %v8579_v27 = vmul.f32 %v8116_v32, %v11184_v24  ;;  %v8583_v38 = vmul.f32 %v8034_v63, %v11189_v51  ;;  %v8587_v20 = vmul.f32 %v8123_v59, %v11189_v51 }
 0x21c   : > { %v8572_v14 = vpop.permute.xlu1 %2566  ;;  %v1999_v42 = vadd.f32 %v1983_v11, %v1894_v57  ;;  %v2000_v6 = vadd.f32 %v1984_v33, %v1895_v31  ;;  %v8592_v50 = vsel %vm336_vm0, %v3379_v29, %v3380_v44  ;;  %v8596_v25 = vmul.f32 %v7988_v16, %v11189_v51  ;;  %v11198_v57 = vld [vmem:[#allocation44_spill] sm:$0xff]  ;;  %v11199_v31 = vld [vmem:[#allocation46_spill] sm:$0xff] }
 0x21d   : > { %v8589_v61 = vpop.permute.xlu0 %2564  ;;  %v2001_v55 = vadd.f32 %v1985_v26, %v1896_v19  ;;  %v2002_v49 = vadd.f32 %v1986_v41, %v1897_v54  ;;  %v8601_v63 = vsel %vm336_vm0, %v3376_v10, %v3377_v48  ;;  %v8605_v59 = vmul.f32 %v8140_v4, %v11189_v51 }
 0x21e   : > { %3247 = vrot.lane.b32.xlu1 %v8462_v47, %s5597_s30  ;;  %v2039_v3 = vsel %vm752_vm3, %v11199_v31, %v11198_v57  ;;  %v8614_v16 = vmul.f32 %v8086_v53, %v11189_v51  ;;  %v8618_v47 = vmul.f32 %v11170_v1, %v11189_v51  ;;  %v8622_v19 = vmul.f32 %v8019_v56, %v11189_v51  ;;  %v11200_v1 = vld [vmem:[#allocation24_spill] sm:$0xff]  ;;  %v11201_v56 = vld [vmem:[#allocation47_spill] sm:$0xff] }
 0x21f   : > { %3245 = vrot.lane.b32.xlu0 %v8468_v30, %s5597_s30  ;;  %v3385_v26 = vrot.slane %v8583_v38, 1  ;;  %v3386_v54 = vrot.slane %v8587_v20, 1  ;;  %v8630_v30 = vmul.f32 %v11172_v22, %v11189_v51  ;;  %v8634_v53 = vmul.f32 %v8116_v32, %v11189_v51 }
 0x220   : > { %v8624_v4 = vpop.permute.xlu1 %2570  ;;  %v2040_v29 = vsel %vm752_vm3, %v11198_v57, %v11200_v1  ;;  %v2041_v44 = vsel %vm752_vm3, %v11200_v1, %v11201_v56  ;;  %v8646_v40 = vmul.f32 %v8208_v58, %v11189_v51  ;;  %v8650_v22 = vmul.f32 %v8068_v21, %v11189_v51 }
 0x221   : > { %v8642_v11 = vpop.permute.xlu0 %2568  ;;  %v2055_v32 = vadd.f32 %v2039_v3, %v1995_v28  ;;  %v3382_v33 = vrot.slane %v8596_v25, 1  ;;  %v3383_v10 = vrot.slane %v8605_v59, 1  ;;  %v3353_v48 = vmul.f32 %v11174_v0, %v11189_v51  ;;  %v11203_v59 = vld [vmem:[#allocation50_spill] sm:$0xff] }
 0x222   : > { %3251 = vrot.lane.b32.xlu1 %v8471_v15, %s5597_s30  ;;  %v2042_v58 = vsel %vm752_vm3, %v11201_v56, %v11202_v7  ;;  %v3391_v21 = vrot.slane %v8614_v16, 1  ;;  %v3392_v28 = vrot.slane %v8618_v47, 1  ;;  %v3388_v15 = vrot.slane %v8622_v19, 1  ;;  %v11205_v47 = vld [vmem:[#allocation63_spill] sm:$0xff]  ;;  %v11206_v19 = vld [vmem:[#allocation60_spill] sm:$0xff]  ;;  %v11208_v56 = vld [vmem:[#allocation58_spill] sm:$0xff] }
 0x223   : > { %3249 = vrot.lane.b32.xlu0 %v8480_v62, %s5597_s30  ;;  %v2056_v41 = vadd.f32 %v2040_v29, %v8528_v13  ;;  %v2057_v38 = vadd.f32 %v2041_v44, %v1997_v46  ;;  %v3389_v0 = vrot.slane %v8630_v30, 1  ;;  %v3397_v25 = vrot.slane %v8634_v53, 1  ;;  %v11204_v62 = vld [vmem:[#allocation59_spill] sm:$0xff]  ;;  %v11207_v53 = vld [vmem:[#allocation62_spill] sm:$0xff] }
 0x224   : > { %v8667_v20 = vpop.permute.xlu1 %2574  ;;  %v2043_v57 = vsel %vm752_vm3, %v11202_v7, %v11203_v59  ;;  %v2044_v31 = vsel %vm752_vm3, %v11203_v59, %v11204_v62  ;;  %v3398_v16 = vrot.slane %v8646_v40, 1  ;;  %v3394_v13 = vrot.slane %v8650_v22, 1  ;;  %v11209_v40 = vld [vmem:[#allocation61_spill] sm:$0xff] }
 0x225   : > { %v8677_v3 = vpop.permute.xlu0 %2572  ;;  %v2058_v46 = vadd.f32 %v2042_v58, %v1998_v35  ;;  %v2144_v30 = vsel %vm752_vm3, %v11206_v19, %v11205_v47  ;;  %v2145_v1 = vsel %vm752_vm3, %v11205_v47, %v11207_v53  ;;  %v3395_v29 = vrot.slane %v3353_v48, 1  ;;  %v11210_v22 = vld [vmem:[#allocation65_spill] sm:$0xff]  ;;  %v11211_v58 = vld [vmem:[#allocation64_spill] sm:$0xff]  ;;  %v11212_v47 = vld [vmem:[#allocation67_spill] sm:$0xff] }
 0x226   : > { %3297 = vrot.lane.b32.xlu1 %v8490_v45, %s5598_s8  ;;  %v2045_v44 = vsel %vm752_vm3, %v11204_v62, %v11208_v56  ;;  %v2046_v35 = vsel %vm752_vm3, %v11208_v56, %v11209_v40  ;;  %v2146_v7 = vsel %vm752_vm3, %v11207_v53, %v11210_v22  ;;  %v2147_v59 = vsel %vm752_vm3, %v11210_v22, %v11211_v58  ;;  %v11213_v19 = vld [vmem:[#allocation66_spill] sm:$0xff]  ;;  %v11214_v22 = vld [vmem:[#allocation69_spill] sm:$0xff] }
 0x227   : > { %3295 = vrot.lane.b32.xlu0 %v8494_v37, %s5598_s8  ;;  %v2059_v45 = vadd.f32 %v2043_v57, %v1999_v42  ;;  %v2060_v48 = vadd.f32 %v2044_v31, %v2000_v6  ;;  %v2148_v62 = vsel %vm752_vm3, %v11211_v58, %v11212_v47  ;;  %v2149_v56 = vsel %vm752_vm3, %v11212_v47, %v11213_v19  ;;  %v11215_v42 = vld [vmem:[#allocation68_spill] sm:$0xff] }
 0x228   : > { %v8709_v40 = vpop.permute.xlu1 %2578  ;;  %v2160_v53 = vadd.f32 %v2144_v30, %v2055_v32  ;;  %v2161_v51 = vadd.f32 %v2145_v1, %v2056_v41  ;;  %v2150_v37 = vsel %vm752_vm3, %v11213_v19, %v11214_v22  ;;  %v2151_v6 = vsel %vm752_vm3, %v11214_v22, %v11215_v42  ;;  %v11224_v19 = vld [vmem:[#allocation23_spill] sm:$0xff]  ;;  %v11228_v22 = vld [vmem:[#allocation80_spill] sm:$0xff]  ;;  %v11229_v42 = vld [vmem:[#allocation81_spill] sm:$0xff] }
 0x229   : > { %v8717_v57 = vpop.permute.xlu0 %2576  ;;  %v2061_v31 = vadd.f32 %v2045_v44, %v2001_v55  ;;  %v2062_v58 = vadd.f32 %v2046_v35, %v2002_v49  ;;  %v2162_v47 = vadd.f32 %v2146_v7, %v2057_v38  ;;  %v2163_v24 = vadd.f32 %v2147_v59, %v2058_v46  ;;  %v8730_v55 = vld [vmem:[%s5699_s13 + $0x1b8] sm:$0xff]  ;;  %v8733_v49 = vld [vmem:[%s5699_s13 + $0x1b0] sm:$0xff]  ;;  %v11220_v35 = vld [vmem:[#allocation71_spill] sm:$0xff] }
 0x22a   : > { %3301 = vrot.lane.b32.xlu1 %v8512_v17, %s5598_s8  ;;  %v2164_v32 = vadd.f32 %v2148_v62, %v2059_v45  ;;  %v2165_v41 = vadd.f32 %v2149_v56, %v2060_v48  ;;  %v8724_v30 = vsel %vm336_vm0, %v3385_v26, %v3386_v54  ;;  %v8727_v1 = vsel %vm336_vm0, %v3382_v33, %v3383_v10  ;;  %v8744_v26 = vld [vmem:[%s5699_s13 + $0x1c8] sm:$0xff]  ;;  %v8747_v54 = vld [vmem:[%s5699_s13 + $0x1c0] sm:$0xff]  ;;  %v11219_v33 = vld [vmem:[#allocation70_spill] sm:$0xff] }
 0x22b   : > { %3299 = vrot.lane.b32.xlu0 %v8522_v12, %s5598_s8  ;;  %11216 = vst [vmem:[#allocation49_spill] sm:$0xff] %v8730_v55  ;;  %v2166_v38 = vadd.f32 %v2150_v37, %v2061_v31  ;;  %v2167_v46 = vadd.f32 %v2151_v6, %v2062_v58  ;;  %v8738_v17 = vsel %vm336_vm0, %v3391_v21, %v3392_v28  ;;  %11217 = vst [vmem:[#allocation86_spill] sm:$0xff] %v8744_v26  ;;  %v8760_v21 = vld [vmem:[%s5699_s13 + $0x1d8] sm:$0xff]  ;;  %v11222_v28 = vld [vmem:[#allocation72_spill] sm:$0xff] }
 0x22c   : > { %v8735_v44 = vpop.permute.xlu1 %2624  ;;  %v8741_v12 = vsel %vm336_vm0, %v3388_v15, %v3389_v0  ;;  %11218 = vst [vmem:[#allocation89_spill] sm:$0xff] %v8747_v54  ;;  %v2192_v10 = vadd.f32 %v11219_v33, %v2160_v53  ;;  %v2193_v7 = vadd.f32 %v11220_v35, %v2161_v51  ;;  %v8754_v45 = vsel %vm336_vm0, %v3397_v25, %v3398_v16  ;;  %v11223_v0 = vld [vmem:[#allocation73_spill] sm:$0xff]  ;;  %v11227_v56 = vld [vmem:[#allocation79_spill] sm:$0xff] }
 0x22d   : > { %v8751_v59 = vpop.permute.xlu0 %2622  ;;  %v8757_v48 = vsel %vm336_vm0, %v3394_v13, %v3395_v29  ;;  %11221 = vst [vmem:[#allocation52_spill] sm:$0xff] %v8760_v21  ;;  %v2194_v15 = vadd.f32 %v11222_v28, %v2162_v47  ;;  %v2195_v62 = vadd.f32 %v11223_v0, %v2163_v24  ;;  %v8768_v51 = vmul.f32 %v8730_v55, %v11224_v19  ;;  %v8775_v16 = vld [vmem:[%s5699_s13 + $0x1d0] sm:$0xff]  ;;  %v11226_v13 = vld [vmem:[#allocation74_spill] sm:$0xff]  ;;  %v11230_v31 = vld [vmem:[#allocation75_spill] sm:$0xff] }
 0x22e   : > { %3305 = vrot.lane.b32.xlu1 %v8534_v8, %s5598_s8  ;;  %v8772_v25 = vmul.f32 %v8733_v49, %v11224_v19  ;;  %11225 = vst [vmem:[#allocation92_spill] sm:$0xff] %v8775_v16  ;;  %v2196_v29 = vadd.f32 %v11226_v13, %v2164_v32  ;;  %v2197_v53 = vadd.f32 %v11227_v56, %v2165_v41  ;;  %v11231_v58 = vld [vmem:[#allocation77_spill] sm:$0xff]  ;;  %v11233_v41 = vld [vmem:[#allocation83_spill] sm:$0xff]  ;;  %v11235_v0 = vld [vmem:[#allocation84_spill] sm:$0xff] }
 0x22f   : > { %3303 = vrot.lane.b32.xlu0 %v8538_v18, %s5598_s8  ;;  %v8783_v24 = vmul.f32 %v8744_v26, %v11224_v19  ;;  %v8787_v8 = vmul.f32 %v8747_v54, %v11224_v19  ;;  %v2198_v37 = vadd.f32 %v11228_v22, %v2166_v38  ;;  %v2199_v6 = vadd.f32 %v11229_v42, %v2167_v46  ;;  %v11234_v35 = vld [vmem:[#allocation87_spill] sm:$0xff]  ;;  %v11237_v22 = vld [vmem:[#allocation82_spill] sm:$0xff] }
 0x230   : > { %v2310_v47 = vsel %vm416_vm1, %v11231_v58, %v11230_v31  ;;  %v8794_v32 = vpop.permute.xlu1 %2628  ;;  %v8798_v18 = vmul.f32 %v8760_v21, %v11224_v19  ;;  %v2264_v33 = vadd.f32 %v11233_v41, %v2192_v10  ;;  %v2265_v28 = vadd.f32 %v11234_v35, %v2193_v7  ;;  %v11238_v58 = vld [vmem:[#allocation88_spill] sm:$0xff]  ;;  %v11240_v21 = vld [vmem:[#allocation85_spill] sm:$0xff]  ;;  %v11245_v55 = vld [vmem:[#allocation90_spill] sm:$0xff] }
 0x231   : > { %v2311_v38 = vsel %vm416_vm1, %v11230_v31, %v11235_v0  ;;  %v8805_v13 = vpop.permute.xlu0 %2626  ;;  %v8809_v46 = vmul.f32 %v8775_v16, %v11224_v19  ;;  %v2266_v56 = vadd.f32 %v8250_v60, %v2194_v15  ;;  %v2312_v42 = vsel %vm416_vm1, %v11235_v0, %v11237_v22  ;;  %v11239_v41 = vld [vmem:[#allocation96_spill] sm:$0xff]  ;;  %v11241_v15 = vld [vmem:[#allocation97_spill] sm:$0xff]  ;;  %v11243_v16 = vld [vmem:[#allocation91_spill] sm:$0xff] }
 0x232   : > { %11232 = vst [vmem:[#allocation55_spill] sm:$0xff] %v8798_v18  ;;  %v2267_v10 = vadd.f32 %v8262_v34, %v2195_v62  ;;  %v2313_v7 = vsel %vm416_vm1, %v11237_v22, %v11238_v58  ;;  %3309 = vrot.lane.b32.xlu1 %v8552_v2, %s5598_s8  ;;  %v2326_v31 = vadd.f32 %v2310_v47, %v2264_v33  ;;  %v11242_v62 = vld [vmem:[#allocation99_spill] sm:$0xff]  ;;  %v11244_v2 = vld [vmem:[#allocation100_spill] sm:$0xff]  ;;  %v11256_v54 = vld [vmem:[#allocation54_spill] sm:$0xff] }
 0x233   : > { %11236 = vst [vmem:[#allocation51_spill] sm:$0xff] %v8809_v46  ;;  %v2268_v35 = vadd.f32 %v11239_v41, %v2196_v29  ;;  %v2314_v60 = vsel %vm416_vm1, %v11238_v58, %v11240_v21  ;;  %v2269_v26 = vadd.f32 %v11241_v15, %v2197_v53  ;;  %3307 = vrot.lane.b32.xlu0 %v8556_v5, %s5598_s8  ;;  %v11246_v58 = vld [vmem:[#allocation94_spill] sm:$0xff]  ;;  %v11248_v15 = vld [vmem:[#allocation93_spill] sm:$0xff] }
 0x234   : > { %v2327_v34 = vadd.f32 %v2311_v38, %v2265_v28  ;;  %v2270_v0 = vadd.f32 %v11242_v62, %v2198_v37  ;;  %v2315_v22 = vsel %vm416_vm1, %v11240_v21, %v11243_v16  ;;  %v2271_v47 = vadd.f32 %v11244_v2, %v2199_v6  ;;  %v8833_v33 = vpop.permute.xlu1 %2632  ;;  %v11247_v38 = vld [vmem:[#allocation98_spill] sm:$0xff]  ;;  %v11249_v6 = vld [vmem:[#allocation95_spill] sm:$0xff]  ;;  %v11253_v62 = vld [vmem:[#allocation76_spill] sm:$0xff] }
 0x235   : > { %v2328_v29 = vadd.f32 %v2312_v42, %v2266_v56  ;;  %v2329_v41 = vadd.f32 %v2313_v7, %v2267_v10  ;;  %v2316_v53 = vsel %vm416_vm1, %v11243_v16, %v11245_v55  ;;  %v2317_v5 = vsel %vm416_vm1, %v11245_v55, %v11246_v58  ;;  %v8841_v28 = vpop.permute.xlu0 %2630  ;;  %v11250_v42 = vld [vmem:[#allocation102_spill] sm:$0xff]  ;;  %v11251_v55 = vld [vmem:[#allocation101_spill] sm:$0xff] }
 0x236   : > { %v2330_v37 = vadd.f32 %v2314_v60, %v2268_v35  ;;  %v2415_v21 = vsel %vm416_vm1, %v11248_v15, %v11247_v38  ;;  %v2416_v56 = vsel %vm416_vm1, %v11247_v38, %v11249_v6  ;;  %v2417_v10 = vsel %vm416_vm1, %v11249_v6, %v11250_v42  ;;  %3400 = vrot.lane.b32.xlu1 %v8575_v9, %s5598_s8  ;;  %v11252_v35 = vld [vmem:[#allocation30_spill] sm:$0xff]  ;;  %v11254_v15 = vld [vmem:[#allocation28_spill] sm:$0xff] }
 0x237   : > { %v2331_v16 = vadd.f32 %v2315_v22, %v2269_v26  ;;  %v2418_v7 = vsel %vm416_vm1, %v11250_v42, %v11251_v55  ;;  %v2419_v60 = vsel %vm416_vm1, %v11251_v55, %v11252_v35  ;;  %v2420_v2 = vsel %vm416_vm1, %v11252_v35, %v11253_v62  ;;  %3311 = vrot.lane.b32.xlu0 %v8579_v27, %s5598_s8  ;;  %v11255_v26 = vld [vmem:[#allocation33_spill] sm:$0xff]  ;;  %v11257_v35 = vld [vmem:[#allocation31_spill] sm:$0xff] }
 0x238   : > { %v2332_v58 = vadd.f32 %v2316_v53, %v2270_v0  ;;  %v2333_v38 = vadd.f32 %v2317_v5, %v2271_v47  ;;  %v2421_v9 = vsel %vm416_vm1, %v11253_v62, %v11254_v15  ;;  %v2422_v22 = vsel %vm416_vm1, %v11254_v15, %v11255_v26  ;;  %v8871_v6 = vpop.permute.xlu1 %2636 }
 0x239   : > { %v2431_v42 = vadd.f32 %v2415_v21, %v2326_v31  ;;  %v2432_v55 = vadd.f32 %v2416_v56, %v2327_v34  ;;  %v2433_v46 = vadd.f32 %v2417_v10, %v2328_v29  ;;  %v2475_v18 = vsel %vm584_vm2, %v11257_v35, %v11256_v54  ;;  %v8876_v27 = vpop.permute.xlu0 %2634  ;;  %v11258_v56 = vld [vmem:[#allocation32_spill] sm:$0xff] }
 0x23a   : > { %v2434_v0 = vadd.f32 %v2418_v7, %v2329_v41  ;;  %v2435_v47 = vadd.f32 %v2419_v60, %v2330_v37  ;;  %v2436_v53 = vadd.f32 %v2420_v2, %v2331_v16  ;;  %v2476_v5 = vsel %vm584_vm2, %v11256_v54, %v8437_v43  ;;  %3404 = vrot.lane.b32.xlu1 %v8592_v50, %s5598_s8  ;;  %v11260_v10 = vld [vmem:[#allocation56_spill] sm:$0xff] }
 0x23b   : > { %v2437_v62 = vadd.f32 %v2421_v9, %v2332_v58  ;;  %v2438_v31 = vadd.f32 %v2422_v22, %v2333_v38  ;;  %v2477_v34 = vsel %vm584_vm2, %v8437_v43, %v8435_v36  ;;  %v2478_v29 = vsel %vm584_vm2, %v8435_v36, %v8465_v23  ;;  %3402 = vrot.lane.b32.xlu0 %v8601_v63, %s5598_s8  ;;  %v11259_v63 = vld [vmem:[#allocation78_spill] sm:$0xff] }
 0x23c   : > { %v2491_v41 = vadd.f32 %v2475_v18, %v2431_v42  ;;  %v2479_v54 = vsel %vm584_vm2, %v8465_v23, %v8458_v39  ;;  %v2580_v50 = vsel %vm584_vm2, %v8546_v52, %v8589_v61  ;;  %v2581_v43 = vsel %vm584_vm2, %v8589_v61, %v8572_v14  ;;  %v2728_v37 = vpop.permute.xlu1 %2727 }
 0x23d   : > { %v2492_v21 = vadd.f32 %v2476_v5, %v2432_v55  ;;  %v2480_v36 = vsel %vm584_vm2, %v8458_v39, %v11258_v56  ;;  %v2481_v18 = vsel %vm584_vm2, %v11258_v56, %v11259_v63  ;;  %v2482_v23 = vsel %vm584_vm2, %v11259_v63, %v11260_v10  ;;  %v8909_v16 = vpop.permute.xlu0 %2638 }
 0x23e   : > { %v2493_v52 = vadd.f32 %v2477_v34, %v2433_v46  ;;  %v2494_v7 = vadd.f32 %v2478_v29, %v2434_v0  ;;  %v2640_v61 = vsel %vm752_vm3, %v8751_v59, %v8735_v44  ;;  %v2641_v39 = vsel %vm752_vm3, %v8735_v44, %v8805_v13  ;;  %3408 = vrot.lane.b32.xlu1 %v8724_v30, %s5598_s8  ;;  %v11261_v34 = vld [vmem:[#allocation26_spill] sm:$0xff] }
 0x23f   : > { %v2495_v60 = vadd.f32 %v2479_v54, %v2435_v47  ;;  %v2596_v2 = vadd.f32 %v2580_v50, %v2491_v41  ;;  %v2597_v58 = vadd.f32 %v2581_v43, %v2492_v21  ;;  %v2582_v38 = vsel %vm584_vm2, %v8572_v14, %v8642_v11  ;;  %3406 = vrot.lane.b32.xlu0 %v8727_v1, %s5598_s8 }
 0x240   : > { %v2496_v46 = vadd.f32 %v2480_v36, %v2436_v53  ;;  %v2497_v15 = vadd.f32 %v2481_v18, %v2437_v62  ;;  %v2498_v59 = vadd.f32 %v2482_v23, %v2438_v31  ;;  %v2583_v44 = vsel %vm584_vm2, %v8642_v11, %v8624_v4  ;;  %v2732_v9 = vpop.permute.xlu1 %2731 }
 0x241   : > { %v2584_v30 = vsel %vm584_vm2, %v8624_v4, %v8677_v3  ;;  %v2656_v26 = vadd.f32 %v2640_v61, %v2596_v2  ;;  %v2642_v14 = vsel %vm752_vm3, %v8805_v13, %v8794_v32  ;;  %v2657_v22 = vadd.f32 %v2641_v39, %v2597_v58  ;;  %v2730_v42 = vpop.permute.xlu0 %2729 }
 0x242   : > { %v2598_v1 = vadd.f32 %v2582_v38, %v2493_v52  ;;  %v2643_v55 = vsel %vm752_vm3, %v8794_v32, %v8841_v28  ;;  %v2745_v35 = vsel %vm752_vm3, %v2728_v37, %v2730_v42  ;;  %v2746_v11 = vsel %vm752_vm3, %v2730_v42, %v2732_v9  ;;  %3412 = vrot.lane.b32.xlu1 %v8738_v17, %s5598_s8  ;;  %v8984_v38 = vld [vmem:[%s5699_s13 + $0x1f8] sm:$0x1] }
 0x243   : > { %v2599_v4 = vadd.f32 %v2583_v44, %v2494_v7  ;;  %v2585_v0 = vsel %vm584_vm2, %v8677_v3, %v8667_v20  ;;  %v2761_v13 = vadd.f32 %v2745_v35, %v2656_v26  ;;  %v2762_v47 = vadd.f32 %v2746_v11, %v2657_v22  ;;  %3410 = vrot.lane.b32.xlu0 %v8741_v12, %s5598_s8 }
 0x244   : > { %v2600_v53 = vadd.f32 %v2584_v30, %v2495_v60  ;;  %v2586_v32 = vsel %vm584_vm2, %v8667_v20, %v8717_v57  ;;  %v2587_v5 = vsel %vm584_vm2, %v8717_v57, %v8709_v40  ;;  %v2658_v17 = vadd.f32 %v2642_v14, %v2598_v1  ;;  %v2736_v62 = vpop.permute.xlu1 %2735  ;;  %v11262_v57 = vld [vmem:[#allocation27_spill] sm:$0xff]  ;;  %v8990_v14 = vld [vmem:[%s5699_s13 + $0x1e8] sm:$0xff] }
 0x245   : > { %v2644_v3 = vsel %vm752_vm3, %v8841_v28, %v8833_v33  ;;  %v2659_v31 = vadd.f32 %v2643_v55, %v2599_v4  ;;  %v2769_v29 = vmul.f32 %v2761_v13, %v11261_v34  ;;  %v2770_v12 = vmul.f32 %v2762_v47, %v11261_v34  ;;  %v2734_v41 = vpop.permute.xlu0 %2733  ;;  %v8998_v1 = vld [vmem:[%s5699_s13 + $0x1e0] sm:$0xff]  ;;  %v9011_v47 = vld [vmem:[%s5699_s13 + $0x208] sm:$0x1] }
 0x246   : > { %v2601_v54 = vadd.f32 %v2585_v0, %v2496_v46  ;;  %v2645_v20 = vsel %vm752_vm3, %v8833_v33, %v8876_v27  ;;  %v2747_v50 = vsel %vm752_vm3, %v2732_v9, %v2734_v41  ;;  %v2748_v40 = vsel %vm752_vm3, %v2734_v41, %v2736_v62  ;;  %3416 = vrot.lane.b32.xlu1 %v8754_v45, %s5598_s8 }
 0x247   : > { %v2777_v28 = vadd.f32 %v2769_v29, %v11262_v57  ;;  %v2778_v43 = vadd.f32 %v2770_v12, %v11262_v57  ;;  %v2763_v37 = vadd.f32 %v2747_v50, %v2658_v17  ;;  %v2764_v21 = vadd.f32 %v2748_v40, %v2659_v31  ;;  %3414 = vrot.lane.b32.xlu0 %v8757_v48, %s5598_s8  ;;  %v11264_v29 = vld [vmem:[#allocation55_spill] sm:$0xff]  ;;  %v9030_v50 = vld [vmem:[%s5699_s13 + $0x218] sm:$0x1] }
 0x248   : > { %v2602_v56 = vadd.f32 %v2586_v32, %v2497_v15  ;;  %v2603_v36 = vadd.f32 %v2587_v5, %v2498_v59  ;;  %v2660_v63 = vadd.f32 %v2644_v3, %v2600_v53  ;;  %v2646_v33 = vsel %vm752_vm3, %v8876_v27, %v8871_v6  ;;  %v2740_v18 = vpop.permute.xlu1 %2739  ;;  %v11263_v15 = vld [vmem:[#allocation29_spill] sm:$0xff]  ;;  %v9023_v3 = vld [vmem:[%s5699_s13 + $0x200] sm:$0x1] }
 0x249   : > { %v5246_v10 = vmul.f32 -1.442695, %v2777_v28  ;;  %v5247_v45 = vmul.f32 -1.442695, %v2778_v43  ;;  %v2771_v23 = vmul.f32 %v2763_v37, %v11261_v34  ;;  %v2772_v52 = vmul.f32 %v2764_v21, %v11261_v34  ;;  %v2738_v7 = vpop.permute.xlu0 %2737  ;;  %v11266_v43 = vld [vmem:[#allocation51_spill] sm:$0xff] }
 0x24a   : > { %v2661_v61 = vadd.f32 %v2645_v20, %v2601_v54  ;;  %v2647_v48 = vsel %vm752_vm3, %v8871_v6, %v8909_v16  ;;  %v2749_v39 = vsel %vm752_vm3, %v2736_v62, %v2738_v7  ;;  %v2750_v60 = vsel %vm752_vm3, %v2738_v7, %v2740_v18  ;;  %3568 = vrot.lane.b32.xlu1 %v8768_v51, %s5596_s15  ;;  %v9020_v62 = vld [vmem:[%s5699_s13 + $0x1f0] sm:$0xff] }
 0x24b   : > { %5386 = vpow2.f32 %v5246_v10  ;;  %v2779_v27 = vadd.f32 %v2771_v23, %v11262_v57  ;;  %v2780_v2 = vadd.f32 %v2772_v52, %v11262_v57  ;;  %v2765_v58 = vadd.f32 %v2749_v39, %v2660_v63  ;;  %3566 = vrot.lane.b32.xlu0 %v8772_v25, %s5596_s15  ;;  %v11265_v54 = vld [vmem:[#allocation89_spill] sm:$0xff] }
 0x24c   : > { %v2662_v6 = vadd.f32 %v2646_v33, %v2602_v56  ;;  %5388 = vpow2.f32 %v5247_v45  ;;  %v2766_v16 = vadd.f32 %v2750_v60, %v2661_v61  ;;  %v2744_v46 = vpop.permute.xlu1 %2743  ;;  %v3608_v51 = vmul.f32 %v8733_v49, %v11263_v15  ;;  %v9039_v21 = vld [vmem:[%s5699_s13 + $0x210] sm:$0x1] }
 0x24d   : > { %v2663_v59 = vadd.f32 %v2647_v48, %v2603_v36  ;;  %v5248_v44 = vmul.f32 -1.442695, %v2779_v27  ;;  %v5249_v9 = vmul.f32 -1.442695, %v2780_v2  ;;  %v2773_v30 = vmul.f32 %v2765_v58, %v11261_v34  ;;  %v2742_v26 = vpop.permute.xlu0 %2741  ;;  %v11268_v36 = vld [vmem:[#allocation49_spill] sm:$0xff]  ;;  %v11271_v48 = vld [vmem:[#allocation86_spill] sm:$0xff] }
 0x24e   : > { %v2774_v25 = vmul.f32 %v2766_v16, %v11261_v34  ;;  %v2751_v22 = vsel %vm752_vm3, %v2740_v18, %v2742_v26  ;;  %v2752_v42 = vsel %vm752_vm3, %v2742_v26, %v2744_v46  ;;  %3572 = vrot.lane.b32.xlu1 %v8783_v24, %s5596_s15  ;;  %v3617_v55 = vmul.f32 %v8984_v38, %v11263_v15  ;;  %v11269_v18 = vld [vmem:[#allocation92_spill] sm:$0xff] }
 0x24f   : > { %5390 = vpow2.f32 %v5248_v44  ;;  %v2781_v35 = vadd.f32 %v2773_v30, %v11262_v57  ;;  %v2767_v11 = vadd.f32 %v2751_v22, %v2662_v6  ;;  %v2768_v4 = vadd.f32 %v2752_v42, %v2663_v59  ;;  %3570 = vrot.lane.b32.xlu0 %v8787_v8, %s5596_s15  ;;  %v9063_v59 = vld [vmem:[%s5699_s13 + $0x228] sm:$0x1] }
 0x250   : > { %5392 = vpow2.f32 %v5249_v9  ;;  %v2782_v0 = vadd.f32 %v2774_v25, %v11262_v57  ;;  %v9006_v24 = vpop.permute.xlu1 %2967  ;;  %v3555_v13 = vmul.f32 %v8990_v14, %v11224_v19  ;;  %v3554_v8 = vmul.f32 %v8998_v1, %v11224_v19 }
 0x251   : > { %v5250_v53 = vmul.f32 -1.442695, %v2781_v35  ;;  %v2775_v32 = vmul.f32 %v2767_v11, %v11261_v34  ;;  %v2776_v5 = vmul.f32 %v2768_v4, %v11261_v34  ;;  %v9015_v17 = vpop.permute.xlu0 %2965  ;;  %v3644_v12 = vrot.slane %v3608_v51, 1  ;;  %v9072_v11 = vld [vmem:[%s5699_s13 + $0x220] sm:$0x1] }
 0x252   : > { %v5251_v31 = vmul.f32 -1.442695, %v2782_v0  ;;  %3576 = vrot.lane.b32.xlu1 %v11264_v29, %s5596_s15  ;;  %v3645_v41 = vrot.slane %v3617_v55, 1  ;;  %v3610_v20 = vmul.f32 %v11265_v54, %v11263_v15  ;;  %v3619_v37 = vmul.f32 %v9011_v47, %v11263_v15 }
 0x253   : > { %5394 = vpow2.f32 %v5250_v53  ;;  %v2783_v40 = vadd.f32 %v2775_v32, %v11262_v57  ;;  %v2784_v28 = vadd.f32 %v2776_v5, %v11262_v57  ;;  %3574 = vrot.lane.b32.xlu0 %v11266_v43, %s5596_s15  ;;  %v3609_v63 = vmul.f32 %v11268_v36, %v11263_v15 }
 0x254   : > { %5396 = vpow2.f32 %v5251_v31  ;;  %v9041_v56 = vpop.permute.xlu1 %2971  ;;  %v3618_v33 = vmul.f32 %v9023_v3, %v11263_v15  ;;  %v3612_v10 = vmul.f32 %v11269_v18, %v11263_v15  ;;  %v3556_v7 = vmul.f32 %v9020_v62, %v11224_v19 }
 0x255   : > { %11267 = vst [vmem:[#allocation14_spill] sm:$0xff] %v9041_v56  ;;  %v5387_v45 = vpop.eup %5386  ;;  %v5252_v23 = vmul.f32 -1.442695, %v2783_v40  ;;  %v9049_v52 = vpop.permute.xlu0 %2969  ;;  %v3621_v61 = vmul.f32 %v9030_v50, %v11263_v15  ;;  %v3611_v39 = vmul.f32 %v11271_v48, %v11263_v15  ;;  %v5253_v2 = vmul.f32 -1.442695, %v2784_v28 }
 0x256   : > { %11270 = vst [vmem:[#allocation53_spill] sm:$0xff] %v9049_v52  ;;  %v5389_v60 = vpop.eup %5388  ;;  %v2809_v27 = vadd.f32 1.0, %v5387_v45  ;;  %3580 = vrot.lane.b32.xlu1 %v3555_v13, %s5596_s15  ;;  %v3646_v58 = vsel %vm336_vm0, %v3644_v12, %v3645_v41  ;;  %v3620_v6 = vmul.f32 %v9039_v21, %v11263_v15  ;;  %v3650_v46 = vrot.slane %v3610_v20, 1  ;;  %v9087_v20 = vld [vmem:[%s5699_s13 + $0x238] sm:$0x1] }
 0x257   : > { %v2810_v16 = vadd.f32 1.0, %v5389_v60  ;;  %5398 = vpow2.f32 %v5252_v23  ;;  %3578 = vrot.lane.b32.xlu0 %v3554_v8, %s5596_s15  ;;  %v3651_v51 = vrot.slane %v3619_v37, 1  ;;  %v3647_v9 = vrot.slane %v3609_v63, 1  ;;  %v11274_v8 = vld [vmem:[#allocation52_spill] sm:$0xff]  ;;  %v9093_v37 = vld [vmem:[%s5699_s13 + $0x230] sm:$0x1] }
 0x258   : > { %5400 = vrcp.f32 %v2809_v27  ;;  %v9065_v44 = vpop.permute.xlu1 %2975  ;;  %v3648_v30 = vrot.slane %v3618_v33, 1  ;;  %v3656_v26 = vrot.slane %v3612_v10, 1  ;;  %v3657_v42 = vrot.slane %v3621_v61, 1 }
 0x259   : > { %11272 = vst [vmem:[#allocation36_spill] sm:$0xff] %v9065_v44  ;;  %v5391_v25 = vpop.eup %5390  ;;  %5402 = vrcp.f32 %v2810_v16  ;;  %v9067_v22 = vpop.permute.xlu0 %2973  ;;  %v3653_v55 = vrot.slane %v3611_v39, 1  ;;  %v3614_v35 = vmul.f32 %v8998_v1, %v11263_v15  ;;  %v3654_v13 = vrot.slane %v3620_v6, 1 }
 0x25a   : > { %11273 = vst [vmem:[#allocation37_spill] sm:$0xff] %v9067_v22  ;;  %v5393_v4 = vpop.eup %5392  ;;  %v2811_v0 = vadd.f32 1.0, %v5391_v25  ;;  %5404 = vpow2.f32 %v5253_v2  ;;  %3671 = vrot.lane.b32.xlu1 %v3646_v58, %s5596_s15  ;;  %v3623_v53 = vmul.f32 %v9063_v59, %v11263_v15  ;;  %v3652_v5 = vsel %vm336_vm0, %v3650_v46, %v3651_v51 }
 0x25b   : > { %v2812_v32 = vadd.f32 1.0, %v5393_v4  ;;  %3582 = vrot.lane.b32.xlu0 %v3556_v7, %s5596_s15  ;;  %v3613_v31 = vmul.f32 %v11274_v8, %v11263_v15  ;;  %v3649_v12 = vsel %vm336_vm0, %v3647_v9, %v3648_v30  ;;  %v3622_v41 = vmul.f32 %v9072_v11, %v11263_v15 }
 0x25c   : > { %5406 = vrcp.f32 %v2811_v0  ;;  %v9081_v29 = vpop.permute.xlu1 %2979  ;;  %v3658_v43 = vsel %vm336_vm0, %v3656_v26, %v3657_v42  ;;  %v3655_v10 = vsel %vm336_vm0, %v3653_v55, %v3654_v13  ;;  %v3662_v45 = vrot.slane %v3614_v35, 1 }
 0x25d   : > { %11275 = vst [vmem:[#allocation39_spill] sm:$0xff] %v9081_v29  ;;  %v5395_v40 = vpop.eup %5394  ;;  %5408 = vrcp.f32 %v2812_v32  ;;  %v9089_v28 = vpop.permute.xlu0 %2977  ;;  %v3663_v23 = vrot.slane %v3623_v53, 1  ;;  %v3659_v61 = vrot.slane %v3613_v31, 1  ;;  %v3616_v39 = vmul.f32 %v9020_v62, %v11263_v15 }
 0x25e   : > { %11276 = vst [vmem:[#allocation38_spill] sm:$0xff] %v9089_v28  ;;  %v5397_v63 = vpop.eup %5396  ;;  %v2813_v33 = vadd.f32 1.0, %v5395_v40  ;;  %3675 = vrot.lane.b32.xlu1 %v3652_v5, %s5596_s15  ;;  %v3625_v60 = vmul.f32 %v9087_v20, %v11263_v15  ;;  %v3660_v2 = vrot.slane %v3622_v41, 1  ;;  %v3615_v58 = vmul.f32 %v8990_v14, %v11263_v15 }
 0x25f   : > { %v2814_v7 = vadd.f32 1.0, %v5397_v63  ;;  %3673 = vrot.lane.b32.xlu0 %v3649_v12, %s5596_s15  ;;  %v3624_v6 = vmul.f32 %v9093_v37, %v11263_v15  ;;  %v3664_v26 = vsel %vm336_vm0, %v3662_v45, %v3663_v23  ;;  %v3668_v25 = vrot.slane %v3616_v39, 1 }
 0x260   : > { %5410 = vrcp.f32 %v2813_v33  ;;  %v9102_v27 = vpop.permute.xlu1 %3070  ;;  %v3669_v42 = vrot.slane %v3625_v60, 1  ;;  %v3661_v4 = vsel %vm336_vm0, %v3659_v61, %v3660_v2  ;;  %v3665_v0 = vrot.slane %v3615_v58, 1  ;;  %v11283_v33 = vld [vmem:[#allocation34_spill] sm:$0xff] }
 0x261   : > { %11277 = vst [vmem:[#allocation18_spill] sm:$0xff] %v9102_v27  ;;  %v5399_v16 = vpop.eup %5398  ;;  %5412 = vrcp.f32 %v2814_v7  ;;  %v9108_v46 = vpop.permute.xlu0 %2981  ;;  %v3666_v13 = vrot.slane %v3624_v6, 1  ;;  %v3713_v23 = vmul.f32 %v8733_v49, %v11283_v33  ;;  %v3716_v60 = vmul.f32 %v11271_v48, %v11283_v33 }
 0x262   : > { %11278 = vst [vmem:[#allocation43_spill] sm:$0xff] %v9108_v46  ;;  %v5401_v51 = vpop.eup %5400  ;;  %v2815_v9 = vadd.f32 1.0, %v5399_v16  ;;  %3679 = vrot.lane.b32.xlu1 %v3658_v43, %s5596_s15  ;;  %v3670_v12 = vsel %vm336_vm0, %v3668_v25, %v3669_v42  ;;  %v3715_v2 = vmul.f32 %v11265_v54, %v11283_v33 }
 0x263   : > { %v5403_v30 = vpop.eup %5402  ;;  %2833 = vst [vmem:[%s7655_s16 + $0x40] sm:$0xff] %v5401_v51  ;;  %3677 = vrot.lane.b32.xlu0 %v3655_v10, %s5596_s15  ;;  %v3667_v40 = vsel %vm336_vm0, %v3665_v0, %v3666_v13  ;;  %v3714_v10 = vmul.f32 %v11268_v36, %v11283_v33  ;;  %v3718_v51 = vmul.f32 %v11274_v8, %v11283_v33 }
 0x264   : > { %v5405_v55 = vpop.eup %5404  ;;  %2834 = vst [vmem:[%s7655_s16 + $0x48] sm:$0xff] %v5403_v30  ;;  %5414 = vrcp.f32 %v2815_v9  ;;  %v9115_v35 = vpop.permute.xlu1 %3074  ;;  %v3717_v9 = vmul.f32 %v11269_v18, %v11283_v33  ;;  %v11288_v30 = vld [vmem:[#allocation35_spill] sm:$0xff]  ;;  %v3719_v0 = vmul.f32 %v8998_v1, %v11283_v33 }
 0x265   : > { %11279 = vst [vmem:[#allocation17_spill] sm:$0xff] %v9115_v35  ;;  %v2816_v53 = vadd.f32 1.0, %v5405_v55  ;;  %v9118_v32 = vpop.permute.xlu0 %3072  ;;  %v3782_v25 = vmul.f32 %v8984_v38, %v11288_v30  ;;  %v5517_v35 = vld [vmem:[%s5699_s13 + $0x110] sm:$0x1] }
 0x266   : > { %11280 = vst [vmem:[#allocation19_spill] sm:$0xff] %v9118_v32  ;;  %v5407_v5 = vpop.eup %5406  ;;  %3683 = vrot.lane.b32.xlu1 %v3664_v26, %s5596_s15  ;;  %v3773_v26 = vmul.f32 %v8733_v49, %v11288_v30 }
 0x267   : > { %v5409_v31 = vpop.eup %5408  ;;  %2835 = vst [vmem:[%s7655_s16 + $0x50] sm:$0xff] %v5407_v5  ;;  %5416 = vrcp.f32 %v2816_v53  ;;  %3681 = vrot.lane.b32.xlu0 %v3661_v4, %s5596_s15  ;;  %v3720_v4 = vmul.f32 %v8990_v14, %v11283_v33  ;;  %v3810_v53 = vrot.slane %v3782_v25, 1  ;;  %v3775_v5 = vmul.f32 %v11265_v54, %v11288_v30 }
 0x268   : > { %2836 = vst [vmem:[%s7655_s16 + $0x58] sm:$0xff] %v5409_v31  ;;  %v9125_v41 = vpop.permute.xlu1 %3078  ;;  %v3809_v13 = vrot.slane %v3773_v26, 1  ;;  %v3784_v31 = vmul.f32 %v9011_v47, %v11288_v30 }
 0x269   : > { %11281 = vst [vmem:[#allocation45_spill] sm:$0xff] %v9125_v41  ;;  %v9128_v43 = vpop.permute.xlu0 %3076 }
 0x26a   : > { %11282 = vst [vmem:[#allocation40_spill] sm:$0xff] %v9128_v43  ;;  %v5411_v63 = vpop.eup %5410  ;;  %3687 = vrot.lane.b32.xlu1 %v3670_v12, %s5596_s15  ;;  %v5516_v43 = vld [vmem:[%s5699_s13 + $0xc8] sm:$0xff] }
 0x26b   : > { %v5413_v45 = vpop.eup %5412  ;;  %2837 = vst [vmem:[%s7655_s16 + $0x60] sm:$0xff] %v5411_v63  ;;  %3685 = vrot.lane.b32.xlu0 %v3667_v40, %s5596_s15  ;;  %v3774_v40 = vmul.f32 %v11268_v36, %v11288_v30  ;;  %v3783_v63 = vmul.f32 %v9023_v3, %v11288_v30 }
 0x26c   : > { %2838 = vst [vmem:[%s7655_s16 + $0x68] sm:$0xff] %v5413_v45  ;;  %v9138_v7 = vpop.permute.xlu1 %3082  ;;  %v3777_v45 = vmul.f32 %v11269_v18, %v11288_v30 }
 0x26d   : > { %11284 = vst [vmem:[#allocation20_spill] sm:$0xff] %v9138_v7  ;;  %v9140_v61 = vpop.permute.xlu0 %3080  ;;  %v3812_v25 = vrot.slane %v3774_v40, 1  ;;  %v3778_v40 = vmul.f32 %v11274_v8, %v11288_v30 }
 0x26e   : > { %11285 = vst [vmem:[#allocation21_spill] sm:$0xff] %v9140_v61  ;;  %v5415_v39 = vpop.eup %5414  ;;  %3733 = vrot.lane.b32.xlu1 %v3714_v10, %s5597_s30  ;;  %v3821_v57 = vrot.slane %v3777_v45, 1  ;;  %v5515_v61 = vld [vmem:[%s5699_s13 + $0x108] sm:$0x1] }
 0x26f   : > { %2839 = vst [vmem:[%s7655_s16 + $0x70] sm:$0xff] %v5415_v39  ;;  %3731 = vrot.lane.b32.xlu0 %v3713_v23, %s5597_s30  ;;  %v3786_v23 = vmul.f32 %v9030_v50, %v11288_v30  ;;  %v3776_v39 = vmul.f32 %v11271_v48, %v11288_v30 }
 0x270   : > { %v9149_v58 = vpop.permute.xlu1 %3086 }
 0x271   : > { %11286 = vst [vmem:[#allocation22_spill] sm:$0xff] %v9149_v58  ;;  %v5417_v6 = vpop.eup %5416  ;;  %v9151_v16 = vpop.permute.xlu0 %3084  ;;  %v3822_v34 = vrot.slane %v3786_v23, 1  ;;  %v3818_v19 = vrot.slane %v3776_v39, 1  ;;  %v5513_v58 = vld [vmem:[%s5699_s13 + $0xc0] sm:$0xff] }
 0x272   : > { %11287 = vst [vmem:[#allocation42_spill] sm:$0xff] %v9151_v16  ;;  %2840 = vst [vmem:[%s7655_s16 + $0x78] sm:$0xff] %v5417_v6  ;;  %3737 = vrot.lane.b32.xlu1 %v3716_v60, %s5597_s30  ;;  %v3785_v60 = vmul.f32 %v9039_v21, %v11288_v30  ;;  %v3721_v6 = vmul.f32 %v9020_v62, %v11283_v33 }
 0x273   : > { %3735 = vrot.lane.b32.xlu0 %v3715_v2, %s5597_s30  ;;  %v3811_v2 = vsel %vm336_vm0, %v3809_v13, %v3810_v53  ;;  %v3779_v13 = vmul.f32 %v8998_v1, %v11288_v30  ;;  %v3788_v53 = vmul.f32 %v9063_v59, %v11288_v30  ;;  %v3823_v23 = vsel %vm336_vm0, %v3821_v57, %v3822_v34 }
 0x274   : > { %v9164_v42 = vpop.permute.xlu1 %3132 }
 0x275   : > { %11289 = vst [vmem:[#allocation44_spill] sm:$0xff] %v9164_v42  ;;  %v9166_v55 = vpop.permute.xlu0 %3130 }
 0x276   : > { %11290 = vst [vmem:[#allocation46_spill] sm:$0xff] %v9166_v55  ;;  %3741 = vrot.lane.b32.xlu1 %v3718_v51, %s5597_s30  ;;  %v3815_v51 = vrot.slane %v3775_v5, 1  ;;  %v5512_v55 = vld [vmem:[%s5699_s13 + $0xb8] sm:$0xff] }
 0x277   : > { %3739 = vrot.lane.b32.xlu0 %v3717_v9, %s5597_s30  ;;  %v3816_v9 = vrot.slane %v3784_v31, 1 }
 0x278   : > { %v9178_v12 = vpop.permute.xlu1 %3136 }
 0x279   : > { %11291 = vst [vmem:[#allocation24_spill] sm:$0xff] %v9178_v12  ;;  %v9184_v10 = vpop.permute.xlu0 %3134  ;;  %v3819_v12 = vrot.slane %v3785_v60, 1  ;;  %v3827_v60 = vrot.slane %v3779_v13, 1 }
 0x27a   : > { %11292 = vst [vmem:[#allocation47_spill] sm:$0xff] %v9184_v10  ;;  %3745 = vrot.lane.b32.xlu1 %v3720_v4, %s5597_s30  ;;  %v3813_v4 = vrot.slane %v3783_v63, 1  ;;  %v3787_v63 = vmul.f32 %v9072_v11, %v11288_v30 }
 0x27b   : > { %3743 = vrot.lane.b32.xlu0 %v3719_v0, %s5597_s30  ;;  %v3817_v0 = vsel %vm336_vm0, %v3815_v51, %v3816_v9  ;;  %v3820_v39 = vsel %vm336_vm0, %v3818_v19, %v3819_v12  ;;  %v3790_v51 = vmul.f32 %v9087_v20, %v11288_v30  ;;  %v3789_v19 = vmul.f32 %v9093_v37, %v11288_v30 }
 0x27c   : > { %v9199_v26 = vpop.permute.xlu1 %3140  ;;  %v3814_v31 = vsel %vm336_vm0, %v3812_v25, %v3813_v4  ;;  %v3824_v25 = vrot.slane %v3778_v40, 1  ;;  %v3825_v4 = vrot.slane %v3787_v63, 1 }
 0x27d   : > { %11293 = vst [vmem:[#allocation57_spill] sm:$0xff] %v9199_v26  ;;  %v9201_v15 = vpop.permute.xlu0 %3138  ;;  %v3834_v13 = vrot.slane %v3790_v51, 1  ;;  %v3831_v63 = vrot.slane %v3789_v19, 1  ;;  %v5509_v26 = vld [vmem:[%s5699_s13 + $0xb0] sm:$0xff] }
 0x27e   : > { %11294 = vst [vmem:[#allocation50_spill] sm:$0xff] %v9201_v15  ;;  %3836 = vrot.lane.b32.xlu1 %v3811_v2, %s5597_s30  ;;  %v3828_v2 = vrot.slane %v3788_v53, 1  ;;  %v5511_v15 = vld [vmem:[%s5699_s13 + $0xf8] sm:$0x1] }
 0x27f   : > { %3747 = vrot.lane.b32.xlu0 %v3721_v6, %s5597_s30  ;;  %v3781_v6 = vmul.f32 %v9020_v62, %v11288_v30 }
 0x280   : > { %v9210_v5 = vpop.permute.xlu1 %3144  ;;  %v3829_v57 = vsel %vm336_vm0, %v3827_v60, %v3828_v2  ;;  %v11303_v2 = vld [vmem:[#allocation41_spill] sm:$0xff] }
 0x281   : > { %11295 = vst [vmem:[#allocation59_spill] sm:$0xff] %v9210_v5  ;;  %v9217_v45 = vpop.permute.xlu0 %3142  ;;  %v3833_v12 = vrot.slane %v3781_v6, 1  ;;  %v3879_v6 = vmul.f32 %v11268_v36, %v11303_v2  ;;  %v3878_v51 = vmul.f32 %v8733_v49, %v11303_v2  ;;  %v3880_v19 = vmul.f32 %v11265_v54, %v11303_v2 }
 0x282   : > { %11296 = vst [vmem:[#allocation63_spill] sm:$0xff] %v9217_v45  ;;  %3840 = vrot.lane.b32.xlu1 %v3817_v0, %s5597_s30  ;;  %v3780_v0 = vmul.f32 %v8990_v14, %v11288_v30 }
 0x283   : > { %3838 = vrot.lane.b32.xlu0 %v3814_v31, %s5597_s30  ;;  %v3826_v31 = vsel %vm336_vm0, %v3824_v25, %v3825_v4 }
 0x284   : > { %v9227_v9 = vpop.permute.xlu1 %3235  ;;  %v3830_v40 = vrot.slane %v3780_v0, 1  ;;  %v3881_v0 = vmul.f32 %v11271_v48, %v11303_v2 }
 0x285   : > { %11297 = vst [vmem:[#allocation60_spill] sm:$0xff] %v9227_v9  ;;  %v9233_v34 = vpop.permute.xlu0 %3146 }
 0x286   : > { %11298 = vst [vmem:[#allocation62_spill] sm:$0xff] %v9233_v34  ;;  %3844 = vrot.lane.b32.xlu1 %v3823_v23, %s5597_s30  ;;  %v3835_v23 = vsel %vm336_vm0, %v3833_v12, %v3834_v13  ;;  %v3883_v13 = vmul.f32 %v11274_v8, %v11303_v2 }
 0x287   : > { %3842 = vrot.lane.b32.xlu0 %v3820_v39, %s5597_s30  ;;  %v3832_v39 = vsel %vm336_vm0, %v3830_v40, %v3831_v63  ;;  %v11308_v40 = vld [vmem:[#allocation16_spill] sm:$0xff] }
 0x288   : > { %v9238_v53 = vpop.permute.xlu1 %3239  ;;  %v3938_v63 = vmul.f32 %v8733_v49, %v11308_v40  ;;  %v3940_v49 = vmul.f32 %v11265_v54, %v11308_v40  ;;  %v3951_v54 = vmul.f32 %v9030_v50, %v11308_v40 }
 0x289   : > { %11299 = vst [vmem:[#allocation58_spill] sm:$0xff] %v9238_v53  ;;  %v9241_v33 = vpop.permute.xlu0 %3237 }
 0x28a   : > { %11300 = vst [vmem:[#allocation61_spill] sm:$0xff] %v9241_v33  ;;  %3848 = vrot.lane.b32.xlu1 %v3829_v57, %s5597_s30  ;;  %v3987_v53 = vrot.slane %v3951_v54, 1 }
 0x28b   : > { %3846 = vrot.lane.b32.xlu0 %v3826_v31, %s5597_s30  ;;  %v3882_v31 = vmul.f32 %v11269_v18, %v11303_v2 }
 0x28c   : > { %v9246_v30 = vpop.permute.xlu1 %3243 }
 0x28d   : > { %11301 = vst [vmem:[#allocation65_spill] sm:$0xff] %v9246_v30  ;;  %v9249_v60 = vpop.permute.xlu0 %3241 }
 0x28e   : > { %11302 = vst [vmem:[#allocation64_spill] sm:$0xff] %v9249_v60  ;;  %3852 = vrot.lane.b32.xlu1 %v3835_v23, %s5597_s30  ;;  %v3947_v23 = vmul.f32 %v8984_v38, %v11308_v40 }
 0x28f   : > { %3850 = vrot.lane.b32.xlu0 %v3832_v39, %s5597_s30 }
 0x290   : > { %v9257_v25 = vpop.permute.xlu1 %3247 }
 0x291   : > { %11304 = vst [vmem:[#allocation67_spill] sm:$0xff] %v9257_v25  ;;  %v9259_v4 = vpop.permute.xlu0 %3245 }
 0x292   : > { %11305 = vst [vmem:[#allocation66_spill] sm:$0xff] %v9259_v4  ;;  %3898 = vrot.lane.b32.xlu1 %v3879_v6, %s5598_s8 }
 0x293   : > { %3896 = vrot.lane.b32.xlu0 %v3878_v51, %s5598_s8  ;;  %v3885_v51 = vmul.f32 %v8990_v14, %v11303_v2 }
 0x294   : > { %v9267_v57 = vpop.permute.xlu1 %3251 }
 0x295   : > { %11306 = vst [vmem:[#allocation69_spill] sm:$0xff] %v9267_v57  ;;  %v9269_v12 = vpop.permute.xlu0 %3249  ;;  %v3975_v57 = vrot.slane %v3947_v23, 1  ;;  %v3950_v23 = vmul.f32 %v9039_v21, %v11308_v40 }
 0x296   : > { %11307 = vst [vmem:[#allocation68_spill] sm:$0xff] %v9269_v12  ;;  %3902 = vrot.lane.b32.xlu1 %v3881_v0, %s5598_s8  ;;  %v3884_v0 = vmul.f32 %v8998_v1, %v11303_v2 }
 0x297   : > { %3900 = vrot.lane.b32.xlu0 %v3880_v19, %s5598_s8  ;;  %v3974_v19 = vrot.slane %v3938_v63, 1  ;;  %v3941_v63 = vmul.f32 %v11271_v48, %v11308_v40  ;;  %v3984_v33 = vrot.slane %v3950_v23, 1 }
 0x298   : > { %v9281_v39 = vpop.permute.xlu1 %3297 }
 0x299   : > { %11309 = vst [vmem:[#allocation70_spill] sm:$0xff] %v9281_v39  ;;  %v9283_v6 = vpop.permute.xlu0 %3295  ;;  %v3949_v39 = vmul.f32 %v9011_v47, %v11308_v40  ;;  %v3983_v9 = vrot.slane %v3941_v63, 1 }
 0x29a   : > { %11310 = vst [vmem:[#allocation71_spill] sm:$0xff] %v9283_v6  ;;  %3906 = vrot.lane.b32.xlu1 %v3883_v13, %s5598_s8  ;;  %v3939_v13 = vmul.f32 %v11268_v36, %v11308_v40  ;;  %v3948_v6 = vmul.f32 %v9023_v3, %v11308_v40  ;;  %v3976_v36 = vsel %vm336_vm0, %v3974_v19, %v3975_v57 }
 0x29b   : > { %3904 = vrot.lane.b32.xlu0 %v3882_v31, %s5598_s8  ;;  %v3942_v31 = vmul.f32 %v11269_v18, %v11308_v40 }
 0x29c   : > { %v9295_v12 = vpop.permute.xlu1 %3301  ;;  %v3977_v18 = vrot.slane %v3939_v13, 1  ;;  %v3978_v30 = vrot.slane %v3948_v6, 1  ;;  %v3952_v13 = vmul.f32 %v9072_v11, %v11308_v40 }
 0x29d   : > { %11311 = vst [vmem:[#allocation72_spill] sm:$0xff] %v9295_v12  ;;  %v9301_v25 = vpop.permute.xlu0 %3299  ;;  %v3886_v12 = vmul.f32 %v9020_v62, %v11303_v2  ;;  %v3986_v48 = vrot.slane %v3942_v31, 1  ;;  %v11328_v2 = vld [vmem:[#allocation13_spill] sm:$0xff] }
 0x29e   : > { %11312 = vst [vmem:[#allocation73_spill] sm:$0xff] %v9301_v25  ;;  %3910 = vrot.lane.b32.xlu1 %v3885_v51, %s5598_s8  ;;  %v3980_v51 = vrot.slane %v3940_v49, 1  ;;  %v3981_v25 = vrot.slane %v3949_v39, 1  ;;  %v3953_v39 = vmul.f32 %v9063_v59, %v11308_v40  ;;  %v3979_v6 = vsel %vm336_vm0, %v3977_v18, %v3978_v30 }
 0x29f   : > { %3908 = vrot.lane.b32.xlu0 %v3884_v0, %s5598_s8  ;;  %v3944_v0 = vmul.f32 %v8998_v1, %v11308_v40  ;;  %v3943_v49 = vmul.f32 %v11274_v8, %v11308_v40  ;;  %v3946_v30 = vmul.f32 %v9020_v62, %v11308_v40  ;;  %v3955_v8 = vmul.f32 %v9087_v20, %v11308_v40 }
 0x2a0   : > { %v9316_v4 = vpop.permute.xlu1 %3305  ;;  %v3982_v57 = vsel %vm336_vm0, %v3980_v51, %v3981_v25  ;;  %v3988_v25 = vsel %vm336_vm0, %v3986_v48, %v3987_v53  ;;  %v3993_v63 = vrot.slane %v3953_v39, 1  ;;  %v3990_v51 = vrot.slane %v3952_v13, 1  ;;  %v9364_v13 = vld [vmem:[%s5699_s13 + $0xe0] sm:$0xff] }
 0x2a1   : > { %11313 = vst [vmem:[#allocation74_spill] sm:$0xff] %v9316_v4  ;;  %v9318_v60 = vpop.permute.xlu0 %3303  ;;  %v3992_v54 = vrot.slane %v3944_v0, 1  ;;  %v3945_v18 = vmul.f32 %v8990_v14, %v11308_v40  ;;  %v3998_v20 = vrot.slane %v3946_v30, 1  ;;  %v3999_v53 = vrot.slane %v3955_v8, 1  ;;  %v11323_v30 = vld [vmem:[#allocation7_spill] sm:$0xff] }
 0x2a2   : > { %11314 = vst [vmem:[#allocation79_spill] sm:$0xff] %v9318_v60  ;;  %4001 = vrot.lane.b32.xlu1 %v3976_v36, %s5598_s8  ;;  %v3989_v36 = vrot.slane %v3943_v49, 1  ;;  %v4181_v8 = vmul.f32 %v9364_v13, %v11323_v30  ;;  %v11334_v60 = vld [vmem:[#allocation12_spill] sm:$0xff]  ;;  %v2885_v10 = vmul.f32 %v5511_v15, %v11328_v2  ;;  %v2878_v42 = vmul.f32 %v5512_v55, %v11328_v2 }
 0x2a3   : > { %3912 = vrot.lane.b32.xlu0 %v3886_v12, %s5598_s8  ;;  %v3985_v12 = vsel %vm336_vm0, %v3983_v9, %v3984_v33  ;;  %v3954_v33 = vmul.f32 %v9093_v37, %v11308_v40  ;;  %v3994_v62 = vsel %vm336_vm0, %v3992_v54, %v3993_v63  ;;  %v3995_v0 = vrot.slane %v3945_v18, 1  ;;  %v9370_v54 = vld [vmem:[%s5699_s13 + $0xd8] sm:$0xff]  ;;  %v5502_v40 = vld [vmem:[%s5699_s13 + $0x90] sm:$0xff] }
 0x2a4   : > { %v9327_v19 = vpop.permute.xlu1 %3309  ;;  %v4000_v49 = vsel %vm336_vm0, %v3998_v20, %v3999_v53  ;;  %v2879_v16 = vmul.f32 %v5513_v58, %v11328_v2  ;;  %v2887_v41 = vmul.f32 %v5515_v61, %v11328_v2  ;;  %v2888_v15 = vmul.f32 %v5517_v35, %v11328_v2 }
 0x2a5   : > { %11315 = vst [vmem:[#allocation80_spill] sm:$0xff] %v9327_v19  ;;  %v9334_v31 = vpop.permute.xlu0 %3307  ;;  %v3996_v39 = vrot.slane %v3954_v33, 1  ;;  %v9386_v33 = vld [vmem:[%s5699_s13 + $0xe8] sm:$0xff]  ;;  %v2918_v35 = vrot.slane %v2885_v10, 1 }
 0x2a6   : > { %11316 = vst [vmem:[#allocation81_spill] sm:$0xff] %v9334_v31  ;;  %4005 = vrot.lane.b32.xlu1 %v3982_v57, %s5598_s8  ;;  %v3991_v57 = vsel %vm336_vm0, %v3989_v36, %v3990_v51  ;;  %v4180_v36 = vmul.f32 %v9370_v54, %v11323_v30  ;;  %v9381_v51 = vld [vmem:[%s5699_s13 + $0xf0] sm:$0xff]  ;;  %v4182_v53 = vmul.f32 %v9386_v33, %v11323_v30  ;;  %v2927_v56 = vrot.slane %v2888_v15, 1  ;;  %v11342_v15 = vld [vmem:[#allocation48_spill] sm:$0xff] }
 0x2a7   : > { %4003 = vrot.lane.b32.xlu0 %v3979_v6, %s5598_s8  ;;  %v4183_v20 = vmul.f32 %v9381_v51, %v11323_v30 }
 0x2a8   : > { %v9344_v23 = vpop.permute.xlu1 %3400 }
 0x2a9   : > { %11317 = vst [vmem:[#allocation75_spill] sm:$0xff] %v9344_v23  ;;  %v9350_v9 = vpop.permute.xlu0 %3311  ;;  %v9437_v23 = vld [vmem:[%s5699_s13 + $0x118] sm:$0xff] }
 0x2aa   : > { %11318 = vst [vmem:[#allocation77_spill] sm:$0xff] %v9350_v9  ;;  %4009 = vrot.lane.b32.xlu1 %v3988_v25, %s5598_s8 }
 0x2ab   : > { %4007 = vrot.lane.b32.xlu0 %v3985_v12, %s5598_s8  ;;  %v3997_v12 = vsel %vm336_vm0, %v3995_v0, %v3996_v39  ;;  %v9402_v39 = vld [vmem:[%s5699_s13 + $0xf8] sm:$0xff] }
 0x2ac   : > { %v9355_v48 = vpop.permute.xlu1 %3404 }
 0x2ad   : > { %11319 = vst [vmem:[#allocation83_spill] sm:$0xff] %v9355_v48  ;;  %v9358_v6 = vpop.permute.xlu0 %3402 }
 0x2ae   : > { %11320 = vst [vmem:[#allocation87_spill] sm:$0xff] %v9358_v6  ;;  %4013 = vrot.lane.b32.xlu1 %v3994_v62, %s5598_s8  ;;  %v5505_v6 = vld [vmem:[%s5699_s13 + $0xe0] sm:$0x1] }
 0x2af   : > { %4011 = vrot.lane.b32.xlu0 %v3991_v57, %s5598_s8  ;;  %v9397_v57 = vld [vmem:[%s5699_s13 + $0x100] sm:$0xff]  ;;  %v9445_v31 = vmul.f32 %v5505_v6, %v11328_v2  ;;  %v9458_v6 = vmul.f32 %v5502_v40, %v11334_v60 }
 0x2b0   : > { %v9366_v25 = vpop.permute.xlu1 %3408 }
 0x2b1   : > { %11321 = vst [vmem:[#allocation84_spill] sm:$0xff] %v9366_v25  ;;  %v9372_v63 = vpop.permute.xlu0 %3406  ;;  %v2909_v45 = vrot.slane %v9445_v31, 1 }
 0x2b2   : > { %11322 = vst [vmem:[#allocation82_spill] sm:$0xff] %v9372_v63  ;;  %4017 = vrot.lane.b32.xlu1 %v4000_v49, %s5598_s8  ;;  %v11331_v63 = vld [vmem:[#allocation8_spill] sm:$0xff] }
 0x2b3   : > { %4015 = vrot.lane.b32.xlu0 %v3997_v12, %s5598_s8  ;;  %v4185_v12 = vmul.f32 %v9397_v57, %v11323_v30  ;;  %v4240_v9 = vmul.f32 %v9370_v54, %v11331_v63  ;;  %v4241_v4 = vmul.f32 %v9364_v13, %v11331_v63  ;;  %v4245_v44 = vmul.f32 %v9397_v57, %v11331_v63 }
 0x2b4   : > { %v9383_v18 = vpop.permute.xlu1 %3412  ;;  %v4248_v10 = vmul.f32 %v9437_v23, %v11331_v63 }
 0x2b5   : > { %11324 = vst [vmem:[#allocation88_spill] sm:$0xff] %v9383_v18  ;;  %v9388_v62 = vpop.permute.xlu0 %3410  ;;  %v5503_v18 = vld [vmem:[%s5699_s13 + $0xd8] sm:$0x1] }
 0x2b6   : > { %11325 = vst [vmem:[#allocation96_spill] sm:$0xff] %v9388_v62  ;;  %4200 = vrot.lane.b32.xlu1 %v4181_v8, %s5596_s15  ;;  %v4184_v8 = vmul.f32 %v9402_v39, %v11323_v30  ;;  %v9422_v62 = vld [vmem:[%s5699_s13 + $0x108] sm:$0xff] }
 0x2b7   : > { %4198 = vrot.lane.b32.xlu0 %v4180_v36, %s5596_s15  ;;  %v9413_v36 = vld [vmem:[%s5699_s13 + $0x110] sm:$0xff]  ;;  %v4186_v19 = vmul.f32 %v9422_v62, %v11323_v30 }
 0x2b8   : > { %v9399_v0 = vpop.permute.xlu1 %3416 }
 0x2b9   : > { %11326 = vst [vmem:[#allocation85_spill] sm:$0xff] %v9399_v0  ;;  %v9404_v49 = vpop.permute.xlu0 %3414  ;;  %v2873_v0 = vmul.f32 %v5502_v40, %v11328_v2 }
 0x2ba   : > { %11327 = vst [vmem:[#allocation97_spill] sm:$0xff] %v9404_v49  ;;  %4204 = vrot.lane.b32.xlu1 %v4183_v20, %s5596_s15  ;;  %v2881_v49 = vmul.f32 %v5503_v18, %v11328_v2 }
 0x2bb   : > { %4202 = vrot.lane.b32.xlu0 %v4182_v53, %s5596_s15  ;;  %v4187_v53 = vmul.f32 %v9413_v36, %v11323_v30  ;;  %v2905_v18 = vrot.slane %v2873_v0, 1  ;;  %v4258_v0 = vrot.slane %v4240_v9, 1 }
 0x2bc   : > { %v9419_v20 = vpop.permute.xlu1 %3568  ;;  %v2906_v48 = vrot.slane %v2881_v49, 1  ;;  %v4242_v49 = vmul.f32 %v9386_v33, %v11331_v63 }
 0x2bd   : > { %11329 = vst [vmem:[#allocation99_spill] sm:$0xff] %v9419_v20  ;;  %v9424_v25 = vpop.permute.xlu0 %3566 }
 0x2be   : > { %11330 = vst [vmem:[#allocation91_spill] sm:$0xff] %v9424_v25  ;;  %4208 = vrot.lane.b32.xlu1 %v4185_v12, %s5596_s15  ;;  %v5504_v25 = vld [vmem:[%s5699_s13 + $0x98] sm:$0xff] }
 0x2bf   : > { %4206 = vrot.lane.b32.xlu0 %v4184_v8, %s5596_s15  ;;  %v9441_v12 = vmul.f32 %v5504_v25, %v11328_v2 }
 0x2c0   : > { %v9434_v20 = vpop.permute.xlu1 %3572 }
 0x2c1   : > { %11332 = vst [vmem:[#allocation100_spill] sm:$0xff] %v9434_v20  ;;  %v9447_v8 = vpop.permute.xlu0 %3570  ;;  %v4188_v20 = vmul.f32 %v9437_v23, %v11323_v30  ;;  %v2908_v30 = vrot.slane %v9441_v12, 1  ;;  %v5508_v12 = vld [vmem:[%s5699_s13 + $0xa8] sm:$0xff] }
 0x2c2   : > { %11333 = vst [vmem:[#allocation90_spill] sm:$0xff] %v9447_v8  ;;  %4212 = vrot.lane.b32.xlu1 %v4187_v53, %s5596_s15  ;;  %v9461_v8 = vsel %vm336_vm0, %v2905_v18, %v2906_v48  ;;  %v5506_v53 = vld [vmem:[%s5699_s13 + $0xa0] sm:$0xff]  ;;  %v9474_v48 = vmul.f32 %v5504_v25, %v11334_v60  ;;  %v2876_v31 = vmul.f32 %v5508_v12, %v11328_v2 }
 0x2c3   : > { %4210 = vrot.lane.b32.xlu0 %v4186_v19, %s5596_s15  ;;  %v2875_v34 = vmul.f32 %v5506_v53, %v11328_v2  ;;  %v5507_v19 = vld [vmem:[%s5699_s13 + $0xe8] sm:$0x1]  ;;  %v9477_v18 = vmul.f32 %v5506_v53, %v11334_v60  ;;  %v2877_v25 = vmul.f32 %v5509_v26, %v11328_v2  ;;  %v4259_v53 = vrot.slane %v4241_v4, 1 }
 0x2c4   : > { %v9463_v9 = vpop.permute.xlu1 %3576  ;;  %v2883_v5 = vmul.f32 %v5507_v19, %v11328_v2  ;;  %v4244_v19 = vmul.f32 %v9402_v39, %v11331_v63 }
 0x2c5   : > { %11335 = vst [vmem:[#allocation94_spill] sm:$0xff] %v9463_v9  ;;  %v9471_v40 = vpop.permute.xlu0 %3574  ;;  %v4260_v9 = vrot.slane %v4242_v49, 1  ;;  %v5510_v49 = vld [vmem:[%s5699_s13 + $0xf0] sm:$0x1]  ;;  %v2911_v32 = vrot.slane %v2875_v34, 1  ;;  %v2917_v28 = vrot.slane %v2877_v25, 1 }
 0x2c6   : > { %11336 = vst [vmem:[#allocation98_spill] sm:$0xff] %v9471_v40  ;;  %4267 = vrot.lane.b32.xlu1 %v4258_v0, %s5596_s15  ;;  %v4243_v0 = vmul.f32 %v9381_v51, %v11331_v63  ;;  %v2884_v40 = vmul.f32 %v5510_v49, %v11328_v2  ;;  %v2880_v49 = vmul.f32 %v5516_v43, %v11328_v2  ;;  %v2912_v46 = vrot.slane %v2883_v5, 1 }
 0x2c7   : > { %4214 = vrot.lane.b32.xlu0 %v4188_v20, %s5596_s15  ;;  %v5514_v20 = vld [vmem:[%s5699_s13 + $0x100] sm:$0x1]  ;;  %v4262_v29 = vrot.slane %v4244_v19, 1 }
 0x2c8   : > { %v9497_v7 = vpop.permute.xlu1 %3580  ;;  %v2886_v4 = vmul.f32 %v5514_v20, %v11328_v2  ;;  %v2914_v20 = vrot.slane %v2876_v31, 1  ;;  %v4261_v61 = vrot.slane %v4243_v0, 1  ;;  %v2915_v22 = vrot.slane %v2884_v40, 1 }
 0x2c9   : > { %11337 = vst [vmem:[#allocation93_spill] sm:$0xff] %v9497_v7  ;;  %v9507_v27 = vpop.permute.xlu0 %3578  ;;  %v4246_v7 = vmul.f32 %v9422_v62, %v11331_v63  ;;  %v2920_v2 = vrot.slane %v2878_v42, 1  ;;  %v2926_v19 = vrot.slane %v2880_v49, 1  ;;  %v2910_v31 = vsel %vm336_vm0, %v2908_v30, %v2909_v45 }
 0x2ca   : > { %11338 = vst [vmem:[#allocation95_spill] sm:$0xff] %v9507_v27  ;;  %4271 = vrot.lane.b32.xlu1 %v4260_v9, %s5596_s15  ;;  %v2923_v27 = vrot.slane %v2879_v16, 1  ;;  %v2921_v5 = vrot.slane %v2886_v4, 1  ;;  %v2924_v9 = vrot.slane %v2887_v41, 1  ;;  %v2913_v25 = vsel %vm336_vm0, %v2911_v32, %v2912_v46 }
 0x2cb   : > { %4269 = vrot.lane.b32.xlu0 %v4259_v53, %s5596_s15  ;;  %v4264_v53 = vrot.slane %v4246_v7, 1  ;;  %v2860_v16 = vmul.f32 %v5508_v12, %v11334_v60  ;;  %v2861_v42 = vmul.f32 %v5509_v26, %v11334_v60  ;;  %v4263_v41 = vrot.slane %v4245_v44, 1 }
 0x2cc   : > { %v9515_v34 = vpop.permute.xlu1 %3671  ;;  %v4247_v40 = vmul.f32 %v9413_v36, %v11331_v63  ;;  %v2916_v45 = vsel %vm336_vm0, %v2914_v20, %v2915_v22  ;;  %v2862_v46 = vmul.f32 %v5512_v55, %v11334_v60  ;;  %v2864_v32 = vmul.f32 %v5516_v43, %v11334_v60  ;;  %v11340_v55 = vld [vmem:[#allocation25_spill] sm:$0xff] }
 0x2cd   : > { %v9517_v52 = vpop.permute.xlu0 %3582  ;;  %v2919_v30 = vsel %vm336_vm0, %v2917_v28, %v2918_v35  ;;  %v2922_v26 = vsel %vm336_vm0, %v2920_v2, %v2921_v5  ;;  %v2925_v44 = vsel %vm336_vm0, %v2923_v27, %v2924_v9  ;;  %v2928_v12 = vsel %vm336_vm0, %v2926_v19, %v2927_v56  ;;  %v5518_v56 = vld [vmem:[%s5699_s13 + $0x1b0] sm:$0xff]  ;;  %v5520_v35 = vld [vmem:[%s5699_s13 + $0x1c0] sm:$0xff]  ;;  %v5521_v9 = vld [vmem:[%s5699_s13 + $0x1c8] sm:$0xff] }
 0x2ce   : > { %4275 = vrot.lane.b32.xlu1 %v4262_v29, %s5596_s15  ;;  %v2863_v29 = vmul.f32 %v5513_v58, %v11334_v60  ;;  %v9543_v22 = vadd.f32 %v9461_v8, %v9458_v6  ;;  %v9546_v58 = vadd.f32 %v2910_v31, %v9474_v48  ;;  %v9549_v43 = vadd.f32 %v2913_v25, %v9477_v18  ;;  %v5522_v25 = vld [vmem:[%s5699_s13 + $0x1d0] sm:$0xff] }
 0x2cf   : > { %4273 = vrot.lane.b32.xlu0 %v4261_v61, %s5596_s15  ;;  %v4266_v28 = vrot.slane %v4248_v10, 1  ;;  %v9552_v27 = vadd.f32 %v2916_v45, %v2860_v16  ;;  %v9556_v2 = vmul.f32 %v5518_v56, %v11340_v55  ;;  %v9560_v8 = vmul.f32 %v8984_v38, %v11340_v55  ;;  %v5519_v38 = vld [vmem:[%s5699_s13 + $0x1b8] sm:$0xff] }
 0x2d0   : > { %v9533_v7 = vpop.permute.xlu1 %3675  ;;  %v4265_v6 = vrot.slane %v4247_v40, 1  ;;  %v9563_v48 = vadd.f32 %v2919_v30, %v2861_v42  ;;  %v9565_v18 = vadd.f32 %v2922_v26, %v2862_v46  ;;  %v9567_v0 = vadd.f32 %v2925_v44, %v2863_v29  ;;  %v5523_v10 = vld [vmem:[%s5699_s13 + $0x1d8] sm:$0xff] }
 0x2d1   : > { %11339 = vst [vmem:[#allocation102_spill] sm:$0xff] %v9533_v7  ;;  %v9539_v63 = vpop.permute.xlu0 %3673  ;;  %v9569_v4 = vadd.f32 %v2928_v12, %v2864_v32  ;;  %v9574_v20 = vmul.f32 %v5518_v56, %v11342_v15  ;;  %v9578_v61 = vmul.f32 %v5519_v38, %v11342_v15  ;;  %v9582_v5 = vmul.f32 %v5520_v35, %v11342_v15 }
 0x2d2   : > { %4279 = vrot.lane.b32.xlu1 %v4264_v53, %s5596_s15  ;;  %v9586_v19 = vmul.f32 %v5521_v9, %v11342_v15  ;;  %v9592_v53 = vmul.f32 %v5522_v25, %v11342_v15  ;;  %v9596_v16 = vmul.f32 %v5523_v10, %v11342_v15  ;;  %v3475_v42 = vmul.f32 %v5519_v38, %v11340_v55 }
 0x2d3   : > { %4277 = vrot.lane.b32.xlu0 %v4263_v41, %s5596_s15  ;;  %v11344_v41 = vld [vmem:[#allocation9_spill] sm:$0xff]  ;;  %v3506_v45 = vrot.slane %v9556_v2, 1  ;;  %v3507_v46 = vrot.slane %v9560_v8, 1  ;;  %v3476_v29 = vmul.f32 %v5520_v35, %v11340_v55  ;;  %v9610_v30 = vmul.f32 %v8998_v1, %v11342_v15 }
 0x2d4   : > { %v9571_v49 = vpop.permute.xlu1 %3679  ;;  %v4310_v40 = vmul.f32 %v9364_v13, %v11344_v41  ;;  %v4309_v32 = vmul.f32 %v9370_v54, %v11344_v41  ;;  %v9614_v26 = vmul.f32 %v8990_v14, %v11342_v15  ;;  %v3483_v44 = vmul.f32 %v9023_v3, %v11340_v55 }
 0x2d5   : > { %11341 = vst [vmem:[#allocation101_spill] sm:$0xff] %v9571_v49  ;;  %v9588_v31 = vpop.permute.xlu0 %3677  ;;  %v3484_v12 = vmul.f32 %v9011_v47, %v11340_v55  ;;  %v3477_v56 = vmul.f32 %v5521_v9, %v11340_v55  ;;  %v3478_v2 = vmul.f32 %v5522_v25, %v11340_v55  ;;  %v3485_v8 = vmul.f32 %v9039_v21, %v11340_v55 }
 0x2d6   : > { %11343 = vst [vmem:[#allocation30_spill] sm:$0xff] %v9588_v31  ;;  %4283 = vrot.lane.b32.xlu1 %v4266_v28, %s5596_s15  ;;  %v3479_v35 = vmul.f32 %v5523_v10, %v11340_v55  ;;  %v3480_v3 = vmul.f32 %v8998_v1, %v11340_v55  ;;  %v3487_v47 = vmul.f32 %v9072_v11, %v11340_v55  ;;  %v3509_v11 = vrot.slane %v3475_v42, 1 }
 0x2d7   : > { %4281 = vrot.lane.b32.xlu0 %v4265_v6, %s5596_s15  ;;  %v3486_v6 = vmul.f32 %v9030_v50, %v11340_v55  ;;  %v4312_v9 = vmul.f32 %v9381_v51, %v11344_v41  ;;  %v3488_v21 = vmul.f32 %v9063_v59, %v11340_v55  ;;  %v3481_v50 = vmul.f32 %v8990_v14, %v11340_v55 }
 0x2d8   : > { %v9620_v28 = vpop.permute.xlu1 %3683  ;;  %v3489_v25 = vmul.f32 %v9093_v37, %v11340_v55  ;;  %v4311_v1 = vmul.f32 %v9386_v33, %v11344_v41  ;;  %v3510_v10 = vrot.slane %v3483_v44, 1  ;;  %v3513_v15 = vrot.slane %v3484_v12, 1 }
 0x2d9   : > { %11345 = vst [vmem:[#allocation76_spill] sm:$0xff] %v9620_v28  ;;  %v9628_v38 = vpop.permute.xlu0 %3681  ;;  %v3515_v28 = vrot.slane %v3477_v56, 1  ;;  %v3518_v59 = vrot.slane %v3478_v2, 1  ;;  %v3519_v49 = vrot.slane %v3486_v6, 1  ;;  %v3521_v14 = vrot.slane %v3479_v35, 1 }
 0x2da   : > { %11346 = vst [vmem:[#allocation28_spill] sm:$0xff] %v9628_v38  ;;  %4329 = vrot.lane.b32.xlu1 %v4310_v40, %s5597_s30  ;;  %v3512_v40 = vrot.slane %v3476_v29, 1  ;;  %v3516_v38 = vrot.slane %v3485_v8, 1  ;;  %v3522_v7 = vrot.slane %v3487_v47, 1  ;;  %v3524_v37 = vrot.slane %v3480_v3, 1  ;;  %v11350_v3 = vld [vmem:[#allocation53_spill] sm:$0xff] }
 0x2db   : > { %4327 = vrot.lane.b32.xlu0 %v4309_v32, %s5597_s30  ;;  %v4314_v32 = vmul.f32 %v9397_v57, %v11344_v41  ;;  %v3525_v42 = vrot.slane %v3488_v21, 1  ;;  %v3527_v44 = vrot.slane %v3481_v50, 1  ;;  %v3528_v29 = vrot.slane %v3489_v25, 1 }
 0x2dc   : > { %v9647_v60 = vpop.permute.xlu1 %3687  ;;  %v4313_v12 = vmul.f32 %v9402_v39, %v11344_v41  ;;  %v2983_v56 = vsel %vm416_vm1, %v9015_v17, %v9006_v24  ;;  %v9661_v2 = vsel %vm336_vm0, %v3506_v45, %v3507_v46  ;;  %v9664_v8 = vsel %vm336_vm0, %v3509_v11, %v3510_v10  ;;  %v11352_v17 = vld [vmem:[#allocation37_spill] sm:$0xff] }
 0x2dd   : > { %11347 = vst [vmem:[#allocation33_spill] sm:$0xff] %v9647_v60  ;;  %v9649_v31 = vpop.permute.xlu0 %3685  ;;  %v9667_v6 = vsel %vm336_vm0, %v3512_v40, %v3513_v15  ;;  %v2984_v47 = vsel %vm416_vm1, %v9006_v24, %v11350_v3  ;;  %v9681_v46 = vsel %vm336_vm0, %v3515_v28, %v3516_v38  ;;  %v9686_v15 = vsel %vm336_vm0, %v3518_v59, %v3519_v49  ;;  %v11355_v59 = vld [vmem:[#allocation36_spill] sm:$0xff] }
 0x2de   : > { %11348 = vst [vmem:[#allocation54_spill] sm:$0xff] %v9649_v31  ;;  %4333 = vrot.lane.b32.xlu1 %v4312_v9, %s5597_s30  ;;  %v11351_v9 = vld [vmem:[#allocation14_spill] sm:$0xff]  ;;  %v9689_v25 = vsel %vm336_vm0, %v3521_v14, %v3522_v7  ;;  %v4316_v24 = vmul.f32 %v9413_v36, %v11344_v41  ;;  %v2999_v10 = vadd.f32 %v2983_v56, %v9543_v22  ;;  %v11419_v31 = vld [vmem:[#allocation97_spill] sm:$0xff] }
 0x2df   : > { %4331 = vrot.lane.b32.xlu0 %v4311_v1, %s5597_s30  ;;  %v2985_v21 = vsel %vm416_vm1, %v11350_v3, %v11351_v9  ;;  %v2986_v45 = vsel %vm416_vm1, %v11351_v9, %v11352_v17  ;;  %v11354_v1 = vld [vmem:[#allocation10_spill] sm:$0xff]  ;;  %v9698_v28 = vsel %vm336_vm0, %v3524_v37, %v3525_v42  ;;  %v9701_v38 = vsel %vm336_vm0, %v3527_v44, %v3528_v29  ;;  %v11358_v44 = vld [vmem:[#allocation39_spill] sm:$0xff] }
 0x2e0   : > { %v9669_v35 = vpop.permute.xlu1 %3733  ;;  %v4369_v11 = vmul.f32 %v9370_v54, %v11354_v1  ;;  %v4315_v7 = vmul.f32 %v9422_v62, %v11344_v41  ;;  %v3000_v49 = vadd.f32 %v2984_v47, %v9546_v58  ;;  %v3001_v40 = vadd.f32 %v2985_v21, %v9549_v43  ;;  %v11360_v43 = vld [vmem:[#allocation19_spill] sm:$0xff]  ;;  %v11361_v56 = vld [vmem:[#allocation18_spill] sm:$0xff]  ;;  %v11364_v21 = vld [vmem:[#allocation40_spill] sm:$0xff] }
 0x2e1   : > { %11349 = vst [vmem:[#allocation31_spill] sm:$0xff] %v9669_v35  ;;  %v9683_v50 = vpop.permute.xlu0 %3731  ;;  %v2987_v14 = vsel %vm416_vm1, %v11352_v17, %v11355_v59  ;;  %v3002_v22 = vadd.f32 %v2986_v45, %v9552_v27  ;;  %v3088_v3 = vsel %vm416_vm1, %v11361_v56, %v11360_v43  ;;  %v11363_v27 = vld [vmem:[#allocation17_spill] sm:$0xff]  ;;  %v4370_v56 = vmul.f32 %v9364_v13, %v11354_v1 }
 0x2e2   : > { %11353 = vst [vmem:[#allocation32_spill] sm:$0xff] %v9683_v50  ;;  %4337 = vrot.lane.b32.xlu1 %v4314_v32, %s5597_s30  ;;  %v11357_v32 = vld [vmem:[#allocation38_spill] sm:$0xff]  ;;  %v3089_v9 = vsel %vm416_vm1, %v11360_v43, %v11363_v27  ;;  %v3090_v17 = vsel %vm416_vm1, %v11363_v27, %v11364_v21  ;;  %v4387_v45 = vrot.slane %v4369_v11, 1  ;;  %v4317_v43 = vmul.f32 %v9437_v23, %v11344_v41 }
 0x2e3   : > { %4335 = vrot.lane.b32.xlu0 %v4313_v12, %s5597_s30  ;;  %v2988_v42 = vsel %vm416_vm1, %v11355_v59, %v11357_v32  ;;  %v2989_v29 = vsel %vm416_vm1, %v11357_v32, %v11358_v44  ;;  %v11359_v12 = vld [vmem:[#allocation43_spill] sm:$0xff]  ;;  %v4371_v59 = vmul.f32 %v9386_v33, %v11354_v1  ;;  %v3003_v32 = vadd.f32 %v2987_v14, %v9563_v48 }
 0x2e4   : > { %v9712_v37 = vpop.permute.xlu1 %3737  ;;  %v2990_v58 = vsel %vm416_vm1, %v11358_v44, %v11359_v12  ;;  %v11365_v44 = vld [vmem:[#allocation45_spill] sm:$0xff]  ;;  %v3005_v11 = vadd.f32 %v2989_v29, %v9567_v0  ;;  %v3104_v55 = vadd.f32 %v3088_v3, %v2999_v10  ;;  %v3105_v14 = vadd.f32 %v3089_v9, %v3000_v49  ;;  %v11371_v49 = vld [vmem:[#allocation22_spill] sm:$0xff]  ;;  %v11372_v9 = vld [vmem:[#allocation44_spill] sm:$0xff] }
 0x2e5   : > { %11356 = vst [vmem:[#allocation78_spill] sm:$0xff] %v9712_v37  ;;  %v9726_v47 = vpop.permute.xlu0 %3735  ;;  %v3091_v12 = vsel %vm416_vm1, %v11364_v21, %v11365_v44  ;;  %v3006_v27 = vadd.f32 %v2990_v58, %v9569_v4  ;;  %v3106_v37 = vadd.f32 %v3090_v17, %v3001_v40  ;;  %v11367_v21 = vld [vmem:[#allocation21_spill] sm:$0xff]  ;;  %v4389_v4 = vrot.slane %v4371_v59, 1  ;;  %v11373_v17 = vld [vmem:[#allocation46_spill] sm:$0xff] }
 0x2e6   : > { %11362 = vst [vmem:[#allocation56_spill] sm:$0xff] %v9726_v47  ;;  %4341 = vrot.lane.b32.xlu1 %v4316_v24, %s5597_s30  ;;  %v3004_v24 = vadd.f32 %v2988_v42, %v9565_v18  ;;  %v11368_v47 = vld [vmem:[#allocation20_spill] sm:$0xff]  ;;  %v3107_v18 = vadd.f32 %v3091_v12, %v3002_v22  ;;  %v11370_v42 = vld [vmem:[#allocation42_spill] sm:$0xff]  ;;  %v4373_v10 = vmul.f32 %v9402_v39, %v11354_v1  ;;  %v4388_v29 = vrot.slane %v4370_v56, 1 }
 0x2e7   : > { %4339 = vrot.lane.b32.xlu0 %v4315_v7, %s5597_s30  ;;  %v3092_v7 = vsel %vm416_vm1, %v11365_v44, %v11367_v21  ;;  %v3093_v41 = vsel %vm416_vm1, %v11367_v21, %v11368_v47  ;;  %v3094_v0 = vsel %vm416_vm1, %v11368_v47, %v11370_v42  ;;  %v3095_v40 = vsel %vm416_vm1, %v11370_v42, %v11371_v49 }
 0x2e8   : > { %v9749_v48 = vpop.permute.xlu1 %3741  ;;  %v4372_v22 = vmul.f32 %v9381_v51, %v11354_v1  ;;  %v4375_v58 = vmul.f32 %v9422_v62, %v11354_v1  ;;  %v3108_v3 = vadd.f32 %v3092_v7, %v3003_v32  ;;  %v3109_v47 = vadd.f32 %v3093_v41, %v3004_v24  ;;  %v11377_v41 = vld [vmem:[#allocation24_spill] sm:$0xff] }
 0x2e9   : > { %11366 = vst [vmem:[#allocation55_spill] sm:$0xff] %v9749_v48  ;;  %v9757_v50 = vpop.permute.xlu0 %3739  ;;  %v4374_v44 = vmul.f32 %v9397_v57, %v11354_v1  ;;  %v3110_v12 = vadd.f32 %v3094_v0, %v3005_v11  ;;  %v9787_v32 = vmul.f32 %v9437_v23, %v11354_v1  ;;  %v9791_v24 = vmul.f32 %v9413_v36, %v11354_v1  ;;  %v11378_v11 = vld [vmem:[#allocation50_spill] sm:$0xff]  ;;  %v11381_v48 = vld [vmem:[#allocation59_spill] sm:$0xff] }
 0x2ea   : > { %11369 = vst [vmem:[#allocation89_spill] sm:$0xff] %v9757_v50  ;;  %4396 = vrot.lane.b32.xlu1 %v4387_v45, %s5597_s30  ;;  %v3148_v45 = vsel %vm584_vm2, %v11373_v17, %v11372_v9  ;;  %v3111_v7 = vadd.f32 %v3095_v40, %v3006_v27  ;;  %v3151_v0 = vsel %vm584_vm2, %v11377_v41, %v11378_v11  ;;  %v4391_v49 = vrot.slane %v4373_v10, 1  ;;  %v11379_v17 = vld [vmem:[#allocation57_spill] sm:$0xff] }
 0x2eb   : > { %4343 = vrot.lane.b32.xlu0 %v4317_v43, %s5597_s30  ;;  %v11375_v43 = vld [vmem:[#allocation47_spill] sm:$0xff]  ;;  %v4390_v1 = vrot.slane %v4372_v22, 1  ;;  %v4393_v27 = vrot.slane %v4375_v58, 1  ;;  %v4394_v22 = vrot.slane %v9791_v24, 1  ;;  %v11384_v58 = vld [vmem:[#allocation62_spill] sm:$0xff] }
 0x2ec   : > { %v9776_v59 = vpop.permute.xlu1 %3745  ;;  %v3149_v56 = vsel %vm584_vm2, %v11372_v9, %v11375_v43  ;;  %v3150_v42 = vsel %vm584_vm2, %v11375_v43, %v11377_v41  ;;  %v3164_v9 = vadd.f32 %v3148_v45, %v3104_v55  ;;  %v4392_v55 = vrot.slane %v4374_v44, 1 }
 0x2ed   : > { %11374 = vst [vmem:[#allocation51_spill] sm:$0xff] %v9776_v59  ;;  %v9783_v21 = vpop.permute.xlu0 %3743  ;;  %v3152_v59 = vsel %vm584_vm2, %v11378_v11, %v11379_v17  ;;  %v3165_v40 = vadd.f32 %v3149_v56, %v3105_v14  ;;  %v3166_v10 = vadd.f32 %v3150_v42, %v3106_v37  ;;  %v3167_v45 = vadd.f32 %v3151_v0, %v3107_v18  ;;  %v11385_v11 = vld [vmem:[#allocation15_spill] sm:$0xff]  ;;  %v11386_v42 = vld [vmem:[#allocation61_spill] sm:$0xff] }
 0x2ee   : > { %11376 = vst [vmem:[#allocation49_spill] sm:$0xff] %v9783_v21  ;;  %4400 = vrot.lane.b32.xlu1 %v4389_v4, %s5597_s30  ;;  %v11380_v21 = vld [vmem:[#allocation63_spill] sm:$0xff]  ;;  %v3168_v14 = vadd.f32 %v3152_v59, %v3108_v3  ;;  %v3155_v56 = vsel %vm584_vm2, %v11381_v48, %v11384_v58  ;;  %v9824_v37 = vmul.f32 %v9370_v54, %v11385_v11  ;;  %v11388_v3 = vld [vmem:[#allocation58_spill] sm:$0xff] }
 0x2ef   : > { %4398 = vrot.lane.b32.xlu0 %v4388_v29, %s5597_s30  ;;  %v3153_v43 = vsel %vm584_vm2, %v11379_v17, %v11380_v21  ;;  %v3154_v41 = vsel %vm584_vm2, %v11380_v21, %v11381_v48  ;;  %v4395_v29 = vrot.slane %v9787_v32, 1  ;;  %v4439_v21 = vmul.f32 %v9364_v13, %v11385_v11  ;;  %v11387_v32 = vld [vmem:[#allocation60_spill] sm:$0xff] }
 0x2f0   : > { %v9810_v4 = vpop.permute.xlu1 %3836  ;;  %v3169_v18 = vadd.f32 %v3153_v43, %v3109_v47  ;;  %v3170_v44 = vadd.f32 %v3154_v41, %v3110_v12  ;;  %v3253_v24 = vsel %vm584_vm2, %v11387_v32, %v11386_v42  ;;  %v3254_v59 = vsel %vm584_vm2, %v11386_v42, %v11388_v3  ;;  %v11389_v48 = vld [vmem:[#allocation64_spill] sm:$0xff]  ;;  %v11392_v43 = vld [vmem:[#allocation11_spill] sm:$0xff] }
 0x2f1   : > { %11382 = vst [vmem:[#allocation92_spill] sm:$0xff] %v9810_v4  ;;  %v9812_v50 = vpop.permute.xlu0 %3747  ;;  %v3255_v0 = vsel %vm584_vm2, %v11388_v3, %v11389_v48  ;;  %v9843_v12 = vmul.f32 %v9381_v51, %v11385_v11  ;;  %v9847_v41 = vmul.f32 %v9370_v54, %v11392_v43  ;;  %v3171_v58 = vadd.f32 %v3155_v56, %v3111_v7 }
 0x2f2   : > { %11383 = vst [vmem:[#allocation86_spill] sm:$0xff] %v9812_v50  ;;  %4404 = vrot.lane.b32.xlu1 %v4391_v49, %s5597_s30  ;;  %v11390_v49 = vld [vmem:[#allocation65_spill] sm:$0xff]  ;;  %v9853_v42 = vmul.f32 %v9386_v33, %v11385_v11  ;;  %v9857_v32 = vmul.f32 %v9397_v57, %v11385_v11  ;;  %v9861_v3 = vmul.f32 %v9402_v39, %v11385_v11 }
 0x2f3   : > { %4402 = vrot.lane.b32.xlu0 %v4390_v1, %s5597_s30  ;;  %v3256_v17 = vsel %vm584_vm2, %v11389_v48, %v11390_v49  ;;  %v3269_v48 = vadd.f32 %v3253_v24, %v3164_v9  ;;  %v3270_v50 = vadd.f32 %v3254_v59, %v3165_v40  ;;  %v9869_v7 = vmul.f32 %v9413_v36, %v11385_v11  ;;  %v11396_v40 = vld [vmem:[#allocation68_spill] sm:$0xff]  ;;  %v11397_v24 = vld [vmem:[#allocation69_spill] sm:$0xff] }
 0x2f4   : > { %v9839_v47 = vpop.permute.xlu1 %3840  ;;  %v3271_v56 = vadd.f32 %v3255_v0, %v3166_v10  ;;  %v3272_v4 = vadd.f32 %v3256_v17, %v3167_v45  ;;  %v9877_v9 = vmul.f32 %v9422_v62, %v11385_v11  ;;  %v3260_v59 = vsel %vm584_vm2, %v11396_v40, %v11397_v24  ;;  %v11401_v17 = vld [vmem:[#allocation71_spill] sm:$0xff]  ;;  %v11403_v45 = vld [vmem:[#allocation73_spill] sm:$0xff] }
 0x2f5   : > { %11391 = vst [vmem:[#allocation52_spill] sm:$0xff] %v9839_v47  ;;  %v9849_v1 = vpop.permute.xlu0 %3838  ;;  %v11394_v47 = vld [vmem:[#allocation66_spill] sm:$0xff]  ;;  %v9890_v0 = vmul.f32 %v9437_v23, %v11385_v11 }
 0x2f6   : > { %11393 = vst [vmem:[#allocation7_spill] sm:$0xff] %v9849_v1  ;;  %v3257_v54 = vsel %vm584_vm2, %v11390_v49, %v11394_v47  ;;  %4408 = vrot.lane.b32.xlu1 %v4393_v27, %s5597_s30  ;;  %v11395_v1 = vld [vmem:[#allocation67_spill] sm:$0xff]  ;;  %v11400_v49 = vld [vmem:[#allocation70_spill] sm:$0xff] }
 0x2f7   : > { %v3258_v35 = vsel %vm584_vm2, %v11394_v47, %v11395_v1  ;;  %4406 = vrot.lane.b32.xlu0 %v4392_v55, %s5597_s30  ;;  %v3259_v27 = vsel %vm584_vm2, %v11395_v1, %v11396_v40  ;;  %11399 = vst [vmem:[#allocation9_spill] sm:$0xff] %v9890_v0  ;;  %v3273_v55 = vadd.f32 %v3257_v54, %v3168_v14  ;;  %v11420_v0 = vld [vmem:[#allocation85_spill] sm:$0xff] }
 0x2f8   : > { %v9885_v10 = vpop.permute.xlu1 %3844  ;;  %v3313_v47 = vsel %vm752_vm3, %v11401_v17, %v11400_v49  ;;  %v9899_v1 = vmul.f32 %v9386_v33, %v11392_v43  ;;  %v9903_v40 = vmul.f32 %v9364_v13, %v11392_v43  ;;  %v3274_v24 = vadd.f32 %v3258_v35, %v3169_v18  ;;  %v11405_v35 = vld [vmem:[#allocation79_spill] sm:$0xff] }
 0x2f9   : > { %11398 = vst [vmem:[#allocation8_spill] sm:$0xff] %v9885_v10  ;;  %v9895_v60 = vpop.permute.xlu0 %3842  ;;  %v3314_v11 = vsel %vm752_vm3, %v11400_v49, %v11403_v45  ;;  %v9911_v14 = vmul.f32 %v9402_v39, %v11392_v43  ;;  %v9915_v54 = vmul.f32 %v9381_v51, %v11392_v43  ;;  %v3275_v33 = vadd.f32 %v3259_v27, %v3170_v44  ;;  %v11404_v10 = vld [vmem:[#allocation72_spill] sm:$0xff]  ;;  %v11407_v27 = vld [vmem:[#allocation74_spill] sm:$0xff] }
 0x2fa   : > { %11402 = vst [vmem:[#allocation53_spill] sm:$0xff] %v9895_v60  ;;  %4412 = vrot.lane.b32.xlu1 %v4395_v29, %s5597_s30  ;;  %v3276_v17 = vadd.f32 %v3260_v59, %v3171_v58  ;;  %v3315_v13 = vsel %vm752_vm3, %v11403_v45, %v11404_v10  ;;  %v3316_v18 = vsel %vm752_vm3, %v11404_v10, %v11405_v35 }
 0x2fb   : > { %4410 = vrot.lane.b32.xlu0 %v4394_v22, %s5597_s30  ;;  %v3329_v29 = vadd.f32 %v3313_v47, %v3269_v48  ;;  %v9928_v39 = vmul.f32 %v9422_v62, %v11392_v43  ;;  %v9932_v51 = vmul.f32 %v9397_v57, %v11392_v43  ;;  %v9936_v44 = vmul.f32 %v9437_v23, %v11392_v43  ;;  %v11408_v48 = vld [vmem:[#allocation81_spill] sm:$0xff]  ;;  %v11410_v47 = vld [vmem:[#allocation87_spill] sm:$0xff] }
 0x2fc   : > { %v9924_v49 = vpop.permute.xlu1 %3848  ;;  %v3330_v58 = vadd.f32 %v3314_v11, %v3270_v50  ;;  %v3317_v22 = vsel %vm752_vm3, %v11405_v35, %v11407_v27  ;;  %v3318_v59 = vsel %vm752_vm3, %v11407_v27, %v11408_v48  ;;  %v9948_v62 = vmul.f32 %v9413_v36, %v11392_v43  ;;  %v11411_v23 = vld [vmem:[#allocation75_spill] sm:$0xff]  ;;  %v11415_v43 = vld [vmem:[#allocation82_spill] sm:$0xff] }
 0x2fd   : > { %11406 = vst [vmem:[#allocation14_spill] sm:$0xff] %v9924_v49  ;;  %v9944_v10 = vpop.permute.xlu0 %3846  ;;  %v3331_v57 = vadd.f32 %v3315_v13, %v3271_v56  ;;  %v3332_v45 = vadd.f32 %v3316_v18, %v3272_v4  ;;  %v3418_v50 = vsel %vm752_vm3, %v11411_v23, %v11410_v47  ;;  %v11412_v11 = vld [vmem:[#allocation83_spill] sm:$0xff]  ;;  %v11413_v49 = vld [vmem:[#allocation80_spill] sm:$0xff]  ;;  %v3334_v18 = vadd.f32 %v3318_v59, %v3274_v24 }
 0x2fe   : > { %11409 = vst [vmem:[#allocation37_spill] sm:$0xff] %v9944_v10  ;;  %v3419_v35 = vsel %vm752_vm3, %v11410_v47, %v11412_v11  ;;  %4458 = vrot.lane.b32.xlu1 %v4439_v21, %s5598_s8  ;;  %v3319_v27 = vsel %vm752_vm3, %v11408_v48, %v11413_v49  ;;  %v11414_v10 = vld [vmem:[#allocation77_spill] sm:$0xff]  ;;  %v3420_v4 = vsel %vm752_vm3, %v11412_v11, %v11415_v43  ;;  %v11416_v56 = vld [vmem:[#allocation84_spill] sm:$0xff] }
 0x2ff   : > { %v3320_v36 = vsel %vm752_vm3, %v11413_v49, %v11414_v10  ;;  %v3421_v13 = vsel %vm752_vm3, %v11415_v43, %v11416_v56  ;;  %4456 = vrot.lane.b32.xlu0 %v9824_v37, %s5598_s8  ;;  %v3333_v21 = vadd.f32 %v3317_v22, %v3273_v55  ;;  %v11417_v47 = vld [vmem:[#allocation96_spill] sm:$0xff]  ;;  %v3434_v11 = vadd.f32 %v3418_v50, %v3329_v29 }
 0x300   : > { %v3422_v48 = vsel %vm752_vm3, %v11416_v56, %v11417_v47  ;;  %v11418_v23 = vld [vmem:[#allocation88_spill] sm:$0xff]  ;;  %v9977_v10 = vpop.permute.xlu1 %3852  ;;  %v3435_v60 = vadd.f32 %v3419_v35, %v3330_v58  ;;  %v3425_v37 = vsel %vm752_vm3, %v11419_v31, %v11420_v0  ;;  %v3335_v24 = vadd.f32 %v3319_v27, %v3275_v33 }
 0x301   : > { %v3423_v49 = vsel %vm752_vm3, %v11417_v47, %v11418_v23  ;;  %v3424_v43 = vsel %vm752_vm3, %v11418_v23, %v11419_v31  ;;  %v9985_v55 = vpop.permute.xlu0 %3850  ;;  %v3336_v22 = vadd.f32 %v3320_v36, %v3276_v17  ;;  %v3436_v59 = vadd.f32 %v3420_v4, %v3331_v57 }
 0x302   : > { %v3437_v56 = vadd.f32 %v3421_v13, %v3332_v45  ;;  %4462 = vrot.lane.b32.xlu1 %v9843_v12, %s5598_s8  ;;  %v3438_v29 = vadd.f32 %v3422_v48, %v3333_v21  ;;  %v3439_v58 = vadd.f32 %v3423_v49, %v3334_v18  ;;  %v4518_v50 = vrot.slane %v9899_v1, 1  ;;  %v9998_v12 = vld [vmem:[%s5699_s13 + $0x200] sm:$0xff]  ;;  %v10001_v45 = vld [vmem:[%s5699_s13 + $0x1f8] sm:$0xff]  ;;  %v10010_v21 = vld [vmem:[%s5699_s13 + $0x210] sm:$0xff] }
 0x303   : > { %4460 = vrot.lane.b32.xlu0 %v9853_v42, %s5598_s8  ;;  %v4517_v31 = vrot.slane %v9903_v40, 1  ;;  %v3440_v0 = vadd.f32 %v3424_v43, %v3335_v24  ;;  %v3441_v35 = vadd.f32 %v3425_v37, %v3336_v22  ;;  %v4520_v17 = vrot.slane %v9911_v14, 1  ;;  %v11421_v49 = vld [vmem:[#allocation23_spill] sm:$0xff] }
 0x304   : > { %v9993_v33 = vpop.permute.xlu1 %3898  ;;  %v4519_v57 = vrot.slane %v9915_v54, 1  ;;  %v3466_v27 = vadd.f32 %v9574_v20, %v3434_v11  ;;  %v3467_v42 = vadd.f32 %v9578_v61, %v3435_v60  ;;  %v4522_v4 = vrot.slane %v9928_v39, 1  ;;  %v10019_v60 = vld [vmem:[%s5699_s13 + $0x208] sm:$0xff]  ;;  %v11422_v43 = vld [vmem:[#allocation99_spill] sm:$0xff] }
 0x305   : > { %v10005_v36 = vpop.permute.xlu0 %3896  ;;  %v4521_v13 = vrot.slane %v9932_v51, 1  ;;  %v3468_v18 = vadd.f32 %v9582_v5, %v3436_v59  ;;  %v3469_v47 = vadd.f32 %v9586_v19, %v3437_v56  ;;  %v4524_v48 = vrot.slane %v9936_v44, 1  ;;  %v11423_v37 = vld [vmem:[#allocation91_spill] sm:$0xff]  ;;  %v11424_v59 = vld [vmem:[#allocation90_spill] sm:$0xff] }
 0x306   : > { %4466 = vrot.lane.b32.xlu1 %v9857_v32, %s5598_s8  ;;  %v4523_v20 = vrot.slane %v9948_v62, 1  ;;  %v3470_v61 = vadd.f32 %v9592_v53, %v3438_v29  ;;  %v3471_v23 = vadd.f32 %v9596_v16, %v3439_v58  ;;  %v10027_v5 = vmul.f32 %v9998_v12, %v11421_v49  ;;  %v11425_v58 = vld [vmem:[#allocation100_spill] sm:$0xff] }
 0x307   : > { %4464 = vrot.lane.b32.xlu0 %v9861_v3, %s5598_s8  ;;  %v10031_v19 = vmul.f32 %v10001_v45, %v11421_v49  ;;  %v3472_v32 = vadd.f32 %v9610_v30, %v3440_v0  ;;  %v3473_v11 = vadd.f32 %v9614_v26, %v3441_v35  ;;  %v3584_v53 = vsel %vm416_vm1, %v11423_v37, %v11422_v43  ;;  %v11426_v35 = vld [vmem:[#allocation98_spill] sm:$0xff]  ;;  %v11428_v37 = vld [vmem:[#allocation95_spill] sm:$0xff] }
 0x308   : > { %v10038_v16 = vpop.permute.xlu1 %3902  ;;  %v10042_v3 = vmul.f32 %v10010_v21, %v11421_v49  ;;  %v3538_v24 = vadd.f32 %v9661_v2, %v3466_v27  ;;  %v3539_v22 = vadd.f32 %v9664_v8, %v3467_v42  ;;  %v3585_v30 = vsel %vm416_vm1, %v11422_v43, %v11424_v59  ;;  %v11427_v43 = vld [vmem:[#allocation94_spill] sm:$0xff] }
 0x309   : > { %v10049_v56 = vpop.permute.xlu0 %3900  ;;  %v10053_v26 = vmul.f32 %v10019_v60, %v11421_v49  ;;  %v3540_v29 = vadd.f32 %v9667_v6, %v3468_v18  ;;  %v3586_v0 = vsel %vm416_vm1, %v11424_v59, %v11425_v58  ;;  %v3541_v2 = vadd.f32 %v9681_v46, %v3469_v47 }
 0x30a   : > { %v3587_v8 = vsel %vm416_vm1, %v11425_v58, %v11426_v35  ;;  %4470 = vrot.lane.b32.xlu1 %v9869_v7, %s5598_s8  ;;  %v3600_v27 = vadd.f32 %v3584_v53, %v3538_v24  ;;  %v3542_v42 = vadd.f32 %v9686_v15, %v3470_v61  ;;  %v3588_v6 = vsel %vm416_vm1, %v11426_v35, %v11427_v43  ;;  %v11429_v24 = vld [vmem:[#allocation93_spill] sm:$0xff]  ;;  %v11435_v35 = vld [vmem:[#allocation76_spill] sm:$0xff] }
 0x30b   : > { %v3543_v18 = vadd.f32 %v9689_v25, %v3471_v23  ;;  %4468 = vrot.lane.b32.xlu0 %v9877_v9, %s5598_s8  ;;  %v3601_v46 = vadd.f32 %v3585_v30, %v3539_v22  ;;  %v3544_v47 = vadd.f32 %v9698_v28, %v3472_v32  ;;  %v3589_v59 = vsel %vm416_vm1, %v11427_v43, %v11428_v37  ;;  %v11431_v22 = vld [vmem:[#allocation30_spill] sm:$0xff]  ;;  %v11433_v58 = vld [vmem:[#allocation101_spill] sm:$0xff] }
 0x30c   : > { %v3545_v7 = vadd.f32 %v9701_v38, %v3473_v11  ;;  %v10077_v53 = vpop.permute.xlu1 %3906  ;;  %v3602_v15 = vadd.f32 %v3586_v0, %v3540_v29  ;;  %v3603_v61 = vadd.f32 %v3587_v8, %v3541_v2  ;;  %v3590_v25 = vsel %vm416_vm1, %v11428_v37, %v11429_v24  ;;  %v11430_v38 = vld [vmem:[#allocation102_spill] sm:$0xff]  ;;  %v11434_v2 = vld [vmem:[#allocation28_spill] sm:$0xff]  ;;  %v11436_v8 = vld [vmem:[#allocation9_spill] sm:$0xff] }
 0x30d   : > { %v3591_v9 = vsel %vm416_vm1, %v11429_v24, %v9517_v52  ;;  %v10085_v23 = vpop.permute.xlu0 %3904  ;;  %v3604_v28 = vadd.f32 %v3588_v6, %v3542_v42  ;;  %v3689_v32 = vsel %vm416_vm1, %v9515_v34, %v9539_v63  ;;  %v3690_v11 = vsel %vm416_vm1, %v9539_v63, %v11430_v38 }
 0x30e   : > { %v3691_v30 = vsel %vm416_vm1, %v11430_v38, %v11431_v22  ;;  %v11432_v29 = vrot.slane %v9847_v41, 1  ;;  %v3605_v52 = vadd.f32 %v3589_v59, %v3543_v18  ;;  %v3692_v0 = vsel %vm416_vm1, %v11431_v22, %v11433_v58  ;;  %v11437_v41 = vld [vmem:[#allocation54_spill] sm:$0xff]  ;;  %v11438_v18 = vld [vmem:[#allocation33_spill] sm:$0xff] }
 0x30f   : > { %v3693_v34 = vsel %vm416_vm1, %v11433_v58, %v11434_v2  ;;  %v3694_v63 = vsel %vm416_vm1, %v11434_v2, %v11435_v35  ;;  %4472 = vrot.lane.b32.xlu0 %v11436_v8, %s5598_s8  ;;  %v3606_v42 = vadd.f32 %v3590_v25, %v3544_v47  ;;  %v3607_v43 = vadd.f32 %v3591_v9, %v3545_v7  ;;  %v11440_v58 = vld [vmem:[#allocation32_spill] sm:$0xff] }
 0x310   : > { %4525 = vrot.lane.b32.xlu1 %v11432_v29, %s5598_s8  ;;  %v3695_v6 = vsel %vm416_vm1, %v11435_v35, %v11437_v41  ;;  %v3696_v37 = vsel %vm416_vm1, %v11437_v41, %v11438_v18  ;;  %v10116_v59 = vpop.permute.xlu1 %3910  ;;  %v3705_v24 = vadd.f32 %v3689_v32, %v3600_v27  ;;  %v3706_v38 = vadd.f32 %v3690_v11, %v3601_v46  ;;  %v11439_v29 = vld [vmem:[#allocation31_spill] sm:$0xff]  ;;  %v11441_v9 = vld [vmem:[#allocation56_spill] sm:$0xff]  ;;  %v11443_v11 = vld [vmem:[#allocation89_spill] sm:$0xff] }
 0x311   : > { %v3707_v22 = vadd.f32 %v3691_v30, %v3602_v15  ;;  %v3749_v2 = vsel %vm584_vm2, %v11440_v58, %v11439_v29  ;;  %v10121_v8 = vpop.permute.xlu0 %3908  ;;  %v3708_v47 = vadd.f32 %v3692_v0, %v3603_v61  ;;  %v3709_v7 = vadd.f32 %v3693_v34, %v3604_v28  ;;  %v11442_v15 = vld [vmem:[#allocation78_spill] sm:$0xff]  ;;  %v11444_v30 = vld [vmem:[#allocation55_spill] sm:$0xff]  ;;  %v11447_v34 = vld [vmem:[#allocation52_spill] sm:$0xff] }
 0x312   : > { %v3710_v25 = vadd.f32 %v3694_v63, %v3605_v52  ;;  %v3750_v35 = vsel %vm584_vm2, %v11439_v29, %v11441_v9  ;;  %v3711_v27 = vadd.f32 %v3695_v6, %v3606_v42  ;;  %v3712_v46 = vadd.f32 %v3696_v37, %v3607_v43  ;;  %v11446_v52 = vld [vmem:[#allocation92_spill] sm:$0xff]  ;;  %v11448_v41 = vld [vmem:[#allocation49_spill] sm:$0xff]  ;;  %v11450_v18 = vld [vmem:[#allocation86_spill] sm:$0xff] }
 0x313   : > { %v3751_v32 = vsel %vm584_vm2, %v11441_v9, %v11442_v15  ;;  %v3752_v61 = vsel %vm584_vm2, %v11442_v15, %v11443_v11  ;;  %4527 = vrot.lane.b32.xlu0 %v4517_v31, %s5598_s8  ;;  %v3765_v28 = vadd.f32 %v3749_v2, %v3705_v24  ;;  %v3753_v1 = vsel %vm584_vm2, %v11443_v11, %v11444_v30  ;;  %v11449_v31 = vld [vmem:[#allocation51_spill] sm:$0xff]  ;;  %v11451_v11 = vld [vmem:[#allocation53_spill] sm:$0xff] }
 0x314   : > { %4529 = vrot.lane.b32.xlu1 %v4518_v50, %s5598_s8  ;;  %v11445_v50 = vld [vmem:[#allocation7_spill] sm:$0xff]  ;;  %v4002_v42 = vpop.permute.xlu1 %4001  ;;  %v3766_v43 = vadd.f32 %v3750_v35, %v3706_v38  ;;  %v3754_v40 = vsel %vm584_vm2, %v11444_v30, %v11448_v41  ;;  %v3755_v6 = vsel %vm584_vm2, %v11448_v41, %v11449_v31  ;;  %v3756_v37 = vsel %vm584_vm2, %v11449_v31, %v11450_v18 }
 0x315   : > { %v3854_v0 = vsel %vm584_vm2, %v11446_v52, %v11445_v50  ;;  %v3855_v63 = vsel %vm584_vm2, %v11445_v50, %v11447_v34  ;;  %v10156_v24 = vpop.permute.xlu0 %3912  ;;  %v3767_v29 = vadd.f32 %v3751_v32, %v3707_v22  ;;  %v3768_v58 = vadd.f32 %v3752_v61, %v3708_v47  ;;  %v11452_v61 = vld [vmem:[#allocation8_spill] sm:$0xff]  ;;  %v11454_v52 = vld [vmem:[#allocation14_spill] sm:$0xff] }
 0x316   : > { %v3914_v38 = vsel %vm752_vm3, %v10005_v36, %v9993_v33  ;;  %v3915_v2 = vsel %vm752_vm3, %v9993_v33, %v10049_v56  ;;  %v3769_v9 = vadd.f32 %v3753_v1, %v3709_v7  ;;  %v3870_v35 = vadd.f32 %v3854_v0, %v3765_v28 }
 0x317   : > { %v3871_v15 = vadd.f32 %v3855_v63, %v3766_v43  ;;  %v3856_v22 = vsel %vm584_vm2, %v11447_v34, %v11451_v11  ;;  %4531 = vrot.lane.b32.xlu0 %v4519_v57, %s5598_s8  ;;  %v3770_v36 = vadd.f32 %v3754_v40, %v3710_v25  ;;  %v3771_v47 = vadd.f32 %v3755_v6, %v3711_v27  ;;  %v11455_v40 = vld [vmem:[#allocation26_spill] sm:$0xff] }
 0x318   : > { %4533 = vrot.lane.b32.xlu1 %v4520_v17, %s5598_s8  ;;  %v3772_v32 = vadd.f32 %v3756_v37, %v3712_v46  ;;  %v3857_v33 = vsel %vm584_vm2, %v11451_v11, %v11452_v61  ;;  %v4006_v14 = vpop.permute.xlu1 %4005  ;;  %v11453_v17 = vld [vmem:[#allocation37_spill] sm:$0xff]  ;;  %v3930_v28 = vadd.f32 %v3914_v38, %v3870_v35  ;;  %v3916_v30 = vsel %vm752_vm3, %v10049_v56, %v10038_v16 }
 0x319   : > { %v3858_v7 = vsel %vm584_vm2, %v11452_v61, %v11453_v17  ;;  %v3931_v1 = vadd.f32 %v3915_v2, %v3871_v15  ;;  %v4004_v54 = vpop.permute.xlu0 %4003  ;;  %v3872_v57 = vadd.f32 %v3856_v22, %v3767_v29  ;;  %v3917_v25 = vsel %vm752_vm3, %v10038_v16, %v10085_v23  ;;  %v10226_v61 = vld [vmem:[%s5699_s13 + $0x220] sm:$0xff] }
 0x31a   : > { %v4019_v27 = vsel %vm752_vm3, %v4002_v42, %v4004_v54  ;;  %v4020_v46 = vsel %vm752_vm3, %v4004_v54, %v4006_v14  ;;  %v3873_v50 = vadd.f32 %v3857_v33, %v3768_v58  ;;  %v3859_v56 = vsel %vm584_vm2, %v11453_v17, %v11454_v52  ;;  %v10240_v17 = vld [vmem:[%s5699_s13 + $0x218] sm:$0xff] }
 0x31b   : > { %v4035_v0 = vadd.f32 %v4019_v27, %v3930_v28  ;;  %v4036_v34 = vadd.f32 %v4020_v46, %v3931_v1  ;;  %4535 = vrot.lane.b32.xlu0 %v4521_v13, %s5598_s8  ;;  %v3874_v16 = vadd.f32 %v3858_v7, %v3769_v9  ;;  %v3860_v63 = vsel %vm584_vm2, %v11454_v52, %v9985_v55 }
 0x31c   : > { %4537 = vrot.lane.b32.xlu1 %v4522_v4, %s5598_s8  ;;  %v3861_v39 = vsel %vm584_vm2, %v9985_v55, %v9977_v10  ;;  %v3932_v4 = vadd.f32 %v3916_v30, %v3872_v57  ;;  %v4010_v42 = vpop.permute.xlu1 %4009  ;;  %v3918_v43 = vsel %vm752_vm3, %v10085_v23, %v10077_v53  ;;  %v3933_v41 = vadd.f32 %v3917_v25, %v3873_v50  ;;  %v11456_v55 = vld [vmem:[#allocation27_spill] sm:$0xff] }
 0x31d   : > { %v4043_v31 = vmul.f32 %v4035_v0, %v11455_v40  ;;  %v4044_v51 = vmul.f32 %v4036_v34, %v11455_v40  ;;  %v4008_v13 = vpop.permute.xlu0 %4007  ;;  %v3875_v6 = vadd.f32 %v3859_v56, %v3770_v36  ;;  %v3919_v18 = vsel %vm752_vm3, %v10077_v53, %v10121_v8  ;;  %v10256_v0 = vld [vmem:[%s5699_s13 + $0x230] sm:$0xff] }
 0x31e   : > { %v4021_v37 = vsel %vm752_vm3, %v4006_v14, %v4008_v13  ;;  %v4022_v10 = vsel %vm752_vm3, %v4008_v13, %v4010_v42  ;;  %v3876_v53 = vadd.f32 %v3860_v63, %v3771_v47  ;;  %v3877_v2 = vadd.f32 %v3861_v39, %v3772_v32  ;;  %v10262_v63 = vld [vmem:[%s5699_s13 + $0x228] sm:$0xff] }
 0x31f   : > { %v4051_v23 = vadd.f32 %v4043_v31, %v11456_v55  ;;  %v4052_v29 = vadd.f32 %v4044_v51, %v11456_v55  ;;  %v4037_v58 = vadd.f32 %v4021_v37, %v3932_v4  ;;  %v4038_v38 = vadd.f32 %v4022_v10, %v3933_v41  ;;  %4539 = vrot.lane.b32.xlu0 %v4523_v20, %s5598_s8  ;;  %v11457_v41 = vld [vmem:[#allocation29_spill] sm:$0xff]  ;;  %v10281_v37 = vld [vmem:[%s5699_s13 + $0x238] sm:$0xff] }
 0x320   : > { %4541 = vrot.lane.b32.xlu1 %v4524_v48, %s5598_s8  ;;  %v3934_v9 = vadd.f32 %v3918_v43, %v3874_v16  ;;  %v3920_v35 = vsel %vm752_vm3, %v10121_v8, %v10116_v59  ;;  %v4014_v44 = vpop.permute.xlu1 %4013  ;;  %v3935_v62 = vadd.f32 %v3919_v18, %v3875_v6  ;;  %v3921_v20 = vsel %vm752_vm3, %v10116_v59, %v10156_v24 }
 0x321   : > { %v5272_v48 = vmul.f32 -1.442695, %v4051_v23  ;;  %v5273_v15 = vmul.f32 -1.442695, %v4052_v29  ;;  %v4045_v11 = vmul.f32 %v4037_v58, %v11455_v40  ;;  %v4046_v22 = vmul.f32 %v4038_v38, %v11455_v40  ;;  %v4012_v36 = vpop.permute.xlu0 %4011 }
 0x322   : > { %v4023_v47 = vsel %vm752_vm3, %v4010_v42, %v4012_v36  ;;  %v4024_v8 = vsel %vm752_vm3, %v4012_v36, %v4014_v44  ;;  %v3936_v7 = vadd.f32 %v3920_v35, %v3876_v53  ;;  %v4637_v28 = vmul.f32 %v10226_v61, %v11421_v49 }
 0x323   : > { %5418 = vpow2.f32 %v5272_v48  ;;  %v4053_v32 = vadd.f32 %v4045_v11, %v11456_v55  ;;  %v4054_v33 = vadd.f32 %v4046_v22, %v11456_v55  ;;  %v4039_v14 = vadd.f32 %v4023_v47, %v3934_v9  ;;  %4650 = vrot.lane.b32.xlu0 %v10031_v19, %s5596_s15 }
 0x324   : > { %4652 = vrot.lane.b32.xlu1 %v10027_v5, %s5596_s15  ;;  %5420 = vpow2.f32 %v5273_v15  ;;  %v4040_v59 = vadd.f32 %v4024_v8, %v3935_v62  ;;  %v4018_v24 = vpop.permute.xlu1 %4017  ;;  %v3937_v5 = vadd.f32 %v3921_v20, %v3877_v2  ;;  %v4636_v46 = vmul.f32 %v10240_v17, %v11421_v49 }
 0x325   : > { %v5274_v30 = vmul.f32 -1.442695, %v4053_v32  ;;  %v5275_v1 = vmul.f32 -1.442695, %v4054_v33  ;;  %v4047_v54 = vmul.f32 %v4039_v14, %v11455_v40  ;;  %v4016_v57 = vpop.permute.xlu0 %4015  ;;  %v4692_v31 = vmul.f32 %v10001_v45, %v11457_v41 }
 0x326   : > { %v4048_v25 = vmul.f32 %v4040_v59, %v11455_v40  ;;  %v4025_v19 = vsel %vm752_vm3, %v4014_v44, %v4016_v57  ;;  %v4026_v27 = vsel %vm752_vm3, %v4016_v57, %v4018_v24  ;;  %v4638_v6 = vmul.f32 %v10262_v63, %v11421_v49 }
 0x327   : > { %5422 = vpow2.f32 %v5274_v30  ;;  %v4055_v50 = vadd.f32 %v4047_v54, %v11456_v55  ;;  %v4041_v52 = vadd.f32 %v4025_v19, %v3936_v7  ;;  %v4042_v56 = vadd.f32 %v4026_v27, %v3937_v5  ;;  %4654 = vrot.lane.b32.xlu0 %v10053_v26, %s5596_s15 }
 0x328   : > { %4656 = vrot.lane.b32.xlu1 %v10042_v3, %s5596_s15  ;;  %5424 = vpow2.f32 %v5275_v1  ;;  %v4056_v34 = vadd.f32 %v4048_v25, %v11456_v55  ;;  %v10259_v16 = vpop.permute.xlu1 %4200  ;;  %v4639_v26 = vmul.f32 %v10256_v0, %v11421_v49  ;;  %v4710_v2 = vrot.slane %v4692_v31, 1  ;;  %v11458_v31 = vld [vmem:[#allocation13_spill] sm:$0xff] }
 0x329   : > { %v5276_v3 = vmul.f32 -1.442695, %v4055_v50  ;;  %v4049_v39 = vmul.f32 %v4041_v52, %v11455_v40  ;;  %v4050_v4 = vmul.f32 %v4042_v56, %v11455_v40  ;;  %v10266_v42 = vpop.permute.xlu0 %4198  ;;  %v4694_v9 = vmul.f32 %v10019_v60, %v11457_v41 }
 0x32a   : > { %v5277_v43 = vmul.f32 -1.442695, %v4056_v34  ;;  %v4640_v44 = vmul.f32 %v10281_v37, %v11421_v49  ;;  %v4693_v48 = vmul.f32 %v9998_v12, %v11457_v41  ;;  %v4696_v47 = vmul.f32 %v10240_v17, %v11457_v41 }
 0x32b   : > { %5426 = vpow2.f32 %v5276_v3  ;;  %v4057_v51 = vadd.f32 %v4049_v39, %v11456_v55  ;;  %v4058_v13 = vadd.f32 %v4050_v4, %v11456_v55  ;;  %4658 = vrot.lane.b32.xlu0 %v4636_v46, %s5596_s15  ;;  %v4712_v20 = vrot.slane %v4694_v9, 1 }
 0x32c   : > { %4660 = vrot.lane.b32.xlu1 %v4637_v28, %s5596_s15  ;;  %5428 = vpow2.f32 %v5277_v43  ;;  %v10278_v18 = vpop.permute.xlu1 %4204  ;;  %v4711_v8 = vrot.slane %v4693_v48, 1  ;;  %v4695_v32 = vmul.f32 %v10010_v21, %v11457_v41  ;;  %v4714_v28 = vrot.slane %v4696_v47, 1  ;;  %v5525_v47 = vld [vmem:[%s5699_s13 + $0xe0] sm:$0xff] }
 0x32d   : > { %v5419_v10 = vpop.eup %5418  ;;  %v5278_v23 = vmul.f32 -1.442695, %v4057_v51  ;;  %v10283_v29 = vpop.permute.xlu0 %4202  ;;  %v5279_v53 = vmul.f32 -1.442695, %v4058_v13  ;;  %v4698_v5 = vmul.f32 %v10262_v63, %v11457_v41  ;;  %v4697_v54 = vmul.f32 %v10226_v61, %v11457_v41 }
 0x32e   : > { %v5421_v58 = vpop.eup %5420  ;;  %v4083_v38 = vadd.f32 1.0, %v5419_v10  ;;  %v4713_v1 = vrot.slane %v4695_v32, 1  ;;  %v4700_v52 = vmul.f32 %v10281_v37, %v11457_v41  ;;  %v4699_v3 = vmul.f32 %v10256_v0, %v11457_v41 }
 0x32f   : > { %v4084_v35 = vadd.f32 1.0, %v5421_v58  ;;  %5430 = vpow2.f32 %v5278_v23  ;;  %4662 = vrot.lane.b32.xlu0 %v4638_v6, %s5596_s15  ;;  %v4716_v50 = vrot.slane %v4698_v5, 1  ;;  %v4715_v34 = vrot.slane %v4697_v54, 1 }
 0x330   : > { %4664 = vrot.lane.b32.xlu1 %v4639_v26, %s5596_s15  ;;  %5432 = vrcp.f32 %v4083_v38  ;;  %v10293_v15 = vpop.permute.xlu1 %4208  ;;  %v5524_v26 = vld [vmem:[%s5699_s13 + $0xd8] sm:$0xff]  ;;  %v4718_v23 = vrot.slane %v4700_v52, 1  ;;  %v4717_v58 = vrot.slane %v4699_v3, 1 }
 0x331   : > { %v5423_v11 = vpop.eup %5422  ;;  %5434 = vrcp.f32 %v4084_v35  ;;  %v10295_v22 = vpop.permute.xlu0 %4206  ;;  %v4139_v51 = vmul.f32 %v5524_v26, %v11458_v31 }
 0x332   : > { %v5425_v36 = vpop.eup %5424  ;;  %v4085_v62 = vadd.f32 1.0, %v5423_v11  ;;  %5436 = vpow2.f32 %v5279_v53  ;;  %v11459_v53 = vld [vmem:[#allocation12_spill] sm:$0xff] }
 0x333   : > { %v4086_v49 = vadd.f32 1.0, %v5425_v36  ;;  %4666 = vrot.lane.b32.xlu0 %v4640_v44, %s5596_s15  ;;  %v4155_v9 = vrot.slane %v4139_v51, 1  ;;  %v11460_v36 = vld [vmem:[#allocation34_spill] sm:$0xff]  ;;  %v4124_v54 = vmul.f32 %v5525_v47, %v11459_v53 }
 0x334   : > { %4719 = vrot.lane.b32.xlu1 %v4710_v2, %s5596_s15  ;;  %5438 = vrcp.f32 %v4085_v62  ;;  %v10303_v33 = vpop.permute.xlu1 %4212  ;;  %v4123_v2 = vmul.f32 %v5524_v26, %v11459_v53  ;;  %v4762_v62 = vmul.f32 %v9998_v12, %v11460_v36 }
 0x335   : > { %v5427_v14 = vpop.eup %5426  ;;  %5440 = vrcp.f32 %v4086_v49  ;;  %v10305_v7 = vpop.permute.xlu0 %4210  ;;  %v4140_v49 = vmul.f32 %v5525_v47, %v11458_v31 }
 0x336   : > { %v5429_v59 = vpop.eup %5428  ;;  %v4087_v24 = vadd.f32 1.0, %v5427_v14  ;;  %v4761_v14 = vmul.f32 %v10001_v45, %v11460_v36 }
 0x337   : > { %v4088_v30 = vadd.f32 1.0, %v5429_v59  ;;  %4721 = vrot.lane.b32.xlu0 %v4711_v8, %s5596_s15  ;;  %v5526_v8 = vld [vmem:[%s5699_s13 + $0xe8] sm:$0xff]  ;;  %v5527_v59 = vld [vmem:[%s5699_s13 + $0xf0] sm:$0xff] }
 0x338   : > { %4723 = vrot.lane.b32.xlu1 %v4712_v20, %s5596_s15  ;;  %5442 = vrcp.f32 %v4087_v24  ;;  %v10313_v57 = vpop.permute.xlu1 %4267  ;;  %v4141_v32 = vmul.f32 %v5526_v8, %v11458_v31  ;;  %v4142_v24 = vmul.f32 %v5527_v59, %v11458_v31  ;;  %v4126_v51 = vmul.f32 %v5527_v59, %v11459_v53 }
 0x339   : > { %v5431_v25 = vpop.eup %5430  ;;  %5444 = vrcp.f32 %v4088_v30  ;;  %v10315_v19 = vpop.permute.xlu0 %4214 }
 0x33a   : > { %v5433_v27 = vpop.eup %5432  ;;  %v4089_v46 = vadd.f32 1.0, %v5431_v25  ;;  %v5529_v25 = vld [vmem:[%s5699_s13 + $0x100] sm:$0xff]  ;;  %v4157_v26 = vrot.slane %v4141_v32, 1  ;;  %v4766_v32 = vmul.f32 %v10226_v61, %v11460_v36 }
 0x33b   : > { %v5435_v56 = vpop.eup %5434  ;;  %4107 = vst [vmem:[%s7655_s16 + $0x80] sm:$0xff] %v5433_v27  ;;  %4725 = vrot.lane.b32.xlu0 %v4713_v1, %s5596_s15  ;;  %v4171_v1 = vadd.f32 %v4155_v9, %v4123_v2  ;;  %v4144_v27 = vmul.f32 %v5529_v25, %v11458_v31 }
 0x33c   : > { %4727 = vrot.lane.b32.xlu1 %v4714_v28, %s5596_s15  ;;  %v5437_v39 = vpop.eup %5436  ;;  %4108 = vst [vmem:[%s7655_s16 + $0x88] sm:$0xff] %v5435_v56  ;;  %5446 = vrcp.f32 %v4089_v46  ;;  %v4272_v4 = vpop.permute.xlu1 %4271  ;;  %v5528_v28 = vld [vmem:[%s5699_s13 + $0xf8] sm:$0xff]  ;;  %v5530_v46 = vld [vmem:[%s5699_s13 + $0x108] sm:$0xff] }
 0x33d   : > { %v4090_v43 = vadd.f32 1.0, %v5437_v39  ;;  %v10327_v13 = vpop.permute.xlu0 %4269  ;;  %v4143_v5 = vmul.f32 %v5528_v28, %v11458_v31 }
 0x33e   : > { %v5439_v6 = vpop.eup %5438  ;;  %v10331_v10 = vsel %vm416_vm1, %v10327_v13, %v4272_v4 }
 0x33f   : > { %v5441_v41 = vpop.eup %5440  ;;  %4109 = vst [vmem:[%s7655_s16 + $0x90] sm:$0xff] %v5439_v6  ;;  %5448 = vrcp.f32 %v4090_v43  ;;  %4729 = vrot.lane.b32.xlu0 %v4715_v34, %s5596_s15  ;;  %v4125_v34 = vmul.f32 %v5526_v8, %v11459_v53  ;;  %v4156_v43 = vrot.slane %v4140_v49, 1  ;;  %v4763_v6 = vmul.f32 %v10019_v60, %v11460_v36 }
 0x340   : > { %4731 = vrot.lane.b32.xlu1 %v4716_v50, %s5596_s15  ;;  %4110 = vst [vmem:[%s7655_s16 + $0x98] sm:$0xff] %v5441_v41  ;;  %v4276_v38 = vpop.permute.xlu1 %4275  ;;  %v4145_v50 = vmul.f32 %v5530_v46, %v11458_v31  ;;  %v4127_v41 = vmul.f32 %v5528_v28, %v11459_v53  ;;  %v4285_v49 = vsel %vm416_vm1, %v10313_v57, %v10327_v13 }
 0x341   : > { %v4274_v35 = vpop.permute.xlu0 %4273  ;;  %v4172_v59 = vadd.f32 %v4156_v43, %v4124_v54  ;;  %v4765_v28 = vmul.f32 %v10240_v17, %v11460_v36  ;;  %v4217_v57 = vsel %vm416_vm1, %v10259_v16, %v10283_v29  ;;  %v4218_v13 = vsel %vm416_vm1, %v10283_v29, %v10278_v18 }
 0x342   : > { %v5443_v44 = vpop.eup %5442  ;;  %v10339_v48 = vsel %vm416_vm1, %v4272_v4, %v4274_v35  ;;  %v10342_v11 = vsel %vm416_vm1, %v4274_v35, %v4276_v38  ;;  %v4764_v4 = vmul.f32 %v10010_v21, %v11460_v36  ;;  %v4128_v35 = vmul.f32 %v5529_v25, %v11459_v53 }
 0x343   : > { %v5445_v20 = vpop.eup %5444  ;;  %4111 = vst [vmem:[%s7655_s16 + $0xa0] sm:$0xff] %v5443_v44  ;;  %4733 = vrot.lane.b32.xlu0 %v4717_v58, %s5596_s15  ;;  %v4158_v58 = vrot.slane %v4142_v24, 1  ;;  %v4129_v44 = vmul.f32 %v5530_v46, %v11459_v53  ;;  %v4173_v24 = vadd.f32 %v4157_v26, %v4125_v34  ;;  %v11461_v34 = vld [vmem:[#allocation35_spill] sm:$0xff]  ;;  %v4767_v26 = vmul.f32 %v10262_v63, %v11460_v36 }
 0x344   : > { %4735 = vrot.lane.b32.xlu1 %v4718_v23, %s5596_s15  ;;  %4112 = vst [vmem:[%s7655_s16 + $0xa8] sm:$0xff] %v5445_v20  ;;  %v4280_v30 = vpop.permute.xlu1 %4279  ;;  %v4216_v23 = vsel %vm416_vm1, %v10266_v42, %v10259_v16  ;;  %v4161_v20 = vrot.slane %v4145_v50, 1  ;;  %v4768_v16 = vmul.f32 %v10256_v0, %v11460_v36  ;;  %v4821_v29 = vmul.f32 %v10001_v45, %v11461_v34 }
 0x345   : > { %v4278_v52 = vpop.permute.xlu0 %4277  ;;  %v4234_v43 = vadd.f32 %v4218_v13, %v4173_v24  ;;  %v4825_v13 = vmul.f32 %v10240_v17, %v11461_v34 }
 0x346   : > { %v5447_v56 = vpop.eup %5446  ;;  %v10367_v3 = vsel %vm416_vm1, %v4276_v38, %v4278_v52  ;;  %v10370_v39 = vsel %vm416_vm1, %v4278_v52, %v4280_v30  ;;  %v4159_v38 = vrot.slane %v4143_v5, 1  ;;  %v5531_v5 = vld [vmem:[%s5699_s13 + $0x110] sm:$0xff]  ;;  %v4177_v52 = vadd.f32 %v4161_v20, %v4129_v44 }
 0x347   : > { %4113 = vst [vmem:[%s7655_s16 + $0xb0] sm:$0xff] %v5447_v56  ;;  %4779 = vrot.lane.b32.xlu0 %v4761_v14, %s5597_s30  ;;  %v4232_v14 = vadd.f32 %v4216_v23, %v4171_v1  ;;  %v4174_v1 = vadd.f32 %v4158_v58, %v4126_v51  ;;  %v4219_v51 = vsel %vm416_vm1, %v10278_v18, %v10295_v22 }
 0x348   : > { %4781 = vrot.lane.b32.xlu1 %v4762_v62, %s5597_s30  ;;  %v4284_v2 = vpop.permute.xlu1 %4283  ;;  %v4160_v62 = vrot.slane %v4144_v27, 1  ;;  %v4175_v54 = vadd.f32 %v4159_v38, %v4127_v41  ;;  %v4130_v23 = vmul.f32 %v5531_v5, %v11459_v53  ;;  %v4823_v44 = vmul.f32 %v10019_v60, %v11461_v34 }
 0x349   : > { %v5449_v9 = vpop.eup %5448  ;;  %v4282_v47 = vpop.permute.xlu0 %4281  ;;  %v4301_v46 = vadd.f32 %v4285_v49, %v4232_v14  ;;  %v4822_v53 = vmul.f32 %v9998_v12, %v11461_v34  ;;  %v4222_v49 = vsel %vm416_vm1, %v10305_v7, %v10303_v33 }
 0x34a   : > { %4114 = vst [vmem:[%s7655_s16 + $0xb8] sm:$0xff] %v5449_v9  ;;  %v10391_v42 = vsel %vm416_vm1, %v4280_v30, %v4282_v47  ;;  %v10394_v8 = vsel %vm416_vm1, %v4282_v47, %v4284_v2  ;;  %v4146_v30 = vmul.f32 %v5531_v5, %v11458_v31  ;;  %v4176_v27 = vadd.f32 %v4160_v62, %v4128_v35 }
 0x34b   : > { %4783 = vrot.lane.b32.xlu0 %v4763_v6, %s5597_s30  ;;  %v4220_v6 = vsel %vm416_vm1, %v10295_v22, %v10293_v15  ;;  %v4303_v2 = vadd.f32 %v10339_v48, %v4234_v43  ;;  %v4769_v35 = vmul.f32 %v10281_v37, %v11460_v36  ;;  %v4839_v22 = vrot.slane %v4821_v29, 1 }
 0x34c   : > { %4785 = vrot.lane.b32.xlu1 %v4764_v4, %s5597_s30  ;;  %v4330_v25 = vpop.permute.xlu1 %4329  ;;  %v4233_v4 = vadd.f32 %v4217_v57, %v4172_v59  ;;  %v4162_v41 = vrot.slane %v4146_v30, 1  ;;  %v4236_v20 = vadd.f32 %v4220_v6, %v4175_v54  ;;  %v4221_v36 = vsel %vm416_vm1, %v10293_v15, %v10305_v7 }
 0x34d   : > { %v4328_v50 = vpop.permute.xlu0 %4327  ;;  %v4841_v57 = vrot.slane %v4823_v44, 1  ;;  %v4840_v15 = vrot.slane %v4822_v53, 1  ;;  %v4824_v7 = vmul.f32 %v10010_v21, %v11461_v34  ;;  %v4843_v29 = vrot.slane %v4825_v13, 1 }
 0x34e   : > { %v4345_v56 = vsel %vm584_vm2, %v4328_v50, %v4330_v25  ;;  %v4302_v38 = vadd.f32 %v10331_v10, %v4233_v4  ;;  %v4235_v10 = vadd.f32 %v4219_v51, %v4174_v1  ;;  %v4305_v24 = vadd.f32 %v10367_v3, %v4236_v20 }
 0x34f   : > { %v10416_v31 = vadd.f32 %v4345_v56, %v4301_v46  ;;  %4787 = vrot.lane.b32.xlu0 %v4765_v28, %s5597_s30  ;;  %v4238_v1 = vadd.f32 %v4222_v49, %v4177_v52  ;;  %v4223_v3 = vsel %vm416_vm1, %v10303_v33, %v10315_v19  ;;  %v4842_v52 = vrot.slane %v4824_v7, 1 }
 0x350   : > { %4789 = vrot.lane.b32.xlu1 %v4766_v32, %s5597_s30  ;;  %v4334_v58 = vpop.permute.xlu1 %4333  ;;  %v4178_v32 = vadd.f32 %v4162_v41, %v4130_v23  ;;  %v4304_v59 = vadd.f32 %v10342_v11, %v4235_v10  ;;  %v4827_v43 = vmul.f32 %v10262_v63, %v11461_v34  ;;  %v4826_v19 = vmul.f32 %v10226_v61, %v11461_v34 }
 0x351   : > { %v4332_v9 = vpop.permute.xlu0 %4331  ;;  %v4307_v56 = vadd.f32 %v10391_v42, %v4238_v1 }
 0x352   : > { %v4346_v18 = vsel %vm584_vm2, %v4330_v25, %v4332_v9  ;;  %v4347_v62 = vsel %vm584_vm2, %v4332_v9, %v4334_v58  ;;  %v4237_v25 = vadd.f32 %v4221_v36, %v4176_v27  ;;  %v4845_v41 = vrot.slane %v4827_v43, 1 }
 0x353   : > { %v4362_v48 = vadd.f32 %v4346_v18, %v4302_v38  ;;  %v10439_v47 = vadd.f32 %v4347_v62, %v4303_v2  ;;  %4791 = vrot.lane.b32.xlu0 %v4767_v26, %s5597_s30  ;;  %v4239_v26 = vadd.f32 %v4223_v3, %v4178_v32  ;;  %v4844_v2 = vrot.slane %v4826_v19, 1  ;;  %v11462_v32 = vld [vmem:[#allocation41_spill] sm:$0xff] }
 0x354   : > { %4793 = vrot.lane.b32.xlu1 %v4768_v16, %s5597_s30  ;;  %v4338_v14 = vpop.permute.xlu1 %4337  ;;  %v4306_v50 = vadd.f32 %v10370_v39, %v4237_v25  ;;  %v4828_v9 = vmul.f32 %v10256_v0, %v11461_v34  ;;  %v4895_v3 = vmul.f32 %v10226_v61, %v11462_v32 }
 0x355   : > { %v4336_v28 = vpop.permute.xlu0 %4335  ;;  %v4308_v42 = vadd.f32 %v10394_v8, %v4239_v26  ;;  %v4896_v26 = vmul.f32 %v10262_v63, %v11462_v32 }
 0x356   : > { %v4348_v5 = vsel %vm584_vm2, %v4334_v58, %v4336_v28  ;;  %v4349_v30 = vsel %vm584_vm2, %v4336_v28, %v4338_v14  ;;  %v4829_v58 = vmul.f32 %v10281_v37, %v11461_v34  ;;  %v4846_v10 = vrot.slane %v4828_v9, 1 }
 0x357   : > { %v4364_v11 = vadd.f32 %v4348_v5, %v4304_v59  ;;  %v4365_v54 = vadd.f32 %v4349_v30, %v4305_v24  ;;  %4795 = vrot.lane.b32.xlu0 %v4769_v35, %s5597_s30  ;;  %v4893_v5 = vmul.f32 %v10010_v21, %v11462_v32 }
 0x358   : > { %4848 = vrot.lane.b32.xlu1 %v4839_v22, %s5597_s30  ;;  %v4342_v46 = vpop.permute.xlu1 %4341  ;;  %v4847_v62 = vrot.slane %v4829_v58, 1 }
 0x359   : > { %v4340_v16 = vpop.permute.xlu0 %4339 }
 0x35a   : > { %v4350_v4 = vsel %vm584_vm2, %v4338_v14, %v4340_v16  ;;  %v4351_v27 = vsel %vm584_vm2, %v4340_v16, %v4342_v46  ;;  %v4891_v14 = vmul.f32 %v9998_v12, %v11462_v32 }
 0x35b   : > { %v4366_v51 = vadd.f32 %v4350_v4, %v4306_v50  ;;  %v4367_v33 = vadd.f32 %v4351_v27, %v4307_v56  ;;  %4850 = vrot.lane.b32.xlu0 %v4840_v15, %s5597_s30  ;;  %v4897_v4 = vmul.f32 %v10256_v0, %v11462_v32  ;;  %v11463_v27 = vld [vmem:[#allocation16_spill] sm:$0xff] }
 0x35c   : > { %4852 = vrot.lane.b32.xlu1 %v4841_v57, %s5597_s30  ;;  %v4397_v39 = vpop.permute.xlu1 %4396  ;;  %v4951_v58 = vmul.f32 %v9998_v12, %v11463_v27  ;;  %v4953_v12 = vmul.f32 %v10010_v21, %v11463_v27  ;;  %v4955_v21 = vmul.f32 %v10226_v61, %v11463_v27 }
 0x35d   : > { %v4344_v6 = vpop.permute.xlu0 %4343 }
 0x35e   : > { %v4352_v23 = vsel %vm584_vm2, %v4342_v46, %v4344_v6  ;;  %v4952_v6 = vmul.f32 %v10019_v60, %v11463_v27 }
 0x35f   : > { %v4368_v38 = vadd.f32 %v4352_v23, %v4308_v42  ;;  %4854 = vrot.lane.b32.xlu0 %v4842_v52, %s5597_s30  ;;  %v4950_v52 = vmul.f32 %v10001_v45, %v11463_v27 }
 0x360   : > { %4856 = vrot.lane.b32.xlu1 %v4843_v29, %s5597_s30  ;;  %v4401_v35 = vpop.permute.xlu1 %4400 }
 0x361   : > { %v4399_v44 = vpop.permute.xlu0 %4398  ;;  %v4968_v42 = vrot.slane %v4950_v52, 1 }
 0x362   : > { %v4414_v8 = vsel %vm584_vm2, %v4397_v39, %v4399_v44  ;;  %v4415_v18 = vsel %vm584_vm2, %v4399_v44, %v4401_v35  ;;  %v4970_v44 = vrot.slane %v4952_v6, 1  ;;  %v5533_v6 = vld [vmem:[%s5699_s13 + $0x200] sm:$0xff] }
 0x363   : > { %v4430_v22 = vadd.f32 %v4414_v8, %v10416_v31  ;;  %v4431_v53 = vadd.f32 %v4415_v18, %v4362_v48  ;;  %4858 = vrot.lane.b32.xlu0 %v4844_v2, %s5597_s30  ;;  %v4890_v31 = vmul.f32 %v10001_v45, %v11462_v32 }
 0x364   : > { %4860 = vrot.lane.b32.xlu1 %v4845_v41, %s5597_s30  ;;  %v4405_v20 = vpop.permute.xlu1 %4404  ;;  %v4898_v41 = vmul.f32 %v10281_v37, %v11462_v32 }
 0x365   : > { %v4403_v36 = vpop.permute.xlu0 %4402 }
 0x366   : > { %v4416_v49 = vsel %vm584_vm2, %v4401_v35, %v4403_v36  ;;  %v4417_v34 = vsel %vm584_vm2, %v4403_v36, %v4405_v20 }
 0x367   : > { %v4432_v59 = vadd.f32 %v4416_v49, %v10439_v47  ;;  %v4433_v24 = vadd.f32 %v4417_v34, %v4364_v11  ;;  %4862 = vrot.lane.b32.xlu0 %v4846_v10, %s5597_s30  ;;  %v4892_v47 = vmul.f32 %v10019_v60, %v11462_v32  ;;  %v4954_v60 = vmul.f32 %v10240_v17, %v11463_v27 }
 0x368   : > { %4864 = vrot.lane.b32.xlu1 %v4847_v62, %s5597_s30  ;;  %v4409_v48 = vpop.permute.xlu1 %4408  ;;  %v4969_v62 = vrot.slane %v4951_v58, 1  ;;  %v4956_v49 = vmul.f32 %v10262_v63, %v11463_v27 }
 0x369   : > { %v4407_v28 = vpop.permute.xlu0 %4406  ;;  %v4972_v36 = vrot.slane %v4954_v60, 1 }
 0x36a   : > { %v4418_v57 = vsel %vm584_vm2, %v4405_v20, %v4407_v28  ;;  %v4419_v13 = vsel %vm584_vm2, %v4407_v28, %v4409_v48  ;;  %v4958_v28 = vmul.f32 %v10281_v37, %v11463_v27 }
 0x36b   : > { %v4434_v30 = vadd.f32 %v4418_v57, %v4365_v54  ;;  %v4435_v15 = vadd.f32 %v4419_v13, %v4366_v51  ;;  %4908 = vrot.lane.b32.xlu0 %v4890_v31, %s5598_s8  ;;  %v4894_v54 = vmul.f32 %v10240_v17, %v11462_v32  ;;  %v4973_v13 = vrot.slane %v4955_v21, 1 }
 0x36c   : > { %4910 = vrot.lane.b32.xlu1 %v4891_v14, %s5598_s8  ;;  %v4413_v7 = vpop.permute.xlu1 %4412  ;;  %v4971_v14 = vrot.slane %v4953_v12, 1  ;;  %v5535_v12 = vld [vmem:[%s5699_s13 + $0x210] sm:$0xff] }
 0x36d   : > { %v4411_v25 = vpop.permute.xlu0 %4410 }
 0x36e   : > { %v4420_v1 = vsel %vm584_vm2, %v4409_v48, %v4411_v25  ;;  %v4421_v11 = vsel %vm584_vm2, %v4411_v25, %v4413_v7  ;;  %v4974_v48 = vrot.slane %v4956_v49, 1  ;;  %v4976_v25 = vrot.slane %v4958_v28, 1 }
 0x36f   : > { %v4436_v46 = vadd.f32 %v4420_v1, %v4367_v33  ;;  %v4437_v50 = vadd.f32 %v4421_v11, %v4368_v38  ;;  %4912 = vrot.lane.b32.xlu0 %v4892_v47, %s5598_s8 }
 0x370   : > { %4914 = vrot.lane.b32.xlu1 %v4893_v5, %s5598_s8  ;;  %v4459_v56 = vpop.permute.xlu1 %4458  ;;  %v4957_v5 = vmul.f32 %v10256_v0, %v11463_v27  ;;  %v11464_v27 = vld [vmem:[#allocation48_spill] sm:$0xff] }
 0x371   : > { %v4457_v16 = vpop.permute.xlu0 %4456 }
 0x372   : > { %v4474_v29 = vsel %vm752_vm3, %v4457_v16, %v4459_v56  ;;  %v4975_v37 = vrot.slane %v4957_v5, 1 }
 0x373   : > { %v4490_v43 = vadd.f32 %v4474_v29, %v4430_v22  ;;  %4916 = vrot.lane.b32.xlu0 %v4894_v54, %s5598_s8 }
 0x374   : > { %4918 = vrot.lane.b32.xlu1 %v4895_v3, %s5598_s8  ;;  %v4463_v51 = vpop.permute.xlu1 %4462 }
 0x375   : > { %v4461_v33 = vpop.permute.xlu0 %4460 }
 0x376   : > { %v4475_v19 = vsel %vm752_vm3, %v4459_v56, %v4461_v33  ;;  %v4476_v39 = vsel %vm752_vm3, %v4461_v33, %v4463_v51 }
 0x377   : > { %v4491_v23 = vadd.f32 %v4475_v19, %v4431_v53  ;;  %v4492_v45 = vadd.f32 %v4476_v39, %v4432_v59  ;;  %4920 = vrot.lane.b32.xlu0 %v4896_v26, %s5598_s8  ;;  %v11465_v26 = vld [vmem:[#allocation25_spill] sm:$0xff] }
 0x378   : > { %4922 = vrot.lane.b32.xlu1 %v4897_v4, %s5598_s8  ;;  %v4467_v38 = vpop.permute.xlu1 %4466  ;;  %v5532_v4 = vld [vmem:[%s5699_s13 + $0x1f8] sm:$0xff]  ;;  %v4595_v49 = vmul.f32 %v10240_v17, %v11465_v26 }
 0x379   : > { %v4465_v2 = vpop.permute.xlu0 %4464  ;;  %v4575_v52 = vmul.f32 %v5532_v4, %v11464_v27 }
 0x37a   : > { %v4477_v9 = vsel %vm752_vm3, %v4463_v51, %v4465_v2  ;;  %v4478_v35 = vsel %vm752_vm3, %v4465_v2, %v4467_v38  ;;  %v4591_v51 = vmul.f32 %v5532_v4, %v11465_v26  ;;  %v4611_v5 = vrot.slane %v4595_v49, 1 }
 0x37b   : > { %v4493_v8 = vadd.f32 %v4477_v9, %v4433_v24  ;;  %v4494_v18 = vadd.f32 %v4478_v35, %v4434_v30  ;;  %4924 = vrot.lane.b32.xlu0 %v4898_v41, %s5598_s8  ;;  %v4592_v41 = vmul.f32 %v5533_v6, %v11465_v26 }
 0x37c   : > { %4977 = vrot.lane.b32.xlu1 %v4968_v42, %s5598_s8  ;;  %v4471_v22 = vpop.permute.xlu1 %4470  ;;  %v4607_v35 = vrot.slane %v4591_v51, 1 }
 0x37d   : > { %v4469_v53 = vpop.permute.xlu0 %4468 }
 0x37e   : > { %v4479_v10 = vsel %vm752_vm3, %v4467_v38, %v4469_v53  ;;  %v4480_v20 = vsel %vm752_vm3, %v4469_v53, %v4471_v22  ;;  %v5534_v38 = vld [vmem:[%s5699_s13 + $0x208] sm:$0xff]  ;;  %v4578_v53 = vmul.f32 %v5535_v12, %v11464_v27 }
 0x37f   : > { %v4495_v34 = vadd.f32 %v4479_v10, %v4435_v15  ;;  %v4496_v32 = vadd.f32 %v4480_v20, %v4436_v46  ;;  %4979 = vrot.lane.b32.xlu0 %v4969_v62, %s5598_s8  ;;  %v4577_v2 = vmul.f32 %v5534_v38, %v11464_v27  ;;  %v4579_v10 = vmul.f32 %v10240_v17, %v11464_v27 }
 0x380   : > { %4981 = vrot.lane.b32.xlu1 %v4970_v44, %s5598_s8  ;;  %v4593_v44 = vmul.f32 %v5534_v38, %v11465_v26  ;;  %v4596_v17 = vmul.f32 %v10226_v61, %v11465_v26 }
 0x381   : > { %v4473_v24 = vpop.permute.xlu0 %4472 }
 0x382   : > { %v4526_v59 = vpop.permute.xlu1 %4525  ;;  %v4481_v31 = vsel %vm752_vm3, %v4471_v22, %v4473_v24  ;;  %v4594_v22 = vmul.f32 %v5535_v12, %v11465_v26  ;;  %v4609_v24 = vrot.slane %v4593_v44, 1 }
 0x383   : > { %v4497_v57 = vadd.f32 %v4481_v31, %v4437_v50  ;;  %4983 = vrot.lane.b32.xlu0 %v4971_v14, %s5598_s8  ;;  %v4580_v31 = vmul.f32 %v10226_v61, %v11464_v27 }
 0x384   : > { %4985 = vrot.lane.b32.xlu1 %v4972_v36, %s5598_s8  ;;  %v4608_v36 = vrot.slane %v4592_v41, 1  ;;  %v4610_v28 = vrot.slane %v4594_v22, 1 }
 0x385   : > { %v4528_v15 = vpop.permute.xlu0 %4527 }
 0x386   : > { %v4530_v30 = vpop.permute.xlu1 %4529  ;;  %v4543_v47 = vsel %vm752_vm3, %v4526_v59, %v4528_v15 }
 0x387   : > { %v4544_v7 = vsel %vm752_vm3, %v4528_v15, %v4530_v30  ;;  %v4559_v1 = vadd.f32 %v4543_v47, %v4490_v43  ;;  %4987 = vrot.lane.b32.xlu0 %v4973_v13, %s5598_s8 }
 0x388   : > { %4989 = vrot.lane.b32.xlu1 %v4974_v48, %s5598_s8  ;;  %v4560_v11 = vadd.f32 %v4544_v7, %v4491_v23  ;;  %v4576_v23 = vmul.f32 %v5533_v6, %v11464_v27 }
 0x389   : > { %v4532_v46 = vpop.permute.xlu0 %4531  ;;  %v4583_v58 = vadd.f32 %v4575_v52, %v4559_v1 }
 0x38a   : > { %v4534_v3 = vpop.permute.xlu1 %4533  ;;  %v4545_v50 = vsel %vm752_vm3, %v4530_v30, %v4532_v46  ;;  %v4597_v30 = vmul.f32 %v10262_v63, %v11465_v26 }
 0x38b   : > { %v4546_v54 = vsel %vm752_vm3, %v4532_v46, %v4534_v3  ;;  %v4561_v56 = vadd.f32 %v4545_v50, %v4492_v45  ;;  %4991 = vrot.lane.b32.xlu0 %v4975_v37, %s5598_s8  ;;  %v4623_v21 = vadd.f32 %v4607_v35, %v4583_v58  ;;  %v4582_v50 = vmul.f32 %v10256_v0, %v11464_v27 }
 0x38c   : > { %4993 = vrot.lane.b32.xlu1 %v4976_v25, %s5598_s8  ;;  %v4562_v16 = vadd.f32 %v4546_v54, %v4493_v8  ;;  %v4613_v61 = vrot.slane %v4597_v30, 1 }
 0x38d   : > { %v4536_v43 = vpop.permute.xlu0 %4535  ;;  %v4585_v14 = vadd.f32 %v4577_v2, %v4561_v56  ;;  %v4612_v56 = vrot.slane %v4596_v17, 1 }
 0x38e   : > { %v4538_v29 = vpop.permute.xlu1 %4537  ;;  %v4547_v33 = vsel %vm752_vm3, %v4534_v3, %v4536_v43  ;;  %v4586_v15 = vadd.f32 %v4578_v53, %v4562_v16 }
 0x38f   : > { %v4548_v19 = vsel %vm752_vm3, %v4536_v43, %v4538_v29  ;;  %v4563_v39 = vadd.f32 %v4547_v33, %v4494_v18  ;;  %v4625_v25 = vadd.f32 %v4609_v24, %v4585_v14 }
 0x390   : > { %v4564_v42 = vadd.f32 %v4548_v19, %v4495_v34  ;;  %v4584_v34 = vadd.f32 %v4576_v23, %v4560_v11  ;;  %v4626_v4 = vadd.f32 %v4610_v28, %v4586_v15 }
 0x391   : > { %v4540_v9 = vpop.permute.xlu0 %4539  ;;  %v4587_v47 = vadd.f32 %v4579_v10, %v4563_v39 }
 0x392   : > { %v4542_v45 = vpop.permute.xlu1 %4541  ;;  %v4549_v60 = vsel %vm752_vm3, %v4538_v29, %v4540_v9  ;;  %v4624_v7 = vadd.f32 %v4608_v36, %v4584_v34  ;;  %v4588_v16 = vadd.f32 %v4580_v31, %v4564_v42 }
 0x393   : > { %v4550_v8 = vsel %vm752_vm3, %v4540_v9, %v4542_v45  ;;  %v4565_v18 = vadd.f32 %v4549_v60, %v4496_v32  ;;  %v4627_v52 = vadd.f32 %v4611_v5, %v4587_v47 }
 0x394   : > { %v4566_v62 = vadd.f32 %v4550_v8, %v4497_v57  ;;  %v4581_v57 = vmul.f32 %v10262_v63, %v11464_v27  ;;  %v4598_v63 = vmul.f32 %v10256_v0, %v11465_v26  ;;  %v4628_v27 = vadd.f32 %v4612_v56, %v4588_v16 }
 0x395   : > { %v4651_v59 = vpop.permute.xlu0 %4650 }
 0x396   : > { %v4653_v20 = vpop.permute.xlu1 %4652  ;;  %v4589_v29 = vadd.f32 %v4581_v57, %v4565_v18  ;;  %v4590_v23 = vadd.f32 %v4582_v50, %v4566_v62  ;;  %v4614_v58 = vrot.slane %v4598_v63, 1 }
 0x397   : > { %v4668_v32 = vsel %vm416_vm1, %v4651_v59, %v4653_v20 }
 0x398   : > { %v4684_v48 = vadd.f32 %v4668_v32, %v4623_v21  ;;  %v4629_v45 = vadd.f32 %v4613_v61, %v4589_v29  ;;  %v4630_v9 = vadd.f32 %v4614_v58, %v4590_v23 }
 0x399   : > { %v4655_v1 = vpop.permute.xlu0 %4654 }
 0x39a   : > { %v4657_v13 = vpop.permute.xlu1 %4656  ;;  %v4669_v11 = vsel %vm416_vm1, %v4653_v20, %v4655_v1 }
 0x39b   : > { %v4670_v37 = vsel %vm416_vm1, %v4655_v1, %v4657_v13  ;;  %v4685_v3 = vadd.f32 %v4669_v11, %v4624_v7 }
 0x39c   : > { %v4686_v46 = vadd.f32 %v4670_v37, %v4625_v25 }
 0x39d   : > { %v4659_v43 = vpop.permute.xlu0 %4658 }
 0x39e   : > { %v4661_v54 = vpop.permute.xlu1 %4660  ;;  %v4671_v51 = vsel %vm416_vm1, %v4657_v13, %v4659_v43 }
 0x39f   : > { %v4672_v33 = vsel %vm416_vm1, %v4659_v43, %v4661_v54  ;;  %v4687_v19 = vadd.f32 %v4671_v51, %v4626_v4 }
 0x3a0   : > { %v4688_v39 = vadd.f32 %v4672_v33, %v4627_v52 }
 0x3a1   : > { %v4663_v41 = vpop.permute.xlu0 %4662 }
 0x3a2   : > { %v4665_v6 = vpop.permute.xlu1 %4664  ;;  %v4673_v38 = vsel %vm416_vm1, %v4661_v54, %v4663_v41 }
 0x3a3   : > { %v4674_v0 = vsel %vm416_vm1, %v4663_v41, %v4665_v6  ;;  %v4689_v26 = vadd.f32 %v4673_v38, %v4628_v27 }
 0x3a4   : > { %v4690_v42 = vadd.f32 %v4674_v0, %v4629_v45 }
 0x3a5   : > { %v4667_v35 = vpop.permute.xlu0 %4666 }
 0x3a6   : > { %v4720_v2 = vpop.permute.xlu1 %4719  ;;  %v4675_v44 = vsel %vm416_vm1, %v4665_v6, %v4667_v35 }
 0x3a7   : > { %v4691_v60 = vadd.f32 %v4675_v44, %v4630_v9 }
 0x3a9   : > { %v4722_v18 = vpop.permute.xlu0 %4721 }
 0x3aa   : > { %v4724_v8 = vpop.permute.xlu1 %4723  ;;  %v4737_v62 = vsel %vm416_vm1, %v4720_v2, %v4722_v18 }
 0x3ab   : > { %v4738_v12 = vsel %vm416_vm1, %v4722_v18, %v4724_v8  ;;  %v4753_v22 = vadd.f32 %v4737_v62, %v4684_v48 }
 0x3ac   : > { %v4754_v53 = vadd.f32 %v4738_v12, %v4685_v3 }
 0x3ad   : > { %v4726_v20 = vpop.permute.xlu0 %4725 }
 0x3ae   : > { %v4728_v10 = vpop.permute.xlu1 %4727  ;;  %v4739_v36 = vsel %vm416_vm1, %v4724_v8, %v4726_v20 }
 0x3af   : > { %v4740_v49 = vsel %vm416_vm1, %v4726_v20, %v4728_v10  ;;  %v4755_v34 = vadd.f32 %v4739_v36, %v4686_v46 }
 0x3b0   : > { %v4756_v14 = vadd.f32 %v4740_v49, %v4687_v19 }
 0x3b1   : > { %v4730_v59 = vpop.permute.xlu0 %4729 }
 0x3b2   : > { %v4732_v21 = vpop.permute.xlu1 %4731  ;;  %v4741_v24 = vsel %vm416_vm1, %v4728_v10, %v4730_v59 }
 0x3b3   : > { %v4742_v32 = vsel %vm416_vm1, %v4730_v59, %v4732_v21  ;;  %v4757_v31 = vadd.f32 %v4741_v24, %v4688_v39 }
 0x3b4   : > { %v4758_v28 = vadd.f32 %v4742_v32, %v4689_v26 }
 0x3b5   : > { %v4734_v13 = vpop.permute.xlu0 %4733 }
 0x3b6   : > { %v4736_v57 = vpop.permute.xlu1 %4735  ;;  %v4743_v48 = vsel %vm416_vm1, %v4732_v21, %v4734_v13 }
 0x3b7   : > { %v4744_v5 = vsel %vm416_vm1, %v4734_v13, %v4736_v57  ;;  %v4759_v17 = vadd.f32 %v4743_v48, %v4690_v42 }
 0x3b8   : > { %v4760_v30 = vadd.f32 %v4744_v5, %v4691_v60 }
 0x3b9   : > { %v4780_v47 = vpop.permute.xlu0 %4779 }
 0x3ba   : > { %v4782_v15 = vpop.permute.xlu1 %4781 }
 0x3bb   : > { %v4797_v27 = vsel %vm584_vm2, %v4780_v47, %v4782_v15 }
 0x3bc   : > { %v4813_v0 = vadd.f32 %v4797_v27, %v4753_v22 }
 0x3bd   : > { %v4784_v25 = vpop.permute.xlu0 %4783 }
 0x3be   : > { %v4786_v7 = vpop.permute.xlu1 %4785  ;;  %v4798_v41 = vsel %vm584_vm2, %v4782_v15, %v4784_v25 }
 0x3bf   : > { %v4799_v58 = vsel %vm584_vm2, %v4784_v25, %v4786_v7  ;;  %v4814_v35 = vadd.f32 %v4798_v41, %v4754_v53 }
 0x3c0   : > { %v4815_v62 = vadd.f32 %v4799_v58, %v4755_v34 }
 0x3c1   : > { %v4788_v11 = vpop.permute.xlu0 %4787 }
 0x3c2   : > { %v4790_v1 = vpop.permute.xlu1 %4789  ;;  %v4800_v38 = vsel %vm584_vm2, %v4786_v7, %v4788_v11 }
 0x3c3   : > { %v4801_v26 = vsel %vm584_vm2, %v4788_v11, %v4790_v1  ;;  %v4816_v12 = vadd.f32 %v4800_v38, %v4756_v14 }
 0x3c4   : > { %v4817_v20 = vadd.f32 %v4801_v26, %v4757_v31 }
 0x3c5   : > { %v4792_v3 = vpop.permute.xlu0 %4791 }
 0x3c6   : > { %v4794_v37 = vpop.permute.xlu1 %4793  ;;  %v4802_v44 = vsel %vm584_vm2, %v4790_v1, %v4792_v3 }
 0x3c7   : > { %v4803_v60 = vsel %vm584_vm2, %v4792_v3, %v4794_v37  ;;  %v4818_v59 = vadd.f32 %v4802_v44, %v4758_v28 }
 0x3c8   : > { %v4819_v53 = vadd.f32 %v4803_v60, %v4759_v17 }
 0x3c9   : > { %v4796_v50 = vpop.permute.xlu0 %4795 }
 0x3ca   : > { %v4849_v46 = vpop.permute.xlu1 %4848  ;;  %v4804_v8 = vsel %vm584_vm2, %v4794_v37, %v4796_v50 }
 0x3cb   : > { %v4820_v24 = vadd.f32 %v4804_v8, %v4760_v30 }
 0x3cd   : > { %v4851_v56 = vpop.permute.xlu0 %4850 }
 0x3ce   : > { %v4853_v54 = vpop.permute.xlu1 %4852  ;;  %v4866_v42 = vsel %vm584_vm2, %v4849_v46, %v4851_v56 }
 0x3cf   : > { %v4867_v2 = vsel %vm584_vm2, %v4851_v56, %v4853_v54  ;;  %v4882_v36 = vadd.f32 %v4866_v42, %v4813_v0 }
 0x3d0   : > { %v4883_v49 = vadd.f32 %v4867_v2, %v4814_v35 }
 0x3d1   : > { %v4855_v63 = vpop.permute.xlu0 %4854 }
 0x3d2   : > { %v4857_v61 = vpop.permute.xlu1 %4856  ;;  %v4868_v21 = vsel %vm584_vm2, %v4853_v54, %v4855_v63 }
 0x3d3   : > { %v4869_v32 = vsel %vm584_vm2, %v4855_v63, %v4857_v61  ;;  %v4884_v15 = vadd.f32 %v4868_v21, %v4815_v62 }
 0x3d4   : > { %v4885_v28 = vadd.f32 %v4869_v32, %v4816_v12 }
 0x3d5   : > { %v4859_v29 = vpop.permute.xlu0 %4858 }
 0x3d6   : > { %v4861_v16 = vpop.permute.xlu1 %4860  ;;  %v4870_v13 = vsel %vm584_vm2, %v4857_v61, %v4859_v29 }
 0x3d7   : > { %v4871_v17 = vsel %vm584_vm2, %v4859_v29, %v4861_v16  ;;  %v4886_v1 = vadd.f32 %v4870_v13, %v4817_v20 }
 0x3d9   : > { %v4863_v52 = vpop.permute.xlu0 %4862 }
 0x3da   : > { %v4865_v4 = vpop.permute.xlu1 %4864  ;;  %v4872_v11 = vsel %vm584_vm2, %v4861_v16, %v4863_v52 }
 0x3db   : > { %v4873_v37 = vsel %vm584_vm2, %v4863_v52, %v4865_v4 }
 0x3dc   : > { %v4889_v27 = vadd.f32 %v4873_v37, %v4820_v24 }
 0x3dd   : > { %v4909_v51 = vpop.permute.xlu0 %4908 }
 0x3de   : > { %v4911_v43 = vpop.permute.xlu1 %4910 }
 0x3df   : > { %v4926_v10 = vsel %vm752_vm3, %v4909_v51, %v4911_v43 }
 0x3e0   : > { %v4942_v48 = vadd.f32 %v4926_v10, %v4882_v36 }
 0x3e1   : > { %v4913_v19 = vpop.permute.xlu0 %4912 }
 0x3e2   : > { %v4915_v33 = vpop.permute.xlu1 %4914  ;;  %v4927_v22 = vsel %vm752_vm3, %v4911_v43, %v4913_v19  ;;  %v4887_v43 = vadd.f32 %v4871_v17, %v4818_v59 }
 0x3e3   : > { %v4928_v34 = vsel %vm752_vm3, %v4913_v19, %v4915_v33  ;;  %v4943_v14 = vadd.f32 %v4927_v22, %v4883_v49 }
 0x3e4   : > { %v4944_v3 = vadd.f32 %v4928_v34, %v4884_v15 }
 0x3e5   : > { %v4917_v6 = vpop.permute.xlu0 %4916 }
 0x3e6   : > { %v4919_v39 = vpop.permute.xlu1 %4918  ;;  %v4929_v31 = vsel %vm752_vm3, %v4915_v33, %v4917_v6 }
 0x3e7   : > { %v4930_v50 = vsel %vm752_vm3, %v4917_v6, %v4919_v39  ;;  %v4945_v54 = vadd.f32 %v4929_v31, %v4885_v28  ;;  %v4888_v6 = vadd.f32 %v4872_v11, %v4819_v53 }
 0x3e8   : > { %v4946_v41 = vadd.f32 %v4930_v50, %v4886_v1 }
 0x3e9   : > { %v4921_v45 = vpop.permute.xlu0 %4920 }
 0x3ea   : > { %v10607_v23 = vpop.permute.xlu1 %4922  ;;  %v4931_v29 = vsel %vm752_vm3, %v4919_v39, %v4921_v45 }
 0x3eb   : > { %v4932_v58 = vsel %vm752_vm3, %v4921_v45, %v10607_v23 }
 0x3ec   : > { %v4948_v12 = vadd.f32 %v4932_v58, %v4888_v6 }
 0x3ed   : > { %v4925_v18 = vpop.permute.xlu0 %4924 }
 0x3ee   : > { %v4978_v9 = vpop.permute.xlu1 %4977  ;;  %v4933_v35 = vsel %vm752_vm3, %v10607_v23, %v4925_v18 }
 0x3ef   : > { %v4949_v20 = vadd.f32 %v4933_v35, %v4889_v27 }
 0x3f1   : > { %v4980_v5 = vpop.permute.xlu0 %4979 }
 0x3f2   : > { %v4982_v57 = vpop.permute.xlu1 %4981  ;;  %v4995_v47 = vsel %vm752_vm3, %v4978_v9, %v4980_v5  ;;  %v4947_v9 = vadd.f32 %v4931_v29, %v4887_v43 }
 0x3f3   : > { %v4996_v7 = vsel %vm752_vm3, %v4980_v5, %v4982_v57  ;;  %v5011_v30 = vadd.f32 %v4995_v47, %v4942_v48 }
 0x3f4   : > { %v5012_v25 = vadd.f32 %v4996_v7, %v4943_v14 }
 0x3f5   : > { %v5019_v56 = vmul.f32 %v5011_v30, %v11455_v40  ;;  %v4984_v63 = vpop.permute.xlu0 %4983 }
 0x3f6   : > { %v4986_v46 = vpop.permute.xlu1 %4985  ;;  %v5020_v61 = vmul.f32 %v5012_v25, %v11455_v40  ;;  %v4997_v51 = vsel %vm752_vm3, %v4982_v57, %v4984_v63 }
 0x3f7   : > { %v4998_v33 = vsel %vm752_vm3, %v4984_v63, %v4986_v46  ;;  %v5027_v16 = vadd.f32 %v5019_v56, %v11456_v55  ;;  %v5013_v52 = vadd.f32 %v4997_v51, %v4944_v3 }
 0x3f8   : > { %v5028_v4 = vadd.f32 %v5020_v61, %v11456_v55  ;;  %v5014_v19 = vadd.f32 %v4998_v33, %v4945_v54 }
 0x3f9   : > { %v5289_v0 = vmul.f32 -1.442695, %v5027_v16  ;;  %v5021_v39 = vmul.f32 %v5013_v52, %v11455_v40  ;;  %v4988_v2 = vpop.permute.xlu0 %4987 }
 0x3fa   : > { %v4990_v38 = vpop.permute.xlu1 %4989  ;;  %v5290_v26 = vmul.f32 -1.442695, %v5028_v4  ;;  %v5022_v42 = vmul.f32 %v5014_v19, %v11455_v40  ;;  %v4999_v44 = vsel %vm752_vm3, %v4986_v46, %v4988_v2 }
 0x3fb   : > { %v5000_v60 = vsel %vm752_vm3, %v4988_v2, %v4990_v38  ;;  %5450 = vpow2.f32 %v5289_v0  ;;  %v5029_v8 = vadd.f32 %v5021_v39, %v11456_v55  ;;  %v5015_v62 = vadd.f32 %v4999_v44, %v4946_v41 }
 0x3fc   : > { %v5030_v45 = vadd.f32 %v5022_v42, %v11456_v55  ;;  %5452 = vpow2.f32 %v5290_v26  ;;  %v5016_v10 = vadd.f32 %v5000_v60, %v4947_v9 }
 0x3fd   : > { %v5291_v36 = vmul.f32 -1.442695, %v5029_v8  ;;  %v5023_v21 = vmul.f32 %v5015_v62, %v11455_v40  ;;  %v4992_v23 = vpop.permute.xlu0 %4991 }
 0x3fe   : > { %v4994_v22 = vpop.permute.xlu1 %4993  ;;  %v5292_v49 = vmul.f32 -1.442695, %v5030_v45  ;;  %v5024_v18 = vmul.f32 %v5016_v10, %v11455_v40  ;;  %v5001_v59 = vsel %vm752_vm3, %v4990_v38, %v4992_v23 }
 0x3ff   : > { %v5002_v53 = vsel %vm752_vm3, %v4992_v23, %v4994_v22  ;;  %5454 = vpow2.f32 %v5291_v36  ;;  %v5031_v24 = vadd.f32 %v5023_v21, %v11456_v55  ;;  %v5017_v32 = vadd.f32 %v5001_v59, %v4948_v12 }
 0x400   : > { %v5018_v57 = vadd.f32 %v5002_v53, %v4949_v20  ;;  %5456 = vpow2.f32 %v5292_v49  ;;  %v5032_v13 = vadd.f32 %v5024_v18, %v11456_v55 }
 0x401   : > { %v5293_v48 = vmul.f32 -1.442695, %v5031_v24  ;;  %v5025_v34 = vmul.f32 %v5017_v32, %v11455_v40 }
 0x402   : > { %v5026_v14 = vmul.f32 %v5018_v57, %v11455_v40  ;;  %v5294_v5 = vmul.f32 -1.442695, %v5032_v13 }
 0x403   : > { %5458 = vpow2.f32 %v5293_v48  ;;  %v5033_v15 = vadd.f32 %v5025_v34, %v11456_v55 }
 0x404   : > { %v5034_v31 = vadd.f32 %v5026_v14, %v11456_v55  ;;  %5460 = vpow2.f32 %v5294_v5 }
 0x405   : > { %v5451_v47 = vpop.eup %5450  ;;  %v5295_v7 = vmul.f32 -1.442695, %v5033_v15 }
 0x406   : > { %v5453_v28 = vpop.eup %5452  ;;  %v5059_v17 = vadd.f32 1.0, %v5451_v47  ;;  %v5296_v30 = vmul.f32 -1.442695, %v5034_v31 }
 0x407   : > { %v5060_v25 = vadd.f32 1.0, %v5453_v28  ;;  %5462 = vpow2.f32 %v5295_v7 }
 0x408   : > { %5464 = vrcp.f32 %v5059_v17 }
 0x409   : > { %v5455_v1 = vpop.eup %5454  ;;  %5466 = vrcp.f32 %v5060_v25 }
 0x40a   : > { %v5457_v11 = vpop.eup %5456  ;;  %v5061_v40 = vadd.f32 1.0, %v5455_v1  ;;  %5468 = vpow2.f32 %v5296_v30 }
 0x40b   : > { %v5062_v37 = vadd.f32 1.0, %v5457_v11 }
 0x40c   : > { %5470 = vrcp.f32 %v5061_v40 }
 0x40d   : > { %v5459_v3 = vpop.eup %5458  ;;  %5472 = vrcp.f32 %v5062_v37 }
 0x40e   : > { %v5461_v55 = vpop.eup %5460  ;;  %v5063_v46 = vadd.f32 1.0, %v5459_v3 }
 0x40f   : > { %v5064_v50 = vadd.f32 1.0, %v5461_v55 }
 0x410   : > { %5474 = vrcp.f32 %v5063_v46 }
 0x411   : > { %v5463_v54 = vpop.eup %5462  ;;  %5476 = vrcp.f32 %v5064_v50 }
 0x412   : > { %v5465_v56 = vpop.eup %5464  ;;  %v5065_v61 = vadd.f32 1.0, %v5463_v54 }
 0x413   : > { %v5467_v63 = vpop.eup %5466  ;;  %5083 = vst [vmem:[%s7655_s16 + $0xc0] sm:$0x7f] %v5465_v56 }
 0x414   : > { %v5469_v43 = vpop.eup %5468  ;;  %5084 = vst [vmem:[%s7655_s16 + $0xc8] sm:$0x7f] %v5467_v63  ;;  %5478 = vrcp.f32 %v5065_v61 }
 0x415   : > { %v5066_v29 = vadd.f32 1.0, %v5469_v43 }
 0x416   : > { %v5471_v51 = vpop.eup %5470 }
 0x417   : > { %v5473_v33 = vpop.eup %5472  ;;  %5085 = vst [vmem:[%s7655_s16 + $0xd0] sm:$0x7f] %v5471_v51  ;;  %5480 = vrcp.f32 %v5066_v29 }
 0x418   : > { %5086 = vst [vmem:[%s7655_s16 + $0xd8] sm:$0x7f] %v5473_v33 }
 0x41a   : > { %v5475_v16 = vpop.eup %5474 }
 0x41b   : > { %v5477_v4 = vpop.eup %5476  ;;  %5087 = vst [vmem:[%s7655_s16 + $0xe0] sm:$0x7f] %v5475_v16 }
 0x41c   : > { %5088 = vst [vmem:[%s7655_s16 + $0xe8] sm:$0x7f] %v5477_v4 }
 0x41e   : > { %v5479_v52 = vpop.eup %5478 }
 0x41f   : > { %5089 = vst [vmem:[%s7655_s16 + $0xf0] sm:$0x7f] %v5479_v52 }
 0x421   : > { %v5481_v19 = vpop.eup %5480 }
 0x422   : > { %5090 = vst [vmem:[%s7655_s16 + $0xf8] sm:$0x7f] %v5481_v19 }
 0x423 PF: > { %s17_s23 = sadd.s32 1, %s5593_s23   ;;  %s11466_s19 = smov %s5585_s21 }
 0x424   : > { %p14_p4 = scmp.ge.s32.totalorder %s17_s23, 18   ;;  %s11467_s20 = smov %s5589_s22 }
 0x425   : > { %s11468_s21 = smov %s11471_s2  ;;  %s11469_s22 = smov %s11475_s24 }
 0x426   :  { %16 = sbr.rel (!%p14_p4) target bundleno = 6 (0x6), region = 72 }
 0x42d   :  { %5120 = vsyncpa [#allocation5], 1 }
 0x42e   :  { %5122 = vsyncpa [#allocation5 + $0x1], 1 }

</bundles_post_ra>
